<compile_context>
chip_gen: v7x
topology: tpu7x:2x2x1
jax: 0.10.0
libtpu: 0.0.40
codegen_flags: <defaults>
</compile_context>

<pallas_src>
import math
from functools import partial

import jax
import jax.numpy as jnp
from jax import lax
from jax.experimental import pallas as pl
from jax.experimental.pallas import tpu as pltpu


# ----------------------------- in-kernel helpers -----------------------------

def _layernorm(x, g, b, eps):
    mu = jnp.mean(x, axis=-1, keepdims=True)
    var = jnp.mean((x - mu) ** 2, axis=-1, keepdims=True)
    return (x - mu) * lax.rsqrt(var + eps) * g + b


def _gelu(x):
    # GPT-2 tanh-approximation gelu in f32 (tanh lands on the EUP slot).
    return 0.5 * x * (1.0 + jnp.tanh(math.sqrt(2.0 / math.pi) * (x + 0.044715 * x ** 3)))


def _pick_tile(total, max_tile, quantum=128):
    """Largest multiple of `quantum` that divides `total` and is <= max_tile."""
    if total <= max_tile:
        return total
    best = None
    t = quantum
    while t <= max_tile:
        if total % t == 0:
            best = t
        t += quantum
    return best if best is not None else total


# ----------------------------- fused Block kernel -----------------------------

def gpt2_block_kernel(x_ref,
                      ln1_g, ln1_b, w_qkv, b_qkv, w_proj, b_proj,
                      ln2_g, ln2_b, w_fc_t, b_fc, w_out, b_out,
                      lnf_g, lnf_b,
                      o_ref, kv_ref,
                      k_sc, v_sc, m_sc, l_sc, acc_sc,
                      *, n_head, eps, kv_tile, ffn_tile, fuse_ln_f):
    x = x_ref[0]                                          # (S, D) f32
    S, D = x.shape
    hd = D // n_head
    n_kv = S // kv_tile

    # ---------------- attention (flash-style over KV tiles) ----------------
    h1 = _layernorm(x, ln1_g[0], ln1_b[0], eps)
    qkv = jnp.dot(h1.astype(jnp.bfloat16), w_qkv[...],
                  preferred_element_type=jnp.float32) + b_qkv[0]      # (S, 3D) f32
    q = qkv[:, 0 * D:1 * D]
    k = qkv[:, 1 * D:2 * D]
    v = qkv[:, 2 * D:3 * D]

    # presents: single lane-dense bf16 store in (S, D) layout; head split stays in XLA.
    kv_ref[0, 0] = k.astype(jnp.bfloat16)
    kv_ref[0, 1] = v.astype(jnp.bfloat16)

    # head split (S, D) -> (H, S, hd); 1/sqrt(hd) folded into q before the bf16 cast.
    # TODO(synk): keep an (S, H*hd) layout end-to-end to remove these XLU transposes.
    scale = jnp.float32(1.0 / math.sqrt(hd))
    qh = (q * scale).reshape(S, n_head, hd).transpose(1, 0, 2).astype(jnp.bfloat16)
    k_sc[...] = k.reshape(S, n_head, hd).transpose(1, 0, 2).astype(jnp.bfloat16)
    v_sc[...] = v.reshape(S, n_head, hd).transpose(1, 0, 2).astype(jnp.bfloat16)

    m_sc[...] = jnp.full_like(m_sc, -jnp.inf)
    l_sc[...] = jnp.zeros_like(l_sc)
    acc_sc[...] = jnp.zeros_like(acc_sc)

    row = lax.broadcasted_iota(jnp.int32, (S, kv_tile), 0)   # query position
    col = lax.broadcasted_iota(jnp.int32, (S, kv_tile), 1)   # key position within tile

    @pl.loop(0, n_kv)
    def _(t):
        c0 = pl.multiple_of(t * kv_tile, kv_tile)
        k_t = k_sc[:, pl.ds(c0, kv_tile), :]                  # (H, tk, hd) bf16
        v_t = v_sc[:, pl.ds(c0, kv_tile), :]
        s = jnp.einsum('hqd,hkd->hqk', qh, k_t,
                       preferred_element_type=jnp.float32)    # (H, S, tk) f32
        causal = ((col + c0) <= row)[None, :, :]
        s = jnp.where(causal, s, jnp.float32(-1e4))           # HF GPT-2 masking convention
        m_prev = m_sc[...]
        m_new = jnp.maximum(m_prev, jnp.max(s, axis=-1, keepdims=True))
        alpha = jnp.exp(m_prev - m_new)
        p = jnp.exp(s - m_new)
        l_sc[...] = alpha * l_sc[...] + jnp.sum(p, axis=-1, keepdims=True)
        acc_sc[...] = alpha * acc_sc[...] + jnp.einsum(
            'hqk,hkd->hqd', p.astype(jnp.bfloat16), v_t,
            preferred_element_type=jnp.float32)
        m_sc[...] = m_new

    attn = acc_sc[...] * pl.reciprocal(l_sc[...], approx=True)   # (H, S, hd) f32
    a = attn.transpose(1, 0, 2).reshape(S, D)
    a = jnp.dot(a.astype(jnp.bfloat16), w_proj[...],
                preferred_element_type=jnp.float32) + b_proj[0]
    x = x + a

    # ---------------- MLP, tiled over the 4*D FFN dim with a real loop ----------------
    # c_fc is stored pre-transposed (4D, D) so both weight slices are sublane-only pl.ds;
    # the output ref is the accumulator (no large live f32 loop carry).
    h2 = _layernorm(x, ln2_g[0], ln2_b[0], eps).astype(jnp.bfloat16)
    o_ref[0] = x + b_out[0]
    n_ffn = w_fc_t.shape[0] // ffn_tile

    @pl.loop(0, n_ffn)
    def _(t):
        r0 = pl.multiple_of(t * ffn_tile, ffn_tile)
        wf = w_fc_t[pl.ds(r0, ffn_tile), :]                   # (tile, D) bf16
        bf = b_fc[pl.ds(t, 1), :]                             # (1, tile) f32
        ff = lax.dot_general(h2, wf, (((1,), (1,)), ((), ())),
                             preferred_element_type=jnp.float32) + bf
        ff = _gelu(ff)
        wo = w_out[pl.ds(r0, ffn_tile), :]                    # (tile, D) bf16
        o_ref[0] += jnp.dot(ff.astype(jnp.bfloat16), wo,
                            preferred_element_type=jnp.float32)

    if fuse_ln_f:                                             # static flag: last layer only
        o_ref[0] = _layernorm(o_ref[0], lnf_g[0], lnf_b[0], eps)


# ----------------------------- pallas_call wrapper -----------------------------

def _weight_spec(shape, single_buffer):
    nd = len(shape)
    index_map = lambda b: (0,) * nd          # grid-invariant block
    if single_buffer:
        try:
            # Grid-invariant: double-buffering buys zero overlap, just 2x weight VMEM.
            return pl.BlockSpec(shape, index_map, pipeline_mode=pl.Buffered(1))
        except Exception:
            pass                              # older builds: fall back to default buffering
    return pl.BlockSpec(shape, index_map)


def _vmem_capacity_bytes():
    try:
        return int(pltpu.get_tpu_info().vmem_capacity_bytes)
    except Exception:
        return 64 << 20                       # conservative (v7x-sized) fallback


def _block_vmem_bytes(S, D, n_head, kv_tile, ffn_tile):
    bf2, f4 = 2, 4
    weights = (3 * D * D + D * D + 4 * D * D + 4 * D * D) * bf2      # bf16 matmul weights
    small = 16 * D * f4                                              # biases + ln params
    io = 2 * (2 * S * D * f4) + 2 * (2 * S * D * bf2)                # x/o + kv blocks (2-buf)
    scratch = 2 * S * D * bf2 + S * D * f4 + 2 * n_head * S * f4     # k/v/acc/m/l scratch
    inter = (3 * S * D * f4                                          # qkv
             + 3 * n_head * S * kv_tile * f4                         # s / p / exp temps
             + 2 * S * D * f4                                        # h1/h2/attn temps
             + 3 * S * ffn_tile * f4)                                # ffn chunk temps
    return weights + small + io + scratch + inter


def run_block(x, p, lnf_g, lnf_b, *, n_head, eps, fuse_ln_f, single_buffer_weights):
    B, S, D = x.shape
    hd = D // n_head
    F = p['w_fc_t'].shape[0]
    kv_tile = _pick_tile(S, max_tile=256)     # bounds the (H, S, tk) online-softmax tile
    ffn_tile = _pick_tile(F, max_tile=512)
    n_ffn = F // ffn_tile
    b_fc_r = p['b_fc'].reshape(n_ffn, ffn_tile)   # per-tile bias rows (sublane indexed)

    weight_args = [p['ln1_g'], p['ln1_b'], p['w_qkv'], p['b_qkv'],
                   p['w_proj'], p['b_proj'], p['ln2_g'], p['ln2_b'],
                   p['w_fc_t'], b_fc_r, p['w_out'], p['b_out'],
                   lnf_g, lnf_b]

    in_specs = [pl.BlockSpec((1, S, D), lambda b: (b, 0, 0))]
    in_specs += [_weight_spec(w.shape, single_buffer_weights) for w in weight_args]
    out_specs = [pl.BlockSpec((1, S, D), lambda b: (b, 0, 0)),
                 pl.BlockSpec((1, 2, S, D), lambda b: (b, 0, 0, 0))]
    out_shape = [jax.ShapeDtypeStruct((B, S, D), jnp.float32),
                 jax.ShapeDtypeStruct((B, 2, S, D), jnp.bfloat16)]
    scratch_shapes = [
        pltpu.VMEM((n_head, S, hd), jnp.bfloat16),   # k (head-split) for KV tiling
        pltpu.VMEM((n_head, S, hd), jnp.bfloat16),   # v (head-split)
        pltpu.VMEM((n_head, S, 1), jnp.float32),     # running max
        pltpu.VMEM((n_head, S, 1), jnp.float32),     # running denom
        pltpu.VMEM((n_head, S, hd), jnp.float32),    # output accumulator
    ]

    # Generation-aware VMEM budget: estimate from actual tile sizes, cap at 85% of
    # physical VMEM (v7x 64 MiB -> ~54 MiB; v5e/v6e 128 MiB -> ~108 MiB).
    est = _block_vmem_bytes(S, D, n_head, kv_tile, ffn_tile)
    cap = _vmem_capacity_bytes()
    vmem_limit = int(min(max(int(1.4 * est) + (4 << 20), 32 << 20), int(0.85 * cap)))

    f = pl.pallas_call(
        partial(gpt2_block_kernel, n_head=n_head, eps=eps,
                kv_tile=kv_tile, ffn_tile=ffn_tile, fuse_ln_f=fuse_ln_f),
        grid=(B,),
        in_specs=in_specs,
        out_specs=out_specs,
        out_shape=out_shape,
        scratch_shapes=scratch_shapes,
        compiler_params=pltpu.CompilerParams(
            dimension_semantics=("parallel",),
            vmem_limit_bytes=vmem_limit),
    )
    return f(x, *weight_args)


# ----------------------------- parameter init (deterministic) -----------------------------

def init_params(key, *, vocab_size, n_positions, n_embd, n_layer, initializer_range=0.02):
    D = n_embd
    keys = iter(jax.random.split(key, 3 + 4 * max(n_layer, 1)))

    def normal(shape, dtype=jnp.float32):
        return (initializer_range * jax.random.normal(next(keys), shape)).astype(dtype)

    params = {
        'wte': normal((vocab_size, D)),
        'wpe': normal((n_positions, D)),
        'wre': normal((2, D)),
        'ln_f_g': jnp.ones((1, D), jnp.float32),
        'ln_f_b': jnp.zeros((1, D), jnp.float32),
        'blocks': [],
    }
    for _ in range(n_layer):
        params['blocks'].append({
            'ln1_g': jnp.ones((1, D), jnp.float32),
            'ln1_b': jnp.zeros((1, D), jnp.float32),
            # MXU matmul weights stored bf16 (halves weight DMA; accumulation is f32)
            'w_qkv': normal((D, 3 * D), jnp.bfloat16),
            'b_qkv': jnp.zeros((1, 3 * D), jnp.float32),
            'w_proj': normal((D, D), jnp.bfloat16),
            'b_proj': jnp.zeros((1, D), jnp.float32),
            'ln2_g': jnp.ones((1, D), jnp.float32),
            'ln2_b': jnp.zeros((1, D), jnp.float32),
            # c_fc stored pre-transposed (4D, D) so FFN tiling only slices sublanes
            'w_fc_t': normal((4 * D, D), jnp.bfloat16),
            'b_fc': jnp.zeros((1, 4 * D), jnp.float32),
            'w_out': normal((4 * D, D), jnp.bfloat16),
            'b_out': jnp.zeros((1, D), jnp.float32),
        })
    return params


# ----------------------------- full forward (glue + kernels) -----------------------------

def gpt2_role_forward(params, input_ids, role_ids, *, n_head, eps=1e-5,
                      single_buffer_weights=True):
    # input_ids, role_ids: int32 [B, S]; past=None, mask=None (eval / no cache)
    B, S = input_ids.shape
    D = params['wte'].shape[1]
    hd = D // n_head

    inputs_embeds = jnp.take(params['wte'], input_ids, axis=0)          # (B, S, D)
    position_ids = jnp.broadcast_to(jnp.arange(S, dtype=jnp.int32)[None, :], (B, S))
    position_embeds = jnp.take(params['wpe'], position_ids, axis=0)     # (B, S, D)
    role_embeds = jnp.take(params['wre'], role_ids, axis=0)             # (B, S, D)

    hidden = inputs_embeds + position_embeds + role_embeds              # dropout = identity (eval)

    n_layer = len(params['blocks'])
    presents = []
    for i, blk in enumerate(params['blocks']):
        hidden, kv = run_block(hidden, blk, params['ln_f_g'], params['ln_f_b'],
                               n_head=n_head, eps=eps,
                               fuse_ln_f=(i == n_layer - 1),
                               single_buffer_weights=single_buffer_weights)
        # kv: (B, 2, S, D) bf16, lane-dense out of the kernel; one fused XLA
        # reshape+transpose gives the PyTorch present layout (2, B, H, S, hd).
        presents.append(kv.reshape(B, 2, S, n_head, hd).transpose(1, 0, 3, 2, 4))

    if n_layer == 0:  # degenerate case: standalone ln_f
        mu = jnp.mean(hidden, axis=-1, keepdims=True)
        var = jnp.mean((hidden - mu) ** 2, axis=-1, keepdims=True)
        hidden = (hidden - mu) * lax.rsqrt(var + eps) * params['ln_f_g'][0] + params['ln_f_b'][0]

    return hidden, presents


# ----------------------------- main -----------------------------

if __name__ == "__main__":
    # small config consistent with the module
    VOCAB, N_POS, N_EMBD, N_HEAD, N_LAYER = 50, 16, 32, 4, 2
    B, S = 2, 8

    key = jax.random.PRNGKey(0)
    kp, ki, kr = jax.random.split(key, 3)

    params = init_params(kp, vocab_size=VOCAB, n_positions=N_POS,
                         n_embd=N_EMBD, n_layer=N_LAYER)
    input_ids = jax.random.randint(ki, (B, S), 0, VOCAB, dtype=jnp.int32)
    role_ids = jax.random.randint(kr, (B, S), 0, 2, dtype=jnp.int32)

    def _run(single_buffer_weights):
        fwd = jax.jit(partial(gpt2_role_forward, n_head=N_HEAD,
                              single_buffer_weights=single_buffer_weights))
        h, pres = fwd(params, input_ids, role_ids)
        h = jax.block_until_ready(h)
        for pr in pres:
            jax.block_until_ready(pr)
        return h, pres

    try:
        hidden, presents = _run(True)
    except Exception:
        # Fallback for builds where single-buffered (pl.Buffered(1)) grid-invariant
        # weight blocks are not supported; default double-buffered specs always work.
        hidden, presents = _run(False)

    assert hidden.shape == (B, S, N_EMBD)
    assert len(presents) == N_LAYER
    assert presents[0].shape == (2, B, N_HEAD, S, N_EMBD // N_HEAD)
    assert bool(jnp.all(jnp.isfinite(hidden)))
    print("KERNEL_OK")
</pallas_src>

<mosaic_0001>
module attributes {stable_mosaic.version = 11 : i64} {
  func.func @gpt2_block_kernel(%arg0: i32, %arg1: memref<1x8x32xf32, #tpu.memory_space<vmem>>, %arg2: memref<1x32xf32, #tpu.memory_space<vmem>>, %arg3: memref<1x32xf32, #tpu.memory_space<vmem>>, %arg4: memref<32x96xbf16, #tpu.memory_space<vmem>>, %arg5: memref<1x96xf32, #tpu.memory_space<vmem>>, %arg6: memref<32x32xbf16, #tpu.memory_space<vmem>>, %arg7: memref<1x32xf32, #tpu.memory_space<vmem>>, %arg8: memref<1x32xf32, #tpu.memory_space<vmem>>, %arg9: memref<1x32xf32, #tpu.memory_space<vmem>>, %arg10: memref<128x32xbf16, #tpu.memory_space<vmem>>, %arg11: memref<1x128xf32, #tpu.memory_space<vmem>>, %arg12: memref<128x32xbf16, #tpu.memory_space<vmem>>, %arg13: memref<1x32xf32, #tpu.memory_space<vmem>>, %arg14: memref<1x32xf32, #tpu.memory_space<vmem>>, %arg15: memref<1x32xf32, #tpu.memory_space<vmem>>, %arg16: memref<1x8x32xf32, #tpu.memory_space<vmem>>, %arg17: memref<1x2x8x32xbf16, #tpu.memory_space<vmem>>, %arg18: memref<4x8x8xbf16, #tpu.memory_space<vmem>>, %arg19: memref<4x8x8xbf16, #tpu.memory_space<vmem>>, %arg20: memref<4x8x1xf32, #tpu.memory_space<vmem>>, %arg21: memref<4x8x1xf32, #tpu.memory_space<vmem>>, %arg22: memref<4x8x8xf32, #tpu.memory_space<vmem>>) attributes {dimension_semantics = [#tpu.dimension_semantics<parallel>], iteration_bounds = array<i64: 2>, scalar_prefetch = 0 : i64, scratch_operands = 5 : i64, tpu.core_type = #tpu.core_type<tc>, window_params = [{transform_indices = @transform_0, window_bounds = array<i64: 1, 8, 32>}, {pipeline_mode = #tpu.pipeline_mode<synchronous>, transform_indices = @transform_1, window_bounds = array<i64: 1, 32>}, {pipeline_mode = #tpu.pipeline_mode<synchronous>, transform_indices = @transform_2, window_bounds = array<i64: 1, 32>}, {pipeline_mode = #tpu.pipeline_mode<synchronous>, transform_indices = @transform_3, window_bounds = array<i64: 32, 96>}, {pipeline_mode = #tpu.pipeline_mode<synchronous>, transform_indices = @transform_4, window_bounds = array<i64: 1, 96>}, {pipeline_mode = #tpu.pipeline_mode<synchronous>, transform_indices = @transform_5, window_bounds = array<i64: 32, 32>}, {pipeline_mode = #tpu.pipeline_mode<synchronous>, transform_indices = @transform_6, window_bounds = array<i64: 1, 32>}, {pipeline_mode = #tpu.pipeline_mode<synchronous>, transform_indices = @transform_7, window_bounds = array<i64: 1, 32>}, {pipeline_mode = #tpu.pipeline_mode<synchronous>, transform_indices = @transform_8, window_bounds = array<i64: 1, 32>}, {pipeline_mode = #tpu.pipeline_mode<synchronous>, transform_indices = @transform_9, window_bounds = array<i64: 128, 32>}, {pipeline_mode = #tpu.pipeline_mode<synchronous>, transform_indices = @transform_10, window_bounds = array<i64: 1, 128>}, {pipeline_mode = #tpu.pipeline_mode<synchronous>, transform_indices = @transform_11, window_bounds = array<i64: 128, 32>}, {pipeline_mode = #tpu.pipeline_mode<synchronous>, transform_indices = @transform_12, window_bounds = array<i64: 1, 32>}, {pipeline_mode = #tpu.pipeline_mode<synchronous>, transform_indices = @transform_13, window_bounds = array<i64: 1, 32>}, {pipeline_mode = #tpu.pipeline_mode<synchronous>, transform_indices = @transform_14, window_bounds = array<i64: 1, 32>}, {transform_indices = @transform_15, window_bounds = array<i64: 1, 8, 32>}, {transform_indices = @transform_16, window_bounds = array<i64: 1, 2, 8, 32>}]} {
    %c0 = arith.constant 0 : index
    %c0_0 = arith.constant 0 : index
    %c0_1 = arith.constant 0 : index
    %0 = vector.load %arg1[%c0, %c0_0, %c0_1] : memref<1x8x32xf32, #tpu.memory_space<vmem>>, vector<1x8x32xf32>
    %1 = vector.shape_cast %0 : vector<1x8x32xf32> to vector<8x32xf32>
    %c0_2 = arith.constant 0 : index
    %c0_3 = arith.constant 0 : index
    %2 = vector.load %arg2[%c0_2, %c0_3] : memref<1x32xf32, #tpu.memory_space<vmem>>, vector<1x32xf32>
    %3 = vector.shape_cast %2 : vector<1x32xf32> to vector<32xf32>
    %c0_4 = arith.constant 0 : index
    %c0_5 = arith.constant 0 : index
    %4 = vector.load %arg3[%c0_4, %c0_5] : memref<1x32xf32, #tpu.memory_space<vmem>>, vector<1x32xf32>
    %5 = vector.shape_cast %4 : vector<1x32xf32> to vector<32xf32>
    %cst = arith.constant dense<0.000000e+00> : vector<8xf32>
    %6 = vector.multi_reduction <add>, %1, %cst [1] : vector<8x32xf32> to vector<8xf32>
    %7 = vector.shape_cast %6 : vector<8xf32> to vector<8x1xf32>
    %cst_6 = arith.constant 3.200000e+01 : f32
    %8 = vector.broadcast %cst_6 : f32 to vector<8x1xf32>
    %9 = arith.divf %7, %8 : vector<8x1xf32>
    %10 = vector.broadcast %9 : vector<8x1xf32> to vector<8x32xf32>
    %11 = arith.subf %1, %10 : vector<8x32xf32>
    %12 = arith.mulf %11, %11 : vector<8x32xf32>
    %cst_7 = arith.constant dense<0.000000e+00> : vector<8xf32>
    %13 = vector.multi_reduction <add>, %12, %cst_7 [1] : vector<8x32xf32> to vector<8xf32>
    %14 = vector.shape_cast %13 : vector<8xf32> to vector<8x1xf32>
    %cst_8 = arith.constant 3.200000e+01 : f32
    %15 = vector.broadcast %cst_8 : f32 to vector<8x1xf32>
    %16 = arith.divf %14, %15 : vector<8x1xf32>
    %17 = vector.broadcast %9 : vector<8x1xf32> to vector<8x32xf32>
    %18 = arith.subf %1, %17 : vector<8x32xf32>
    %cst_9 = arith.constant 9.99999974E-6 : f32
    %19 = vector.broadcast %cst_9 : f32 to vector<8x1xf32>
    %20 = arith.addf %16, %19 : vector<8x1xf32>
    %21 = math.rsqrt %20 : vector<8x1xf32>
    %22 = vector.broadcast %21 : vector<8x1xf32> to vector<8x32xf32>
    %23 = arith.mulf %18, %22 : vector<8x32xf32>
    %24 = vector.shape_cast %3 : vector<32xf32> to vector<1x32xf32>
    %25 = vector.broadcast %24 : vector<1x32xf32> to vector<8x32xf32>
    %26 = arith.mulf %23, %25 : vector<8x32xf32>
    %27 = vector.shape_cast %5 : vector<32xf32> to vector<1x32xf32>
    %28 = vector.broadcast %27 : vector<1x32xf32> to vector<8x32xf32>
    %29 = arith.addf %26, %28 : vector<8x32xf32>
    %30 = arith.truncf %29 : vector<8x32xf32> to vector<8x32xbf16>
    %c0_10 = arith.constant 0 : index
    %c0_11 = arith.constant 0 : index
    %31 = vector.load %arg4[%c0_10, %c0_11] : memref<32x96xbf16, #tpu.memory_space<vmem>>, vector<32x96xbf16>
    %cst_12 = arith.constant dense<0.000000e+00> : vector<8x96xf32>
    %32 = tpu.matmul %30, %31, %cst_12 {dimension_numbers = #tpu.dot_dimension_numbers<[1], [0], [0], [1], [0, 0, 1, 1], [], []>} : vector<8x32xbf16>, vector<32x96xbf16>, vector<8x96xf32> -> vector<8x96xf32>
    %c0_13 = arith.constant 0 : index
    %c0_14 = arith.constant 0 : index
    %33 = vector.load %arg5[%c0_13, %c0_14] : memref<1x96xf32, #tpu.memory_space<vmem>>, vector<1x96xf32>
    %34 = vector.shape_cast %33 : vector<1x96xf32> to vector<96xf32>
    %35 = vector.shape_cast %34 : vector<96xf32> to vector<1x96xf32>
    %36 = vector.broadcast %35 : vector<1x96xf32> to vector<8x96xf32>
    %37 = arith.addf %32, %36 : vector<8x96xf32>
    %38 = vector.extract_strided_slice %37 {offsets = [0, 0], sizes = [8, 32], strides = [1, 1]} : vector<8x96xf32> to vector<8x32xf32>
    %39 = vector.extract_strided_slice %37 {offsets = [0, 32], sizes = [8, 32], strides = [1, 1]} : vector<8x96xf32> to vector<8x32xf32>
    %40 = vector.extract_strided_slice %37 {offsets = [0, 64], sizes = [8, 32], strides = [1, 1]} : vector<8x96xf32> to vector<8x32xf32>
    %41 = arith.truncf %39 : vector<8x32xf32> to vector<8x32xbf16>
    %c0_15 = arith.constant 0 : index
    %c0_16 = arith.constant 0 : index
    %c0_17 = arith.constant 0 : index
    %c0_18 = arith.constant 0 : index
    %42 = vector.load %arg17[%c0_15, %c0_16, %c0_17, %c0_18] : memref<1x2x8x32xbf16, #tpu.memory_space<vmem>>, vector<1x1x8x32xbf16>
    %43 = vector.shape_cast %42 : vector<1x1x8x32xbf16> to vector<8x32xbf16>
    %44 = vector.shape_cast %41 : vector<8x32xbf16> to vector<1x1x8x32xbf16>
    tpu.vector_store %arg17[%c0_15, %c0_16, %c0_17, %c0_18], %44 {strides = array<i32>} : memref<1x2x8x32xbf16, #tpu.memory_space<vmem>>, vector<1x1x8x32xbf16>,
    %45 = arith.truncf %40 : vector<8x32xf32> to vector<8x32xbf16>
    %c0_19 = arith.constant 0 : index
    %c1 = arith.constant 1 : index
    %c0_20 = arith.constant 0 : index
    %c0_21 = arith.constant 0 : index
    %46 = vector.load %arg17[%c0_19, %c1, %c0_20, %c0_21] : memref<1x2x8x32xbf16, #tpu.memory_space<vmem>>, vector<1x1x8x32xbf16>
    %47 = vector.shape_cast %46 : vector<1x1x8x32xbf16> to vector<8x32xbf16>
    %48 = vector.shape_cast %45 : vector<8x32xbf16> to vector<1x1x8x32xbf16>
    tpu.vector_store %arg17[%c0_19, %c1, %c0_20, %c0_21], %48 {strides = array<i32>} : memref<1x2x8x32xbf16, #tpu.memory_space<vmem>>, vector<1x1x8x32xbf16>,
    %cst_22 = arith.constant 0.353553385 : f32
    %49 = vector.broadcast %cst_22 : f32 to vector<8x32xf32>
    %50 = arith.mulf %38, %49 : vector<8x32xf32>
    %51 = vector.shape_cast %50 : vector<8x32xf32> to vector<8x4x8xf32>
    %52 = tpu.transpose %51, [1, 0, 2] : vector<8x4x8xf32> -> vector<4x8x8xf32>
    %53 = arith.truncf %52 : vector<4x8x8xf32> to vector<4x8x8xbf16>
    %54 = vector.shape_cast %39 : vector<8x32xf32> to vector<8x4x8xf32>
    %55 = tpu.transpose %54, [1, 0, 2] : vector<8x4x8xf32> -> vector<4x8x8xf32>
    %56 = arith.truncf %55 : vector<4x8x8xf32> to vector<4x8x8xbf16>
    %c0_23 = arith.constant 0 : index
    %c0_24 = arith.constant 0 : index
    %c0_25 = arith.constant 0 : index
    %57 = vector.load %arg18[%c0_23, %c0_24, %c0_25] : memref<4x8x8xbf16, #tpu.memory_space<vmem>>, vector<4x8x8xbf16>
    tpu.vector_store %arg18[%c0_23, %c0_24, %c0_25], %56 {strides = array<i32>} : memref<4x8x8xbf16, #tpu.memory_space<vmem>>, vector<4x8x8xbf16>,
    %58 = vector.shape_cast %40 : vector<8x32xf32> to vector<8x4x8xf32>
    %59 = tpu.transpose %58, [1, 0, 2] : vector<8x4x8xf32> -> vector<4x8x8xf32>
    %60 = arith.truncf %59 : vector<4x8x8xf32> to vector<4x8x8xbf16>
    %c0_26 = arith.constant 0 : index
    %c0_27 = arith.constant 0 : index
    %c0_28 = arith.constant 0 : index
    %61 = vector.load %arg19[%c0_26, %c0_27, %c0_28] : memref<4x8x8xbf16, #tpu.memory_space<vmem>>, vector<4x8x8xbf16>
    tpu.vector_store %arg19[%c0_26, %c0_27, %c0_28], %60 {strides = array<i32>} : memref<4x8x8xbf16, #tpu.memory_space<vmem>>, vector<4x8x8xbf16>,
    %cst_29 = arith.constant 0xFF800000 : f32
    %62 = vector.broadcast %cst_29 : f32 to vector<4x8x1xf32>
    %c0_30 = arith.constant 0 : index
    %c0_31 = arith.constant 0 : index
    %c0_32 = arith.constant 0 : index
    %63 = vector.load %arg20[%c0_30, %c0_31, %c0_32] : memref<4x8x1xf32, #tpu.memory_space<vmem>>, vector<4x8x1xf32>
    tpu.vector_store %arg20[%c0_30, %c0_31, %c0_32], %62 {strides = array<i32>} : memref<4x8x1xf32, #tpu.memory_space<vmem>>, vector<4x8x1xf32>,
    %cst_33 = arith.constant 0.000000e+00 : f32
    %64 = vector.broadcast %cst_33 : f32 to vector<4x8x1xf32>
    %c0_34 = arith.constant 0 : index
    %c0_35 = arith.constant 0 : index
    %c0_36 = arith.constant 0 : index
    %65 = vector.load %arg21[%c0_34, %c0_35, %c0_36] : memref<4x8x1xf32, #tpu.memory_space<vmem>>, vector<4x8x1xf32>
    tpu.vector_store %arg21[%c0_34, %c0_35, %c0_36], %64 {strides = array<i32>} : memref<4x8x1xf32, #tpu.memory_space<vmem>>, vector<4x8x1xf32>,
    %cst_37 = arith.constant 0.000000e+00 : f32
    %66 = vector.broadcast %cst_37 : f32 to vector<4x8x8xf32>
    %c0_38 = arith.constant 0 : index
    %c0_39 = arith.constant 0 : index
    %c0_40 = arith.constant 0 : index
    %67 = vector.load %arg22[%c0_38, %c0_39, %c0_40] : memref<4x8x8xf32, #tpu.memory_space<vmem>>, vector<4x8x8xf32>
    tpu.vector_store %arg22[%c0_38, %c0_39, %c0_40], %66 {strides = array<i32>} : memref<4x8x8xf32, #tpu.memory_space<vmem>>, vector<4x8x8xf32>,
    %68 = tpu.iota {dimensions = array<i32: 0>} : vector<8x8xi32>
    %69 = tpu.iota {dimensions = array<i32: 1>} : vector<8x8xi32>
    %c0_i32 = arith.constant 0 : i32
    %c1_i32 = arith.constant 1 : i32
    %70 = arith.muli %c0_i32, %c1_i32 : i32
    %c0_i32_41 = arith.constant 0 : i32
    %71 = arith.addi %c0_i32_41, %70 : i32
    %c8_i32 = arith.constant 8 : i32
    %72 = arith.muli %71, %c8_i32 : i32
    %73 = tpu.assume_multiple %72, 8 : i32
    %c0_42 = arith.constant 0 : index
    %74 = arith.index_cast %73 : i32 to index
    %c0_43 = arith.constant 0 : index
    %75 = vector.load %arg18[%c0_42, %74, %c0_43] : memref<4x8x8xbf16, #tpu.memory_space<vmem>>, vector<4x8x8xbf16>
    %c0_44 = arith.constant 0 : index
    %76 = arith.index_cast %73 : i32 to index
    %c0_45 = arith.constant 0 : index
    %77 = vector.load %arg19[%c0_44, %76, %c0_45] : memref<4x8x8xbf16, #tpu.memory_space<vmem>>, vector<4x8x8xbf16>
    "tpu.trace_start"() <{level = 10 : i32, message = "hqd,hkd->hqk"}> : () -> ()
    %cst_46 = arith.constant dense<0.000000e+00> : vector<4x8x8xf32>
    %78 = tpu.matmul %53, %75, %cst_46 {dimension_numbers = #tpu.dot_dimension_numbers<[2], [2], [1], [1], [0, 0, 0, 1, 1, 1], [0], [0]>} : vector<4x8x8xbf16>, vector<4x8x8xbf16>, vector<4x8x8xf32> -> vector<4x8x8xf32>
    "tpu.trace_stop"() : () -> ()
    %79 = vector.broadcast %73 : i32 to vector<8x8xi32>
    %80 = arith.addi %69, %79 : vector<8x8xi32>
    %81 = arith.cmpi sle, %80, %68 : vector<8x8xi32>
    %82 = vector.shape_cast %81 : vector<8x8xi1> to vector<1x8x8xi1>
    %cst_47 = arith.constant -1.000000e+04 : f32
    %83 = vector.shape_cast %82 : vector<1x8x8xi1> to vector<1x8x8xi1>
    %84 = vector.broadcast %83 : vector<1x8x8xi1> to vector<4x8x8xi1>
    %85 = vector.broadcast %cst_47 : f32 to vector<4x8x8xf32>
    %86 = arith.select %84, %78, %85 : vector<4x8x8xi1>, vector<4x8x8xf32>
    %c0_48 = arith.constant 0 : index
    %c0_49 = arith.constant 0 : index
    %c0_50 = arith.constant 0 : index
    %87 = vector.load %arg20[%c0_48, %c0_49, %c0_50] : memref<4x8x1xf32, #tpu.memory_space<vmem>>, vector<4x8x1xf32>
    %cst_51 = arith.constant dense<0xFF800000> : vector<4x8xf32>
    %88 = vector.multi_reduction <maximumf>, %86, %cst_51 [2] : vector<4x8x8xf32> to vector<4x8xf32>
    %89 = vector.shape_cast %88 : vector<4x8xf32> to vector<4x8x1xf32>
    %90 = arith.maximumf %87, %89 : vector<4x8x1xf32>
    %91 = arith.subf %87, %90 : vector<4x8x1xf32>
    %92 = math.exp %91 : vector<4x8x1xf32>
    %93 = vector.broadcast %90 : vector<4x8x1xf32> to vector<4x8x8xf32>
    %94 = arith.subf %86, %93 : vector<4x8x8xf32>
    %95 = math.exp %94 : vector<4x8x8xf32>
    %c0_52 = arith.constant 0 : index
    %c0_53 = arith.constant 0 : index
    %c0_54 = arith.constant 0 : index
    %96 = vector.load %arg21[%c0_52, %c0_53, %c0_54] : memref<4x8x1xf32, #tpu.memory_space<vmem>>, vector<4x8x1xf32>
    %97 = arith.mulf %92, %96 : vector<4x8x1xf32>
    %cst_55 = arith.constant dense<0.000000e+00> : vector<4x8xf32>
    %98 = vector.multi_reduction <add>, %95, %cst_55 [2] : vector<4x8x8xf32> to vector<4x8xf32>
    %99 = vector.shape_cast %98 : vector<4x8xf32> to vector<4x8x1xf32>
    %100 = arith.addf %97, %99 : vector<4x8x1xf32>
    %c0_56 = arith.constant 0 : index
    %c0_57 = arith.constant 0 : index
    %c0_58 = arith.constant 0 : index
    %101 = vector.load %arg21[%c0_56, %c0_57, %c0_58] : memref<4x8x1xf32, #tpu.memory_space<vmem>>, vector<4x8x1xf32>
    tpu.vector_store %arg21[%c0_56, %c0_57, %c0_58], %100 {strides = array<i32>} : memref<4x8x1xf32, #tpu.memory_space<vmem>>, vector<4x8x1xf32>,
    %c0_59 = arith.constant 0 : index
    %c0_60 = arith.constant 0 : index
    %c0_61 = arith.constant 0 : index
    %102 = vector.load %arg22[%c0_59, %c0_60, %c0_61] : memref<4x8x8xf32, #tpu.memory_space<vmem>>, vector<4x8x8xf32>
    %103 = vector.broadcast %92 : vector<4x8x1xf32> to vector<4x8x8xf32>
    %104 = arith.mulf %103, %102 : vector<4x8x8xf32>
    %105 = arith.truncf %95 : vector<4x8x8xf32> to vector<4x8x8xbf16>
    "tpu.trace_start"() <{level = 10 : i32, message = "hqk,hkd->hqd"}> : () -> ()
    %cst_62 = arith.constant dense<0.000000e+00> : vector<4x8x8xf32>
    %106 = tpu.matmul %105, %77, %cst_62 {dimension_numbers = #tpu.dot_dimension_numbers<[2], [1], [1], [2], [0, 0, 0, 1, 1, 2], [0], [0]>} : vector<4x8x8xbf16>, vector<4x8x8xbf16>, vector<4x8x8xf32> -> vector<4x8x8xf32>
    "tpu.trace_stop"() : () -> ()
    %107 = arith.addf %104, %106 : vector<4x8x8xf32>
    %c0_63 = arith.constant 0 : index
    %c0_64 = arith.constant 0 : index
    %c0_65 = arith.constant 0 : index
    %108 = vector.load %arg22[%c0_63, %c0_64, %c0_65] : memref<4x8x8xf32, #tpu.memory_space<vmem>>, vector<4x8x8xf32>
    tpu.vector_store %arg22[%c0_63, %c0_64, %c0_65], %107 {strides = array<i32>} : memref<4x8x8xf32, #tpu.memory_space<vmem>>, vector<4x8x8xf32>,
    %c0_66 = arith.constant 0 : index
    %c0_67 = arith.constant 0 : index
    %c0_68 = arith.constant 0 : index
    %109 = vector.load %arg20[%c0_66, %c0_67, %c0_68] : memref<4x8x1xf32, #tpu.memory_space<vmem>>, vector<4x8x1xf32>
    tpu.vector_store %arg20[%c0_66, %c0_67, %c0_68], %90 {strides = array<i32>} : memref<4x8x1xf32, #tpu.memory_space<vmem>>, vector<4x8x1xf32>,
    %c1_i32_69 = arith.constant 1 : i32
    %c0_70 = arith.constant 0 : index
    %c0_71 = arith.constant 0 : index
    %c0_72 = arith.constant 0 : index
    %110 = vector.load %arg22[%c0_70, %c0_71, %c0_72] : memref<4x8x8xf32, #tpu.memory_space<vmem>>, vector<4x8x8xf32>
    %c0_73 = arith.constant 0 : index
    %c0_74 = arith.constant 0 : index
    %c0_75 = arith.constant 0 : index
    %111 = vector.load %arg21[%c0_73, %c0_74, %c0_75] : memref<4x8x1xf32, #tpu.memory_space<vmem>>, vector<4x8x1xf32>
    %112 = tpu.reciprocal %111 {approx = true} : vector<4x8x1xf32> -> vector<4x8x1xf32>
    %113 = vector.broadcast %112 : vector<4x8x1xf32> to vector<4x8x8xf32>
    %114 = arith.mulf %110, %113 : vector<4x8x8xf32>
    %115 = tpu.transpose %114, [1, 0, 2] : vector<4x8x8xf32> -> vector<8x4x8xf32>
    %116 = vector.shape_cast %115 : vector<8x4x8xf32> to vector<8x32xf32>
    %117 = arith.truncf %116 : vector<8x32xf32> to vector<8x32xbf16>
    %c0_76 = arith.constant 0 : index
    %c0_77 = arith.constant 0 : index
    %118 = vector.load %arg6[%c0_76, %c0_77] : memref<32x32xbf16, #tpu.memory_space<vmem>>, vector<32x32xbf16>
    %cst_78 = arith.constant dense<0.000000e+00> : vector<8x32xf32>
    %119 = tpu.matmul %117, %118, %cst_78 {dimension_numbers = #tpu.dot_dimension_numbers<[1], [0], [0], [1], [0, 0, 1, 1], [], []>} : vector<8x32xbf16>, vector<32x32xbf16>, vector<8x32xf32> -> vector<8x32xf32>
    %c0_79 = arith.constant 0 : index
    %c0_80 = arith.constant 0 : index
    %120 = vector.load %arg7[%c0_79, %c0_80] : memref<1x32xf32, #tpu.memory_space<vmem>>, vector<1x32xf32>
    %121 = vector.shape_cast %120 : vector<1x32xf32> to vector<32xf32>
    %122 = vector.shape_cast %121 : vector<32xf32> to vector<1x32xf32>
    %123 = vector.broadcast %122 : vector<1x32xf32> to vector<8x32xf32>
    %124 = arith.addf %119, %123 : vector<8x32xf32>
    %125 = arith.addf %1, %124 : vector<8x32xf32>
    %c0_81 = arith.constant 0 : index
    %c0_82 = arith.constant 0 : index
    %126 = vector.load %arg8[%c0_81, %c0_82] : memref<1x32xf32, #tpu.memory_space<vmem>>, vector<1x32xf32>
    %127 = vector.shape_cast %126 : vector<1x32xf32> to vector<32xf32>
    %c0_83 = arith.constant 0 : index
    %c0_84 = arith.constant 0 : index
    %128 = vector.load %arg9[%c0_83, %c0_84] : memref<1x32xf32, #tpu.memory_space<vmem>>, vector<1x32xf32>
    %129 = vector.shape_cast %128 : vector<1x32xf32> to vector<32xf32>
    %cst_85 = arith.constant dense<0.000000e+00> : vector<8xf32>
    %130 = vector.multi_reduction <add>, %125, %cst_85 [1] : vector<8x32xf32> to vector<8xf32>
    %131 = vector.shape_cast %130 : vector<8xf32> to vector<8x1xf32>
    %cst_86 = arith.constant 3.200000e+01 : f32
    %132 = vector.broadcast %cst_86 : f32 to vector<8x1xf32>
    %133 = arith.divf %131, %132 : vector<8x1xf32>
    %134 = vector.broadcast %133 : vector<8x1xf32> to vector<8x32xf32>
    %135 = arith.subf %125, %134 : vector<8x32xf32>
    %136 = arith.mulf %135, %135 : vector<8x32xf32>
    %cst_87 = arith.constant dense<0.000000e+00> : vector<8xf32>
    %137 = vector.multi_reduction <add>, %136, %cst_87 [1] : vector<8x32xf32> to vector<8xf32>
    %138 = vector.shape_cast %137 : vector<8xf32> to vector<8x1xf32>
    %cst_88 = arith.constant 3.200000e+01 : f32
    %139 = vector.broadcast %cst_88 : f32 to vector<8x1xf32>
    %140 = arith.divf %138, %139 : vector<8x1xf32>
    %141 = vector.broadcast %133 : vector<8x1xf32> to vector<8x32xf32>
    %142 = arith.subf %125, %141 : vector<8x32xf32>
    %cst_89 = arith.constant 9.99999974E-6 : f32
    %143 = vector.broadcast %cst_89 : f32 to vector<8x1xf32>
    %144 = arith.addf %140, %143 : vector<8x1xf32>
    %145 = math.rsqrt %144 : vector<8x1xf32>
    %146 = vector.broadcast %145 : vector<8x1xf32> to vector<8x32xf32>
    %147 = arith.mulf %142, %146 : vector<8x32xf32>
    %148 = vector.shape_cast %127 : vector<32xf32> to vector<1x32xf32>
    %149 = vector.broadcast %148 : vector<1x32xf32> to vector<8x32xf32>
    %150 = arith.mulf %147, %149 : vector<8x32xf32>
    %151 = vector.shape_cast %129 : vector<32xf32> to vector<1x32xf32>
    %152 = vector.broadcast %151 : vector<1x32xf32> to vector<8x32xf32>
    %153 = arith.addf %150, %152 : vector<8x32xf32>
    %154 = arith.truncf %153 : vector<8x32xf32> to vector<8x32xbf16>
    %c0_90 = arith.constant 0 : index
    %c0_91 = arith.constant 0 : index
    %155 = vector.load %arg13[%c0_90, %c0_91] : memref<1x32xf32, #tpu.memory_space<vmem>>, vector<1x32xf32>
    %156 = vector.shape_cast %155 : vector<1x32xf32> to vector<32xf32>
    %157 = vector.shape_cast %156 : vector<32xf32> to vector<1x32xf32>
    %158 = vector.broadcast %157 : vector<1x32xf32> to vector<8x32xf32>
    %159 = arith.addf %125, %158 : vector<8x32xf32>
    %c0_92 = arith.constant 0 : index
    %c0_93 = arith.constant 0 : index
    %c0_94 = arith.constant 0 : index
    %160 = vector.load %arg16[%c0_92, %c0_93, %c0_94] : memref<1x8x32xf32, #tpu.memory_space<vmem>>, vector<1x8x32xf32>
    %161 = vector.shape_cast %160 : vector<1x8x32xf32> to vector<8x32xf32>
    %162 = vector.shape_cast %159 : vector<8x32xf32> to vector<1x8x32xf32>
    tpu.vector_store %arg16[%c0_92, %c0_93, %c0_94], %162 {strides = array<i32>} : memref<1x8x32xf32, #tpu.memory_space<vmem>>, vector<1x8x32xf32>,
    %c0_i32_95 = arith.constant 0 : i32
    %c1_i32_96 = arith.constant 1 : i32
    %163 = arith.muli %c0_i32_95, %c1_i32_96 : i32
    %c0_i32_97 = arith.constant 0 : i32
    %164 = arith.addi %c0_i32_97, %163 : i32
    %c128_i32 = arith.constant 128 : i32
    %165 = arith.muli %164, %c128_i32 : i32
    %166 = tpu.assume_multiple %165, 128 : i32
    %167 = arith.index_cast %166 : i32 to index
    %c0_98 = arith.constant 0 : index
    %168 = vector.load %arg10[%167, %c0_98] : memref<128x32xbf16, #tpu.memory_space<vmem>>, vector<128x32xbf16>
    %169 = arith.index_cast %164 : i32 to index
    %c0_99 = arith.constant 0 : index
    %170 = vector.load %arg11[%169, %c0_99] : memref<1x128xf32, #tpu.memory_space<vmem>>, vector<1x128xf32>
    %cst_100 = arith.constant dense<0.000000e+00> : vector<8x128xf32>
    %171 = tpu.matmul %154, %168, %cst_100 {dimension_numbers = #tpu.dot_dimension_numbers<[1], [1], [0], [0], [0, 0, 1, 0], [], []>} : vector<8x32xbf16>, vector<128x32xbf16>, vector<8x128xf32> -> vector<8x128xf32>
    %172 = vector.broadcast %170 : vector<1x128xf32> to vector<8x128xf32>
    %173 = arith.addf %171, %172 : vector<8x128xf32>
    %cst_101 = arith.constant 5.000000e-01 : f32
    %174 = vector.broadcast %cst_101 : f32 to vector<8x128xf32>
    %175 = arith.mulf %174, %173 : vector<8x128xf32>
    %176 = arith.mulf %173, %173 : vector<8x128xf32>
    %177 = arith.mulf %173, %176 : vector<8x128xf32>
    %cst_102 = arith.constant 4.471500e-02 : f32
    %178 = vector.broadcast %cst_102 : f32 to vector<8x128xf32>
    %179 = arith.mulf %178, %177 : vector<8x128xf32>
    %180 = arith.addf %173, %179 : vector<8x128xf32>
    %cst_103 = arith.constant 0.797884583 : f32
    %181 = vector.broadcast %cst_103 : f32 to vector<8x128xf32>
    %182 = arith.mulf %181, %180 : vector<8x128xf32>
    %183 = math.tanh %182 : vector<8x128xf32>
    %cst_104 = arith.constant 1.000000e+00 : f32
    %184 = vector.broadcast %cst_104 : f32 to vector<8x128xf32>
    %185 = arith.addf %184, %183 : vector<8x128xf32>
    %186 = arith.mulf %175, %185 : vector<8x128xf32>
    %187 = arith.index_cast %166 : i32 to index
    %c0_105 = arith.constant 0 : index
    %188 = vector.load %arg12[%187, %c0_105] : memref<128x32xbf16, #tpu.memory_space<vmem>>, vector<128x32xbf16>
    %c0_106 = arith.constant 0 : index
    %c0_107 = arith.constant 0 : index
    %c0_108 = arith.constant 0 : index
    %189 = vector.load %arg16[%c0_106, %c0_107, %c0_108] : memref<1x8x32xf32, #tpu.memory_space<vmem>>, vector<1x8x32xf32>
    %190 = vector.shape_cast %189 : vector<1x8x32xf32> to vector<8x32xf32>
    %191 = arith.truncf %186 : vector<8x128xf32> to vector<8x128xbf16>
    %cst_109 = arith.constant dense<0.000000e+00> : vector<8x32xf32>
    %192 = tpu.matmul %191, %188, %cst_109 {dimension_numbers = #tpu.dot_dimension_numbers<[1], [0], [0], [1], [0, 0, 1, 1], [], []>} : vector<8x128xbf16>, vector<128x32xbf16>, vector<8x32xf32> -> vector<8x32xf32>
    %193 = arith.addf %190, %192 : vector<8x32xf32>
    %c0_110 = arith.constant 0 : index
    %c0_111 = arith.constant 0 : index
    %c0_112 = arith.constant 0 : index
    %194 = vector.load %arg16[%c0_110, %c0_111, %c0_112] : memref<1x8x32xf32, #tpu.memory_space<vmem>>, vector<1x8x32xf32>
    %195 = vector.shape_cast %194 : vector<1x8x32xf32> to vector<8x32xf32>
    %196 = vector.shape_cast %193 : vector<8x32xf32> to vector<1x8x32xf32>
    tpu.vector_store %arg16[%c0_110, %c0_111, %c0_112], %196 {strides = array<i32>} : memref<1x8x32xf32, #tpu.memory_space<vmem>>, vector<1x8x32xf32>,
    %c1_i32_113 = arith.constant 1 : i32
    return
  }
  func.func @transform_0(%arg0: i32) -> (i32, i32, i32) {
    %c0_i32 = arith.constant 0 : i32
    %c0_i32_0 = arith.constant 0 : i32
    %c0_i32_1 = arith.constant 0 : i32
    return %arg0, %c0_i32, %c0_i32_0 : i32, i32, i32
  }
  func.func @transform_1(%arg0: i32) -> (i32, i32) {
    %c0_i32 = arith.constant 0 : i32
    %c0_i32_0 = arith.constant 0 : i32
    %c0_i32_1 = arith.constant 0 : i32
    return %c0_i32, %c0_i32_0 : i32, i32
  }
  func.func @transform_2(%arg0: i32) -> (i32, i32) {
    %c0_i32 = arith.constant 0 : i32
    %c0_i32_0 = arith.constant 0 : i32
    %c0_i32_1 = arith.constant 0 : i32
    return %c0_i32, %c0_i32_0 : i32, i32
  }
  func.func @transform_3(%arg0: i32) -> (i32, i32) {
    %c0_i32 = arith.constant 0 : i32
    %c0_i32_0 = arith.constant 0 : i32
    %c0_i32_1 = arith.constant 0 : i32
    return %c0_i32, %c0_i32_0 : i32, i32
  }
  func.func @transform_4(%arg0: i32) -> (i32, i32) {
    %c0_i32 = arith.constant 0 : i32
    %c0_i32_0 = arith.constant 0 : i32
    %c0_i32_1 = arith.constant 0 : i32
    return %c0_i32, %c0_i32_0 : i32, i32
  }
  func.func @transform_5(%arg0: i32) -> (i32, i32) {
    %c0_i32 = arith.constant 0 : i32
    %c0_i32_0 = arith.constant 0 : i32
    %c0_i32_1 = arith.constant 0 : i32
    return %c0_i32, %c0_i32_0 : i32, i32
  }
  func.func @transform_6(%arg0: i32) -> (i32, i32) {
    %c0_i32 = arith.constant 0 : i32
    %c0_i32_0 = arith.constant 0 : i32
    %c0_i32_1 = arith.constant 0 : i32
    return %c0_i32, %c0_i32_0 : i32, i32
  }
  func.func @transform_7(%arg0: i32) -> (i32, i32) {
    %c0_i32 = arith.constant 0 : i32
    %c0_i32_0 = arith.constant 0 : i32
    %c0_i32_1 = arith.constant 0 : i32
    return %c0_i32, %c0_i32_0 : i32, i32
  }
  func.func @transform_8(%arg0: i32) -> (i32, i32) {
    %c0_i32 = arith.constant 0 : i32
    %c0_i32_0 = arith.constant 0 : i32
    %c0_i32_1 = arith.constant 0 : i32
    return %c0_i32, %c0_i32_0 : i32, i32
  }
  func.func @transform_9(%arg0: i32) -> (i32, i32) {
    %c0_i32 = arith.constant 0 : i32
    %c0_i32_0 = arith.constant 0 : i32
    %c0_i32_1 = arith.constant 0 : i32
    return %c0_i32, %c0_i32_0 : i32, i32
  }
  func.func @transform_10(%arg0: i32) -> (i32, i32) {
    %c0_i32 = arith.constant 0 : i32
    %c0_i32_0 = arith.constant 0 : i32
    %c0_i32_1 = arith.constant 0 : i32
    return %c0_i32, %c0_i32_0 : i32, i32
  }
  func.func @transform_11(%arg0: i32) -> (i32, i32) {
    %c0_i32 = arith.constant 0 : i32
    %c0_i32_0 = arith.constant 0 : i32
    %c0_i32_1 = arith.constant 0 : i32
    return %c0_i32, %c0_i32_0 : i32, i32
  }
  func.func @transform_12(%arg0: i32) -> (i32, i32) {
    %c0_i32 = arith.constant 0 : i32
    %c0_i32_0 = arith.constant 0 : i32
    %c0_i32_1 = arith.constant 0 : i32
    return %c0_i32, %c0_i32_0 : i32, i32
  }
  func.func @transform_13(%arg0: i32) -> (i32, i32) {
    %c0_i32 = arith.constant 0 : i32
    %c0_i32_0 = arith.constant 0 : i32
    %c0_i32_1 = arith.constant 0 : i32
    return %c0_i32, %c0_i32_0 : i32, i32
  }
  func.func @transform_14(%arg0: i32) -> (i32, i32) {
    %c0_i32 = arith.constant 0 : i32
    %c0_i32_0 = arith.constant 0 : i32
    %c0_i32_1 = arith.constant 0 : i32
    return %c0_i32, %c0_i32_0 : i32, i32
  }
  func.func @transform_15(%arg0: i32) -> (i32, i32, i32) {
    %c0_i32 = arith.constant 0 : i32
    %c0_i32_0 = arith.constant 0 : i32
    %c0_i32_1 = arith.constant 0 : i32
    return %arg0, %c0_i32, %c0_i32_0 : i32, i32, i32
  }
  func.func @transform_16(%arg0: i32) -> (i32, i32, i32, i32) {
    %c0_i32 = arith.constant 0 : i32
    %c0_i32_0 = arith.constant 0 : i32
    %c0_i32_1 = arith.constant 0 : i32
    %c0_i32_2 = arith.constant 0 : i32
    return %arg0, %c0_i32, %c0_i32_0, %c0_i32_1 : i32, i32, i32, i32
  }
}

module attributes {stable_mosaic.version = 11 : i64} {
  func.func @gpt2_block_kernel(%arg0: i32, %arg1: memref<1x8x32xf32, #tpu.memory_space<vmem>>, %arg2: memref<1x32xf32, #tpu.memory_space<vmem>>, %arg3: memref<1x32xf32, #tpu.memory_space<vmem>>, %arg4: memref<32x96xbf16, #tpu.memory_space<vmem>>, %arg5: memref<1x96xf32, #tpu.memory_space<vmem>>, %arg6: memref<32x32xbf16, #tpu.memory_space<vmem>>, %arg7: memref<1x32xf32, #tpu.memory_space<vmem>>, %arg8: memref<1x32xf32, #tpu.memory_space<vmem>>, %arg9: memref<1x32xf32, #tpu.memory_space<vmem>>, %arg10: memref<128x32xbf16, #tpu.memory_space<vmem>>, %arg11: memref<1x128xf32, #tpu.memory_space<vmem>>, %arg12: memref<128x32xbf16, #tpu.memory_space<vmem>>, %arg13: memref<1x32xf32, #tpu.memory_space<vmem>>, %arg14: memref<1x32xf32, #tpu.memory_space<vmem>>, %arg15: memref<1x32xf32, #tpu.memory_space<vmem>>, %arg16: memref<1x8x32xf32, #tpu.memory_space<vmem>>, %arg17: memref<1x2x8x32xbf16, #tpu.memory_space<vmem>>, %arg18: memref<4x8x8xbf16, #tpu.memory_space<vmem>>, %arg19: memref<4x8x8xbf16, #tpu.memory_space<vmem>>, %arg20: memref<4x8x1xf32, #tpu.memory_space<vmem>>, %arg21: memref<4x8x1xf32, #tpu.memory_space<vmem>>, %arg22: memref<4x8x8xf32, #tpu.memory_space<vmem>>) attributes {dimension_semantics = [#tpu.dimension_semantics<parallel>], iteration_bounds = array<i64: 2>, scalar_prefetch = 0 : i64, scratch_operands = 5 : i64, tpu.core_type = #tpu.core_type<tc>, window_params = [{transform_indices = @transform_0, window_bounds = array<i64: 1, 8, 32>}, {pipeline_mode = #tpu.pipeline_mode<synchronous>, transform_indices = @transform_1, window_bounds = array<i64: 1, 32>}, {pipeline_mode = #tpu.pipeline_mode<synchronous>, transform_indices = @transform_2, window_bounds = array<i64: 1, 32>}, {pipeline_mode = #tpu.pipeline_mode<synchronous>, transform_indices = @transform_3, window_bounds = array<i64: 32, 96>}, {pipeline_mode = #tpu.pipeline_mode<synchronous>, transform_indices = @transform_4, window_bounds = array<i64: 1, 96>}, {pipeline_mode = #tpu.pipeline_mode<synchronous>, transform_indices = @transform_5, window_bounds = array<i64: 32, 32>}, {pipeline_mode = #tpu.pipeline_mode<synchronous>, transform_indices = @transform_6, window_bounds = array<i64: 1, 32>}, {pipeline_mode = #tpu.pipeline_mode<synchronous>, transform_indices = @transform_7, window_bounds = array<i64: 1, 32>}, {pipeline_mode = #tpu.pipeline_mode<synchronous>, transform_indices = @transform_8, window_bounds = array<i64: 1, 32>}, {pipeline_mode = #tpu.pipeline_mode<synchronous>, transform_indices = @transform_9, window_bounds = array<i64: 128, 32>}, {pipeline_mode = #tpu.pipeline_mode<synchronous>, transform_indices = @transform_10, window_bounds = array<i64: 1, 128>}, {pipeline_mode = #tpu.pipeline_mode<synchronous>, transform_indices = @transform_11, window_bounds = array<i64: 128, 32>}, {pipeline_mode = #tpu.pipeline_mode<synchronous>, transform_indices = @transform_12, window_bounds = array<i64: 1, 32>}, {pipeline_mode = #tpu.pipeline_mode<synchronous>, transform_indices = @transform_13, window_bounds = array<i64: 1, 32>}, {pipeline_mode = #tpu.pipeline_mode<synchronous>, transform_indices = @transform_14, window_bounds = array<i64: 1, 32>}, {transform_indices = @transform_15, window_bounds = array<i64: 1, 8, 32>}, {transform_indices = @transform_16, window_bounds = array<i64: 1, 2, 8, 32>}]} {
    %c0 = arith.constant 0 : index
    %c0_0 = arith.constant 0 : index
    %c0_1 = arith.constant 0 : index
    %0 = vector.load %arg1[%c0, %c0_0, %c0_1] : memref<1x8x32xf32, #tpu.memory_space<vmem>>, vector<1x8x32xf32>
    %1 = vector.shape_cast %0 : vector<1x8x32xf32> to vector<8x32xf32>
    %c0_2 = arith.constant 0 : index
    %c0_3 = arith.constant 0 : index
    %2 = vector.load %arg2[%c0_2, %c0_3] : memref<1x32xf32, #tpu.memory_space<vmem>>, vector<1x32xf32>
    %3 = vector.shape_cast %2 : vector<1x32xf32> to vector<32xf32>
    %c0_4 = arith.constant 0 : index
    %c0_5 = arith.constant 0 : index
    %4 = vector.load %arg3[%c0_4, %c0_5] : memref<1x32xf32, #tpu.memory_space<vmem>>, vector<1x32xf32>
    %5 = vector.shape_cast %4 : vector<1x32xf32> to vector<32xf32>
    %cst = arith.constant dense<0.000000e+00> : vector<8xf32>
    %6 = vector.multi_reduction <add>, %1, %cst [1] : vector<8x32xf32> to vector<8xf32>
    %7 = vector.shape_cast %6 : vector<8xf32> to vector<8x1xf32>
    %cst_6 = arith.constant 3.200000e+01 : f32
    %8 = vector.broadcast %cst_6 : f32 to vector<8x1xf32>
    %9 = arith.divf %7, %8 : vector<8x1xf32>
    %10 = vector.broadcast %9 : vector<8x1xf32> to vector<8x32xf32>
    %11 = arith.subf %1, %10 : vector<8x32xf32>
    %12 = arith.mulf %11, %11 : vector<8x32xf32>
    %cst_7 = arith.constant dense<0.000000e+00> : vector<8xf32>
    %13 = vector.multi_reduction <add>, %12, %cst_7 [1] : vector<8x32xf32> to vector<8xf32>
    %14 = vector.shape_cast %13 : vector<8xf32> to vector<8x1xf32>
    %cst_8 = arith.constant 3.200000e+01 : f32
    %15 = vector.broadcast %cst_8 : f32 to vector<8x1xf32>
    %16 = arith.divf %14, %15 : vector<8x1xf32>
    %17 = vector.broadcast %9 : vector<8x1xf32> to vector<8x32xf32>
    %18 = arith.subf %1, %17 : vector<8x32xf32>
    %cst_9 = arith.constant 9.99999974E-6 : f32
    %19 = vector.broadcast %cst_9 : f32 to vector<8x1xf32>
    %20 = arith.addf %16, %19 : vector<8x1xf32>
    %21 = math.rsqrt %20 : vector<8x1xf32>
    %22 = vector.broadcast %21 : vector<8x1xf32> to vector<8x32xf32>
    %23 = arith.mulf %18, %22 : vector<8x32xf32>
    %24 = vector.shape_cast %3 : vector<32xf32> to vector<1x32xf32>
    %25 = vector.broadcast %24 : vector<1x32xf32> to vector<8x32xf32>
    %26 = arith.mulf %23, %25 : vector<8x32xf32>
    %27 = vector.shape_cast %5 : vector<32xf32> to vector<1x32xf32>
    %28 = vector.broadcast %27 : vector<1x32xf32> to vector<8x32xf32>
    %29 = arith.addf %26, %28 : vector<8x32xf32>
    %30 = arith.truncf %29 : vector<8x32xf32> to vector<8x32xbf16>
    %c0_10 = arith.constant 0 : index
    %c0_11 = arith.constant 0 : index
    %31 = vector.load %arg4[%c0_10, %c0_11] : memref<32x96xbf16, #tpu.memory_space<vmem>>, vector<32x96xbf16>
    %cst_12 = arith.constant dense<0.000000e+00> : vector<8x96xf32>
    %32 = tpu.matmul %30, %31, %cst_12 {dimension_numbers = #tpu.dot_dimension_numbers<[1], [0], [0], [1], [0, 0, 1, 1], [], []>} : vector<8x32xbf16>, vector<32x96xbf16>, vector<8x96xf32> -> vector<8x96xf32>
    %c0_13 = arith.constant 0 : index
    %c0_14 = arith.constant 0 : index
    %33 = vector.load %arg5[%c0_13, %c0_14] : memref<1x96xf32, #tpu.memory_space<vmem>>, vector<1x96xf32>
    %34 = vector.shape_cast %33 : vector<1x96xf32> to vector<96xf32>
    %35 = vector.shape_cast %34 : vector<96xf32> to vector<1x96xf32>
    %36 = vector.broadcast %35 : vector<1x96xf32> to vector<8x96xf32>
    %37 = arith.addf %32, %36 : vector<8x96xf32>
    %38 = vector.extract_strided_slice %37 {offsets = [0, 0], sizes = [8, 32], strides = [1, 1]} : vector<8x96xf32> to vector<8x32xf32>
    %39 = vector.extract_strided_slice %37 {offsets = [0, 32], sizes = [8, 32], strides = [1, 1]} : vector<8x96xf32> to vector<8x32xf32>
    %40 = vector.extract_strided_slice %37 {offsets = [0, 64], sizes = [8, 32], strides = [1, 1]} : vector<8x96xf32> to vector<8x32xf32>
    %41 = arith.truncf %39 : vector<8x32xf32> to vector<8x32xbf16>
    %c0_15 = arith.constant 0 : index
    %c0_16 = arith.constant 0 : index
    %c0_17 = arith.constant 0 : index
    %c0_18 = arith.constant 0 : index
    %42 = vector.load %arg17[%c0_15, %c0_16, %c0_17, %c0_18] : memref<1x2x8x32xbf16, #tpu.memory_space<vmem>>, vector<1x1x8x32xbf16>
    %43 = vector.shape_cast %42 : vector<1x1x8x32xbf16> to vector<8x32xbf16>
    %44 = vector.shape_cast %41 : vector<8x32xbf16> to vector<1x1x8x32xbf16>
    tpu.vector_store %arg17[%c0_15, %c0_16, %c0_17, %c0_18], %44 {strides = array<i32>} : memref<1x2x8x32xbf16, #tpu.memory_space<vmem>>, vector<1x1x8x32xbf16>,
    %45 = arith.truncf %40 : vector<8x32xf32> to vector<8x32xbf16>
    %c0_19 = arith.constant 0 : index
    %c1 = arith.constant 1 : index
    %c0_20 = arith.constant 0 : index
    %c0_21 = arith.constant 0 : index
    %46 = vector.load %arg17[%c0_19, %c1, %c0_20, %c0_21] : memref<1x2x8x32xbf16, #tpu.memory_space<vmem>>, vector<1x1x8x32xbf16>
    %47 = vector.shape_cast %46 : vector<1x1x8x32xbf16> to vector<8x32xbf16>
    %48 = vector.shape_cast %45 : vector<8x32xbf16> to vector<1x1x8x32xbf16>
    tpu.vector_store %arg17[%c0_19, %c1, %c0_20, %c0_21], %48 {strides = array<i32>} : memref<1x2x8x32xbf16, #tpu.memory_space<vmem>>, vector<1x1x8x32xbf16>,
    %cst_22 = arith.constant 0.353553385 : f32
    %49 = vector.broadcast %cst_22 : f32 to vector<8x32xf32>
    %50 = arith.mulf %38, %49 : vector<8x32xf32>
    %51 = vector.shape_cast %50 : vector<8x32xf32> to vector<8x4x8xf32>
    %52 = tpu.transpose %51, [1, 0, 2] : vector<8x4x8xf32> -> vector<4x8x8xf32>
    %53 = arith.truncf %52 : vector<4x8x8xf32> to vector<4x8x8xbf16>
    %54 = vector.shape_cast %39 : vector<8x32xf32> to vector<8x4x8xf32>
    %55 = tpu.transpose %54, [1, 0, 2] : vector<8x4x8xf32> -> vector<4x8x8xf32>
    %56 = arith.truncf %55 : vector<4x8x8xf32> to vector<4x8x8xbf16>
    %c0_23 = arith.constant 0 : index
    %c0_24 = arith.constant 0 : index
    %c0_25 = arith.constant 0 : index
    %57 = vector.load %arg18[%c0_23, %c0_24, %c0_25] : memref<4x8x8xbf16, #tpu.memory_space<vmem>>, vector<4x8x8xbf16>
    tpu.vector_store %arg18[%c0_23, %c0_24, %c0_25], %56 {strides = array<i32>} : memref<4x8x8xbf16, #tpu.memory_space<vmem>>, vector<4x8x8xbf16>,
    %58 = vector.shape_cast %40 : vector<8x32xf32> to vector<8x4x8xf32>
    %59 = tpu.transpose %58, [1, 0, 2] : vector<8x4x8xf32> -> vector<4x8x8xf32>
    %60 = arith.truncf %59 : vector<4x8x8xf32> to vector<4x8x8xbf16>
    %c0_26 = arith.constant 0 : index
    %c0_27 = arith.constant 0 : index
    %c0_28 = arith.constant 0 : index
    %61 = vector.load %arg19[%c0_26, %c0_27, %c0_28] : memref<4x8x8xbf16, #tpu.memory_space<vmem>>, vector<4x8x8xbf16>
    tpu.vector_store %arg19[%c0_26, %c0_27, %c0_28], %60 {strides = array<i32>} : memref<4x8x8xbf16, #tpu.memory_space<vmem>>, vector<4x8x8xbf16>,
    %cst_29 = arith.constant 0xFF800000 : f32
    %62 = vector.broadcast %cst_29 : f32 to vector<4x8x1xf32>
    %c0_30 = arith.constant 0 : index
    %c0_31 = arith.constant 0 : index
    %c0_32 = arith.constant 0 : index
    %63 = vector.load %arg20[%c0_30, %c0_31, %c0_32] : memref<4x8x1xf32, #tpu.memory_space<vmem>>, vector<4x8x1xf32>
    tpu.vector_store %arg20[%c0_30, %c0_31, %c0_32], %62 {strides = array<i32>} : memref<4x8x1xf32, #tpu.memory_space<vmem>>, vector<4x8x1xf32>,
    %cst_33 = arith.constant 0.000000e+00 : f32
    %64 = vector.broadcast %cst_33 : f32 to vector<4x8x1xf32>
    %c0_34 = arith.constant 0 : index
    %c0_35 = arith.constant 0 : index
    %c0_36 = arith.constant 0 : index
    %65 = vector.load %arg21[%c0_34, %c0_35, %c0_36] : memref<4x8x1xf32, #tpu.memory_space<vmem>>, vector<4x8x1xf32>
    tpu.vector_store %arg21[%c0_34, %c0_35, %c0_36], %64 {strides = array<i32>} : memref<4x8x1xf32, #tpu.memory_space<vmem>>, vector<4x8x1xf32>,
    %cst_37 = arith.constant 0.000000e+00 : f32
    %66 = vector.broadcast %cst_37 : f32 to vector<4x8x8xf32>
    %c0_38 = arith.constant 0 : index
    %c0_39 = arith.constant 0 : index
    %c0_40 = arith.constant 0 : index
    %67 = vector.load %arg22[%c0_38, %c0_39, %c0_40] : memref<4x8x8xf32, #tpu.memory_space<vmem>>, vector<4x8x8xf32>
    tpu.vector_store %arg22[%c0_38, %c0_39, %c0_40], %66 {strides = array<i32>} : memref<4x8x8xf32, #tpu.memory_space<vmem>>, vector<4x8x8xf32>,
    %68 = tpu.iota {dimensions = array<i32: 0>} : vector<8x8xi32>
    %69 = tpu.iota {dimensions = array<i32: 1>} : vector<8x8xi32>
    %c0_i32 = arith.constant 0 : i32
    %c1_i32 = arith.constant 1 : i32
    %70 = arith.muli %c0_i32, %c1_i32 : i32
    %c0_i32_41 = arith.constant 0 : i32
    %71 = arith.addi %c0_i32_41, %70 : i32
    %c8_i32 = arith.constant 8 : i32
    %72 = arith.muli %71, %c8_i32 : i32
    %73 = tpu.assume_multiple %72, 8 : i32
    %c0_42 = arith.constant 0 : index
    %74 = arith.index_cast %73 : i32 to index
    %c0_43 = arith.constant 0 : index
    %75 = vector.load %arg18[%c0_42, %74, %c0_43] : memref<4x8x8xbf16, #tpu.memory_space<vmem>>, vector<4x8x8xbf16>
    %c0_44 = arith.constant 0 : index
    %76 = arith.index_cast %73 : i32 to index
    %c0_45 = arith.constant 0 : index
    %77 = vector.load %arg19[%c0_44, %76, %c0_45] : memref<4x8x8xbf16, #tpu.memory_space<vmem>>, vector<4x8x8xbf16>
    "tpu.trace_start"() <{level = 10 : i32, message = "hqd,hkd->hqk"}> : () -> ()
    %cst_46 = arith.constant dense<0.000000e+00> : vector<4x8x8xf32>
    %78 = tpu.matmul %53, %75, %cst_46 {dimension_numbers = #tpu.dot_dimension_numbers<[2], [2], [1], [1], [0, 0, 0, 1, 1, 1], [0], [0]>} : vector<4x8x8xbf16>, vector<4x8x8xbf16>, vector<4x8x8xf32> -> vector<4x8x8xf32>
    "tpu.trace_stop"() : () -> ()
    %79 = vector.broadcast %73 : i32 to vector<8x8xi32>
    %80 = arith.addi %69, %79 : vector<8x8xi32>
    %81 = arith.cmpi sle, %80, %68 : vector<8x8xi32>
    %82 = vector.shape_cast %81 : vector<8x8xi1> to vector<1x8x8xi1>
    %cst_47 = arith.constant -1.000000e+04 : f32
    %83 = vector.shape_cast %82 : vector<1x8x8xi1> to vector<1x8x8xi1>
    %84 = vector.broadcast %83 : vector<1x8x8xi1> to vector<4x8x8xi1>
    %85 = vector.broadcast %cst_47 : f32 to vector<4x8x8xf32>
    %86 = arith.select %84, %78, %85 : vector<4x8x8xi1>, vector<4x8x8xf32>
    %c0_48 = arith.constant 0 : index
    %c0_49 = arith.constant 0 : index
    %c0_50 = arith.constant 0 : index
    %87 = vector.load %arg20[%c0_48, %c0_49, %c0_50] : memref<4x8x1xf32, #tpu.memory_space<vmem>>, vector<4x8x1xf32>
    %cst_51 = arith.constant dense<0xFF800000> : vector<4x8xf32>
    %88 = vector.multi_reduction <maximumf>, %86, %cst_51 [2] : vector<4x8x8xf32> to vector<4x8xf32>
    %89 = vector.shape_cast %88 : vector<4x8xf32> to vector<4x8x1xf32>
    %90 = arith.maximumf %87, %89 : vector<4x8x1xf32>
    %91 = arith.subf %87, %90 : vector<4x8x1xf32>
    %92 = math.exp %91 : vector<4x8x1xf32>
    %93 = vector.broadcast %90 : vector<4x8x1xf32> to vector<4x8x8xf32>
    %94 = arith.subf %86, %93 : vector<4x8x8xf32>
    %95 = math.exp %94 : vector<4x8x8xf32>
    %c0_52 = arith.constant 0 : index
    %c0_53 = arith.constant 0 : index
    %c0_54 = arith.constant 0 : index
    %96 = vector.load %arg21[%c0_52, %c0_53, %c0_54] : memref<4x8x1xf32, #tpu.memory_space<vmem>>, vector<4x8x1xf32>
    %97 = arith.mulf %92, %96 : vector<4x8x1xf32>
    %cst_55 = arith.constant dense<0.000000e+00> : vector<4x8xf32>
    %98 = vector.multi_reduction <add>, %95, %cst_55 [2] : vector<4x8x8xf32> to vector<4x8xf32>
    %99 = vector.shape_cast %98 : vector<4x8xf32> to vector<4x8x1xf32>
    %100 = arith.addf %97, %99 : vector<4x8x1xf32>
    %c0_56 = arith.constant 0 : index
    %c0_57 = arith.constant 0 : index
    %c0_58 = arith.constant 0 : index
    %101 = vector.load %arg21[%c0_56, %c0_57, %c0_58] : memref<4x8x1xf32, #tpu.memory_space<vmem>>, vector<4x8x1xf32>
    tpu.vector_store %arg21[%c0_56, %c0_57, %c0_58], %100 {strides = array<i32>} : memref<4x8x1xf32, #tpu.memory_space<vmem>>, vector<4x8x1xf32>,
    %c0_59 = arith.constant 0 : index
    %c0_60 = arith.constant 0 : index
    %c0_61 = arith.constant 0 : index
    %102 = vector.load %arg22[%c0_59, %c0_60, %c0_61] : memref<4x8x8xf32, #tpu.memory_space<vmem>>, vector<4x8x8xf32>
    %103 = vector.broadcast %92 : vector<4x8x1xf32> to vector<4x8x8xf32>
    %104 = arith.mulf %103, %102 : vector<4x8x8xf32>
    %105 = arith.truncf %95 : vector<4x8x8xf32> to vector<4x8x8xbf16>
    "tpu.trace_start"() <{level = 10 : i32, message = "hqk,hkd->hqd"}> : () -> ()
    %cst_62 = arith.constant dense<0.000000e+00> : vector<4x8x8xf32>
    %106 = tpu.matmul %105, %77, %cst_62 {dimension_numbers = #tpu.dot_dimension_numbers<[2], [1], [1], [2], [0, 0, 0, 1, 1, 2], [0], [0]>} : vector<4x8x8xbf16>, vector<4x8x8xbf16>, vector<4x8x8xf32> -> vector<4x8x8xf32>
    "tpu.trace_stop"() : () -> ()
    %107 = arith.addf %104, %106 : vector<4x8x8xf32>
    %c0_63 = arith.constant 0 : index
    %c0_64 = arith.constant 0 : index
    %c0_65 = arith.constant 0 : index
    %108 = vector.load %arg22[%c0_63, %c0_64, %c0_65] : memref<4x8x8xf32, #tpu.memory_space<vmem>>, vector<4x8x8xf32>
    tpu.vector_store %arg22[%c0_63, %c0_64, %c0_65], %107 {strides = array<i32>} : memref<4x8x8xf32, #tpu.memory_space<vmem>>, vector<4x8x8xf32>,
    %c0_66 = arith.constant 0 : index
    %c0_67 = arith.constant 0 : index
    %c0_68 = arith.constant 0 : index
    %109 = vector.load %arg20[%c0_66, %c0_67, %c0_68] : memref<4x8x1xf32, #tpu.memory_space<vmem>>, vector<4x8x1xf32>
    tpu.vector_store %arg20[%c0_66, %c0_67, %c0_68], %90 {strides = array<i32>} : memref<4x8x1xf32, #tpu.memory_space<vmem>>, vector<4x8x1xf32>,
    %c1_i32_69 = arith.constant 1 : i32
    %c0_70 = arith.constant 0 : index
    %c0_71 = arith.constant 0 : index
    %c0_72 = arith.constant 0 : index
    %110 = vector.load %arg22[%c0_70, %c0_71, %c0_72] : memref<4x8x8xf32, #tpu.memory_space<vmem>>, vector<4x8x8xf32>
    %c0_73 = arith.constant 0 : index
    %c0_74 = arith.constant 0 : index
    %c0_75 = arith.constant 0 : index
    %111 = vector.load %arg21[%c0_73, %c0_74, %c0_75] : memref<4x8x1xf32, #tpu.memory_space<vmem>>, vector<4x8x1xf32>
    %112 = tpu.reciprocal %111 {approx = true} : vector<4x8x1xf32> -> vector<4x8x1xf32>
    %113 = vector.broadcast %112 : vector<4x8x1xf32> to vector<4x8x8xf32>
    %114 = arith.mulf %110, %113 : vector<4x8x8xf32>
    %115 = tpu.transpose %114, [1, 0, 2] : vector<4x8x8xf32> -> vector<8x4x8xf32>
    %116 = vector.shape_cast %115 : vector<8x4x8xf32> to vector<8x32xf32>
    %117 = arith.truncf %116 : vector<8x32xf32> to vector<8x32xbf16>
    %c0_76 = arith.constant 0 : index
    %c0_77 = arith.constant 0 : index
    %118 = vector.load %arg6[%c0_76, %c0_77] : memref<32x32xbf16, #tpu.memory_space<vmem>>, vector<32x32xbf16>
    %cst_78 = arith.constant dense<0.000000e+00> : vector<8x32xf32>
    %119 = tpu.matmul %117, %118, %cst_78 {dimension_numbers = #tpu.dot_dimension_numbers<[1], [0], [0], [1], [0, 0, 1, 1], [], []>} : vector<8x32xbf16>, vector<32x32xbf16>, vector<8x32xf32> -> vector<8x32xf32>
    %c0_79 = arith.constant 0 : index
    %c0_80 = arith.constant 0 : index
    %120 = vector.load %arg7[%c0_79, %c0_80] : memref<1x32xf32, #tpu.memory_space<vmem>>, vector<1x32xf32>
    %121 = vector.shape_cast %120 : vector<1x32xf32> to vector<32xf32>
    %122 = vector.shape_cast %121 : vector<32xf32> to vector<1x32xf32>
    %123 = vector.broadcast %122 : vector<1x32xf32> to vector<8x32xf32>
    %124 = arith.addf %119, %123 : vector<8x32xf32>
    %125 = arith.addf %1, %124 : vector<8x32xf32>
    %c0_81 = arith.constant 0 : index
    %c0_82 = arith.constant 0 : index
    %126 = vector.load %arg8[%c0_81, %c0_82] : memref<1x32xf32, #tpu.memory_space<vmem>>, vector<1x32xf32>
    %127 = vector.shape_cast %126 : vector<1x32xf32> to vector<32xf32>
    %c0_83 = arith.constant 0 : index
    %c0_84 = arith.constant 0 : index
    %128 = vector.load %arg9[%c0_83, %c0_84] : memref<1x32xf32, #tpu.memory_space<vmem>>, vector<1x32xf32>
    %129 = vector.shape_cast %128 : vector<1x32xf32> to vector<32xf32>
    %cst_85 = arith.constant dense<0.000000e+00> : vector<8xf32>
    %130 = vector.multi_reduction <add>, %125, %cst_85 [1] : vector<8x32xf32> to vector<8xf32>
    %131 = vector.shape_cast %130 : vector<8xf32> to vector<8x1xf32>
    %cst_86 = arith.constant 3.200000e+01 : f32
    %132 = vector.broadcast %cst_86 : f32 to vector<8x1xf32>
    %133 = arith.divf %131, %132 : vector<8x1xf32>
    %134 = vector.broadcast %133 : vector<8x1xf32> to vector<8x32xf32>
    %135 = arith.subf %125, %134 : vector<8x32xf32>
    %136 = arith.mulf %135, %135 : vector<8x32xf32>
    %cst_87 = arith.constant dense<0.000000e+00> : vector<8xf32>
    %137 = vector.multi_reduction <add>, %136, %cst_87 [1] : vector<8x32xf32> to vector<8xf32>
    %138 = vector.shape_cast %137 : vector<8xf32> to vector<8x1xf32>
    %cst_88 = arith.constant 3.200000e+01 : f32
    %139 = vector.broadcast %cst_88 : f32 to vector<8x1xf32>
    %140 = arith.divf %138, %139 : vector<8x1xf32>
    %141 = vector.broadcast %133 : vector<8x1xf32> to vector<8x32xf32>
    %142 = arith.subf %125, %141 : vector<8x32xf32>
    %cst_89 = arith.constant 9.99999974E-6 : f32
    %143 = vector.broadcast %cst_89 : f32 to vector<8x1xf32>
    %144 = arith.addf %140, %143 : vector<8x1xf32>
    %145 = math.rsqrt %144 : vector<8x1xf32>
    %146 = vector.broadcast %145 : vector<8x1xf32> to vector<8x32xf32>
    %147 = arith.mulf %142, %146 : vector<8x32xf32>
    %148 = vector.shape_cast %127 : vector<32xf32> to vector<1x32xf32>
    %149 = vector.broadcast %148 : vector<1x32xf32> to vector<8x32xf32>
    %150 = arith.mulf %147, %149 : vector<8x32xf32>
    %151 = vector.shape_cast %129 : vector<32xf32> to vector<1x32xf32>
    %152 = vector.broadcast %151 : vector<1x32xf32> to vector<8x32xf32>
    %153 = arith.addf %150, %152 : vector<8x32xf32>
    %154 = arith.truncf %153 : vector<8x32xf32> to vector<8x32xbf16>
    %c0_90 = arith.constant 0 : index
    %c0_91 = arith.constant 0 : index
    %155 = vector.load %arg13[%c0_90, %c0_91] : memref<1x32xf32, #tpu.memory_space<vmem>>, vector<1x32xf32>
    %156 = vector.shape_cast %155 : vector<1x32xf32> to vector<32xf32>
    %157 = vector.shape_cast %156 : vector<32xf32> to vector<1x32xf32>
    %158 = vector.broadcast %157 : vector<1x32xf32> to vector<8x32xf32>
    %159 = arith.addf %125, %158 : vector<8x32xf32>
    %c0_92 = arith.constant 0 : index
    %c0_93 = arith.constant 0 : index
    %c0_94 = arith.constant 0 : index
    %160 = vector.load %arg16[%c0_92, %c0_93, %c0_94] : memref<1x8x32xf32, #tpu.memory_space<vmem>>, vector<1x8x32xf32>
    %161 = vector.shape_cast %160 : vector<1x8x32xf32> to vector<8x32xf32>
    %162 = vector.shape_cast %159 : vector<8x32xf32> to vector<1x8x32xf32>
    tpu.vector_store %arg16[%c0_92, %c0_93, %c0_94], %162 {strides = array<i32>} : memref<1x8x32xf32, #tpu.memory_space<vmem>>, vector<1x8x32xf32>,
    %c0_i32_95 = arith.constant 0 : i32
    %c1_i32_96 = arith.constant 1 : i32
    %163 = arith.muli %c0_i32_95, %c1_i32_96 : i32
    %c0_i32_97 = arith.constant 0 : i32
    %164 = arith.addi %c0_i32_97, %163 : i32
    %c128_i32 = arith.constant 128 : i32
    %165 = arith.muli %164, %c128_i32 : i32
    %166 = tpu.assume_multiple %165, 128 : i32
    %167 = arith.index_cast %166 : i32 to index
    %c0_98 = arith.constant 0 : index
    %168 = vector.load %arg10[%167, %c0_98] : memref<128x32xbf16, #tpu.memory_space<vmem>>, vector<128x32xbf16>
    %169 = arith.index_cast %164 : i32 to index
    %c0_99 = arith.constant 0 : index
    %170 = vector.load %arg11[%169, %c0_99] : memref<1x128xf32, #tpu.memory_space<vmem>>, vector<1x128xf32>
    %cst_100 = arith.constant dense<0.000000e+00> : vector<8x128xf32>
    %171 = tpu.matmul %154, %168, %cst_100 {dimension_numbers = #tpu.dot_dimension_numbers<[1], [1], [0], [0], [0, 0, 1, 0], [], []>} : vector<8x32xbf16>, vector<128x32xbf16>, vector<8x128xf32> -> vector<8x128xf32>
    %172 = vector.broadcast %170 : vector<1x128xf32> to vector<8x128xf32>
    %173 = arith.addf %171, %172 : vector<8x128xf32>
    %cst_101 = arith.constant 5.000000e-01 : f32
    %174 = vector.broadcast %cst_101 : f32 to vector<8x128xf32>
    %175 = arith.mulf %174, %173 : vector<8x128xf32>
    %176 = arith.mulf %173, %173 : vector<8x128xf32>
    %177 = arith.mulf %173, %176 : vector<8x128xf32>
    %cst_102 = arith.constant 4.471500e-02 : f32
    %178 = vector.broadcast %cst_102 : f32 to vector<8x128xf32>
    %179 = arith.mulf %178, %177 : vector<8x128xf32>
    %180 = arith.addf %173, %179 : vector<8x128xf32>
    %cst_103 = arith.constant 0.797884583 : f32
    %181 = vector.broadcast %cst_103 : f32 to vector<8x128xf32>
    %182 = arith.mulf %181, %180 : vector<8x128xf32>
    %183 = math.tanh %182 : vector<8x128xf32>
    %cst_104 = arith.constant 1.000000e+00 : f32
    %184 = vector.broadcast %cst_104 : f32 to vector<8x128xf32>
    %185 = arith.addf %184, %183 : vector<8x128xf32>
    %186 = arith.mulf %175, %185 : vector<8x128xf32>
    %187 = arith.index_cast %166 : i32 to index
    %c0_105 = arith.constant 0 : index
    %188 = vector.load %arg12[%187, %c0_105] : memref<128x32xbf16, #tpu.memory_space<vmem>>, vector<128x32xbf16>
    %c0_106 = arith.constant 0 : index
    %c0_107 = arith.constant 0 : index
    %c0_108 = arith.constant 0 : index
    %189 = vector.load %arg16[%c0_106, %c0_107, %c0_108] : memref<1x8x32xf32, #tpu.memory_space<vmem>>, vector<1x8x32xf32>
    %190 = vector.shape_cast %189 : vector<1x8x32xf32> to vector<8x32xf32>
    %191 = arith.truncf %186 : vector<8x128xf32> to vector<8x128xbf16>
    %cst_109 = arith.constant dense<0.000000e+00> : vector<8x32xf32>
    %192 = tpu.matmul %191, %188, %cst_109 {dimension_numbers = #tpu.dot_dimension_numbers<[1], [0], [0], [1], [0, 0, 1, 1], [], []>} : vector<8x128xbf16>, vector<128x32xbf16>, vector<8x32xf32> -> vector<8x32xf32>
    %193 = arith.addf %190, %192 : vector<8x32xf32>
    %c0_110 = arith.constant 0 : index
    %c0_111 = arith.constant 0 : index
    %c0_112 = arith.constant 0 : index
    %194 = vector.load %arg16[%c0_110, %c0_111, %c0_112] : memref<1x8x32xf32, #tpu.memory_space<vmem>>, vector<1x8x32xf32>
    %195 = vector.shape_cast %194 : vector<1x8x32xf32> to vector<8x32xf32>
    %196 = vector.shape_cast %193 : vector<8x32xf32> to vector<1x8x32xf32>
    tpu.vector_store %arg16[%c0_110, %c0_111, %c0_112], %196 {strides = array<i32>} : memref<1x8x32xf32, #tpu.memory_space<vmem>>, vector<1x8x32xf32>,
    %c1_i32_113 = arith.constant 1 : i32
    %c0_114 = arith.constant 0 : index
    %c0_115 = arith.constant 0 : index
    %c0_116 = arith.constant 0 : index
    %197 = vector.load %arg16[%c0_114, %c0_115, %c0_116] : memref<1x8x32xf32, #tpu.memory_space<vmem>>, vector<1x8x32xf32>
    %198 = vector.shape_cast %197 : vector<1x8x32xf32> to vector<8x32xf32>
    %c0_117 = arith.constant 0 : index
    %c0_118 = arith.constant 0 : index
    %199 = vector.load %arg14[%c0_117, %c0_118] : memref<1x32xf32, #tpu.memory_space<vmem>>, vector<1x32xf32>
    %200 = vector.shape_cast %199 : vector<1x32xf32> to vector<32xf32>
    %c0_119 = arith.constant 0 : index
    %c0_120 = arith.constant 0 : index
    %201 = vector.load %arg15[%c0_119, %c0_120] : memref<1x32xf32, #tpu.memory_space<vmem>>, vector<1x32xf32>
    %202 = vector.shape_cast %201 : vector<1x32xf32> to vector<32xf32>
    %cst_121 = arith.constant dense<0.000000e+00> : vector<8xf32>
    %203 = vector.multi_reduction <add>, %198, %cst_121 [1] : vector<8x32xf32> to vector<8xf32>
    %204 = vector.shape_cast %203 : vector<8xf32> to vector<8x1xf32>
    %cst_122 = arith.constant 3.200000e+01 : f32
    %205 = vector.broadcast %cst_122 : f32 to vector<8x1xf32>
    %206 = arith.divf %204, %205 : vector<8x1xf32>
    %207 = vector.broadcast %206 : vector<8x1xf32> to vector<8x32xf32>
    %208 = arith.subf %198, %207 : vector<8x32xf32>
    %209 = arith.mulf %208, %208 : vector<8x32xf32>
    %cst_123 = arith.constant dense<0.000000e+00> : vector<8xf32>
    %210 = vector.multi_reduction <add>, %209, %cst_123 [1] : vector<8x32xf32> to vector<8xf32>
    %211 = vector.shape_cast %210 : vector<8xf32> to vector<8x1xf32>
    %cst_124 = arith.constant 3.200000e+01 : f32
    %212 = vector.broadcast %cst_124 : f32 to vector<8x1xf32>
    %213 = arith.divf %211, %212 : vector<8x1xf32>
    %214 = vector.broadcast %206 : vector<8x1xf32> to vector<8x32xf32>
    %215 = arith.subf %198, %214 : vector<8x32xf32>
    %cst_125 = arith.constant 9.99999974E-6 : f32
    %216 = vector.broadcast %cst_125 : f32 to vector<8x1xf32>
    %217 = arith.addf %213, %216 : vector<8x1xf32>
    %218 = math.rsqrt %217 : vector<8x1xf32>
    %219 = vector.broadcast %218 : vector<8x1xf32> to vector<8x32xf32>
    %220 = arith.mulf %215, %219 : vector<8x32xf32>
    %221 = vector.shape_cast %200 : vector<32xf32> to vector<1x32xf32>
    %222 = vector.broadcast %221 : vector<1x32xf32> to vector<8x32xf32>
    %223 = arith.mulf %220, %222 : vector<8x32xf32>
    %224 = vector.shape_cast %202 : vector<32xf32> to vector<1x32xf32>
    %225 = vector.broadcast %224 : vector<1x32xf32> to vector<8x32xf32>
    %226 = arith.addf %223, %225 : vector<8x32xf32>
    %c0_126 = arith.constant 0 : index
    %c0_127 = arith.constant 0 : index
    %c0_128 = arith.constant 0 : index
    %227 = vector.load %arg16[%c0_126, %c0_127, %c0_128] : memref<1x8x32xf32, #tpu.memory_space<vmem>>, vector<1x8x32xf32>
    %228 = vector.shape_cast %227 : vector<1x8x32xf32> to vector<8x32xf32>
    %229 = vector.shape_cast %226 : vector<8x32xf32> to vector<1x8x32xf32>
    tpu.vector_store %arg16[%c0_126, %c0_127, %c0_128], %229 {strides = array<i32>} : memref<1x8x32xf32, #tpu.memory_space<vmem>>, vector<1x8x32xf32>,
    return
  }
  func.func @transform_0(%arg0: i32) -> (i32, i32, i32) {
    %c0_i32 = arith.constant 0 : i32
    %c0_i32_0 = arith.constant 0 : i32
    %c0_i32_1 = arith.constant 0 : i32
    return %arg0, %c0_i32, %c0_i32_0 : i32, i32, i32
  }
  func.func @transform_1(%arg0: i32) -> (i32, i32) {
    %c0_i32 = arith.constant 0 : i32
    %c0_i32_0 = arith.constant 0 : i32
    %c0_i32_1 = arith.constant 0 : i32
    return %c0_i32, %c0_i32_0 : i32, i32
  }
  func.func @transform_2(%arg0: i32) -> (i32, i32) {
    %c0_i32 = arith.constant 0 : i32
    %c0_i32_0 = arith.constant 0 : i32
    %c0_i32_1 = arith.constant 0 : i32
    return %c0_i32, %c0_i32_0 : i32, i32
  }
  func.func @transform_3(%arg0: i32) -> (i32, i32) {
    %c0_i32 = arith.constant 0 : i32
    %c0_i32_0 = arith.constant 0 : i32
    %c0_i32_1 = arith.constant 0 : i32
    return %c0_i32, %c0_i32_0 : i32, i32
  }
  func.func @transform_4(%arg0: i32) -> (i32, i32) {
    %c0_i32 = arith.constant 0 : i32
    %c0_i32_0 = arith.constant 0 : i32
    %c0_i32_1 = arith.constant 0 : i32
    return %c0_i32, %c0_i32_0 : i32, i32
  }
  func.func @transform_5(%arg0: i32) -> (i32, i32) {
    %c0_i32 = arith.constant 0 : i32
    %c0_i32_0 = arith.constant 0 : i32
    %c0_i32_1 = arith.constant 0 : i32
    return %c0_i32, %c0_i32_0 : i32, i32
  }
  func.func @transform_6(%arg0: i32) -> (i32, i32) {
    %c0_i32 = arith.constant 0 : i32
    %c0_i32_0 = arith.constant 0 : i32
    %c0_i32_1 = arith.constant 0 : i32
    return %c0_i32, %c0_i32_0 : i32, i32
  }
  func.func @transform_7(%arg0: i32) -> (i32, i32) {
    %c0_i32 = arith.constant 0 : i32
    %c0_i32_0 = arith.constant 0 : i32
    %c0_i32_1 = arith.constant 0 : i32
    return %c0_i32, %c0_i32_0 : i32, i32
  }
  func.func @transform_8(%arg0: i32) -> (i32, i32) {
    %c0_i32 = arith.constant 0 : i32
    %c0_i32_0 = arith.constant 0 : i32
    %c0_i32_1 = arith.constant 0 : i32
    return %c0_i32, %c0_i32_0 : i32, i32
  }
  func.func @transform_9(%arg0: i32) -> (i32, i32) {
    %c0_i32 = arith.constant 0 : i32
    %c0_i32_0 = arith.constant 0 : i32
    %c0_i32_1 = arith.constant 0 : i32
    return %c0_i32, %c0_i32_0 : i32, i32
  }
  func.func @transform_10(%arg0: i32) -> (i32, i32) {
    %c0_i32 = arith.constant 0 : i32
    %c0_i32_0 = arith.constant 0 : i32
    %c0_i32_1 = arith.constant 0 : i32
    return %c0_i32, %c0_i32_0 : i32, i32
  }
  func.func @transform_11(%arg0: i32) -> (i32, i32) {
    %c0_i32 = arith.constant 0 : i32
    %c0_i32_0 = arith.constant 0 : i32
    %c0_i32_1 = arith.constant 0 : i32
    return %c0_i32, %c0_i32_0 : i32, i32
  }
  func.func @transform_12(%arg0: i32) -> (i32, i32) {
    %c0_i32 = arith.constant 0 : i32
    %c0_i32_0 = arith.constant 0 : i32
    %c0_i32_1 = arith.constant 0 : i32
    return %c0_i32, %c0_i32_0 : i32, i32
  }
  func.func @transform_13(%arg0: i32) -> (i32, i32) {
    %c0_i32 = arith.constant 0 : i32
    %c0_i32_0 = arith.constant 0 : i32
    %c0_i32_1 = arith.constant 0 : i32
    return %c0_i32, %c0_i32_0 : i32, i32
  }
  func.func @transform_14(%arg0: i32) -> (i32, i32) {
    %c0_i32 = arith.constant 0 : i32
    %c0_i32_0 = arith.constant 0 : i32
    %c0_i32_1 = arith.constant 0 : i32
    return %c0_i32, %c0_i32_0 : i32, i32
  }
  func.func @transform_15(%arg0: i32) -> (i32, i32, i32) {
    %c0_i32 = arith.constant 0 : i32
    %c0_i32_0 = arith.constant 0 : i32
    %c0_i32_1 = arith.constant 0 : i32
    return %arg0, %c0_i32, %c0_i32_0 : i32, i32, i32
  }
  func.func @transform_16(%arg0: i32) -> (i32, i32, i32, i32) {
    %c0_i32 = arith.constant 0 : i32
    %c0_i32_0 = arith.constant 0 : i32
    %c0_i32_1 = arith.constant 0 : i32
    %c0_i32_2 = arith.constant 0 : i32
    return %arg0, %c0_i32, %c0_i32_0, %c0_i32_1 : i32, i32, i32, i32
  }
}

module attributes {stable_mosaic.version = 11 : i64} {
  func.func @gpt2_block_kernel(%arg0: i32, %arg1: memref<1x8x32xf32, #tpu.memory_space<vmem>>, %arg2: memref<1x32xf32, #tpu.memory_space<vmem>>, %arg3: memref<1x32xf32, #tpu.memory_space<vmem>>, %arg4: memref<32x96xbf16, #tpu.memory_space<vmem>>, %arg5: memref<1x96xf32, #tpu.memory_space<vmem>>, %arg6: memref<32x32xbf16, #tpu.memory_space<vmem>>, %arg7: memref<1x32xf32, #tpu.memory_space<vmem>>, %arg8: memref<1x32xf32, #tpu.memory_space<vmem>>, %arg9: memref<1x32xf32, #tpu.memory_space<vmem>>, %arg10: memref<128x32xbf16, #tpu.memory_space<vmem>>, %arg11: memref<1x128xf32, #tpu.memory_space<vmem>>, %arg12: memref<128x32xbf16, #tpu.memory_space<vmem>>, %arg13: memref<1x32xf32, #tpu.memory_space<vmem>>, %arg14: memref<1x32xf32, #tpu.memory_space<vmem>>, %arg15: memref<1x32xf32, #tpu.memory_space<vmem>>, %arg16: memref<1x8x32xf32, #tpu.memory_space<vmem>>, %arg17: memref<1x2x8x32xbf16, #tpu.memory_space<vmem>>, %arg18: memref<4x8x8xbf16, #tpu.memory_space<vmem>>, %arg19: memref<4x8x8xbf16, #tpu.memory_space<vmem>>, %arg20: memref<4x8x1xf32, #tpu.memory_space<vmem>>, %arg21: memref<4x8x1xf32, #tpu.memory_space<vmem>>, %arg22: memref<4x8x8xf32, #tpu.memory_space<vmem>>) attributes {dimension_semantics = [#tpu.dimension_semantics<parallel>], iteration_bounds = array<i64: 2>, scalar_prefetch = 0 : i64, scratch_operands = 5 : i64, tpu.core_type = #tpu.core_type<tc>, window_params = [{transform_indices = @transform_0, window_bounds = array<i64: 1, 8, 32>}, {pipeline_mode = #tpu.pipeline_mode<synchronous>, transform_indices = @transform_1, window_bounds = array<i64: 1, 32>}, {pipeline_mode = #tpu.pipeline_mode<synchronous>, transform_indices = @transform_2, window_bounds = array<i64: 1, 32>}, {pipeline_mode = #tpu.pipeline_mode<synchronous>, transform_indices = @transform_3, window_bounds = array<i64: 32, 96>}, {pipeline_mode = #tpu.pipeline_mode<synchronous>, transform_indices = @transform_4, window_bounds = array<i64: 1, 96>}, {pipeline_mode = #tpu.pipeline_mode<synchronous>, transform_indices = @transform_5, window_bounds = array<i64: 32, 32>}, {pipeline_mode = #tpu.pipeline_mode<synchronous>, transform_indices = @transform_6, window_bounds = array<i64: 1, 32>}, {pipeline_mode = #tpu.pipeline_mode<synchronous>, transform_indices = @transform_7, window_bounds = array<i64: 1, 32>}, {pipeline_mode = #tpu.pipeline_mode<synchronous>, transform_indices = @transform_8, window_bounds = array<i64: 1, 32>}, {pipeline_mode = #tpu.pipeline_mode<synchronous>, transform_indices = @transform_9, window_bounds = array<i64: 128, 32>}, {pipeline_mode = #tpu.pipeline_mode<synchronous>, transform_indices = @transform_10, window_bounds = array<i64: 1, 128>}, {pipeline_mode = #tpu.pipeline_mode<synchronous>, transform_indices = @transform_11, window_bounds = array<i64: 128, 32>}, {pipeline_mode = #tpu.pipeline_mode<synchronous>, transform_indices = @transform_12, window_bounds = array<i64: 1, 32>}, {pipeline_mode = #tpu.pipeline_mode<synchronous>, transform_indices = @transform_13, window_bounds = array<i64: 1, 32>}, {pipeline_mode = #tpu.pipeline_mode<synchronous>, transform_indices = @transform_14, window_bounds = array<i64: 1, 32>}, {transform_indices = @transform_15, window_bounds = array<i64: 1, 8, 32>}, {transform_indices = @transform_16, window_bounds = array<i64: 1, 2, 8, 32>}]} {
    %c0 = arith.constant 0 : index
    %c0_0 = arith.constant 0 : index
    %c0_1 = arith.constant 0 : index
    %0 = vector.load %arg1[%c0, %c0_0, %c0_1] : memref<1x8x32xf32, #tpu.memory_space<vmem>>, vector<1x8x32xf32>
    %1 = vector.shape_cast %0 : vector<1x8x32xf32> to vector<8x32xf32>
    %c0_2 = arith.constant 0 : index
    %c0_3 = arith.constant 0 : index
    %2 = vector.load %arg2[%c0_2, %c0_3] : memref<1x32xf32, #tpu.memory_space<vmem>>, vector<1x32xf32>
    %3 = vector.shape_cast %2 : vector<1x32xf32> to vector<32xf32>
    %c0_4 = arith.constant 0 : index
    %c0_5 = arith.constant 0 : index
    %4 = vector.load %arg3[%c0_4, %c0_5] : memref<1x32xf32, #tpu.memory_space<vmem>>, vector<1x32xf32>
    %5 = vector.shape_cast %4 : vector<1x32xf32> to vector<32xf32>
    %cst = arith.constant dense<0.000000e+00> : vector<8xf32>
    %6 = vector.multi_reduction <add>, %1, %cst [1] : vector<8x32xf32> to vector<8xf32>
    %7 = vector.shape_cast %6 : vector<8xf32> to vector<8x1xf32>
    %cst_6 = arith.constant 3.200000e+01 : f32
    %8 = vector.broadcast %cst_6 : f32 to vector<8x1xf32>
    %9 = arith.divf %7, %8 : vector<8x1xf32>
    %10 = vector.broadcast %9 : vector<8x1xf32> to vector<8x32xf32>
    %11 = arith.subf %1, %10 : vector<8x32xf32>
    %12 = arith.mulf %11, %11 : vector<8x32xf32>
    %cst_7 = arith.constant dense<0.000000e+00> : vector<8xf32>
    %13 = vector.multi_reduction <add>, %12, %cst_7 [1] : vector<8x32xf32> to vector<8xf32>
    %14 = vector.shape_cast %13 : vector<8xf32> to vector<8x1xf32>
    %cst_8 = arith.constant 3.200000e+01 : f32
    %15 = vector.broadcast %cst_8 : f32 to vector<8x1xf32>
    %16 = arith.divf %14, %15 : vector<8x1xf32>
    %17 = vector.broadcast %9 : vector<8x1xf32> to vector<8x32xf32>
    %18 = arith.subf %1, %17 : vector<8x32xf32>
    %cst_9 = arith.constant 9.99999974E-6 : f32
    %19 = vector.broadcast %cst_9 : f32 to vector<8x1xf32>
    %20 = arith.addf %16, %19 : vector<8x1xf32>
    %21 = math.rsqrt %20 : vector<8x1xf32>
    %22 = vector.broadcast %21 : vector<8x1xf32> to vector<8x32xf32>
    %23 = arith.mulf %18, %22 : vector<8x32xf32>
    %24 = vector.shape_cast %3 : vector<32xf32> to vector<1x32xf32>
    %25 = vector.broadcast %24 : vector<1x32xf32> to vector<8x32xf32>
    %26 = arith.mulf %23, %25 : vector<8x32xf32>
    %27 = vector.shape_cast %5 : vector<32xf32> to vector<1x32xf32>
    %28 = vector.broadcast %27 : vector<1x32xf32> to vector<8x32xf32>
    %29 = arith.addf %26, %28 : vector<8x32xf32>
    %30 = arith.truncf %29 : vector<8x32xf32> to vector<8x32xbf16>
    %c0_10 = arith.constant 0 : index
    %c0_11 = arith.constant 0 : index
    %31 = vector.load %arg4[%c0_10, %c0_11] : memref<32x96xbf16, #tpu.memory_space<vmem>>, vector<32x96xbf16>
    %cst_12 = arith.constant dense<0.000000e+00> : vector<8x96xf32>
    %32 = tpu.matmul %30, %31, %cst_12 {dimension_numbers = #tpu.dot_dimension_numbers<[1], [0], [0], [1], [0, 0, 1, 1], [], []>} : vector<8x32xbf16>, vector<32x96xbf16>, vector<8x96xf32> -> vector<8x96xf32>
    %c0_13 = arith.constant 0 : index
    %c0_14 = arith.constant 0 : index
    %33 = vector.load %arg5[%c0_13, %c0_14] : memref<1x96xf32, #tpu.memory_space<vmem>>, vector<1x96xf32>
    %34 = vector.shape_cast %33 : vector<1x96xf32> to vector<96xf32>
    %35 = vector.shape_cast %34 : vector<96xf32> to vector<1x96xf32>
    %36 = vector.broadcast %35 : vector<1x96xf32> to vector<8x96xf32>
    %37 = arith.addf %32, %36 : vector<8x96xf32>
    %38 = vector.extract_strided_slice %37 {offsets = [0, 0], sizes = [8, 32], strides = [1, 1]} : vector<8x96xf32> to vector<8x32xf32>
    %39 = vector.extract_strided_slice %37 {offsets = [0, 32], sizes = [8, 32], strides = [1, 1]} : vector<8x96xf32> to vector<8x32xf32>
    %40 = vector.extract_strided_slice %37 {offsets = [0, 64], sizes = [8, 32], strides = [1, 1]} : vector<8x96xf32> to vector<8x32xf32>
    %41 = arith.truncf %39 : vector<8x32xf32> to vector<8x32xbf16>
    %c0_15 = arith.constant 0 : index
    %c0_16 = arith.constant 0 : index
    %c0_17 = arith.constant 0 : index
    %c0_18 = arith.constant 0 : index
    %42 = vector.load %arg17[%c0_15, %c0_16, %c0_17, %c0_18] : memref<1x2x8x32xbf16, #tpu.memory_space<vmem>>, vector<1x1x8x32xbf16>
    %43 = vector.shape_cast %42 : vector<1x1x8x32xbf16> to vector<8x32xbf16>
    %44 = vector.shape_cast %41 : vector<8x32xbf16> to vector<1x1x8x32xbf16>
    tpu.vector_store %arg17[%c0_15, %c0_16, %c0_17, %c0_18], %44 {strides = array<i32>} : memref<1x2x8x32xbf16, #tpu.memory_space<vmem>>, vector<1x1x8x32xbf16>,
    %45 = arith.truncf %40 : vector<8x32xf32> to vector<8x32xbf16>
    %c0_19 = arith.constant 0 : index
    %c1 = arith.constant 1 : index
    %c0_20 = arith.constant 0 : index
    %c0_21 = arith.constant 0 : index
    %46 = vector.load %arg17[%c0_19, %c1, %c0_20, %c0_21] : memref<1x2x8x32xbf16, #tpu.memory_space<vmem>>, vector<1x1x8x32xbf16>
    %47 = vector.shape_cast %46 : vector<1x1x8x32xbf16> to vector<8x32xbf16>
    %48 = vector.shape_cast %45 : vector<8x32xbf16> to vector<1x1x8x32xbf16>
    tpu.vector_store %arg17[%c0_19, %c1, %c0_20, %c0_21], %48 {strides = array<i32>} : memref<1x2x8x32xbf16, #tpu.memory_space<vmem>>, vector<1x1x8x32xbf16>,
    %cst_22 = arith.constant 0.353553385 : f32
    %49 = vector.broadcast %cst_22 : f32 to vector<8x32xf32>
    %50 = arith.mulf %38, %49 : vector<8x32xf32>
    %51 = vector.shape_cast %50 : vector<8x32xf32> to vector<8x4x8xf32>
    %52 = tpu.transpose %51, [1, 0, 2] : vector<8x4x8xf32> -> vector<4x8x8xf32>
    %53 = arith.truncf %52 : vector<4x8x8xf32> to vector<4x8x8xbf16>
    %54 = vector.shape_cast %39 : vector<8x32xf32> to vector<8x4x8xf32>
    %55 = tpu.transpose %54, [1, 0, 2] : vector<8x4x8xf32> -> vector<4x8x8xf32>
    %56 = arith.truncf %55 : vector<4x8x8xf32> to vector<4x8x8xbf16>
    %c0_23 = arith.constant 0 : index
    %c0_24 = arith.constant 0 : index
    %c0_25 = arith.constant 0 : index
    %57 = vector.load %arg18[%c0_23, %c0_24, %c0_25] : memref<4x8x8xbf16, #tpu.memory_space<vmem>>, vector<4x8x8xbf16>
    tpu.vector_store %arg18[%c0_23, %c0_24, %c0_25], %56 {strides = array<i32>} : memref<4x8x8xbf16, #tpu.memory_space<vmem>>, vector<4x8x8xbf16>,
    %58 = vector.shape_cast %40 : vector<8x32xf32> to vector<8x4x8xf32>
    %59 = tpu.transpose %58, [1, 0, 2] : vector<8x4x8xf32> -> vector<4x8x8xf32>
    %60 = arith.truncf %59 : vector<4x8x8xf32> to vector<4x8x8xbf16>
    %c0_26 = arith.constant 0 : index
    %c0_27 = arith.constant 0 : index
    %c0_28 = arith.constant 0 : index
    %61 = vector.load %arg19[%c0_26, %c0_27, %c0_28] : memref<4x8x8xbf16, #tpu.memory_space<vmem>>, vector<4x8x8xbf16>
    tpu.vector_store %arg19[%c0_26, %c0_27, %c0_28], %60 {strides = array<i32>} : memref<4x8x8xbf16, #tpu.memory_space<vmem>>, vector<4x8x8xbf16>,
    %cst_29 = arith.constant 0xFF800000 : f32
    %62 = vector.broadcast %cst_29 : f32 to vector<4x8x1xf32>
    %c0_30 = arith.constant 0 : index
    %c0_31 = arith.constant 0 : index
    %c0_32 = arith.constant 0 : index
    %63 = vector.load %arg20[%c0_30, %c0_31, %c0_32] : memref<4x8x1xf32, #tpu.memory_space<vmem>>, vector<4x8x1xf32>
    tpu.vector_store %arg20[%c0_30, %c0_31, %c0_32], %62 {strides = array<i32>} : memref<4x8x1xf32, #tpu.memory_space<vmem>>, vector<4x8x1xf32>,
    %cst_33 = arith.constant 0.000000e+00 : f32
    %64 = vector.broadcast %cst_33 : f32 to vector<4x8x1xf32>
    %c0_34 = arith.constant 0 : index
    %c0_35 = arith.constant 0 : index
    %c0_36 = arith.constant 0 : index
    %65 = vector.load %arg21[%c0_34, %c0_35, %c0_36] : memref<4x8x1xf32, #tpu.memory_space<vmem>>, vector<4x8x1xf32>
    tpu.vector_store %arg21[%c0_34, %c0_35, %c0_36], %64 {strides = array<i32>} : memref<4x8x1xf32, #tpu.memory_space<vmem>>, vector<4x8x1xf32>,
    %cst_37 = arith.constant 0.000000e+00 : f32
    %66 = vector.broadcast %cst_37 : f32 to vector<4x8x8xf32>
    %c0_38 = arith.constant 0 : index
    %c0_39 = arith.constant 0 : index
    %c0_40 = arith.constant 0 : index
    %67 = vector.load %arg22[%c0_38, %c0_39, %c0_40] : memref<4x8x8xf32, #tpu.memory_space<vmem>>, vector<4x8x8xf32>
    tpu.vector_store %arg22[%c0_38, %c0_39, %c0_40], %66 {strides = array<i32>} : memref<4x8x8xf32, #tpu.memory_space<vmem>>, vector<4x8x8xf32>,
    %68 = tpu.iota {dimensions = array<i32: 0>} : vector<8x8xi32>
    %69 = tpu.iota {dimensions = array<i32: 1>} : vector<8x8xi32>
    %c0_i32 = arith.constant 0 : i32
    %c1_i32 = arith.constant 1 : i32
    %70 = arith.muli %c0_i32, %c1_i32 : i32
    %c0_i32_41 = arith.constant 0 : i32
    %71 = arith.addi %c0_i32_41, %70 : i32
    %c8_i32 = arith.constant 8 : i32
    %72 = arith.muli %71, %c8_i32 : i32
    %73 = tpu.assume_multiple %72, 8 : i32
    %c0_42 = arith.constant 0 : index
    %74 = arith.index_cast %73 : i32 to index
    %c0_43 = arith.constant 0 : index
    %75 = vector.load %arg18[%c0_42, %74, %c0_43] : memref<4x8x8xbf16, #tpu.memory_space<vmem>>, vector<4x8x8xbf16>
    %c0_44 = arith.constant 0 : index
    %76 = arith.index_cast %73 : i32 to index
    %c0_45 = arith.constant 0 : index
    %77 = vector.load %arg19[%c0_44, %76, %c0_45] : memref<4x8x8xbf16, #tpu.memory_space<vmem>>, vector<4x8x8xbf16>
    "tpu.trace_start"() <{level = 10 : i32, message = "hqd,hkd->hqk"}> : () -> ()
    %cst_46 = arith.constant dense<0.000000e+00> : vector<4x8x8xf32>
    %78 = tpu.matmul %53, %75, %cst_46 {dimension_numbers = #tpu.dot_dimension_numbers<[2], [2], [1], [1], [0, 0, 0, 1, 1, 1], [0], [0]>} : vector<4x8x8xbf16>, vector<4x8x8xbf16>, vector<4x8x8xf32> -> vector<4x8x8xf32>
    "tpu.trace_stop"() : () -> ()
    %79 = vector.broadcast %73 : i32 to vector<8x8xi32>
    %80 = arith.addi %69, %79 : vector<8x8xi32>
    %81 = arith.cmpi sle, %80, %68 : vector<8x8xi32>
    %82 = vector.shape_cast %81 : vector<8x8xi1> to vector<1x8x8xi1>
    %cst_47 = arith.constant -1.000000e+04 : f32
    %83 = vector.shape_cast %82 : vector<1x8x8xi1> to vector<1x8x8xi1>
    %84 = vector.broadcast %83 : vector<1x8x8xi1> to vector<4x8x8xi1>
    %85 = vector.broadcast %cst_47 : f32 to vector<4x8x8xf32>
    %86 = arith.select %84, %78, %85 : vector<4x8x8xi1>, vector<4x8x8xf32>
    %c0_48 = arith.constant 0 : index
    %c0_49 = arith.constant 0 : index
    %c0_50 = arith.constant 0 : index
    %87 = vector.load %arg20[%c0_48, %c0_49, %c0_50] : memref<4x8x1xf32, #tpu.memory_space<vmem>>, vector<4x8x1xf32>
    %cst_51 = arith.constant dense<0xFF800000> : vector<4x8xf32>
    %88 = vector.multi_reduction <maximumf>, %86, %cst_51 [2] : vector<4x8x8xf32> to vector<4x8xf32>
    %89 = vector.shape_cast %88 : vector<4x8xf32> to vector<4x8x1xf32>
    %90 = arith.maximumf %87, %89 : vector<4x8x1xf32>
    %91 = arith.subf %87, %90 : vector<4x8x1xf32>
    %92 = math.exp %91 : vector<4x8x1xf32>
    %93 = vector.broadcast %90 : vector<4x8x1xf32> to vector<4x8x8xf32>
    %94 = arith.subf %86, %93 : vector<4x8x8xf32>
    %95 = math.exp %94 : vector<4x8x8xf32>
    %c0_52 = arith.constant 0 : index
    %c0_53 = arith.constant 0 : index
    %c0_54 = arith.constant 0 : index
    %96 = vector.load %arg21[%c0_52, %c0_53, %c0_54] : memref<4x8x1xf32, #tpu.memory_space<vmem>>, vector<4x8x1xf32>
    %97 = arith.mulf %92, %96 : vector<4x8x1xf32>
    %cst_55 = arith.constant dense<0.000000e+00> : vector<4x8xf32>
    %98 = vector.multi_reduction <add>, %95, %cst_55 [2] : vector<4x8x8xf32> to vector<4x8xf32>
    %99 = vector.shape_cast %98 : vector<4x8xf32> to vector<4x8x1xf32>
    %100 = arith.addf %97, %99 : vector<4x8x1xf32>
    %c0_56 = arith.constant 0 : index
    %c0_57 = arith.constant 0 : index
    %c0_58 = arith.constant 0 : index
    %101 = vector.load %arg21[%c0_56, %c0_57, %c0_58] : memref<4x8x1xf32, #tpu.memory_space<vmem>>, vector<4x8x1xf32>
    tpu.vector_store %arg21[%c0_56, %c0_57, %c0_58], %100 {strides = array<i32>} : memref<4x8x1xf32, #tpu.memory_space<vmem>>, vector<4x8x1xf32>,
    %c0_59 = arith.constant 0 : index
    %c0_60 = arith.constant 0 : index
    %c0_61 = arith.constant 0 : index
    %102 = vector.load %arg22[%c0_59, %c0_60, %c0_61] : memref<4x8x8xf32, #tpu.memory_space<vmem>>, vector<4x8x8xf32>
    %103 = vector.broadcast %92 : vector<4x8x1xf32> to vector<4x8x8xf32>
    %104 = arith.mulf %103, %102 : vector<4x8x8xf32>
    %105 = arith.truncf %95 : vector<4x8x8xf32> to vector<4x8x8xbf16>
    "tpu.trace_start"() <{level = 10 : i32, message = "hqk,hkd->hqd"}> : () -> ()
    %cst_62 = arith.constant dense<0.000000e+00> : vector<4x8x8xf32>
    %106 = tpu.matmul %105, %77, %cst_62 {dimension_numbers = #tpu.dot_dimension_numbers<[2], [1], [1], [2], [0, 0, 0, 1, 1, 2], [0], [0]>} : vector<4x8x8xbf16>, vector<4x8x8xbf16>, vector<4x8x8xf32> -> vector<4x8x8xf32>
    "tpu.trace_stop"() : () -> ()
    %107 = arith.addf %104, %106 : vector<4x8x8xf32>
    %c0_63 = arith.constant 0 : index
    %c0_64 = arith.constant 0 : index
    %c0_65 = arith.constant 0 : index
    %108 = vector.load %arg22[%c0_63, %c0_64, %c0_65] : memref<4x8x8xf32, #tpu.memory_space<vmem>>, vector<4x8x8xf32>
    tpu.vector_store %arg22[%c0_63, %c0_64, %c0_65], %107 {strides = array<i32>} : memref<4x8x8xf32, #tpu.memory_space<vmem>>, vector<4x8x8xf32>,
    %c0_66 = arith.constant 0 : index
    %c0_67 = arith.constant 0 : index
    %c0_68 = arith.constant 0 : index
    %109 = vector.load %arg20[%c0_66, %c0_67, %c0_68] : memref<4x8x1xf32, #tpu.memory_space<vmem>>, vector<4x8x1xf32>
    tpu.vector_store %arg20[%c0_66, %c0_67, %c0_68], %90 {strides = array<i32>} : memref<4x8x1xf32, #tpu.memory_space<vmem>>, vector<4x8x1xf32>,
    %c1_i32_69 = arith.constant 1 : i32
    %c0_70 = arith.constant 0 : index
    %c0_71 = arith.constant 0 : index
    %c0_72 = arith.constant 0 : index
    %110 = vector.load %arg22[%c0_70, %c0_71, %c0_72] : memref<4x8x8xf32, #tpu.memory_space<vmem>>, vector<4x8x8xf32>
    %c0_73 = arith.constant 0 : index
    %c0_74 = arith.constant 0 : index
    %c0_75 = arith.constant 0 : index
    %111 = vector.load %arg21[%c0_73, %c0_74, %c0_75] : memref<4x8x1xf32, #tpu.memory_space<vmem>>, vector<4x8x1xf32>
    %112 = tpu.reciprocal %111 {approx = true} : vector<4x8x1xf32> -> vector<4x8x1xf32>
    %113 = vector.broadcast %112 : vector<4x8x1xf32> to vector<4x8x8xf32>
    %114 = arith.mulf %110, %113 : vector<4x8x8xf32>
    %115 = tpu.transpose %114, [1, 0, 2] : vector<4x8x8xf32> -> vector<8x4x8xf32>
    %116 = vector.shape_cast %115 : vector<8x4x8xf32> to vector<8x32xf32>
    %117 = arith.truncf %116 : vector<8x32xf32> to vector<8x32xbf16>
    %c0_76 = arith.constant 0 : index
    %c0_77 = arith.constant 0 : index
    %118 = vector.load %arg6[%c0_76, %c0_77] : memref<32x32xbf16, #tpu.memory_space<vmem>>, vector<32x32xbf16>
    %cst_78 = arith.constant dense<0.000000e+00> : vector<8x32xf32>
    %119 = tpu.matmul %117, %118, %cst_78 {dimension_numbers = #tpu.dot_dimension_numbers<[1], [0], [0], [1], [0, 0, 1, 1], [], []>} : vector<8x32xbf16>, vector<32x32xbf16>, vector<8x32xf32> -> vector<8x32xf32>
    %c0_79 = arith.constant 0 : index
    %c0_80 = arith.constant 0 : index
    %120 = vector.load %arg7[%c0_79, %c0_80] : memref<1x32xf32, #tpu.memory_space<vmem>>, vector<1x32xf32>
    %121 = vector.shape_cast %120 : vector<1x32xf32> to vector<32xf32>
    %122 = vector.shape_cast %121 : vector<32xf32> to vector<1x32xf32>
    %123 = vector.broadcast %122 : vector<1x32xf32> to vector<8x32xf32>
    %124 = arith.addf %119, %123 : vector<8x32xf32>
    %125 = arith.addf %1, %124 : vector<8x32xf32>
    %c0_81 = arith.constant 0 : index
    %c0_82 = arith.constant 0 : index
    %126 = vector.load %arg8[%c0_81, %c0_82] : memref<1x32xf32, #tpu.memory_space<vmem>>, vector<1x32xf32>
    %127 = vector.shape_cast %126 : vector<1x32xf32> to vector<32xf32>
    %c0_83 = arith.constant 0 : index
    %c0_84 = arith.constant 0 : index
    %128 = vector.load %arg9[%c0_83, %c0_84] : memref<1x32xf32, #tpu.memory_space<vmem>>, vector<1x32xf32>
    %129 = vector.shape_cast %128 : vector<1x32xf32> to vector<32xf32>
    %cst_85 = arith.constant dense<0.000000e+00> : vector<8xf32>
    %130 = vector.multi_reduction <add>, %125, %cst_85 [1] : vector<8x32xf32> to vector<8xf32>
    %131 = vector.shape_cast %130 : vector<8xf32> to vector<8x1xf32>
    %cst_86 = arith.constant 3.200000e+01 : f32
    %132 = vector.broadcast %cst_86 : f32 to vector<8x1xf32>
    %133 = arith.divf %131, %132 : vector<8x1xf32>
    %134 = vector.broadcast %133 : vector<8x1xf32> to vector<8x32xf32>
    %135 = arith.subf %125, %134 : vector<8x32xf32>
    %136 = arith.mulf %135, %135 : vector<8x32xf32>
    %cst_87 = arith.constant dense<0.000000e+00> : vector<8xf32>
    %137 = vector.multi_reduction <add>, %136, %cst_87 [1] : vector<8x32xf32> to vector<8xf32>
    %138 = vector.shape_cast %137 : vector<8xf32> to vector<8x1xf32>
    %cst_88 = arith.constant 3.200000e+01 : f32
    %139 = vector.broadcast %cst_88 : f32 to vector<8x1xf32>
    %140 = arith.divf %138, %139 : vector<8x1xf32>
    %141 = vector.broadcast %133 : vector<8x1xf32> to vector<8x32xf32>
    %142 = arith.subf %125, %141 : vector<8x32xf32>
    %cst_89 = arith.constant 9.99999974E-6 : f32
    %143 = vector.broadcast %cst_89 : f32 to vector<8x1xf32>
    %144 = arith.addf %140, %143 : vector<8x1xf32>
    %145 = math.rsqrt %144 : vector<8x1xf32>
    %146 = vector.broadcast %145 : vector<8x1xf32> to vector<8x32xf32>
    %147 = arith.mulf %142, %146 : vector<8x32xf32>
    %148 = vector.shape_cast %127 : vector<32xf32> to vector<1x32xf32>
    %149 = vector.broadcast %148 : vector<1x32xf32> to vector<8x32xf32>
    %150 = arith.mulf %147, %149 : vector<8x32xf32>
    %151 = vector.shape_cast %129 : vector<32xf32> to vector<1x32xf32>
    %152 = vector.broadcast %151 : vector<1x32xf32> to vector<8x32xf32>
    %153 = arith.addf %150, %152 : vector<8x32xf32>
    %154 = arith.truncf %153 : vector<8x32xf32> to vector<8x32xbf16>
    %c0_90 = arith.constant 0 : index
    %c0_91 = arith.constant 0 : index
    %155 = vector.load %arg13[%c0_90, %c0_91] : memref<1x32xf32, #tpu.memory_space<vmem>>, vector<1x32xf32>
    %156 = vector.shape_cast %155 : vector<1x32xf32> to vector<32xf32>
    %157 = vector.shape_cast %156 : vector<32xf32> to vector<1x32xf32>
    %158 = vector.broadcast %157 : vector<1x32xf32> to vector<8x32xf32>
    %159 = arith.addf %125, %158 : vector<8x32xf32>
    %c0_92 = arith.constant 0 : index
    %c0_93 = arith.constant 0 : index
    %c0_94 = arith.constant 0 : index
    %160 = vector.load %arg16[%c0_92, %c0_93, %c0_94] : memref<1x8x32xf32, #tpu.memory_space<vmem>>, vector<1x8x32xf32>
    %161 = vector.shape_cast %160 : vector<1x8x32xf32> to vector<8x32xf32>
    %162 = vector.shape_cast %159 : vector<8x32xf32> to vector<1x8x32xf32>
    tpu.vector_store %arg16[%c0_92, %c0_93, %c0_94], %162 {strides = array<i32>} : memref<1x8x32xf32, #tpu.memory_space<vmem>>, vector<1x8x32xf32>,
    %c0_i32_95 = arith.constant 0 : i32
    %c1_i32_96 = arith.constant 1 : i32
    %163 = arith.muli %c0_i32_95, %c1_i32_96 : i32
    %c0_i32_97 = arith.constant 0 : i32
    %164 = arith.addi %c0_i32_97, %163 : i32
    %c128_i32 = arith.constant 128 : i32
    %165 = arith.muli %164, %c128_i32 : i32
    %166 = tpu.assume_multiple %165, 128 : i32
    %167 = arith.index_cast %166 : i32 to index
    %c0_98 = arith.constant 0 : index
    %168 = vector.load %arg10[%167, %c0_98] : memref<128x32xbf16, #tpu.memory_space<vmem>>, vector<128x32xbf16>
    %169 = arith.index_cast %164 : i32 to index
    %c0_99 = arith.constant 0 : index
    %170 = vector.load %arg11[%169, %c0_99] : memref<1x128xf32, #tpu.memory_space<vmem>>, vector<1x128xf32>
    %cst_100 = arith.constant dense<0.000000e+00> : vector<8x128xf32>
    %171 = tpu.matmul %154, %168, %cst_100 {dimension_numbers = #tpu.dot_dimension_numbers<[1], [1], [0], [0], [0, 0, 1, 0], [], []>} : vector<8x32xbf16>, vector<128x32xbf16>, vector<8x128xf32> -> vector<8x128xf32>
    %172 = vector.broadcast %170 : vector<1x128xf32> to vector<8x128xf32>
    %173 = arith.addf %171, %172 : vector<8x128xf32>
    %cst_101 = arith.constant 5.000000e-01 : f32
    %174 = vector.broadcast %cst_101 : f32 to vector<8x128xf32>
    %175 = arith.mulf %174, %173 : vector<8x128xf32>
    %176 = arith.mulf %173, %173 : vector<8x128xf32>
    %177 = arith.mulf %173, %176 : vector<8x128xf32>
    %cst_102 = arith.constant 4.471500e-02 : f32
    %178 = vector.broadcast %cst_102 : f32 to vector<8x128xf32>
    %179 = arith.mulf %178, %177 : vector<8x128xf32>
    %180 = arith.addf %173, %179 : vector<8x128xf32>
    %cst_103 = arith.constant 0.797884583 : f32
    %181 = vector.broadcast %cst_103 : f32 to vector<8x128xf32>
    %182 = arith.mulf %181, %180 : vector<8x128xf32>
    %183 = math.tanh %182 : vector<8x128xf32>
    %cst_104 = arith.constant 1.000000e+00 : f32
    %184 = vector.broadcast %cst_104 : f32 to vector<8x128xf32>
    %185 = arith.addf %184, %183 : vector<8x128xf32>
    %186 = arith.mulf %175, %185 : vector<8x128xf32>
    %187 = arith.index_cast %166 : i32 to index
    %c0_105 = arith.constant 0 : index
    %188 = vector.load %arg12[%187, %c0_105] : memref<128x32xbf16, #tpu.memory_space<vmem>>, vector<128x32xbf16>
    %c0_106 = arith.constant 0 : index
    %c0_107 = arith.constant 0 : index
    %c0_108 = arith.constant 0 : index
    %189 = vector.load %arg16[%c0_106, %c0_107, %c0_108] : memref<1x8x32xf32, #tpu.memory_space<vmem>>, vector<1x8x32xf32>
    %190 = vector.shape_cast %189 : vector<1x8x32xf32> to vector<8x32xf32>
    %191 = arith.truncf %186 : vector<8x128xf32> to vector<8x128xbf16>
    %cst_109 = arith.constant dense<0.000000e+00> : vector<8x32xf32>
    %192 = tpu.matmul %191, %188, %cst_109 {dimension_numbers = #tpu.dot_dimension_numbers<[1], [0], [0], [1], [0, 0, 1, 1], [], []>} : vector<8x128xbf16>, vector<128x32xbf16>, vector<8x32xf32> -> vector<8x32xf32>
    %193 = arith.addf %190, %192 : vector<8x32xf32>
    %c0_110 = arith.constant 0 : index
    %c0_111 = arith.constant 0 : index
    %c0_112 = arith.constant 0 : index
    %194 = vector.load %arg16[%c0_110, %c0_111, %c0_112] : memref<1x8x32xf32, #tpu.memory_space<vmem>>, vector<1x8x32xf32>
    %195 = vector.shape_cast %194 : vector<1x8x32xf32> to vector<8x32xf32>
    %196 = vector.shape_cast %193 : vector<8x32xf32> to vector<1x8x32xf32>
    tpu.vector_store %arg16[%c0_110, %c0_111, %c0_112], %196 {strides = array<i32>} : memref<1x8x32xf32, #tpu.memory_space<vmem>>, vector<1x8x32xf32>,
    %c1_i32_113 = arith.constant 1 : i32
    %c0_114 = arith.constant 0 : index
    %c0_115 = arith.constant 0 : index
    %c0_116 = arith.constant 0 : index
    %197 = vector.load %arg16[%c0_114, %c0_115, %c0_116] : memref<1x8x32xf32, #tpu.memory_space<vmem>>, vector<1x8x32xf32>
    %198 = vector.shape_cast %197 : vector<1x8x32xf32> to vector<8x32xf32>
    %c0_117 = arith.constant 0 : index
    %c0_118 = arith.constant 0 : index
    %199 = vector.load %arg14[%c0_117, %c0_118] : memref<1x32xf32, #tpu.memory_space<vmem>>, vector<1x32xf32>
    %200 = vector.shape_cast %199 : vector<1x32xf32> to vector<32xf32>
    %c0_119 = arith.constant 0 : index
    %c0_120 = arith.constant 0 : index
    %201 = vector.load %arg15[%c0_119, %c0_120] : memref<1x32xf32, #tpu.memory_space<vmem>>, vector<1x32xf32>
    %202 = vector.shape_cast %201 : vector<1x32xf32> to vector<32xf32>
    %cst_121 = arith.constant dense<0.000000e+00> : vector<8xf32>
    %203 = vector.multi_reduction <add>, %198, %cst_121 [1] : vector<8x32xf32> to vector<8xf32>
    %204 = vector.shape_cast %203 : vector<8xf32> to vector<8x1xf32>
    %cst_122 = arith.constant 3.200000e+01 : f32
    %205 = vector.broadcast %cst_122 : f32 to vector<8x1xf32>
    %206 = arith.divf %204, %205 : vector<8x1xf32>
    %207 = vector.broadcast %206 : vector<8x1xf32> to vector<8x32xf32>
    %208 = arith.subf %198, %207 : vector<8x32xf32>
    %209 = arith.mulf %208, %208 : vector<8x32xf32>
    %cst_123 = arith.constant dense<0.000000e+00> : vector<8xf32>
    %210 = vector.multi_reduction <add>, %209, %cst_123 [1] : vector<8x32xf32> to vector<8xf32>
    %211 = vector.shape_cast %210 : vector<8xf32> to vector<8x1xf32>
    %cst_124 = arith.constant 3.200000e+01 : f32
    %212 = vector.broadcast %cst_124 : f32 to vector<8x1xf32>
    %213 = arith.divf %211, %212 : vector<8x1xf32>
    %214 = vector.broadcast %206 : vector<8x1xf32> to vector<8x32xf32>
    %215 = arith.subf %198, %214 : vector<8x32xf32>
    %cst_125 = arith.constant 9.99999974E-6 : f32
    %216 = vector.broadcast %cst_125 : f32 to vector<8x1xf32>
    %217 = arith.addf %213, %216 : vector<8x1xf32>
    %218 = math.rsqrt %217 : vector<8x1xf32>
    %219 = vector.broadcast %218 : vector<8x1xf32> to vector<8x32xf32>
    %220 = arith.mulf %215, %219 : vector<8x32xf32>
    %221 = vector.shape_cast %200 : vector<32xf32> to vector<1x32xf32>
    %222 = vector.broadcast %221 : vector<1x32xf32> to vector<8x32xf32>
    %223 = arith.mulf %220, %222 : vector<8x32xf32>
    %224 = vector.shape_cast %202 : vector<32xf32> to vector<1x32xf32>
    %225 = vector.broadcast %224 : vector<1x32xf32> to vector<8x32xf32>
    %226 = arith.addf %223, %225 : vector<8x32xf32>
    %c0_126 = arith.constant 0 : index
    %c0_127 = arith.constant 0 : index
    %c0_128 = arith.constant 0 : index
    %227 = vector.load %arg16[%c0_126, %c0_127, %c0_128] : memref<1x8x32xf32, #tpu.memory_space<vmem>>, vector<1x8x32xf32>
    %228 = vector.shape_cast %227 : vector<1x8x32xf32> to vector<8x32xf32>
    %229 = vector.shape_cast %226 : vector<8x32xf32> to vector<1x8x32xf32>
    tpu.vector_store %arg16[%c0_126, %c0_127, %c0_128], %229 {strides = array<i32>} : memref<1x8x32xf32, #tpu.memory_space<vmem>>, vector<1x8x32xf32>,
    return
  }
  func.func @transform_0(%arg0: i32) -> (i32, i32, i32) {
    %c0_i32 = arith.constant 0 : i32
    %c0_i32_0 = arith.constant 0 : i32
    %c0_i32_1 = arith.constant 0 : i32
    return %arg0, %c0_i32, %c0_i32_0 : i32, i32, i32
  }
  func.func @transform_1(%arg0: i32) -> (i32, i32) {
    %c0_i32 = arith.constant 0 : i32
    %c0_i32_0 = arith.constant 0 : i32
    %c0_i32_1 = arith.constant 0 : i32
    return %c0_i32, %c0_i32_0 : i32, i32
  }
  func.func @transform_2(%arg0: i32) -> (i32, i32) {
    %c0_i32 = arith.constant 0 : i32
    %c0_i32_0 = arith.constant 0 : i32
    %c0_i32_1 = arith.constant 0 : i32
    return %c0_i32, %c0_i32_0 : i32, i32
  }
  func.func @transform_3(%arg0: i32) -> (i32, i32) {
    %c0_i32 = arith.constant 0 : i32
    %c0_i32_0 = arith.constant 0 : i32
    %c0_i32_1 = arith.constant 0 : i32
    return %c0_i32, %c0_i32_0 : i32, i32
  }
  func.func @transform_4(%arg0: i32) -> (i32, i32) {
    %c0_i32 = arith.constant 0 : i32
    %c0_i32_0 = arith.constant 0 : i32
    %c0_i32_1 = arith.constant 0 : i32
    return %c0_i32, %c0_i32_0 : i32, i32
  }
  func.func @transform_5(%arg0: i32) -> (i32, i32) {
    %c0_i32 = arith.constant 0 : i32
    %c0_i32_0 = arith.constant 0 : i32
    %c0_i32_1 = arith.constant 0 : i32
    return %c0_i32, %c0_i32_0 : i32, i32
  }
  func.func @transform_6(%arg0: i32) -> (i32, i32) {
    %c0_i32 = arith.constant 0 : i32
    %c0_i32_0 = arith.constant 0 : i32
    %c0_i32_1 = arith.constant 0 : i32
    return %c0_i32, %c0_i32_0 : i32, i32
  }
  func.func @transform_7(%arg0: i32) -> (i32, i32) {
    %c0_i32 = arith.constant 0 : i32
    %c0_i32_0 = arith.constant 0 : i32
    %c0_i32_1 = arith.constant 0 : i32
    return %c0_i32, %c0_i32_0 : i32, i32
  }
  func.func @transform_8(%arg0: i32) -> (i32, i32) {
    %c0_i32 = arith.constant 0 : i32
    %c0_i32_0 = arith.constant 0 : i32
    %c0_i32_1 = arith.constant 0 : i32
    return %c0_i32, %c0_i32_0 : i32, i32
  }
  func.func @transform_9(%arg0: i32) -> (i32, i32) {
    %c0_i32 = arith.constant 0 : i32
    %c0_i32_0 = arith.constant 0 : i32
    %c0_i32_1 = arith.constant 0 : i32
    return %c0_i32, %c0_i32_0 : i32, i32
  }
  func.func @transform_10(%arg0: i32) -> (i32, i32) {
    %c0_i32 = arith.constant 0 : i32
    %c0_i32_0 = arith.constant 0 : i32
    %c0_i32_1 = arith.constant 0 : i32
    return %c0_i32, %c0_i32_0 : i32, i32
  }
  func.func @transform_11(%arg0: i32) -> (i32, i32) {
    %c0_i32 = arith.constant 0 : i32
    %c0_i32_0 = arith.constant 0 : i32
    %c0_i32_1 = arith.constant 0 : i32
    return %c0_i32, %c0_i32_0 : i32, i32
  }
  func.func @transform_12(%arg0: i32) -> (i32, i32) {
    %c0_i32 = arith.constant 0 : i32
    %c0_i32_0 = arith.constant 0 : i32
    %c0_i32_1 = arith.constant 0 : i32
    return %c0_i32, %c0_i32_0 : i32, i32
  }
  func.func @transform_13(%arg0: i32) -> (i32, i32) {
    %c0_i32 = arith.constant 0 : i32
    %c0_i32_0 = arith.constant 0 : i32
    %c0_i32_1 = arith.constant 0 : i32
    return %c0_i32, %c0_i32_0 : i32, i32
  }
  func.func @transform_14(%arg0: i32) -> (i32, i32) {
    %c0_i32 = arith.constant 0 : i32
    %c0_i32_0 = arith.constant 0 : i32
    %c0_i32_1 = arith.constant 0 : i32
    return %c0_i32, %c0_i32_0 : i32, i32
  }
  func.func @transform_15(%arg0: i32) -> (i32, i32, i32) {
    %c0_i32 = arith.constant 0 : i32
    %c0_i32_0 = arith.constant 0 : i32
    %c0_i32_1 = arith.constant 0 : i32
    return %arg0, %c0_i32, %c0_i32_0 : i32, i32, i32
  }
  func.func @transform_16(%arg0: i32) -> (i32, i32, i32, i32) {
    %c0_i32 = arith.constant 0 : i32
    %c0_i32_0 = arith.constant 0 : i32
    %c0_i32_1 = arith.constant 0 : i32
    %c0_i32_2 = arith.constant 0 : i32
    return %arg0, %c0_i32, %c0_i32_0, %c0_i32_1 : i32, i32, i32, i32
  }
}

module attributes {stable_mosaic.version = 11 : i64} {
  func.func @gpt2_block_kernel(%arg0: i32, %arg1: memref<1x8x32xf32, #tpu.memory_space<vmem>>, %arg2: memref<1x32xf32, #tpu.memory_space<vmem>>, %arg3: memref<1x32xf32, #tpu.memory_space<vmem>>, %arg4: memref<32x96xbf16, #tpu.memory_space<vmem>>, %arg5: memref<1x96xf32, #tpu.memory_space<vmem>>, %arg6: memref<32x32xbf16, #tpu.memory_space<vmem>>, %arg7: memref<1x32xf32, #tpu.memory_space<vmem>>, %arg8: memref<1x32xf32, #tpu.memory_space<vmem>>, %arg9: memref<1x32xf32, #tpu.memory_space<vmem>>, %arg10: memref<128x32xbf16, #tpu.memory_space<vmem>>, %arg11: memref<1x128xf32, #tpu.memory_space<vmem>>, %arg12: memref<128x32xbf16, #tpu.memory_space<vmem>>, %arg13: memref<1x32xf32, #tpu.memory_space<vmem>>, %arg14: memref<1x32xf32, #tpu.memory_space<vmem>>, %arg15: memref<1x32xf32, #tpu.memory_space<vmem>>, %arg16: memref<1x8x32xf32, #tpu.memory_space<vmem>>, %arg17: memref<1x2x8x32xbf16, #tpu.memory_space<vmem>>, %arg18: memref<4x8x8xbf16, #tpu.memory_space<vmem>>, %arg19: memref<4x8x8xbf16, #tpu.memory_space<vmem>>, %arg20: memref<4x8x1xf32, #tpu.memory_space<vmem>>, %arg21: memref<4x8x1xf32, #tpu.memory_space<vmem>>, %arg22: memref<4x8x8xf32, #tpu.memory_space<vmem>>) attributes {dimension_semantics = [#tpu.dimension_semantics<parallel>], iteration_bounds = array<i64: 2>, scalar_prefetch = 0 : i64, scratch_operands = 5 : i64, tpu.core_type = #tpu.core_type<tc>, window_params = [{transform_indices = @transform_0, window_bounds = array<i64: 1, 8, 32>}, {pipeline_mode = #tpu.pipeline_mode<synchronous>, transform_indices = @transform_1, window_bounds = array<i64: 1, 32>}, {pipeline_mode = #tpu.pipeline_mode<synchronous>, transform_indices = @transform_2, window_bounds = array<i64: 1, 32>}, {pipeline_mode = #tpu.pipeline_mode<synchronous>, transform_indices = @transform_3, window_bounds = array<i64: 32, 96>}, {pipeline_mode = #tpu.pipeline_mode<synchronous>, transform_indices = @transform_4, window_bounds = array<i64: 1, 96>}, {pipeline_mode = #tpu.pipeline_mode<synchronous>, transform_indices = @transform_5, window_bounds = array<i64: 32, 32>}, {pipeline_mode = #tpu.pipeline_mode<synchronous>, transform_indices = @transform_6, window_bounds = array<i64: 1, 32>}, {pipeline_mode = #tpu.pipeline_mode<synchronous>, transform_indices = @transform_7, window_bounds = array<i64: 1, 32>}, {pipeline_mode = #tpu.pipeline_mode<synchronous>, transform_indices = @transform_8, window_bounds = array<i64: 1, 32>}, {pipeline_mode = #tpu.pipeline_mode<synchronous>, transform_indices = @transform_9, window_bounds = array<i64: 128, 32>}, {pipeline_mode = #tpu.pipeline_mode<synchronous>, transform_indices = @transform_10, window_bounds = array<i64: 1, 128>}, {pipeline_mode = #tpu.pipeline_mode<synchronous>, transform_indices = @transform_11, window_bounds = array<i64: 128, 32>}, {pipeline_mode = #tpu.pipeline_mode<synchronous>, transform_indices = @transform_12, window_bounds = array<i64: 1, 32>}, {pipeline_mode = #tpu.pipeline_mode<synchronous>, transform_indices = @transform_13, window_bounds = array<i64: 1, 32>}, {pipeline_mode = #tpu.pipeline_mode<synchronous>, transform_indices = @transform_14, window_bounds = array<i64: 1, 32>}, {transform_indices = @transform_15, window_bounds = array<i64: 1, 8, 32>}, {transform_indices = @transform_16, window_bounds = array<i64: 1, 2, 8, 32>}]} {
    %c0 = arith.constant 0 : index
    %c0_0 = arith.constant 0 : index
    %c0_1 = arith.constant 0 : index
    %0 = vector.load %arg1[%c0, %c0_0, %c0_1] : memref<1x8x32xf32, #tpu.memory_space<vmem>>, vector<1x8x32xf32>
    %1 = vector.shape_cast %0 : vector<1x8x32xf32> to vector<8x32xf32>
    %c0_2 = arith.constant 0 : index
    %c0_3 = arith.constant 0 : index
    %2 = vector.load %arg2[%c0_2, %c0_3] : memref<1x32xf32, #tpu.memory_space<vmem>>, vector<1x32xf32>
    %3 = vector.shape_cast %2 : vector<1x32xf32> to vector<32xf32>
    %c0_4 = arith.constant 0 : index
    %c0_5 = arith.constant 0 : index
    %4 = vector.load %arg3[%c0_4, %c0_5] : memref<1x32xf32, #tpu.memory_space<vmem>>, vector<1x32xf32>
    %5 = vector.shape_cast %4 : vector<1x32xf32> to vector<32xf32>
    %cst = arith.constant dense<0.000000e+00> : vector<8xf32>
    %6 = vector.multi_reduction <add>, %1, %cst [1] : vector<8x32xf32> to vector<8xf32>
    %7 = vector.shape_cast %6 : vector<8xf32> to vector<8x1xf32>
    %cst_6 = arith.constant 3.200000e+01 : f32
    %8 = vector.broadcast %cst_6 : f32 to vector<8x1xf32>
    %9 = arith.divf %7, %8 : vector<8x1xf32>
    %10 = vector.broadcast %9 : vector<8x1xf32> to vector<8x32xf32>
    %11 = arith.subf %1, %10 : vector<8x32xf32>
    %12 = arith.mulf %11, %11 : vector<8x32xf32>
    %cst_7 = arith.constant dense<0.000000e+00> : vector<8xf32>
    %13 = vector.multi_reduction <add>, %12, %cst_7 [1] : vector<8x32xf32> to vector<8xf32>
    %14 = vector.shape_cast %13 : vector<8xf32> to vector<8x1xf32>
    %cst_8 = arith.constant 3.200000e+01 : f32
    %15 = vector.broadcast %cst_8 : f32 to vector<8x1xf32>
    %16 = arith.divf %14, %15 : vector<8x1xf32>
    %17 = vector.broadcast %9 : vector<8x1xf32> to vector<8x32xf32>
    %18 = arith.subf %1, %17 : vector<8x32xf32>
    %cst_9 = arith.constant 9.99999974E-6 : f32
    %19 = vector.broadcast %cst_9 : f32 to vector<8x1xf32>
    %20 = arith.addf %16, %19 : vector<8x1xf32>
    %21 = math.rsqrt %20 : vector<8x1xf32>
    %22 = vector.broadcast %21 : vector<8x1xf32> to vector<8x32xf32>
    %23 = arith.mulf %18, %22 : vector<8x32xf32>
    %24 = vector.shape_cast %3 : vector<32xf32> to vector<1x32xf32>
    %25 = vector.broadcast %24 : vector<1x32xf32> to vector<8x32xf32>
    %26 = arith.mulf %23, %25 : vector<8x32xf32>
    %27 = vector.shape_cast %5 : vector<32xf32> to vector<1x32xf32>
    %28 = vector.broadcast %27 : vector<1x32xf32> to vector<8x32xf32>
    %29 = arith.addf %26, %28 : vector<8x32xf32>
    %30 = arith.truncf %29 : vector<8x32xf32> to vector<8x32xbf16>
    %c0_10 = arith.constant 0 : index
    %c0_11 = arith.constant 0 : index
    %31 = vector.load %arg4[%c0_10, %c0_11] : memref<32x96xbf16, #tpu.memory_space<vmem>>, vector<32x96xbf16>
    %cst_12 = arith.constant dense<0.000000e+00> : vector<8x96xf32>
    %32 = tpu.matmul %30, %31, %cst_12 {dimension_numbers = #tpu.dot_dimension_numbers<[1], [0], [0], [1], [0, 0, 1, 1], [], []>} : vector<8x32xbf16>, vector<32x96xbf16>, vector<8x96xf32> -> vector<8x96xf32>
    %c0_13 = arith.constant 0 : index
    %c0_14 = arith.constant 0 : index
    %33 = vector.load %arg5[%c0_13, %c0_14] : memref<1x96xf32, #tpu.memory_space<vmem>>, vector<1x96xf32>
    %34 = vector.shape_cast %33 : vector<1x96xf32> to vector<96xf32>
    %35 = vector.shape_cast %34 : vector<96xf32> to vector<1x96xf32>
    %36 = vector.broadcast %35 : vector<1x96xf32> to vector<8x96xf32>
    %37 = arith.addf %32, %36 : vector<8x96xf32>
    %38 = vector.extract_strided_slice %37 {offsets = [0, 0], sizes = [8, 32], strides = [1, 1]} : vector<8x96xf32> to vector<8x32xf32>
    %39 = vector.extract_strided_slice %37 {offsets = [0, 32], sizes = [8, 32], strides = [1, 1]} : vector<8x96xf32> to vector<8x32xf32>
    %40 = vector.extract_strided_slice %37 {offsets = [0, 64], sizes = [8, 32], strides = [1, 1]} : vector<8x96xf32> to vector<8x32xf32>
    %41 = arith.truncf %39 : vector<8x32xf32> to vector<8x32xbf16>
    %c0_15 = arith.constant 0 : index
    %c0_16 = arith.constant 0 : index
    %c0_17 = arith.constant 0 : index
    %c0_18 = arith.constant 0 : index
    %42 = vector.load %arg17[%c0_15, %c0_16, %c0_17, %c0_18] : memref<1x2x8x32xbf16, #tpu.memory_space<vmem>>, vector<1x1x8x32xbf16>
    %43 = vector.shape_cast %42 : vector<1x1x8x32xbf16> to vector<8x32xbf16>
    %44 = vector.shape_cast %41 : vector<8x32xbf16> to vector<1x1x8x32xbf16>
    tpu.vector_store %arg17[%c0_15, %c0_16, %c0_17, %c0_18], %44 {strides = array<i32>} : memref<1x2x8x32xbf16, #tpu.memory_space<vmem>>, vector<1x1x8x32xbf16>,
    %45 = arith.truncf %40 : vector<8x32xf32> to vector<8x32xbf16>
    %c0_19 = arith.constant 0 : index
    %c1 = arith.constant 1 : index
    %c0_20 = arith.constant 0 : index
    %c0_21 = arith.constant 0 : index
    %46 = vector.load %arg17[%c0_19, %c1, %c0_20, %c0_21] : memref<1x2x8x32xbf16, #tpu.memory_space<vmem>>, vector<1x1x8x32xbf16>
    %47 = vector.shape_cast %46 : vector<1x1x8x32xbf16> to vector<8x32xbf16>
    %48 = vector.shape_cast %45 : vector<8x32xbf16> to vector<1x1x8x32xbf16>
    tpu.vector_store %arg17[%c0_19, %c1, %c0_20, %c0_21], %48 {strides = array<i32>} : memref<1x2x8x32xbf16, #tpu.memory_space<vmem>>, vector<1x1x8x32xbf16>,
    %cst_22 = arith.constant 0.353553385 : f32
    %49 = vector.broadcast %cst_22 : f32 to vector<8x32xf32>
    %50 = arith.mulf %38, %49 : vector<8x32xf32>
    %51 = vector.shape_cast %50 : vector<8x32xf32> to vector<8x4x8xf32>
    %52 = tpu.transpose %51, [1, 0, 2] : vector<8x4x8xf32> -> vector<4x8x8xf32>
    %53 = arith.truncf %52 : vector<4x8x8xf32> to vector<4x8x8xbf16>
    %54 = vector.shape_cast %39 : vector<8x32xf32> to vector<8x4x8xf32>
    %55 = tpu.transpose %54, [1, 0, 2] : vector<8x4x8xf32> -> vector<4x8x8xf32>
    %56 = arith.truncf %55 : vector<4x8x8xf32> to vector<4x8x8xbf16>
    %c0_23 = arith.constant 0 : index
    %c0_24 = arith.constant 0 : index
    %c0_25 = arith.constant 0 : index
    %57 = vector.load %arg18[%c0_23, %c0_24, %c0_25] : memref<4x8x8xbf16, #tpu.memory_space<vmem>>, vector<4x8x8xbf16>
    tpu.vector_store %arg18[%c0_23, %c0_24, %c0_25], %56 {strides = array<i32>} : memref<4x8x8xbf16, #tpu.memory_space<vmem>>, vector<4x8x8xbf16>,
    %58 = vector.shape_cast %40 : vector<8x32xf32> to vector<8x4x8xf32>
    %59 = tpu.transpose %58, [1, 0, 2] : vector<8x4x8xf32> -> vector<4x8x8xf32>
    %60 = arith.truncf %59 : vector<4x8x8xf32> to vector<4x8x8xbf16>
    %c0_26 = arith.constant 0 : index
    %c0_27 = arith.constant 0 : index
    %c0_28 = arith.constant 0 : index
    %61 = vector.load %arg19[%c0_26, %c0_27, %c0_28] : memref<4x8x8xbf16, #tpu.memory_space<vmem>>, vector<4x8x8xbf16>
    tpu.vector_store %arg19[%c0_26, %c0_27, %c0_28], %60 {strides = array<i32>} : memref<4x8x8xbf16, #tpu.memory_space<vmem>>, vector<4x8x8xbf16>,
    %cst_29 = arith.constant 0xFF800000 : f32
    %62 = vector.broadcast %cst_29 : f32 to vector<4x8x1xf32>
    %c0_30 = arith.constant 0 : index
    %c0_31 = arith.constant 0 : index
    %c0_32 = arith.constant 0 : index
    %63 = vector.load %arg20[%c0_30, %c0_31, %c0_32] : memref<4x8x1xf32, #tpu.memory_space<vmem>>, vector<4x8x1xf32>
    tpu.vector_store %arg20[%c0_30, %c0_31, %c0_32], %62 {strides = array<i32>} : memref<4x8x1xf32, #tpu.memory_space<vmem>>, vector<4x8x1xf32>,
    %cst_33 = arith.constant 0.000000e+00 : f32
    %64 = vector.broadcast %cst_33 : f32 to vector<4x8x1xf32>
    %c0_34 = arith.constant 0 : index
    %c0_35 = arith.constant 0 : index
    %c0_36 = arith.constant 0 : index
    %65 = vector.load %arg21[%c0_34, %c0_35, %c0_36] : memref<4x8x1xf32, #tpu.memory_space<vmem>>, vector<4x8x1xf32>
    tpu.vector_store %arg21[%c0_34, %c0_35, %c0_36], %64 {strides = array<i32>} : memref<4x8x1xf32, #tpu.memory_space<vmem>>, vector<4x8x1xf32>,
    %cst_37 = arith.constant 0.000000e+00 : f32
    %66 = vector.broadcast %cst_37 : f32 to vector<4x8x8xf32>
    %c0_38 = arith.constant 0 : index
    %c0_39 = arith.constant 0 : index
    %c0_40 = arith.constant 0 : index
    %67 = vector.load %arg22[%c0_38, %c0_39, %c0_40] : memref<4x8x8xf32, #tpu.memory_space<vmem>>, vector<4x8x8xf32>
    tpu.vector_store %arg22[%c0_38, %c0_39, %c0_40], %66 {strides = array<i32>} : memref<4x8x8xf32, #tpu.memory_space<vmem>>, vector<4x8x8xf32>,
    %68 = tpu.iota {dimensions = array<i32: 0>} : vector<8x8xi32>
    %69 = tpu.iota {dimensions = array<i32: 1>} : vector<8x8xi32>
    %c0_i32 = arith.constant 0 : i32
    %c1_i32 = arith.constant 1 : i32
    %70 = arith.muli %c0_i32, %c1_i32 : i32
    %c0_i32_41 = arith.constant 0 : i32
    %71 = arith.addi %c0_i32_41, %70 : i32
    %c8_i32 = arith.constant 8 : i32
    %72 = arith.muli %71, %c8_i32 : i32
    %73 = tpu.assume_multiple %72, 8 : i32
    %c0_42 = arith.constant 0 : index
    %74 = arith.index_cast %73 : i32 to index
    %c0_43 = arith.constant 0 : index
    %75 = vector.load %arg18[%c0_42, %74, %c0_43] : memref<4x8x8xbf16, #tpu.memory_space<vmem>>, vector<4x8x8xbf16>
    %c0_44 = arith.constant 0 : index
    %76 = arith.index_cast %73 : i32 to index
    %c0_45 = arith.constant 0 : index
    %77 = vector.load %arg19[%c0_44, %76, %c0_45] : memref<4x8x8xbf16, #tpu.memory_space<vmem>>, vector<4x8x8xbf16>
    "tpu.trace_start"() <{level = 10 : i32, message = "hqd,hkd->hqk"}> : () -> ()
    %cst_46 = arith.constant dense<0.000000e+00> : vector<4x8x8xf32>
    %78 = tpu.matmul %53, %75, %cst_46 {dimension_numbers = #tpu.dot_dimension_numbers<[2], [2], [1], [1], [0, 0, 0, 1, 1, 1], [0], [0]>} : vector<4x8x8xbf16>, vector<4x8x8xbf16>, vector<4x8x8xf32> -> vector<4x8x8xf32>
    "tpu.trace_stop"() : () -> ()
    %79 = vector.broadcast %73 : i32 to vector<8x8xi32>
    %80 = arith.addi %69, %79 : vector<8x8xi32>
    %81 = arith.cmpi sle, %80, %68 : vector<8x8xi32>
    %82 = vector.shape_cast %81 : vector<8x8xi1> to vector<1x8x8xi1>
    %cst_47 = arith.constant -1.000000e+04 : f32
    %83 = vector.shape_cast %82 : vector<1x8x8xi1> to vector<1x8x8xi1>
    %84 = vector.broadcast %83 : vector<1x8x8xi1> to vector<4x8x8xi1>
    %85 = vector.broadcast %cst_47 : f32 to vector<4x8x8xf32>
    %86 = arith.select %84, %78, %85 : vector<4x8x8xi1>, vector<4x8x8xf32>
    %c0_48 = arith.constant 0 : index
    %c0_49 = arith.constant 0 : index
    %c0_50 = arith.constant 0 : index
    %87 = vector.load %arg20[%c0_48, %c0_49, %c0_50] : memref<4x8x1xf32, #tpu.memory_space<vmem>>, vector<4x8x1xf32>
    %cst_51 = arith.constant dense<0xFF800000> : vector<4x8xf32>
    %88 = vector.multi_reduction <maximumf>, %86, %cst_51 [2] : vector<4x8x8xf32> to vector<4x8xf32>
    %89 = vector.shape_cast %88 : vector<4x8xf32> to vector<4x8x1xf32>
    %90 = arith.maximumf %87, %89 : vector<4x8x1xf32>
    %91 = arith.subf %87, %90 : vector<4x8x1xf32>
    %92 = math.exp %91 : vector<4x8x1xf32>
    %93 = vector.broadcast %90 : vector<4x8x1xf32> to vector<4x8x8xf32>
    %94 = arith.subf %86, %93 : vector<4x8x8xf32>
    %95 = math.exp %94 : vector<4x8x8xf32>
    %c0_52 = arith.constant 0 : index
    %c0_53 = arith.constant 0 : index
    %c0_54 = arith.constant 0 : index
    %96 = vector.load %arg21[%c0_52, %c0_53, %c0_54] : memref<4x8x1xf32, #tpu.memory_space<vmem>>, vector<4x8x1xf32>
    %97 = arith.mulf %92, %96 : vector<4x8x1xf32>
    %cst_55 = arith.constant dense<0.000000e+00> : vector<4x8xf32>
    %98 = vector.multi_reduction <add>, %95, %cst_55 [2] : vector<4x8x8xf32> to vector<4x8xf32>
    %99 = vector.shape_cast %98 : vector<4x8xf32> to vector<4x8x1xf32>
    %100 = arith.addf %97, %99 : vector<4x8x1xf32>
    %c0_56 = arith.constant 0 : index
    %c0_57 = arith.constant 0 : index
    %c0_58 = arith.constant 0 : index
    %101 = vector.load %arg21[%c0_56, %c0_57, %c0_58] : memref<4x8x1xf32, #tpu.memory_space<vmem>>, vector<4x8x1xf32>
    tpu.vector_store %arg21[%c0_56, %c0_57, %c0_58], %100 {strides = array<i32>} : memref<4x8x1xf32, #tpu.memory_space<vmem>>, vector<4x8x1xf32>,
    %c0_59 = arith.constant 0 : index
    %c0_60 = arith.constant 0 : index
    %c0_61 = arith.constant 0 : index
    %102 = vector.load %arg22[%c0_59, %c0_60, %c0_61] : memref<4x8x8xf32, #tpu.memory_space<vmem>>, vector<4x8x8xf32>
    %103 = vector.broadcast %92 : vector<4x8x1xf32> to vector<4x8x8xf32>
    %104 = arith.mulf %103, %102 : vector<4x8x8xf32>
    %105 = arith.truncf %95 : vector<4x8x8xf32> to vector<4x8x8xbf16>
    "tpu.trace_start"() <{level = 10 : i32, message = "hqk,hkd->hqd"}> : () -> ()
    %cst_62 = arith.constant dense<0.000000e+00> : vector<4x8x8xf32>
    %106 = tpu.matmul %105, %77, %cst_62 {dimension_numbers = #tpu.dot_dimension_numbers<[2], [1], [1], [2], [0, 0, 0, 1, 1, 2], [0], [0]>} : vector<4x8x8xbf16>, vector<4x8x8xbf16>, vector<4x8x8xf32> -> vector<4x8x8xf32>
    "tpu.trace_stop"() : () -> ()
    %107 = arith.addf %104, %106 : vector<4x8x8xf32>
    %c0_63 = arith.constant 0 : index
    %c0_64 = arith.constant 0 : index
    %c0_65 = arith.constant 0 : index
    %108 = vector.load %arg22[%c0_63, %c0_64, %c0_65] : memref<4x8x8xf32, #tpu.memory_space<vmem>>, vector<4x8x8xf32>
    tpu.vector_store %arg22[%c0_63, %c0_64, %c0_65], %107 {strides = array<i32>} : memref<4x8x8xf32, #tpu.memory_space<vmem>>, vector<4x8x8xf32>,
    %c0_66 = arith.constant 0 : index
    %c0_67 = arith.constant 0 : index
    %c0_68 = arith.constant 0 : index
    %109 = vector.load %arg20[%c0_66, %c0_67, %c0_68] : memref<4x8x1xf32, #tpu.memory_space<vmem>>, vector<4x8x1xf32>
    tpu.vector_store %arg20[%c0_66, %c0_67, %c0_68], %90 {strides = array<i32>} : memref<4x8x1xf32, #tpu.memory_space<vmem>>, vector<4x8x1xf32>,
    %c1_i32_69 = arith.constant 1 : i32
    %c0_70 = arith.constant 0 : index
    %c0_71 = arith.constant 0 : index
    %c0_72 = arith.constant 0 : index
    %110 = vector.load %arg22[%c0_70, %c0_71, %c0_72] : memref<4x8x8xf32, #tpu.memory_space<vmem>>, vector<4x8x8xf32>
    %c0_73 = arith.constant 0 : index
    %c0_74 = arith.constant 0 : index
    %c0_75 = arith.constant 0 : index
    %111 = vector.load %arg21[%c0_73, %c0_74, %c0_75] : memref<4x8x1xf32, #tpu.memory_space<vmem>>, vector<4x8x1xf32>
    %112 = tpu.reciprocal %111 {approx = true} : vector<4x8x1xf32> -> vector<4x8x1xf32>
    %113 = vector.broadcast %112 : vector<4x8x1xf32> to vector<4x8x8xf32>
    %114 = arith.mulf %110, %113 : vector<4x8x8xf32>
    %115 = tpu.transpose %114, [1, 0, 2] : vector<4x8x8xf32> -> vector<8x4x8xf32>
    %116 = vector.shape_cast %115 : vector<8x4x8xf32> to vector<8x32xf32>
    %117 = arith.truncf %116 : vector<8x32xf32> to vector<8x32xbf16>
    %c0_76 = arith.constant 0 : index
    %c0_77 = arith.constant 0 : index
    %118 = vector.load %arg6[%c0_76, %c0_77] : memref<32x32xbf16, #tpu.memory_space<vmem>>, vector<32x32xbf16>
    %cst_78 = arith.constant dense<0.000000e+00> : vector<8x32xf32>
    %119 = tpu.matmul %117, %118, %cst_78 {dimension_numbers = #tpu.dot_dimension_numbers<[1], [0], [0], [1], [0, 0, 1, 1], [], []>} : vector<8x32xbf16>, vector<32x32xbf16>, vector<8x32xf32> -> vector<8x32xf32>
    %c0_79 = arith.constant 0 : index
    %c0_80 = arith.constant 0 : index
    %120 = vector.load %arg7[%c0_79, %c0_80] : memref<1x32xf32, #tpu.memory_space<vmem>>, vector<1x32xf32>
    %121 = vector.shape_cast %120 : vector<1x32xf32> to vector<32xf32>
    %122 = vector.shape_cast %121 : vector<32xf32> to vector<1x32xf32>
    %123 = vector.broadcast %122 : vector<1x32xf32> to vector<8x32xf32>
    %124 = arith.addf %119, %123 : vector<8x32xf32>
    %125 = arith.addf %1, %124 : vector<8x32xf32>
    %c0_81 = arith.constant 0 : index
    %c0_82 = arith.constant 0 : index
    %126 = vector.load %arg8[%c0_81, %c0_82] : memref<1x32xf32, #tpu.memory_space<vmem>>, vector<1x32xf32>
    %127 = vector.shape_cast %126 : vector<1x32xf32> to vector<32xf32>
    %c0_83 = arith.constant 0 : index
    %c0_84 = arith.constant 0 : index
    %128 = vector.load %arg9[%c0_83, %c0_84] : memref<1x32xf32, #tpu.memory_space<vmem>>, vector<1x32xf32>
    %129 = vector.shape_cast %128 : vector<1x32xf32> to vector<32xf32>
    %cst_85 = arith.constant dense<0.000000e+00> : vector<8xf32>
    %130 = vector.multi_reduction <add>, %125, %cst_85 [1] : vector<8x32xf32> to vector<8xf32>
    %131 = vector.shape_cast %130 : vector<8xf32> to vector<8x1xf32>
    %cst_86 = arith.constant 3.200000e+01 : f32
    %132 = vector.broadcast %cst_86 : f32 to vector<8x1xf32>
    %133 = arith.divf %131, %132 : vector<8x1xf32>
    %134 = vector.broadcast %133 : vector<8x1xf32> to vector<8x32xf32>
    %135 = arith.subf %125, %134 : vector<8x32xf32>
    %136 = arith.mulf %135, %135 : vector<8x32xf32>
    %cst_87 = arith.constant dense<0.000000e+00> : vector<8xf32>
    %137 = vector.multi_reduction <add>, %136, %cst_87 [1] : vector<8x32xf32> to vector<8xf32>
    %138 = vector.shape_cast %137 : vector<8xf32> to vector<8x1xf32>
    %cst_88 = arith.constant 3.200000e+01 : f32
    %139 = vector.broadcast %cst_88 : f32 to vector<8x1xf32>
    %140 = arith.divf %138, %139 : vector<8x1xf32>
    %141 = vector.broadcast %133 : vector<8x1xf32> to vector<8x32xf32>
    %142 = arith.subf %125, %141 : vector<8x32xf32>
    %cst_89 = arith.constant 9.99999974E-6 : f32
    %143 = vector.broadcast %cst_89 : f32 to vector<8x1xf32>
    %144 = arith.addf %140, %143 : vector<8x1xf32>
    %145 = math.rsqrt %144 : vector<8x1xf32>
    %146 = vector.broadcast %145 : vector<8x1xf32> to vector<8x32xf32>
    %147 = arith.mulf %142, %146 : vector<8x32xf32>
    %148 = vector.shape_cast %127 : vector<32xf32> to vector<1x32xf32>
    %149 = vector.broadcast %148 : vector<1x32xf32> to vector<8x32xf32>
    %150 = arith.mulf %147, %149 : vector<8x32xf32>
    %151 = vector.shape_cast %129 : vector<32xf32> to vector<1x32xf32>
    %152 = vector.broadcast %151 : vector<1x32xf32> to vector<8x32xf32>
    %153 = arith.addf %150, %152 : vector<8x32xf32>
    %154 = arith.truncf %153 : vector<8x32xf32> to vector<8x32xbf16>
    %c0_90 = arith.constant 0 : index
    %c0_91 = arith.constant 0 : index
    %155 = vector.load %arg13[%c0_90, %c0_91] : memref<1x32xf32, #tpu.memory_space<vmem>>, vector<1x32xf32>
    %156 = vector.shape_cast %155 : vector<1x32xf32> to vector<32xf32>
    %157 = vector.shape_cast %156 : vector<32xf32> to vector<1x32xf32>
    %158 = vector.broadcast %157 : vector<1x32xf32> to vector<8x32xf32>
    %159 = arith.addf %125, %158 : vector<8x32xf32>
    %c0_92 = arith.constant 0 : index
    %c0_93 = arith.constant 0 : index
    %c0_94 = arith.constant 0 : index
    %160 = vector.load %arg16[%c0_92, %c0_93, %c0_94] : memref<1x8x32xf32, #tpu.memory_space<vmem>>, vector<1x8x32xf32>
    %161 = vector.shape_cast %160 : vector<1x8x32xf32> to vector<8x32xf32>
    %162 = vector.shape_cast %159 : vector<8x32xf32> to vector<1x8x32xf32>
    tpu.vector_store %arg16[%c0_92, %c0_93, %c0_94], %162 {strides = array<i32>} : memref<1x8x32xf32, #tpu.memory_space<vmem>>, vector<1x8x32xf32>,
    %c0_i32_95 = arith.constant 0 : i32
    %c1_i32_96 = arith.constant 1 : i32
    %163 = arith.muli %c0_i32_95, %c1_i32_96 : i32
    %c0_i32_97 = arith.constant 0 : i32
    %164 = arith.addi %c0_i32_97, %163 : i32
    %c128_i32 = arith.constant 128 : i32
    %165 = arith.muli %164, %c128_i32 : i32
    %166 = tpu.assume_multiple %165, 128 : i32
    %167 = arith.index_cast %166 : i32 to index
    %c0_98 = arith.constant 0 : index
    %168 = vector.load %arg10[%167, %c0_98] : memref<128x32xbf16, #tpu.memory_space<vmem>>, vector<128x32xbf16>
    %169 = arith.index_cast %164 : i32 to index
    %c0_99 = arith.constant 0 : index
    %170 = vector.load %arg11[%169, %c0_99] : memref<1x128xf32, #tpu.memory_space<vmem>>, vector<1x128xf32>
    %cst_100 = arith.constant dense<0.000000e+00> : vector<8x128xf32>
    %171 = tpu.matmul %154, %168, %cst_100 {dimension_numbers = #tpu.dot_dimension_numbers<[1], [1], [0], [0], [0, 0, 1, 0], [], []>} : vector<8x32xbf16>, vector<128x32xbf16>, vector<8x128xf32> -> vector<8x128xf32>
    %172 = vector.broadcast %170 : vector<1x128xf32> to vector<8x128xf32>
    %173 = arith.addf %171, %172 : vector<8x128xf32>
    %cst_101 = arith.constant 5.000000e-01 : f32
    %174 = vector.broadcast %cst_101 : f32 to vector<8x128xf32>
    %175 = arith.mulf %174, %173 : vector<8x128xf32>
    %176 = arith.mulf %173, %173 : vector<8x128xf32>
    %177 = arith.mulf %173, %176 : vector<8x128xf32>
    %cst_102 = arith.constant 4.471500e-02 : f32
    %178 = vector.broadcast %cst_102 : f32 to vector<8x128xf32>
    %179 = arith.mulf %178, %177 : vector<8x128xf32>
    %180 = arith.addf %173, %179 : vector<8x128xf32>
    %cst_103 = arith.constant 0.797884583 : f32
    %181 = vector.broadcast %cst_103 : f32 to vector<8x128xf32>
    %182 = arith.mulf %181, %180 : vector<8x128xf32>
    %183 = math.tanh %182 : vector<8x128xf32>
    %cst_104 = arith.constant 1.000000e+00 : f32
    %184 = vector.broadcast %cst_104 : f32 to vector<8x128xf32>
    %185 = arith.addf %184, %183 : vector<8x128xf32>
    %186 = arith.mulf %175, %185 : vector<8x128xf32>
    %187 = arith.index_cast %166 : i32 to index
    %c0_105 = arith.constant 0 : index
    %188 = vector.load %arg12[%187, %c0_105] : memref<128x32xbf16, #tpu.memory_space<vmem>>, vector<128x32xbf16>
    %c0_106 = arith.constant 0 : index
    %c0_107 = arith.constant 0 : index
    %c0_108 = arith.constant 0 : index
    %189 = vector.load %arg16[%c0_106, %c0_107, %c0_108] : memref<1x8x32xf32, #tpu.memory_space<vmem>>, vector<1x8x32xf32>
    %190 = vector.shape_cast %189 : vector<1x8x32xf32> to vector<8x32xf32>
    %191 = arith.truncf %186 : vector<8x128xf32> to vector<8x128xbf16>
    %cst_109 = arith.constant dense<0.000000e+00> : vector<8x32xf32>
    %192 = tpu.matmul %191, %188, %cst_109 {dimension_numbers = #tpu.dot_dimension_numbers<[1], [0], [0], [1], [0, 0, 1, 1], [], []>} : vector<8x128xbf16>, vector<128x32xbf16>, vector<8x32xf32> -> vector<8x32xf32>
    %193 = arith.addf %190, %192 : vector<8x32xf32>
    %c0_110 = arith.constant 0 : index
    %c0_111 = arith.constant 0 : index
    %c0_112 = arith.constant 0 : index
    %194 = vector.load %arg16[%c0_110, %c0_111, %c0_112] : memref<1x8x32xf32, #tpu.memory_space<vmem>>, vector<1x8x32xf32>
    %195 = vector.shape_cast %194 : vector<1x8x32xf32> to vector<8x32xf32>
    %196 = vector.shape_cast %193 : vector<8x32xf32> to vector<1x8x32xf32>
    tpu.vector_store %arg16[%c0_110, %c0_111, %c0_112], %196 {strides = array<i32>} : memref<1x8x32xf32, #tpu.memory_space<vmem>>, vector<1x8x32xf32>,
    %c1_i32_113 = arith.constant 1 : i32
    return
  }
  func.func @transform_0(%arg0: i32) -> (i32, i32, i32) {
    %c0_i32 = arith.constant 0 : i32
    %c0_i32_0 = arith.constant 0 : i32
    %c0_i32_1 = arith.constant 0 : i32
    return %arg0, %c0_i32, %c0_i32_0 : i32, i32, i32
  }
  func.func @transform_1(%arg0: i32) -> (i32, i32) {
    %c0_i32 = arith.constant 0 : i32
    %c0_i32_0 = arith.constant 0 : i32
    %c0_i32_1 = arith.constant 0 : i32
    return %c0_i32, %c0_i32_0 : i32, i32
  }
  func.func @transform_2(%arg0: i32) -> (i32, i32) {
    %c0_i32 = arith.constant 0 : i32
    %c0_i32_0 = arith.constant 0 : i32
    %c0_i32_1 = arith.constant 0 : i32
    return %c0_i32, %c0_i32_0 : i32, i32
  }
  func.func @transform_3(%arg0: i32) -> (i32, i32) {
    %c0_i32 = arith.constant 0 : i32
    %c0_i32_0 = arith.constant 0 : i32
    %c0_i32_1 = arith.constant 0 : i32
    return %c0_i32, %c0_i32_0 : i32, i32
  }
  func.func @transform_4(%arg0: i32) -> (i32, i32) {
    %c0_i32 = arith.constant 0 : i32
    %c0_i32_0 = arith.constant 0 : i32
    %c0_i32_1 = arith.constant 0 : i32
    return %c0_i32, %c0_i32_0 : i32, i32
  }
  func.func @transform_5(%arg0: i32) -> (i32, i32) {
    %c0_i32 = arith.constant 0 : i32
    %c0_i32_0 = arith.constant 0 : i32
    %c0_i32_1 = arith.constant 0 : i32
    return %c0_i32, %c0_i32_0 : i32, i32
  }
  func.func @transform_6(%arg0: i32) -> (i32, i32) {
    %c0_i32 = arith.constant 0 : i32
    %c0_i32_0 = arith.constant 0 : i32
    %c0_i32_1 = arith.constant 0 : i32
    return %c0_i32, %c0_i32_0 : i32, i32
  }
  func.func @transform_7(%arg0: i32) -> (i32, i32) {
    %c0_i32 = arith.constant 0 : i32
    %c0_i32_0 = arith.constant 0 : i32
    %c0_i32_1 = arith.constant 0 : i32
    return %c0_i32, %c0_i32_0 : i32, i32
  }
  func.func @transform_8(%arg0: i32) -> (i32, i32) {
    %c0_i32 = arith.constant 0 : i32
    %c0_i32_0 = arith.constant 0 : i32
    %c0_i32_1 = arith.constant 0 : i32
    return %c0_i32, %c0_i32_0 : i32, i32
  }
  func.func @transform_9(%arg0: i32) -> (i32, i32) {
    %c0_i32 = arith.constant 0 : i32
    %c0_i32_0 = arith.constant 0 : i32
    %c0_i32_1 = arith.constant 0 : i32
    return %c0_i32, %c0_i32_0 : i32, i32
  }
  func.func @transform_10(%arg0: i32) -> (i32, i32) {
    %c0_i32 = arith.constant 0 : i32
    %c0_i32_0 = arith.constant 0 : i32
    %c0_i32_1 = arith.constant 0 : i32
    return %c0_i32, %c0_i32_0 : i32, i32
  }
  func.func @transform_11(%arg0: i32) -> (i32, i32) {
    %c0_i32 = arith.constant 0 : i32
    %c0_i32_0 = arith.constant 0 : i32
    %c0_i32_1 = arith.constant 0 : i32
    return %c0_i32, %c0_i32_0 : i32, i32
  }
  func.func @transform_12(%arg0: i32) -> (i32, i32) {
    %c0_i32 = arith.constant 0 : i32
    %c0_i32_0 = arith.constant 0 : i32
    %c0_i32_1 = arith.constant 0 : i32
    return %c0_i32, %c0_i32_0 : i32, i32
  }
  func.func @transform_13(%arg0: i32) -> (i32, i32) {
    %c0_i32 = arith.constant 0 : i32
    %c0_i32_0 = arith.constant 0 : i32
    %c0_i32_1 = arith.constant 0 : i32
    return %c0_i32, %c0_i32_0 : i32, i32
  }
  func.func @transform_14(%arg0: i32) -> (i32, i32) {
    %c0_i32 = arith.constant 0 : i32
    %c0_i32_0 = arith.constant 0 : i32
    %c0_i32_1 = arith.constant 0 : i32
    return %c0_i32, %c0_i32_0 : i32, i32
  }
  func.func @transform_15(%arg0: i32) -> (i32, i32, i32) {
    %c0_i32 = arith.constant 0 : i32
    %c0_i32_0 = arith.constant 0 : i32
    %c0_i32_1 = arith.constant 0 : i32
    return %arg0, %c0_i32, %c0_i32_0 : i32, i32, i32
  }
  func.func @transform_16(%arg0: i32) -> (i32, i32, i32, i32) {
    %c0_i32 = arith.constant 0 : i32
    %c0_i32_0 = arith.constant 0 : i32
    %c0_i32_1 = arith.constant 0 : i32
    %c0_i32_2 = arith.constant 0 : i32
    return %arg0, %c0_i32, %c0_i32_0, %c0_i32_1 : i32, i32, i32, i32
  }
}

</mosaic_0001>

<bundles_post_ra>
// kernel: gpt2_role_forward.3
= control target key start
LH: loop header
LB: loop body
LE: loop exit
PB: predicated region body
PF: predicated region fallthrough
CT: control target
= control target key end

     0   :  { %s3355_s0 = inlined_call_operand.vmem [shape: f32[2,8,32], index: 0, kind: input, shape index: {}]   ;;  %s3356_s1 = inlined_call_operand.vmem [shape: f32[1,32], index: 1, kind: input, shape index: {}]   ;;  %s3357_s2 = inlined_call_operand.vmem [shape: f32[1,32], index: 2, kind: input, shape index: {}]   ;;  %s3358_s3 = inlined_call_operand.vmem [shape: bf16[32,96], index: 3, kind: input, shape index: {}]   ;;  %s3359_s4 = inlined_call_operand.vmem [shape: f32[1,96], index: 4, kind: input, shape index: {}]   ;;  %s3360_s5 = inlined_call_operand.vmem [shape: bf16[32,32], index: 5, kind: input, shape index: {}]   ;;  %s3361_s6 = inlined_call_operand.vmem [shape: f32[1,32], index: 6, kind: input, shape index: {}]   ;;  %s3362_s7 = inlined_call_operand.vmem [shape: f32[1,32], index: 7, kind: input, shape index: {}]   ;;  %s3363_s8 = inlined_call_operand.vmem [shape: f32[1,32], index: 8, kind: input, shape index: {}]   ;;  %s3364_s9 = inlined_call_operand.vmem [shape: bf16[128,32], index: 9, kind: input, shape index: {}]   ;;  %s3365_s10 = inlined_call_operand.vmem [shape: f32[1,128], index: 10, kind: input, shape index: {}]   ;;  %s3366_s11 = inlined_call_operand.vmem [shape: bf16[128,32], index: 11, kind: input, shape index: {}]   ;;  %s3367_s12 = inlined_call_operand.vmem [shape: f32[1,32], index: 12, kind: input, shape index: {}]   ;;  %s3368_s13 = inlined_call_operand.vmem [shape: f32[1,32], index: 13, kind: input, shape index: {}]   ;;  %s3369_s14 = inlined_call_operand.vmem [shape: f32[1,32], index: 14, kind: input, shape index: {}]   ;;  %s3370_s15 = inlined_call_operand.hbm [shape: f32[2,8,32], index: 15, kind: output, shape index: {0}]   ;;  %s3371_s16 = inlined_call_operand.vmem [shape: bf16[2,2,8,32], index: 16, kind: output, shape index: {1}]  }
   0x1   :  { %3377 = sst [smem:[#allocation12_spill]] %s3355_s0 }
   0x2   :  { %3378 = sst [smem:[#allocation13_spill]] %s3356_s1 }
   0x3   :  { %3379 = sst [smem:[#allocation14_spill]] %s3357_s2 }
   0x4   :  { %3380 = sst [smem:[#allocation15_spill]] %s3358_s3 }
   0x5   :  { %22 = vsyncpa [#allocation8], 0 }
   0x6   :  { %24 = vsyncpa [#allocation8 + $0x1], 0  ;;  %s2816_s21 = smov 0   ;;  %s2818_s22 = smov 0  }
   0x7   :  { %s2820_s23 = smov 0   ;;  %s2822_s24 = smov 0  }
   0x8 LB: > { %3381 = sst [smem:[#allocation10_spill]] %s2710_s23  ;;  %s2837_s25 = sadd.s32 4294967295, %s2714_s24   ;;  %s2714_s24 = sphi %s2822_s24, %s3397_s24   ;;  %s2710_s23 = sphi %s2820_s23, %s3394_s23   ;;  %s2706_s22 = sphi %s2818_s22, %s3396_s22   ;;  %s2702_s21 = sphi %s2816_s21, %s3395_s21  }
   0x9   : > { %s2335_s26 = sadd.s32 4294967294, %s2714_s24   ;;  %s2841_s27 = sadd.s32 1, %s2714_s24  }
   0xa   : > { %s357_s28 = sadd.s32 1, %s2710_s23  ;;  %s354_s29 = ssub.s32 %s2714_s24, %s2841_s27 }
   0xb   : > { %p367_p0 = scmp.ne.s32.totalorder %s2710_s23, %s2706_s22  ;;  %p355_p1 = scmp.eq.s32.totalorder %s354_s29, 0 }
   0xc   : > { %p368_p2 = scmp.eq.s32.totalorder %s2837_s25, 1  ;;  %p373_p3 = scmp.ne.s32.totalorder %s2706_s22, %s2702_s21 }
   0xd   : > { %p374_p4 = scmp.eq.s32.totalorder %s2335_s26, 1  ;;  %p2338_p7 = scmp.ge.s32.totalorder %s2714_s24, 1 }
   0xe   : > { %s2852_s30 = scalar_select %p355_p1, %s2710_s23, %s357_s28  }
   0xf   : > { %p2854_p5 = por %p368_p2, %p367_p0  ;;  %p2858_p6 = por %p374_p4, %p373_p3 }
  0x10   : > { %3382 = sst [smem:[#allocation11_spill]] %s2852_s30  ;;  %p467_p8 = scmp.lt.s32.totalorder %s2714_s24, 3 }
  0x12   : > { %p468_p9 = pnand %p2338_p7, %p467_p8 }
  0x13   : > { %p521_p10 = scmp.lt.s32.totalorder (!%p468_p9), %s2837_s25, 1  ;;  %vm534_vm0 = vcmask (!%p468_p9), 261120   ;;  %s3385_s28 = sld [smem:[#allocation12_spill]] (!%p468_p9)  ;;  %v2716_v8 = vmov (!%p468_p9), 0.0   ;;  %vm2717_vm1 = vmmov (!%p468_p9), 0   ;;  %vm1124_vm2 = vcmask (!%p468_p9), 64512  }
  0x14   : > { %471 = sbr.rel (%p468_p9) target bundleno = 3111 (0xc27), region = 80  ;;  %s3386_s3 = sld [smem:[#allocation15_spill]] (!%p468_p9)  ;;  %2440 = vmatprep.subr.bf16.mxu1 (!%p468_p9), %v2716_v8  ;;  %2444 = vmatprep.mubr.msk.bf16.mxu1 (!%p468_p9), %vm2717_vm1, %v2716_v8  ;;  %v2345_v20 = vld [vmem:[%s3359_s4] ss:$0 sm:$0xff] (!%p468_p9)  ;;  %1125 = vst.msk [vmem:[#allocation6] sm:$0xff] (!%p468_p9), %vm1124_vm2, %v2716_v8  ;;  %1126 = vst.msk [vmem:[#allocation6 + $0x8] sm:$0xff] (!%p468_p9), %vm1124_vm2, %v2716_v8  ;;  %v660_v33 = vlaneseq (!%p468_p9) }
  0x15   : > { %2466 = vmatprep.subr.bf16.mxu0 (!%p468_p9), %v2716_v8  ;;  %2468 = vmatprep.mubr.msk.bf16.mxu0 (!%p468_p9), %vm2717_vm1, %v2716_v8  ;;  %s3387_s1 = sld [smem:[#allocation13_spill]] (!%p468_p9)  ;;  %s3388_s2 = sld [smem:[#allocation14_spill]] (!%p468_p9)  ;;  %1127 = vst.msk [vmem:[#allocation6 + $0x10] sm:$0xff] (!%p468_p9), %vm1124_vm2, %v2716_v8  ;;  %1128 = vst.msk [vmem:[#allocation6 + $0x18] sm:$0xff] (!%p468_p9), %vm1124_vm2, %v2716_v8  ;;  %v2722_v31 = vmov (!%p468_p9), 1983009808  }
  0x16   : > { %s2718_s23 = smov (!%p468_p9), 104   ;;  %s2719_s30 = smov (!%p468_p9), 120   ;;  %v658_v32 = vunpack.c.l.s4 (!%p468_p9), %v2722_v31  ;;  %v2723_v35 = vmov (!%p468_p9), 1934713408   ;;  %v2939_v38 = vshrl.u32 (!%p468_p9), %v660_v33, 7  ;;  %vm954_vm3 = vcmask (!%p468_p9), 60416  }
  0x17   : > { %v690_v36 = vunpack.c.l.s4 (!%p468_p9), %v2723_v35  ;;  %vm1115_vm4 = vcmask (!%p468_p9), 7168   ;;  %s3374_s20 = smov (!%p468_p9), 64   ;;  %vm1461_vm6 = vcmask (!%p468_p9), 1043456   ;;  %s2727_s26 = smov (!%p468_p9), 16   ;;  %vm1840_vm7 = vcmask (!%p468_p9), 130048  }
  0x18   : > { %v659_v37 = vunpack.c.0.s8 (!%p468_p9), %v658_v32  ;;  %1120 = vst.msk [vmem:[#allocation5] sm:$0xff] (!%p468_p9), %vm1115_vm4, %v2716_v8  ;;  %1121 = vst.msk [vmem:[#allocation5 + $0x8] sm:$0xff] (!%p468_p9), %vm1115_vm4, %v2716_v8  ;;  %vm1842_vm8 = vcmask (!%p468_p9), 195584   ;;  %vm637_vm9 = vcmask (!%p468_p9), 257024  }
  0x19   : > { %v691_v40 = vunpack.c.0.s8 (!%p468_p9), %v690_v36  ;;  %1122 = vst.msk [vmem:[#allocation5 + $0x10] sm:$0xff] (!%p468_p9), %vm1115_vm4, %v2716_v8  ;;  %1123 = vst.msk [vmem:[#allocation5 + $0x18] sm:$0xff] (!%p468_p9), %vm1115_vm4, %v2716_v8 }
  0x1a   : > { %v2599_v7 = vld [vmem:[%s3386_s3] sm:$0xff] (!%p468_p9)   ;;  %v2600_v9 = vld [vmem:[%s3386_s3 + $0x8] sm:$0xff] (!%p468_p9)   ;;  %v2942_v41 = vsub.s32 (!%p468_p9), %v659_v37, %v2939_v38 }
  0x1b   : > { %s2866_s18 = scalar_select %p521_p10, %s2837_s25, 1  ;;  %2441 = vmatpush3.bf16.msra.mxu1 %v2599_v7  ;;  %v2343_v14 = vld [vmem:[%s3387_s1] ss:$0 sm:$0xff]  ;;  %v2945_v47 = vsub.s32 %v691_v40, %v2939_v38 }
  0x1c   : > { %2442 = vmatprep.subr.bf16.mxu1 %v2716_v8  ;;  %v2344_v16 = vld [vmem:[%s3388_s2] ss:$0 sm:$0xff] }
  0x1d   : > { %s3373_s19 = sshll.u32 %s2866_s18, 3 }
  0x1e   : > { %s2874_s29 = scalar_lea.vmem %s3385_s28, %s3373_s19  ;;  %s2720_s28 = smov 112  }
  0x1f   : > { %v531_v0 = vld [vmem:[%s2874_s29] sm:$0xff]  ;;  %2443 = vmatpush3.bf16.msra.mxu1 %v2600_v9  ;;  %s3375_s19 = smov 96  }
  0x20   : > { %v535_v1 = vsel %vm534_vm0, %v531_v0, 0.0  ;;  %2448 = vmatprep.subr.bf16.mxu1 %v2716_v8 }
  0x21   : > { %536 = vadd.xlane.f32.xlu0 %v535_v1 }
  0xae   : > { %v537_v2 = vpop.xlane.xlu0 %536 }
  0xaf   : > { %v539_v3 = vmul.f32 0.03125, %v537_v2 }
  0xb1   : > { %v540_v4 = vsub.f32 %v531_v0, %v539_v3 }
  0xb3   : > { %v541_v5 = vmul.f32 %v540_v4, %v540_v4 }
  0xb5   : > { %v542_v6 = vsel %vm534_vm0, %v541_v5, 0.0 }
  0xb6   : > { %543 = vadd.xlane.f32.xlu0 %v542_v6 }
 0x143   : > { %v544_v10 = vpop.xlane.xlu0 %543 }
 0x144   : > { %v545_v11 = vmul.f32 0.03125, %v544_v10 }
 0x146   : > { %v546_v12 = vadd.f32 1e-05, %v545_v11 }
 0x148   : > { %2619 = vrsqrt.f32 %v546_v12 }
 0x152   : > { %v2620_v13 = vpop.eup %2619 }
 0x153   : > { %v548_v15 = vmul.f32 %v2620_v13, %v540_v4 }
 0x155   : > { %v555_v17 = vmul.f32 %v2343_v14, %v548_v15 }
 0x157   : > { %v562_v18 = vadd.f32 %v2344_v16, %v555_v17 }
 0x159   : > { %v563_v19 = vpack.c.bf16 %v562_v18, %v562_v18 }
 0x15b   : > { %2445 = vmatmul.mubr.msk.bf16.vlgmr.msra.gmra.mrb[0].mxu1 %vm534_vm0, %v563_v19 }
 0x15c   : > { %2450 = vmatprep.mubr.msk.bf16.mxu1 %vm2717_vm1, %v2716_v8 }
 0x22e   : > { %v624_v21 = vpop.f32.mrb[0].mxu1 }
 0x22f   : > { %v2905_v22 = vadd.f32 %v2345_v20, %v624_v21  ;;  %v2446_v23 = vpop.f32.mrb[1].mxu1 }
 0x230   : > { %v627_v24 = vpop.f32.mrb[2].mxu1 }
 0x231   : > { %800 = vrot.lane.b32.xlu0 %v2905_v22, %s2718_s23  ;;  %796 = vrot.lane.b32.xlu1 %v2905_v22, %s2719_s30  ;;  %v2447_v25 = vpop.f32.mrb[3].mxu1  ;;  %v2910_v26 = vmul.f32 0.35355338, %v2905_v22 }
 0x235   : > { %798 = vrot.lane.b32.xlu1 %v2905_v22, %s2720_s28  ;;  %652 = vrot.lane.b32.xlu0 %v2910_v26, %s2718_s23  ;;  %s2728_s23 = smov 8  }
 0x239   : > { %802 = vrot.lane.b32.xlu1 %v2905_v22, %s3375_s19 }
 0x2a3   : > { %v2916_v27 = vpop.permute.xlu1 %796  ;;  %v2924_v29 = vpop.permute.xlu0 %800 }
 0x2a4   : > { %804 = vrot.lane.b32.xlu1 %v2916_v27, %s3375_s19 }
 0x2a7   : > { %v2920_v28 = vpop.permute.xlu1 %798  ;;  %v653_v57 = vpop.permute.xlu0 %652 }
 0x2a8   : > { %806 = vrot.lane.b32.xlu1 %v2920_v28, %s3375_s19 }
 0x2ab   : > { %v803_v30 = vpop.permute.xlu1 %802 }
 0x2ac   : > { %808 = vrot.lane.b32.xlu1 %v2924_v29, %s3375_s19 }
 0x2b0   : > { %646 = vrot.lane.b32.xlu1 %v2910_v26, %s2719_s30  ;;  %s2729_s30 = smov 24  }
 0x2b4   : > { %649 = vrot.lane.b32.xlu1 %v2910_v26, %s2720_s28 }
 0x316   : > { %v805_v34 = vpop.permute.xlu1 %804 }
 0x31a   : > { %v807_v39 = vpop.permute.xlu1 %806 }
 0x31b   : > { %v814_v42 = vcombine.low %v803_v30, %v807_v39  ;;  %v815_v43 = vcombine.high %v803_v30, %v807_v39 }
 0x31d   : > { %v822_v48 = vrot.slane %v814_v42, %v2942_v41  ;;  %v829_v49 = vrot.slane %v815_v43, %v2942_v41 }
 0x31e   : > { %v809_v44 = vpop.permute.xlu1 %808 }
 0x31f   : > { %v830_v45 = vcombine.low %v805_v34, %v809_v44  ;;  %v831_v46 = vcombine.high %v805_v34, %v809_v44 }
 0x321   : > { %v838_v50 = vrot.slane %v830_v45, %v2942_v41  ;;  %v845_v51 = vrot.slane %v831_v46, %v2942_v41 }
 0x322   : > { %v647_v52 = vpop.permute.xlu1 %646 }
 0x323   : > { %v846_v53 = vcombine.low %v822_v48, %v838_v50  ;;  %v847_v54 = vcombine.high %v822_v48, %v838_v50  ;;  %v862_v55 = vcombine.low %v829_v49, %v845_v51  ;;  %v863_v56 = vcombine.high %v829_v49, %v845_v51 }
 0x324   : > { %v671_v62 = vcombine.low %v647_v52, %v653_v57  ;;  %v672_v63 = vcombine.high %v647_v52, %v653_v57 }
 0x325   : > { %v854_v58 = vrot.slane %v846_v53, %v2945_v47  ;;  %v861_v59 = vrot.slane %v847_v54, %v2945_v47  ;;  %v870_v60 = vrot.slane %v862_v55, %v2945_v47  ;;  %v877_v61 = vrot.slane %v863_v56, %v2945_v47 }
 0x326   : > { %v650_v0 = vpop.permute.xlu1 %649  ;;  %v679_v12 = vrot.slane %v671_v62, %v2942_v41  ;;  %v686_v13 = vrot.slane %v672_v63, %v2942_v41 }
 0x327   : > { %v882_v1 = vcombine.low %v854_v58, %v861_v59  ;;  %v2353_v2 = vcombine.high %v854_v58, %v861_v59  ;;  %v898_v3 = vcombine.low %v870_v60, %v877_v61  ;;  %v2354_v4 = vcombine.high %v870_v60, %v877_v61 }
 0x328   : > { %v655_v5 = vcombine.low %v2910_v26, %v650_v0  ;;  %v656_v6 = vcombine.high %v2910_v26, %v650_v0 }
 0x329   : > { %v889_v7 = vrot.slane %v882_v1, %v2942_v41  ;;  %v897_v9 = vrot.slane %v2353_v2, %v2942_v41  ;;  %v905_v10 = vrot.slane %v898_v3, %v2942_v41  ;;  %v913_v11 = vrot.slane %v2354_v4, %v2942_v41 }
 0x32a   : > { %v663_v14 = vrot.slane %v655_v5, %v2942_v41  ;;  %v670_v15 = vrot.slane %v656_v6, %v2942_v41 }
 0x32b   : > { %v914_v16 = vcombine.low %v889_v7, %v897_v9  ;;  %v915_v17 = vcombine.high %v889_v7, %v897_v9  ;;  %v930_v18 = vcombine.low %v905_v10, %v913_v11  ;;  %v931_v19 = vcombine.high %v905_v10, %v913_v11 }
 0x32c   : > { %v687_v20 = vcombine.low %v663_v14, %v679_v12  ;;  %v688_v21 = vcombine.high %v663_v14, %v679_v12  ;;  %v703_v23 = vcombine.low %v670_v15, %v686_v13  ;;  %v704_v24 = vcombine.high %v670_v15, %v686_v13 }
 0x32d   : > { %v922_v25 = vrot.slane %v914_v16, %v2945_v47  ;;  %v929_v26 = vrot.slane %v915_v17, %v2945_v47  ;;  %v938_v30 = vrot.slane %v930_v18, %v2945_v47  ;;  %v945_v31 = vrot.slane %v931_v19, %v2945_v47 }
 0x32e   : > { %v695_v32 = vrot.slane %v687_v20, %v2945_v47  ;;  %v702_v34 = vrot.slane %v688_v21, %v2945_v47  ;;  %v711_v35 = vrot.slane %v703_v23, %v2945_v47  ;;  %v718_v36 = vrot.slane %v704_v24, %v2945_v47 }
 0x32f   : > { %v946_v37 = vcombine.low %v922_v25, %v938_v30  ;;  %v947_v39 = vcombine.high %v922_v25, %v938_v30  ;;  %v948_v40 = vcombine.low %v929_v26, %v945_v31  ;;  %v949_v42 = vcombine.high %v929_v26, %v945_v31 }
 0x330   : > { %v723_v43 = vcombine.low %v695_v32, %v702_v34  ;;  %v2351_v44 = vcombine.high %v695_v32, %v702_v34  ;;  %v739_v45 = vcombine.low %v711_v35, %v718_v36  ;;  %v2352_v46 = vcombine.high %v711_v35, %v718_v36 }
 0x331   : > { %v950_v48 = vpack.c.bf16 %v946_v37, %v946_v37  ;;  %v951_v49 = vpack.c.bf16 %v947_v39, %v947_v39  ;;  %v952_v50 = vpack.c.bf16 %v948_v40, %v948_v40  ;;  %v953_v51 = vpack.c.bf16 %v949_v42, %v949_v42 }
 0x332   : > { %v730_v52 = vrot.slane %v723_v43, %v2942_v41  ;;  %v738_v53 = vrot.slane %v2351_v44, %v2942_v41  ;;  %v746_v54 = vrot.slane %v739_v45, %v2942_v41  ;;  %v754_v55 = vrot.slane %v2352_v46, %v2942_v41 }
 0x333   : > { %955 = vst.msk [vmem:[#allocation2] sm:$0xf] %vm954_vm3, %v950_v48  ;;  %956 = vst.msk [vmem:[#allocation2 + $0x4] sm:$0xf] %vm954_vm3, %v951_v49  ;;  %v2724_v17 = vmov -inf   ;;  %v1132_v18 = vand.u32 127, %v660_v33 }
 0x334   : > { %957 = vst.msk [vmem:[#allocation2 + $0x8] sm:$0xf] %vm954_vm3, %v952_v50  ;;  %958 = vst.msk [vmem:[#allocation2 + $0xc] sm:$0xf] %vm954_vm3, %v953_v51  ;;  %v755_v56 = vcombine.low %v730_v52, %v738_v53  ;;  %v771_v57 = vcombine.low %v746_v54, %v754_v55  ;;  %v756_v58 = vcombine.high %v730_v52, %v738_v53  ;;  %v2725_v50 = vmov 0  }
 0x335   : > { %v772_v59 = vcombine.high %v746_v54, %v754_v55  ;;  %1116 = vst.msk [vmem:[#allocation4] sm:$0xff] %vm1115_vm4, %v2724_v17  ;;  %1117 = vst.msk [vmem:[#allocation4 + $0x8] sm:$0xff] %vm1115_vm4, %v2724_v17  ;;  %vm1327_vm5 = vcmp.le.s32.totalorder %v1132_v18, %v2939_v38  ;;  %2597 = vset.pattern.permute.xlu1 %v2725_v50  ;;  %2598 = vset.pattern.permute.xlu0 %v2725_v50 }
 0x336   : > { %v763_v60 = vrot.slane %v755_v56, %v2945_v47  ;;  %v779_v61 = vrot.slane %v771_v57, %v2945_v47  ;;  %v770_v62 = vrot.slane %v756_v58, %v2945_v47  ;;  %1118 = vst.msk [vmem:[#allocation4 + $0x10] sm:$0xff] %vm1115_vm4, %v2724_v17  ;;  %1119 = vst.msk [vmem:[#allocation4 + $0x18] sm:$0xff] %vm1115_vm4, %v2724_v17 }
 0x337   : > { %v786_v63 = vrot.slane %v772_v59, %v2945_v47 }
 0x338   : > { %v787_v4 = vcombine.low %v763_v60, %v779_v61  ;;  %v788_v11 = vcombine.high %v763_v60, %v779_v61 }
 0x339   : > { %v790_v5 = vcombine.high %v770_v62, %v786_v63  ;;  %v789_v15 = vcombine.low %v770_v62, %v786_v63 }
 0x33a   : > { %v1133_v0 = vld [vmem:[#allocation2] sm:$0xf]  ;;  %v1134_v6 = vld [vmem:[#allocation2 + $0x4] sm:$0xf]  ;;  %v791_v7 = vpack.c.bf16 %v787_v4, %v787_v4  ;;  %v792_v13 = vpack.c.bf16 %v788_v11, %v788_v11 }
 0x33b   : > { %v1136_v1 = vld [vmem:[#allocation2 + $0xc] sm:$0xf]  ;;  %v1145_v2 = vsel %vm1124_vm2, %v1133_v0, 0  ;;  %v794_v9 = vpack.c.bf16 %v790_v5, %v790_v5  ;;  %v1191_v10 = vsel %vm1124_vm2, %v1134_v6, 0  ;;  %v1135_v12 = vld [vmem:[#allocation2 + $0x8] sm:$0xf]  ;;  %v793_v16 = vpack.c.bf16 %v789_v15, %v789_v15 }
 0x33c   : > { %v1283_v3 = vsel %vm1124_vm2, %v1136_v1, 0  ;;  %2449 = vmatpush3.bf16.xpose.msra.mxu1 %v1145_v2  ;;  %v1237_v14 = vsel %vm1124_vm2, %v1135_v12, 0  ;;  %v3051_v38 = vld [vmem:[#allocation4] sm:$0xff] }
 0x33d   : > { %2467 = vmatpush3.bf16.xpose.msra.mxu0 %v1283_v3  ;;  %2454 = vmatprep.subr.bf16.mxu1 %v2716_v8  ;;  %v3056_v53 = vld [vmem:[#allocation4 + $0x18] sm:$0xff]  ;;  %v3080_v59 = vld [vmem:[#allocation4 + $0x10] sm:$0xff] }
 0x33e   : > { %2478 = vmatprep.subr.bf16.mxu0 %v2716_v8 }
 0x343   : > { %2451 = vmatmul.mubr.msk.bf16.vlgmr.msra.gmra.mrb[4].mxu1 %vm1124_vm2, %v791_v7 }
 0x344   : > { %2469 = vmatmul.mubr.msk.bf16.vlgmr.msra.gmra.mrb[0].mxu0 %vm1124_vm2, %v794_v9  ;;  %2455 = vmatpush3.bf16.xpose.msra.mxu1 %v1191_v10 }
 0x345   : > { %2456 = vmatprep.mubr.msk.bf16.mxu1 %vm2717_vm1, %v2716_v8  ;;  %2460 = vmatprep.subr.bf16.mxu1 %v2716_v8 }
 0x346   : > { %2480 = vmatprep.mubr.msk.bf16.mxu0 %vm2717_vm1, %v2716_v8 }
 0x34b   : > { %2457 = vmatmul.mubr.msk.bf16.vlgmr.msra.gmra.mrb[8].mxu1 %vm1124_vm2, %v792_v13 }
 0x34c   : > { %2461 = vmatpush3.bf16.xpose.msra.mxu1 %v1237_v14  ;;  %2462 = vmatprep.mubr.msk.bf16.mxu1 %vm2717_vm1, %v2716_v8 }
 0x34d   : > { %2472 = vmatprep.subr.bf16.mxu1 %v2716_v8 }
 0x353   : > { %2463 = vmatmul.mubr.msk.bf16.vlgmr.msra.gmra.mrb[12].mxu1 %vm1124_vm2, %v793_v16 }
 0x354   : > { %2474 = vmatprep.mubr.msk.bf16.mxu1 %vm2717_vm1, %v2716_v8 }
 0x416   : > { %v1181_v19 = vpop.f32.mrb[4].mxu1 }
 0x417   : > { %v1319_v20 = vpop.f32.mrb[0].mxu0  ;;  %v3021_v21 = vsel %vm1327_vm5, %v1181_v19, -10000.0  ;;  %v2452_v24 = vpop.f32.mrb[5].mxu1 }
 0x418   : > { %v3025_v23 = vsel %vm1327_vm5, %v1319_v20, -10000.0  ;;  %v2470_v25 = vpop.f32.mrb[1].mxu0  ;;  %v1184_v26 = vpop.f32.mrb[6].mxu1  ;;  %v1338_v31 = vsel %vm1124_vm2, %v3021_v21, -inf }
 0x419   : > { %v1322_v30 = vpop.f32.mrb[2].mxu0  ;;  %1339 = vmax.xlane.f32.xlu1 %v1338_v31  ;;  %v2453_v32 = vpop.f32.mrb[7].mxu1  ;;  %v1347_v34 = vsel %vm1124_vm2, %v3025_v23, -inf }
 0x41a   : > { %v2471_v33 = vpop.f32.mrb[3].mxu0 }
 0x41d   : > { %1348 = vmax.xlane.f32.xlu1 %v1347_v34 }
 0x41e   : > { %v1227_v35 = vpop.f32.mrb[8].mxu1 }
 0x41f   : > { %v3033_v36 = vsel %vm1327_vm5, %v1227_v35, -10000.0  ;;  %v2458_v37 = vpop.f32.mrb[9].mxu1 }
 0x420   : > { %v1230_v39 = vpop.f32.mrb[10].mxu1  ;;  %v1341_v40 = vsel %vm1124_vm2, %v3033_v36, -inf }
 0x421   : > { %1342 = vmax.xlane.f32.xlu0 %v1341_v40  ;;  %v2459_v42 = vpop.f32.mrb[11].mxu1 }
 0x426   : > { %v1273_v43 = vpop.f32.mrb[12].mxu1 }
 0x427   : > { %v3039_v44 = vsel %vm1327_vm5, %v1273_v43, -10000.0  ;;  %v2464_v45 = vpop.f32.mrb[13].mxu1 }
 0x428   : > { %v1276_v46 = vpop.f32.mrb[14].mxu1  ;;  %v1344_v48 = vsel %vm1124_vm2, %v3039_v44, -inf }
 0x429   : > { %1345 = vmax.xlane.f32.xlu0 %v1344_v48  ;;  %v2465_v49 = vpop.f32.mrb[15].mxu1 }
 0x42e   : > { %961 = vrot.lane.b32.xlu1 %v2916_v27, %s3374_s20 }
 0x432   : > { %963 = vrot.lane.b32.xlu1 %v2920_v28, %s3374_s20 }
 0x43f   : > { %959 = vrot.lane.b32.xlu0 %v2905_v22, %s3374_s20 }
 0x443   : > { %965 = vrot.lane.b32.xlu0 %v2924_v29, %s3374_s20  ;;  %v3066_v29 = vld [vmem:[#allocation4 + $0x8] sm:$0xff]  ;;  %s3389_s20 = smov 96  }
 0x4a6   : > { %v1340_v51 = vpop.xlane.xlu1 %1339 }
 0x4a7   : > { %v3054_v52 = vmax.f32 %v3051_v38, %v1340_v51 }
 0x4a9   : > { %v1354_v27 = vsub.f32 %v3051_v38, %v3054_v52  ;;  %1651 = vst.msk [vmem:[#allocation4] sm:$0xff] %vm1115_vm4, %v3054_v52  ;;  %1368 = vperm.xlu1 %2597, %v3054_v52  }
 0x4aa   : > { %v1349_v28 = vpop.xlane.xlu1 %1348 }
 0x4ab   : > { %v3064_v54 = vmax.f32 %v3056_v53, %v1349_v28 }
 0x4ad   : > { %v1357_v55 = vsub.f32 %v3056_v53, %v3064_v54  ;;  %1654 = vst.msk [vmem:[#allocation4 + $0x18] sm:$0xff] %vm1115_vm4, %v3064_v54 }
 0x4ae   : > { %v1343_v56 = vpop.xlane.xlu0 %1342  ;;  %v962_v60 = vpop.permute.xlu1 %961 }
 0x4af   : > { %v3073_v57 = vmax.f32 %v3066_v29, %v1343_v56  ;;  %v1364_v52 = vmul.f32 1.442695, %v1357_v55 }
 0x4b1   : > { %v1355_v58 = vsub.f32 %v3066_v29, %v3073_v57  ;;  %1652 = vst.msk [vmem:[#allocation4 + $0x8] sm:$0xff] %vm1115_vm4, %v3073_v57  ;;  %1373 = vperm.xlu0 %2598, %v3073_v57   ;;  %v1400_v29 = vld [vmem:[#allocation5 + $0x10] sm:$0xff] }
 0x4b2   : > { %v964_v1 = vpop.permute.xlu1 %963 }
 0x4b3   : > { %v1360_v53 = vmul.f32 1.442695, %v1355_v58 }
 0x4b6   : > { %v1346_v61 = vpop.xlane.xlu0 %1345 }
 0x4b7   : > { %v3083_v62 = vmax.f32 %v3080_v59, %v1346_v61 }
 0x4b9   : > { %v1356_v63 = vsub.f32 %v3080_v59, %v3083_v62  ;;  %1653 = vst.msk [vmem:[#allocation4 + $0x10] sm:$0xff] %vm1115_vm4, %v3083_v62  ;;  %1378 = vperm.xlu1 %2597, %v3083_v62  }
 0x4ba   : > { %v960_v0 = vpop.permute.xlu0 %959 }
 0x4bb   : > { %v971_v2 = vcombine.low %v960_v0, %v964_v1  ;;  %v972_v3 = vcombine.high %v960_v0, %v964_v1 }
 0x4bd   : > { %1383 = vperm.xlu1 %2597, %v3064_v54   ;;  %v979_v7 = vrot.slane %v971_v2, %v2942_v41  ;;  %v986_v9 = vrot.slane %v972_v3, %v2942_v41 }
 0x4be   : > { %v966_v4 = vpop.permute.xlu0 %965 }
 0x4bf   : > { %v987_v5 = vcombine.low %v962_v60, %v966_v4  ;;  %v988_v6 = vcombine.high %v962_v60, %v966_v4 }
 0x4c1   : > { %v995_v10 = vrot.slane %v987_v5, %v2942_v41  ;;  %v1002_v11 = vrot.slane %v988_v6, %v2942_v41 }
 0x4c3   : > { %v1003_v12 = vcombine.low %v979_v7, %v995_v10  ;;  %v1004_v13 = vcombine.high %v979_v7, %v995_v10  ;;  %v1019_v14 = vcombine.low %v986_v9, %v1002_v11  ;;  %v1020_v15 = vcombine.high %v986_v9, %v1002_v11 }
 0x4c5   : > { %v1011_v16 = vrot.slane %v1003_v12, %v2945_v47  ;;  %v1018_v17 = vrot.slane %v1004_v13, %v2945_v47  ;;  %v1027_v18 = vrot.slane %v1019_v14, %v2945_v47  ;;  %v1034_v19 = vrot.slane %v1020_v15, %v2945_v47 }
 0x4c7   : > { %v1039_v20 = vcombine.low %v1011_v16, %v1018_v17  ;;  %v2355_v24 = vcombine.high %v1011_v16, %v1018_v17  ;;  %v1055_v25 = vcombine.low %v1027_v18, %v1034_v19  ;;  %v2356_v26 = vcombine.high %v1027_v18, %v1034_v19 }
 0x4c9   : > { %v1046_v30 = vrot.slane %v1039_v20, %v2942_v41  ;;  %v1054_v31 = vrot.slane %v2355_v24, %v2942_v41  ;;  %v1062_v33 = vrot.slane %v1055_v25, %v2942_v41  ;;  %v1070_v32 = vrot.slane %v2356_v26, %v2942_v41 }
 0x4ca   : > { %v1358_v26 = vmul.f32 1.442695, %v1354_v27 }
 0x4cb   : > { %v1071_v34 = vcombine.low %v1046_v30, %v1054_v31  ;;  %v1072_v35 = vcombine.high %v1046_v30, %v1054_v31  ;;  %v1087_v37 = vcombine.low %v1062_v33, %v1070_v32  ;;  %v1088_v39 = vcombine.high %v1062_v33, %v1070_v32 }
 0x4cc   : > { %v1362_v30 = vmul.f32 1.442695, %v1356_v63  ;;  %v1398_v63 = vld [vmem:[#allocation5] sm:$0xff] }
 0x4cd   : > { %v1079_v40 = vrot.slane %v1071_v34, %v2945_v47  ;;  %v1086_v42 = vrot.slane %v1072_v35, %v2945_v47  ;;  %v1095_v43 = vrot.slane %v1087_v37, %v2945_v47  ;;  %v1102_v45 = vrot.slane %v1088_v39, %v2945_v47  ;;  %v1399_v39 = vld [vmem:[#allocation5 + $0x8] sm:$0xff] }
 0x4cf   : > { %v1103_v46 = vcombine.low %v1079_v40, %v1095_v43  ;;  %v1104_v48 = vcombine.high %v1079_v40, %v1095_v43  ;;  %v1105_v49 = vcombine.low %v1086_v42, %v1102_v45  ;;  %v1106_v50 = vcombine.high %v1086_v42, %v1102_v45 }
 0x4d1   : > { %v1107_v51 = vpack.c.bf16 %v1103_v46, %v1103_v46  ;;  %v1108_v28 = vpack.c.bf16 %v1104_v48, %v1104_v48  ;;  %v1109_v56 = vpack.c.bf16 %v1105_v49, %v1105_v49  ;;  %v1110_v60 = vpack.c.bf16 %v1106_v50, %v1106_v50  ;;  %v1401_v46 = vld [vmem:[#allocation5 + $0x18] sm:$0xff] }
 0x4d3   : > { %1111 = vst.msk [vmem:[#allocation3] sm:$0xf] %vm954_vm3, %v1107_v51  ;;  %1112 = vst.msk [vmem:[#allocation3 + $0x4] sm:$0xf] %vm954_vm3, %v1108_v28 }
 0x4d4   : > { %1113 = vst.msk [vmem:[#allocation3 + $0x8] sm:$0xf] %vm954_vm3, %v1109_v56  ;;  %1114 = vst.msk [vmem:[#allocation3 + $0xc] sm:$0xf] %vm954_vm3, %v1110_v60 }
 0x4da   : > { %v1137_v61 = vld [vmem:[#allocation3] sm:$0xf]  ;;  %v1138_v0 = vld [vmem:[#allocation3 + $0x4] sm:$0xf] }
 0x4db   : > { %v1463_v1 = vsel %vm1461_vm6, %v1137_v61, 0  ;;  %v1509_v2 = vsel %vm1461_vm6, %v1138_v0, 0  ;;  %v1139_v11 = vld [vmem:[#allocation3 + $0x8] sm:$0xf]  ;;  %v1140_v20 = vld [vmem:[#allocation3 + $0xc] sm:$0xf] }
 0x4dc   : > { %2473 = vmatpush3.bf16.msra.mxu1 %v1463_v1  ;;  %2479 = vmatpush3.bf16.msra.mxu0 %v1509_v2  ;;  %v1601_v25 = vsel %vm1461_vm6, %v1140_v20, 0 }
 0x4dd   : > { %2484 = vmatprep.subr.bf16.mxu1 %v2716_v8  ;;  %2490 = vmatprep.subr.bf16.mxu0 %v2716_v8 }
 0x528   : > { %v1369_v3 = vpop.permute.xlu1 %1368 }
 0x529   : > { %v1386_v4 = vsub.f32 %v3021_v21, %v1369_v3  ;;  %v1555_v21 = vsel %vm1461_vm6, %v1139_v11, 0  ;;  %v1426_v3 = vld [vmem:[#allocation6] sm:$0xff] }
 0x52b   : > { %v1390_v5 = vmul.f32 1.442695, %v1386_v4 }
 0x52d   : > { %2621 = vpow2.f32 %v1390_v5 }
 0x530   : > { %v1374_v6 = vpop.permute.xlu0 %1373 }
 0x531   : > { %v1387_v7 = vsub.f32 %v3033_v36, %v1374_v6 }
 0x533   : > { %v1392_v9 = vmul.f32 1.442695, %v1387_v7 }
 0x535   : > { %2623 = vpow2.f32 %v1392_v9 }
 0x537   : > { %v2622_v10 = vpop.eup %2621 }
 0x538   : > { %v1379_v12 = vpop.permute.xlu1 %1378  ;;  %v1406_v13 = vsel %vm1124_vm2, %v2622_v10, 0.0  ;;  %v1454_v14 = vpack.c.bf16 %v2622_v10, %v2622_v10 }
 0x539   : > { %v1388_v15 = vsub.f32 %v3039_v44, %v1379_v12  ;;  %1407 = vadd.xlane.f32.xlu0 %v1406_v13  ;;  %v1427_v12 = vld [vmem:[#allocation6 + $0x8] sm:$0xff] }
 0x53a   : > { %2475 = vmatmul.mubr.msk.bf16.vlgmr.msra.gmra.mrb[16].mxu1 %vm1124_vm2, %v1454_v14 }
 0x53b   : > { %v1394_v16 = vmul.f32 1.442695, %v1388_v15  ;;  %2485 = vmatpush3.bf16.msra.mxu1 %v1555_v21  ;;  %2486 = vmatprep.mubr.msk.bf16.mxu1 %vm2717_vm1, %v2716_v8 }
 0x53c   : > { %v1384_v36 = vpop.permute.xlu1 %1383  ;;  %2496 = vmatprep.subr.bf16.mxu1 %v2716_v8 }
 0x53d   : > { %2625 = vpow2.f32 %v1394_v16  ;;  %v1389_v17 = vsub.f32 %v3025_v23, %v1384_v36 }
 0x53f   : > { %v2624_v18 = vpop.eup %2623  ;;  %v1396_v19 = vmul.f32 1.442695, %v1389_v17 }
 0x540   : > { %v1409_v44 = vsel %vm1124_vm2, %v2624_v18, 0.0  ;;  %v1455_v24 = vpack.c.bf16 %v2624_v18, %v2624_v18 }
 0x541   : > { %2627 = vpow2.f32 %v1396_v19  ;;  %1410 = vadd.xlane.f32.xlu1 %v1409_v44  ;;  %v1428_v19 = vld [vmem:[#allocation6 + $0x10] sm:$0xff]  ;;  %v1429_v44 = vld [vmem:[#allocation6 + $0x18] sm:$0xff] }
 0x542   : > { %2481 = vmatmul.mubr.msk.bf16.vlgmr.msra.gmra.mrb[4].mxu0 %vm1124_vm2, %v1455_v24  ;;  %2629 = vpow2.f32 %v1358_v26 }
 0x543   : > { %2491 = vmatpush3.bf16.msra.mxu0 %v1601_v25  ;;  %2492 = vmatprep.mubr.msk.bf16.mxu0 %vm2717_vm1, %v2716_v8  ;;  %2631 = vpow2.f32 %v1362_v30 }
 0x544   : > { %2504 = vmatprep.subr.bf16.mxu0 %v2716_v8  ;;  %2633 = vpow2.f32 %v1364_v52 }
 0x545   : > { %2635 = vpow2.f32 %v1360_v53 }
 0x547   : > { %v2626_v23 = vpop.eup %2625 }
 0x548   : > { %v1412_v31 = vsel %vm1124_vm2, %v2626_v23, 0.0  ;;  %v1456_v33 = vpack.c.bf16 %v2626_v23, %v2626_v23 }
 0x549   : > { %1413 = vadd.xlane.f32.xlu0 %v1412_v31 }
 0x54a   : > { %2487 = vmatmul.mubr.msk.bf16.vlgmr.msra.gmra.mrb[20].mxu1 %vm1124_vm2, %v1456_v33 }
 0x54b   : > { %v2628_v38 = vpop.eup %2627  ;;  %2500 = vmatprep.mubr.msk.bf16.mxu1 %vm2717_vm1, %v2716_v8 }
 0x54c   : > { %v1415_v27 = vsel %vm1124_vm2, %v2628_v38, 0.0  ;;  %v1457_v32 = vpack.c.bf16 %v2628_v38, %v2628_v38  ;;  %v2630_v59 = vpop.eup %2629 }
 0x54d   : > { %1416 = vadd.xlane.f32.xlu0 %v1415_v27  ;;  %v2632_v54 = vpop.eup %2631  ;;  %v1402_v34 = vmul.f32 %v2630_v59, %v1398_v63 }
 0x54e   : > { %2493 = vmatmul.mubr.msk.bf16.vlgmr.msra.gmra.mrb[8].mxu0 %vm1124_vm2, %v1457_v32  ;;  %v2634_v55 = vpop.eup %2633  ;;  %v1404_v57 = vmul.f32 %v2632_v54, %v1400_v29 }
 0x54f   : > { %2520 = vmatprep.mubr.msk.bf16.mxu0 %vm2717_vm1, %v2716_v8  ;;  %v2636_v62 = vpop.eup %2635  ;;  %v1405_v50 = vmul.f32 %v2634_v55, %v1401_v46 }
 0x550   : > { %v1403_v40 = vmul.f32 %v2636_v62, %v1399_v39 }
 0x552   : > { %1432 = vperm.xlu1 %2597, %v2630_v59  }
 0x556   : > { %1442 = vperm.xlu1 %2597, %v2632_v54  }
 0x55a   : > { %1447 = vperm.xlu1 %2597, %v2634_v55  }
 0x563   : > { %1437 = vperm.xlu0 %2598, %v2636_v62  }
 0x5c6   : > { %v1408_v35 = vpop.xlane.xlu0 %1407 }
 0x5c7   : > { %v1418_v37 = vadd.f32 %v1408_v35, %v1402_v34 }
 0x5c9   : > { %1422 = vst.msk [vmem:[#allocation5] sm:$0xff] %vm1115_vm4, %v1418_v37 }
 0x5ce   : > { %v1411_v42 = vpop.xlane.xlu1 %1410 }
 0x5cf   : > { %v1419_v43 = vadd.f32 %v1411_v42, %v1403_v40 }
 0x5d0   : > { %v1659_v45 = vld [vmem:[#allocation5] sm:$0xff] }
 0x5d1   : > { %1423 = vst.msk [vmem:[#allocation5 + $0x8] sm:$0xff] %vm1115_vm4, %v1419_v43  ;;  %2637 = vrcp.f32 %v1659_v45 }
 0x5d2   : > { %v1433_v4 = vpop.permute.xlu1 %1432 }
 0x5d3   : > { %v1450_v5 = vmul.f32 %v1433_v4, %v1426_v3 }
 0x5d6   : > { %v1414_v58 = vpop.xlane.xlu0 %1413  ;;  %v1443_v36 = vpop.permute.xlu1 %1442 }
 0x5d7   : > { %v1420_v48 = vadd.f32 %v1414_v58, %v1404_v57  ;;  %v1452_v20 = vmul.f32 %v1443_v36, %v1428_v19 }
 0x5d8   : > { %v1660_v49 = vld [vmem:[#allocation5 + $0x8] sm:$0xff] }
 0x5d9   : > { %1424 = vst.msk [vmem:[#allocation5 + $0x10] sm:$0xff] %vm1115_vm4, %v1420_v48  ;;  %2639 = vrcp.f32 %v1660_v49 }
 0x5da   : > { %v1417_v51 = vpop.xlane.xlu0 %1416  ;;  %v1448_v24 = vpop.permute.xlu1 %1447 }
 0x5db   : > { %v2638_v28 = vpop.eup %2637  ;;  %v1421_v56 = vadd.f32 %v1417_v51, %v1405_v50  ;;  %v1453_v31 = vmul.f32 %v1448_v24, %v1429_v44 }
 0x5dc   : > { %1669 = vperm.xlu0 %2598, %v2638_v28  }
 0x5dd   : > { %1425 = vst.msk [vmem:[#allocation5 + $0x18] sm:$0xff] %vm1115_vm4, %v1421_v56 }
 0x5e0   : > { %v1661_v60 = vld [vmem:[#allocation5 + $0x10] sm:$0xff] }
 0x5e1   : > { %2641 = vrcp.f32 %v1661_v60 }
 0x5e2   : > { %v1438_v13 = vpop.permute.xlu0 %1437 }
 0x5e3   : > { %v2640_v61 = vpop.eup %2639  ;;  %v1451_v14 = vmul.f32 %v1438_v13, %v1427_v12 }
 0x5e4   : > { %1674 = vperm.xlu1 %2597, %v2640_v61   ;;  %v1662_v0 = vld [vmem:[#allocation5 + $0x18] sm:$0xff]  ;;  %v2601_v61 = vld [vmem:[%s3360_s5] sm:$0xff]  }
 0x5e5   : > { %2643 = vrcp.f32 %v1662_v0  ;;  %2497 = vmatpush3.bf16.msra.mxu1 %v2601_v61 }
 0x5e6   : > { %2498 = vmatprep.subr.bf16.mxu1 %v2716_v8 }
 0x5eb   : > { %v2642_v1 = vpop.eup %2641 }
 0x5ec   : > { %1679 = vperm.xlu0 %2598, %v2642_v1  }
 0x5ef   : > { %v2644_v2 = vpop.eup %2643 }
 0x5f0   : > { %1684 = vperm.xlu1 %2597, %v2644_v2  }
 0x60d   : > { %v1499_v6 = vpop.f32.mrb[16].mxu1 }
 0x60e   : > { %v1643_v7 = vadd.f32 %v1499_v6, %v1450_v5  ;;  %v2476_v9 = vpop.f32.mrb[17].mxu1 }
 0x60f   : > { %v1502_v10 = vpop.f32.mrb[18].mxu1  ;;  %v2602_v9 = vld [vmem:[%s3360_s5 + $0x8] sm:$0xff]  }
 0x610   : > { %1647 = vst.msk [vmem:[#allocation6] sm:$0xff] %vm1124_vm2, %v1643_v7  ;;  %v2477_v11 = vpop.f32.mrb[19].mxu1  ;;  %2499 = vmatpush3.bf16.msra.mxu1 %v2602_v9 }
 0x611   : > { %2524 = vmatprep.subr.bf16.mxu1 %v2716_v8 }
 0x615   : > { %v1545_v15 = vpop.f32.mrb[4].mxu0 }
 0x616   : > { %v1644_v21 = vadd.f32 %v1545_v15, %v1451_v14  ;;  %v2482_v16 = vpop.f32.mrb[5].mxu0 }
 0x617   : > { %v1548_v17 = vpop.f32.mrb[6].mxu0  ;;  %v1655_v34 = vld [vmem:[#allocation6] sm:$0xff] }
 0x618   : > { %1648 = vst.msk [vmem:[#allocation6 + $0x8] sm:$0xff] %vm1124_vm2, %v1644_v21  ;;  %v2483_v18 = vpop.f32.mrb[7].mxu0 }
 0x61d   : > { %v1591_v25 = vpop.f32.mrb[20].mxu1 }
 0x61e   : > { %v1645_v26 = vadd.f32 %v1591_v25, %v1452_v20  ;;  %v2488_v23 = vpop.f32.mrb[21].mxu1 }
 0x61f   : > { %v1594_v30 = vpop.f32.mrb[22].mxu1  ;;  %v1656_v37 = vld [vmem:[#allocation6 + $0x8] sm:$0xff] }
 0x620   : > { %1649 = vst.msk [vmem:[#allocation6 + $0x10] sm:$0xff] %vm1124_vm2, %v1645_v26  ;;  %v2489_v33 = vpop.f32.mrb[23].mxu1 }
 0x621   : > { %v1637_v38 = vpop.f32.mrb[8].mxu0 }
 0x622   : > { %v1646_v52 = vadd.f32 %v1637_v38, %v1453_v31  ;;  %v2494_v27 = vpop.f32.mrb[9].mxu0  ;;  %v2367_v38 = vld [vmem:[%s3361_s6] ss:$0 sm:$0xff] }
 0x623   : > { %v1640_v32 = vpop.f32.mrb[10].mxu0 }
 0x624   : > { %1650 = vst.msk [vmem:[#allocation6 + $0x18] sm:$0xff] %vm1124_vm2, %v1646_v52  ;;  %v2495_v59 = vpop.f32.mrb[11].mxu0 }
 0x625   : > { %v2373_v59 = vld [vmem:[%s3367_s12] ss:$0 sm:$0xff] }
 0x627   : > { %v1657_v62 = vld [vmem:[#allocation6 + $0x10] sm:$0xff] }
 0x62b   : > { %v1658_v39 = vld [vmem:[#allocation6 + $0x18] sm:$0xff] }
 0x65b   : > { %v1670_v53 = vpop.permute.xlu0 %1669 }
 0x65c   : > { %v1687_v35 = vmul.f32 %v1670_v53, %v1655_v34 }
 0x663   : > { %v1675_v54 = vpop.permute.xlu1 %1674 }
 0x664   : > { %v1688_v42 = vmul.f32 %v1675_v54, %v1656_v37  ;;  %v2651_v54 = vld [vmem:[%s2874_s29] sm:$0xff]  ;;  %s3391_s29 = smov 64  }
 0x66b   : > { %v1680_v55 = vpop.permute.xlu0 %1679 }
 0x66c   : > { %v1689_v63 = vmul.f32 %v1680_v55, %v1657_v62 }
 0x66e   : > { %v1691_v43 = vcombine.low %v1687_v35, %v1689_v63  ;;  %v1692_v45 = vcombine.high %v1687_v35, %v1689_v63  ;;  %v2603_v35 = vld [vmem:[%s3364_s9] sm:$0xff]  }
 0x66f   : > { %v1685_v40 = vpop.permute.xlu1 %1684  ;;  %v2018_v37 = vsel %vm534_vm0, %v2603_v35, 0  ;;  %v2399_v35 = vpack.c.bf16 %v2905_v22, %v2905_v22 }
 0x670   : > { %v1690_v29 = vmul.f32 %v1685_v40, %v1658_v39  ;;  %v1699_v46 = vrot.slane %v1691_v43, %v2942_v41  ;;  %v1706_v48 = vrot.slane %v1692_v45, %v2942_v41  ;;  %2505 = vmatpush3.bf16.xpose.msra.mxu0 %v2018_v37  ;;  %v2604_v39 = vld [vmem:[%s3364_s9 + $0x8] sm:$0xff]   ;;  %v2606_v45 = vld [vmem:[%s3364_s9 + $0x18] sm:$0xff]  }
 0x671   : > { %2506 = vmatprep.subr.bf16.mxu0 %v2716_v8  ;;  %v2021_v40 = vsel %vm534_vm0, %v2604_v39, 0 }
 0x672   : > { %v1707_v57 = vcombine.low %v1688_v42, %v1690_v29  ;;  %v1708_v58 = vcombine.high %v1688_v42, %v1690_v29  ;;  %v2605_v42 = vld [vmem:[%s3364_s9 + $0x10] sm:$0xff]   ;;  %v2027_v29 = vsel %vm534_vm0, %v2606_v45, 0 }
 0x673   : > { %v2024_v43 = vsel %vm534_vm0, %v2605_v42, 0 }
 0x674   : > { %v1715_v49 = vrot.slane %v1707_v57, %v2942_v41  ;;  %v1722_v50 = vrot.slane %v1708_v58, %v2942_v41  ;;  %v2607_v57 = vld [vmem:[%s3364_s9 + $0x20] sm:$0xff]  }
 0x675   : > { %v2030_v58 = vsel %vm534_vm0, %v2607_v57, 0 }
 0x676   : > { %v1723_v51 = vcombine.low %v1699_v46, %v1715_v49  ;;  %v1724_v28 = vcombine.high %v1699_v46, %v1715_v49  ;;  %v1739_v56 = vcombine.low %v1706_v48, %v1722_v50  ;;  %v1740_v60 = vcombine.high %v1706_v48, %v1722_v50 }
 0x678   : > { %v1731_v0 = vrot.slane %v1723_v51, %v2945_v47  ;;  %v1738_v1 = vrot.slane %v1724_v28, %v2945_v47  ;;  %v1747_v2 = vrot.slane %v1739_v56, %v2945_v47  ;;  %v1754_v3 = vrot.slane %v1740_v60, %v2945_v47  ;;  %2507 = vmatpush3.bf16.xpose.msra.mxu0 %v2021_v40  ;;  %v2608_v28 = vld [vmem:[%s3364_s9 + $0x28] sm:$0xff]   ;;  %v2609_v60 = vld [vmem:[%s3364_s9 + $0x30] sm:$0xff]  }
 0x679   : > { %2508 = vmatprep.subr.bf16.mxu0 %v2716_v8  ;;  %v2033_v56 = vsel %vm534_vm0, %v2608_v28, 0  ;;  %v2036_v61 = vsel %vm534_vm0, %v2609_v60, 0 }
 0x67a   : > { %v1759_v4 = vcombine.low %v1731_v0, %v1738_v1  ;;  %v2365_v5 = vcombine.high %v1731_v0, %v1738_v1  ;;  %v1775_v6 = vcombine.low %v1747_v2, %v1754_v3  ;;  %v2366_v7 = vcombine.high %v1747_v2, %v1754_v3  ;;  %v2610_v0 = vld [vmem:[%s3364_s9 + $0x38] sm:$0xff]   ;;  %v2611_v2 = vld [vmem:[%s3366_s11] sm:$0xff]  }
 0x67b   : > { %v2039_v1 = vsel %vm534_vm0, %v2610_v0, 0 }
 0x67c   : > { %v1766_v10 = vrot.slane %v1759_v4, %v2942_v41  ;;  %v1774_v11 = vrot.slane %v2365_v5, %v2942_v41  ;;  %v1782_v12 = vrot.slane %v1775_v6, %v2942_v41  ;;  %v1790_v13 = vrot.slane %v2366_v7, %v2942_v41  ;;  %v2371_v7 = vld [vmem:[%s3362_s7] ss:$0 sm:$0xff] }
 0x67e   : > { %v1792_v14 = vcombine.high %v1766_v10, %v1774_v11  ;;  %v1808_v15 = vcombine.high %v1782_v12, %v1790_v13  ;;  %v1791_v21 = vcombine.low %v1766_v10, %v1774_v11  ;;  %v1807_v16 = vcombine.low %v1782_v12, %v1790_v13  ;;  %v2372_v10 = vld [vmem:[%s3363_s8] ss:$0 sm:$0xff] }
 0x680   : > { %v1806_v36 = vrot.slane %v1792_v14, %v2945_v47  ;;  %v1822_v17 = vrot.slane %v1808_v15, %v2945_v47  ;;  %v1799_v18 = vrot.slane %v1791_v21, %v2945_v47  ;;  %v1815_v19 = vrot.slane %v1807_v16, %v2945_v47  ;;  %2509 = vmatpush3.bf16.xpose.msra.mxu0 %v2024_v43  ;;  %v2612_v14 = vld [vmem:[%s3366_s11 + $0x8] sm:$0xff]   ;;  %v2613_v15 = vld [vmem:[%s3366_s11 + $0x10] sm:$0xff]   ;;  %v2614_v21 = vld [vmem:[%s3366_s11 + $0x18] sm:$0xff]  }
 0x681   : > { %2510 = vmatprep.subr.bf16.mxu0 %v2716_v8  ;;  %v2615_v16 = vld [vmem:[%s3366_s11 + $0x20] sm:$0xff]  }
 0x682   : > { %v1825_v20 = vcombine.low %v1806_v36, %v1822_v17  ;;  %v1824_v44 = vcombine.high %v1799_v18, %v1815_v19  ;;  %v1823_v24 = vcombine.low %v1799_v18, %v1815_v19  ;;  %v1826_v41 = vcombine.high %v1806_v36, %v1822_v17  ;;  %v2616_v36 = vld [vmem:[%s3366_s11 + $0x28] sm:$0xff]   ;;  %v2617_v17 = vld [vmem:[%s3366_s11 + $0x30] sm:$0xff]   ;;  %v2618_v18 = vld [vmem:[%s3366_s11 + $0x38] sm:$0xff]  }
 0x683   : > { %v2374_v19 = vld [vmem:[%s3365_s10] ss:$0 sm:$0xff] }
 0x684   : > { %1832 = vrot.lane.b32.xlu1 %v1825_v20, %s2727_s26  ;;  %1828 = vrot.lane.b32.xlu0 %v1824_v44, %s2728_s23  ;;  %s3376_s23 = sand.u32 1, %s2706_s22  }
 0x688   : > { %1836 = vrot.lane.b32.xlu0 %v1826_v41, %s2729_s30  ;;  %s2339_s30 = sshll.u32 %s3376_s23, 3  ;;  %2511 = vmatpush3.bf16.xpose.msra.mxu0 %v2027_v29 }
 0x689   : > { %s3198_s28 = scalar_lea.vmem [#allocation7], %s2339_s30  ;;  %2512 = vmatprep.subr.bf16.mxu0 %v2716_v8  ;;  %s3390_s30 = sshll.u32 %s2866_s18, 3 }
 0x68a   : > { %s529_s26 = scalar_lea.vmem %s3371_s16, %s3390_s30  ;;  %s2395_s30 = sshll.u32 %s2837_s25, 7 }
 0x68b   : > { %s2248_s23 = sshll.u32 %s3198_s28, 4  ;;  %s3309_s3 = scalar_lea.hbm %s3370_s15, %s2395_s30  ;;  %s3311_s23 = int_to_ptr.vmem [resolvable:$true] %s2248_s23 }
 0x68c   : > { %s2652_s19 = scalar_lea.vmem %s3311_s23, 128  ;;  %s2730_s25 = smov [#allocation7]  }
 0x68d   : > { %p2653_p11 = scmp.ne.s32.totalorder %s3311_s23, %s2652_s19  ;;  %s2656_s2 = sshll.u32 %s2730_s25, 4  ;;  %s2657_s2 = int_to_ptr.vmem [resolvable:$false] %s2656_s2 }
 0x68e   : > { %p2659_p0 = scmp.lt.s32.totalorder %s3311_s23, %s2657_s2 }
 0x68f   : > { %p2654_p12 = pnand %p2653_p11, %p2854_p5 }
 0x690   : > { %2513 = vmatpush3.bf16.xpose.msra.mxu0 %v2030_v58 }
 0x691   : > { %2514 = vmatprep.subr.bf16.mxu0 %v2716_v8  ;;  %p2655_p13 = pneg %p2654_p12 }
 0x698   : > { %2515 = vmatpush3.bf16.xpose.msra.mxu0 %v2033_v56 }
 0x699   : > { %2516 = vmatprep.subr.bf16.mxu0 %v2716_v8 }
 0x6a0   : > { %2517 = vmatpush3.bf16.xpose.msra.mxu0 %v2036_v61 }
 0x6a1   : > { %2518 = vmatprep.subr.bf16.mxu0 %v2716_v8 }
 0x6a8   : > { %2519 = vmatpush3.bf16.xpose.msra.mxu0 %v2039_v1 }
 0x6f6   : > { %v1829_v25 = vpop.permute.xlu0 %1828  ;;  %v1833_v26 = vpop.permute.xlu1 %1832 }
 0x6f7   : > { %v1839_v23 = vsel %vm1124_vm2, %v1823_v24, %v1829_v25 }
 0x6f8   : > { %v1841_v30 = vsel %vm1840_vm7, %v1839_v23, %v1833_v26 }
 0x6fa   : > { %v1837_v47 = vpop.permute.xlu0 %1836 }
 0x6fb   : > { %v1843_v31 = vsel %vm1842_vm8, %v1841_v30, %v1837_v47 }
 0x6fc   : > { %v1844_v33 = vpack.c.bf16 %v1843_v31, %v1843_v31 }
 0x6fe   : > { %2501 = vmatmul.mubr.msk.bf16.vlgmr.msra.gmra.mrb[24].mxu1 %vm534_vm0, %v1844_v33 }
 0x6ff   : > { %2540 = vmatprep.mubr.msk.bf16.mxu1 %vm2717_vm1, %v2716_v8  ;;  %2525 = vmatpush3.bf16.msra.mxu1 %v2611_v2 }
 0x700   : > { %2526 = vmatprep.subr.bf16.mxu1 %v2716_v8 }
 0x703   : > { %2527 = vmatpush3.bf16.msra.mxu1 %v2612_v14 }
 0x704   : > { %2528 = vmatprep.subr.bf16.mxu1 %v2716_v8 }
 0x707   : > { %2529 = vmatpush3.bf16.msra.mxu1 %v2613_v15 }
 0x708   : > { %2530 = vmatprep.subr.bf16.mxu1 %v2716_v8 }
 0x70b   : > { %2531 = vmatpush3.bf16.msra.mxu1 %v2614_v21 }
 0x70c   : > { %2532 = vmatprep.subr.bf16.mxu1 %v2716_v8 }
 0x70f   : > { %2533 = vmatpush3.bf16.msra.mxu1 %v2615_v16 }
 0x710   : > { %2534 = vmatprep.subr.bf16.mxu1 %v2716_v8 }
 0x713   : > { %2535 = vmatpush3.bf16.msra.mxu1 %v2616_v36 }
 0x714   : > { %2536 = vmatprep.subr.bf16.mxu1 %v2716_v8 }
 0x717   : > { %2537 = vmatpush3.bf16.msra.mxu1 %v2617_v17 }
 0x718   : > { %2538 = vmatprep.subr.bf16.mxu1 %v2716_v8 }
 0x71b   : > { %2539 = vmatpush3.bf16.msra.mxu1 %v2618_v18 }
 0x7d1   : > { %v1905_v52 = vpop.f32.mrb[24].mxu1 }
 0x7d2   : > { %v1906_v27 = vadd.f32 %v2367_v38, %v1905_v52  ;;  %v2502_v32 = vpop.f32.mrb[25].mxu1 }
 0x7d3   : > { %v1908_v53 = vpop.f32.mrb[26].mxu1 }
 0x7d4   : > { %v1911_v55 = vadd.f32 %v2651_v54, %v1906_v27  ;;  %v2503_v62 = vpop.f32.mrb[27].mxu1 }
 0x7d6   : > { %v1949_v63 = vadd.f32 %v2373_v59, %v1911_v55  ;;  %v1914_v34 = vsel %vm534_vm0, %v1911_v55, 0.0 }
 0x7d7   : > { %1915 = vadd.xlane.f32.xlu1 %v1914_v34 }
 0x7d8   : > { %1950 = vst.msk [vmem:[%s3198_s28] sm:$0xff] %vm534_vm0, %v1949_v63 }
 0x7df   : > { %v2106_v32 = vld [vmem:[%s3198_s28] sm:$0xff] }
 0x864   : > { %v1916_v46 = vpop.xlane.xlu1 %1915 }
 0x865   : > { %v1917_v48 = vmul.f32 0.03125, %v1916_v46 }
 0x867   : > { %v1918_v49 = vsub.f32 %v1911_v55, %v1917_v48  ;;  %v2392_v48 = vld [vmem:[%s3368_s13] ss:$0 sm:$0xff] }
 0x869   : > { %v1919_v50 = vmul.f32 %v1918_v49, %v1918_v49 }
 0x86b   : > { %v1920_v51 = vsel %vm534_vm0, %v1919_v50, 0.0  ;;  %v2393_v50 = vld [vmem:[%s3369_s14] ss:$0 sm:$0xff] }
 0x86c   : > { %1921 = vadd.xlane.f32.xlu0 %v1920_v51 }
 0x8f9   : > { %v1922_v3 = vpop.xlane.xlu0 %1921 }
 0x8fa   : > { %v1923_v4 = vmul.f32 0.03125, %v1922_v3 }
 0x8fc   : > { %v1924_v5 = vadd.f32 1e-05, %v1923_v4 }
 0x8fe   : > { %2645 = vrsqrt.f32 %v1924_v5 }
 0x908   : > { %v2646_v6 = vpop.eup %2645 }
 0x909   : > { %v1926_v9 = vmul.f32 %v2646_v6, %v1918_v49 }
 0x90b   : > { %v1933_v11 = vmul.f32 %v2371_v7, %v1926_v9 }
 0x90d   : > { %v1940_v12 = vadd.f32 %v2372_v10, %v1933_v11 }
 0x90f   : > { %v1941_v13 = vpack.c.bf16 %v1940_v12, %v1940_v12 }
 0x911   : > { %2521 = vmatmul.mubr.msk.bf16.vlgmr.msra.gmra.mrb[12].mxu0 %vm534_vm0, %v1941_v13 }
 0x9e4   : > { %v2075_v20 = vpop.f32.mrb[12].mxu0 }
 0x9e5   : > { %v2076_v44 = vadd.f32 %v2374_v19, %v2075_v20  ;;  %v2522_v24 = vpop.f32.mrb[13].mxu0 }
 0x9e6   : > { %v2078_v41 = vpop.f32.mrb[14].mxu0 }
 0x9e7   : > { %v2082_v25 = vmul.f32 %v2076_v44, %v2076_v44  ;;  %v2523_v26 = vpop.f32.mrb[15].mxu0  ;;  %v2081_v33 = vmul.f32 0.5, %v2076_v44 }
 0x9e9   : > { %v2083_v23 = vmul.f32 %v2082_v25, %v2076_v44 }
 0x9eb   : > { %v2084_v47 = vmul.f32 0.044715, %v2083_v23 }
 0x9ed   : > { %v2085_v30 = vadd.f32 %v2084_v47, %v2076_v44 }
 0x9ef   : > { %v2086_v31 = vmul.f32 0.7978846, %v2085_v30 }
 0x9f1   : > { %2647 = vtanh.f32 %v2086_v31 }
 0x9fb   : > { %v2648_v8 = vpop.eup %2647 }
 0x9fc   : > { %v2088_v38 = vadd.f32 1.0, %v2648_v8 }
 0x9fe   : > { %v2089_v52 = vmul.f32 %v2088_v38, %v2081_v33 }
 0xa00   : > { %v2107_v27 = vpack.c.bf16 %v2089_v52, %v2089_v52 }
 0xa02   : > { %2541 = vmatmul.mubr.bf16.vlgmr.msra.gmra.mrb[28].mxu1 %v2107_v27 }
 0xad5   : > { %v2190_v59 = vpop.f32.mrb[28].mxu1 }
 0xad6   : > { %v2196_v53 = vadd.f32 %v2190_v59, %v2106_v32  ;;  %v2542_v54 = vpop.f32.mrb[29].mxu1 }
 0xad7   : > { %v2193_v55 = vpop.f32.mrb[30].mxu1 }
 0xad8   : > { %2197 = vst.msk [vmem:[%s3198_s28] sm:$0xff] %vm534_vm0, %v2196_v53  ;;  %v2543_v62 = vpop.f32.mrb[31].mxu1 }
 0xadf   : > { %v2198_v63 = vld [vmem:[%s3198_s28] sm:$0xff] }
 0xae0   : > { %v2201_v34 = vsel %vm534_vm0, %v2198_v63, 0.0 }
 0xae1   : > { %2202 = vadd.xlane.f32.xlu0 %v2201_v34 }
 0xaf7   : > { %634 = vrot.lane.b32.xlu0 %v2399_v35, %s3389_s20  ;;  %s2658_s20 = scalar_lea.vmem %s2657_s2, 256 }
 0xaf8   : > { %p2660_p1 = scmp.lt.s32.totalorder %s2658_s20, %s2652_s19 }
 0xafa   : > { %p2661_p2 = por %p2660_p1, %p2659_p0 }
 0xafc   : > { %p2662_p3 = pnand %p2661_p2, %p2655_p13 }
 0xb6e   : > { %v2203_v37 = vpop.xlane.xlu0 %2202 }
 0xb6f   : > { %v2204_v39 = vmul.f32 0.03125, %v2203_v37 }
 0xb71   : > { %v2205_v40 = vsub.f32 %v2198_v63, %v2204_v39 }
 0xb72   : > { %v635_v42 = vpop.permute.xlu0 %634 }
 0xb73   : > { %638 = vst.msk [vmem:[%s529_s26] sm:$0xf] %vm637_vm9, %v635_v42  ;;  %v2206_v43 = vmul.f32 %v2205_v40, %v2205_v40 }
 0xb75   : > { %v2207_v45 = vsel %vm534_vm0, %v2206_v43, 0.0 }
 0xb76   : > { %2208 = vadd.xlane.f32.xlu1 %v2207_v45 }
 0xb87   : > { %639 = vrot.lane.b32.xlu1 %v2399_v35, %s3391_s29 }
 0xc03   : > { %v2209_v22 = vpop.xlane.xlu1 %2208 }
 0xc04   : > { %v2210_v29 = vmul.f32 0.03125, %v2209_v22 }
 0xc06   : > { %v2211_v57 = vadd.f32 1e-05, %v2210_v29 }
 0xc07   : > { %v640_v58 = vpop.permute.xlu1 %639 }
 0xc08   : > { %2649 = vrsqrt.f32 %v2211_v57  ;;  %2350 = vst.msk [vmem:[%s529_s26 + $0x4] sm:$0xf] %vm637_vm9, %v640_v58  ;;  %s3392_s26 = sand.u32 1, %s2706_s22  }
 0xc09   : > { %s2230_s18 = scalar_lea.sflag [#allocation8], %s3392_s26 }
 0xc12   : > { %v2650_v46 = vpop.eup %2649 }
 0xc13   : > { %v2213_v49 = vmul.f32 %v2650_v46, %v2205_v40 }
 0xc15   : > { %v2220_v51 = vmul.f32 %v2392_v48, %v2213_v49 }
 0xc17   : > { %v2227_v28 = vadd.f32 %v2393_v50, %v2220_v51 }
 0xc19   : > { %2228 = vst.msk [vmem:[%s3198_s28] sm:$0xff] %vm534_vm0, %v2227_v28 }
 0xc1a   : > { %2665 = shalt.err (!%p2662_p3)
}
 0xc1b   : > { %s2666_s28 = scalar_lea.hbm %s3309_s3, 128  ;;  %s2670_s29 = scalar_lea.hbm %s3370_s15, 256 }
 0xc1c   : > { %p2667_p4 = scmp.ne.s32.totalorder %s3309_s3, %s2666_s28  ;;  %p2671_p9 = scmp.lt.u32.totalorder %s3309_s3, %s3370_s15 }
 0xc1d   : > { %p2672_p10 = scmp.lt.u32.totalorder %s2670_s29, %s2666_s28  ;;  %p2674_p12 = scmp.lt.u32.totalorder %s2666_s28, %s3309_s3 }
 0xc1e   : > { %p2668_p7 = pnand %p2667_p4, %p2854_p5 }
 0xc1f   : > { %p2673_p11 = por %p2672_p10, %p2671_p9 }
 0xc20   : > { %p2669_p8 = pneg %p2668_p7 }
 0xc21   : > { %p2675_p13 = por %p2674_p12, %p2673_p11 }
 0xc23   : > { %p2676_p0 = pnand %p2675_p13, %p2669_p8 }
 0xc25   : > { %2679 = shalt.err (!%p2676_p0)
}
 0xc26   : > { %2544 = dma.vmem_to_hbm [thread:$0]  (%p2854_p5), %s3311_s23, 128, %s3309_s3, %s2230_s18  }
 0xc27 PF: > { %p2550_p1 = scmp.ge.s32.totalorder %s2714_s24, 2  ;;  %s2263_s19 = sand.u32 1, %s2702_s21  }
 0xc28   : > { %s2264_s2 = scalar_lea.sflag [#allocation8], %s2263_s19 }
 0xc29   : > { %p2547_p2 = pnand %p2550_p1, %p2858_p6 }
 0xc2b   : > { %2697 = dma.done.wait (!%p2547_p2), %s2264_s2, 128  }
 0xc2c   : > { %2699 = vsyncadd (!%p2547_p2), %s2264_s2, 4294967168  ;;  %s3393_s20 = sld [smem:[#allocation10_spill]]  ;;  %s3394_s23 = sld [smem:[#allocation11_spill]] }
 0xc2d   : > { %p27_p3 = scmp.ge.s32.totalorder %s2841_s27, 4   ;;  %s3395_s21 = smov %s2706_s22 }
 0xc2e   : > { %s3397_s24 = smov %s2841_s27 }
 0xc2f   :  { %29 = sbr.rel (!%p27_p3) target bundleno = 8 (0x8), region = 128 }
 0xc32   : > { %s3396_s22 = smov %s3393_s20 }
 0xc36   :  { %2277 = vsyncpa [#allocation8], 1 }
 0xc37   :  { %2279 = vsyncpa [#allocation8 + $0x1], 1 }

// kernel: gpt2_role_forward.2
= control target key start
LH: loop header
LB: loop body
LE: loop exit
PB: predicated region body
PF: predicated region fallthrough
CT: control target
= control target key end

     0   :  { %s2672_s21 = smov 0   ;;  %s3112_s0 = inlined_call_operand.vmem [shape: f32[2,8,32], index: 0, kind: input, shape index: {}]   ;;  %s3113_s1 = inlined_call_operand.vmem [shape: f32[1,32], index: 1, kind: input, shape index: {}]   ;;  %s3114_s2 = inlined_call_operand.vmem [shape: f32[1,32], index: 2, kind: input, shape index: {}]   ;;  %s3115_s3 = inlined_call_operand.vmem [shape: bf16[32,96], index: 3, kind: input, shape index: {}]   ;;  %s3116_s4 = inlined_call_operand.vmem [shape: f32[1,96], index: 4, kind: input, shape index: {}]   ;;  %s3117_s5 = inlined_call_operand.vmem [shape: bf16[32,32], index: 5, kind: input, shape index: {}]   ;;  %s3118_s6 = inlined_call_operand.vmem [shape: f32[1,32], index: 6, kind: input, shape index: {}]   ;;  %s3119_s7 = inlined_call_operand.vmem [shape: f32[1,32], index: 7, kind: input, shape index: {}]   ;;  %s3120_s8 = inlined_call_operand.vmem [shape: f32[1,32], index: 8, kind: input, shape index: {}]   ;;  %s3121_s9 = inlined_call_operand.vmem [shape: bf16[128,32], index: 9, kind: input, shape index: {}]   ;;  %s3122_s10 = inlined_call_operand.vmem [shape: f32[1,128], index: 10, kind: input, shape index: {}]   ;;  %s3123_s11 = inlined_call_operand.vmem [shape: bf16[128,32], index: 11, kind: input, shape index: {}]   ;;  %s3124_s12 = inlined_call_operand.vmem [shape: f32[1,32], index: 12, kind: input, shape index: {}]   ;;  %s3125_s13 = inlined_call_operand.vmem [shape: f32[1,32], index: 13, kind: input, shape index: {}]   ;;  %s3126_s14 = inlined_call_operand.vmem [shape: f32[1,32], index: 14, kind: input, shape index: {}]   ;;  %s3127_s15 = inlined_call_operand.vmem [shape: f32[2,8,32], index: 15, kind: output, shape index: {0}]   ;;  %s3128_s16 = inlined_call_operand.vmem [shape: bf16[2,2,8,32], index: 16, kind: output, shape index: {1}]  }
   0x1   :  { %3129 = sst [smem:[#allocation7_spill]] %s3112_s0 }
   0x2 LB: > { %s2284_s13 = sadd.s32 4294967295, %s2571_s21   ;;  %p2288_p0 = scmp.ge.s32.totalorder %s2571_s21, 1  ;;  %s2571_s21 = sphi %s2672_s21, %s27_s21  }
   0x3   : > { %p464_p1 = scmp.lt.s32.totalorder %s2571_s21, 3 }
   0x5   : > { %p465_p2 = pnand %p2288_p0, %p464_p1 }
   0x6   : > { %p517_p3 = scmp.lt.s32.totalorder (!%p465_p2), %s2284_s13, 1  ;;  %vm534_vm0 = vcmask (!%p465_p2), 261120   ;;  %s3130_s24 = sld [smem:[#allocation7_spill]] (!%p465_p2)  ;;  %v2514_v7 = vld [vmem:[%s3115_s3] sm:$0xff] (!%p465_p2)   ;;  %v2573_v8 = vmov (!%p465_p2), 0.0   ;;  %vm2574_vm1 = vmmov (!%p465_p2), 0   ;;  %v660_v33 = vlaneseq (!%p465_p2) }
   0x7   : > { %468 = sbr.rel (%p465_p2) target bundleno = 2763 (0xacb), region = 80  ;;  %2386 = vmatprep.subr.bf16.mxu1 (!%p465_p2), %v2573_v8  ;;  %2390 = vmatprep.mubr.msk.bf16.mxu1 (!%p465_p2), %vm2574_vm1, %v2573_v8  ;;  %v2515_v9 = vld [vmem:[%s3115_s3 + $0x8] sm:$0xff] (!%p465_p2)   ;;  %v2293_v14 = vld [vmem:[%s3113_s1] ss:$0 sm:$0xff] (!%p465_p2)  ;;  %s2576_s22 = smov (!%p465_p2), 120   ;;  %vm1124_vm2 = vcmask (!%p465_p2), 64512  }
   0x8   : > { %2387 = vmatpush3.bf16.msra.mxu1 (!%p465_p2), %v2514_v7  ;;  %2412 = vmatprep.subr.bf16.mxu0 (!%p465_p2), %v2573_v8  ;;  %v2294_v16 = vld [vmem:[%s3114_s2] ss:$0 sm:$0xff] (!%p465_p2)  ;;  %s2577_s23 = smov (!%p465_p2), 112   ;;  %1125 = vst.msk [vmem:[#allocation6] sm:$0xff] (!%p465_p2), %vm1124_vm2, %v2573_v8  ;;  %1126 = vst.msk [vmem:[#allocation6 + $0x8] sm:$0xff] (!%p465_p2), %vm1124_vm2, %v2573_v8  ;;  %v2751_v38 = vshrl.u32 (!%p465_p2), %v660_v33, 7 }
   0x9   : > { %2388 = vmatprep.subr.bf16.mxu1 (!%p465_p2), %v2573_v8  ;;  %2414 = vmatprep.mubr.msk.bf16.mxu0 (!%p465_p2), %vm2574_vm1, %v2573_v8  ;;  %v2295_v20 = vld [vmem:[%s3116_s4] ss:$0 sm:$0xff] (!%p465_p2)  ;;  %1127 = vst.msk [vmem:[#allocation6 + $0x10] sm:$0xff] (!%p465_p2), %vm1124_vm2, %v2573_v8  ;;  %1128 = vst.msk [vmem:[#allocation6 + $0x18] sm:$0xff] (!%p465_p2), %vm1124_vm2, %v2573_v8  ;;  %v2579_v31 = vmov (!%p465_p2), 1983009808  }
   0xa   : > { %v658_v32 = vunpack.c.l.s4 (!%p465_p2), %v2579_v31  ;;  %v2580_v35 = vmov (!%p465_p2), 1934713408   ;;  %vm954_vm3 = vcmask (!%p465_p2), 60416   ;;  %vm1115_vm4 = vcmask (!%p465_p2), 7168   ;;  %s2583_s26 = smov (!%p465_p2), 64   ;;  %s2584_s0 = smov (!%p465_p2), 16  }
   0xb   : > { %v690_v36 = vunpack.c.l.s4 (!%p465_p2), %v2580_v35  ;;  %1120 = vst.msk [vmem:[#allocation5] sm:$0xff] (!%p465_p2), %vm1115_vm4, %v2573_v8  ;;  %1121 = vst.msk [vmem:[#allocation5 + $0x8] sm:$0xff] (!%p465_p2), %vm1115_vm4, %v2573_v8  ;;  %vm1461_vm6 = vcmask (!%p465_p2), 1043456   ;;  %s2585_s17 = smov (!%p465_p2), 8   ;;  %s2586_s18 = smov (!%p465_p2), 24   ;;  %vm1840_vm7 = vcmask (!%p465_p2), 130048  }
   0xc   : > { %2389 = vmatpush3.bf16.msra.mxu1 (!%p465_p2), %v2515_v9  ;;  %v659_v37 = vunpack.c.0.s8 (!%p465_p2), %v658_v32  ;;  %1122 = vst.msk [vmem:[#allocation5 + $0x10] sm:$0xff] (!%p465_p2), %vm1115_vm4, %v2573_v8  ;;  %1123 = vst.msk [vmem:[#allocation5 + $0x18] sm:$0xff] (!%p465_p2), %vm1115_vm4, %v2573_v8  ;;  %vm1842_vm8 = vcmask (!%p465_p2), 195584   ;;  %vm637_vm9 = vcmask (!%p465_p2), 257024  }
   0xd   : > { %2394 = vmatprep.subr.bf16.mxu1 (!%p465_p2), %v2573_v8  ;;  %v691_v40 = vunpack.c.0.s8 (!%p465_p2), %v690_v36 }
   0xe   : > { %s3132_s13 = smov (!%p517_p3, %s2284_s13), 1  ;;  %v2754_v41 = vsub.s32 %v659_v37, %v2751_v38 }
   0xf   : > { %s2680_s14 = sshll.u32 %s3132_s13, 3  ;;  %s2575_s13 = smov 104   ;;  %v2757_v47 = vsub.s32 %v691_v40, %v2751_v38 }
  0x10   : > { %s2686_s25 = scalar_lea.vmem %s3130_s24, %s2680_s14  ;;  %s2578_s24 = smov 96  }
  0x11   : > { %v531_v0 = vld [vmem:[%s2686_s25] sm:$0xff]  ;;  %s3010_s28 = scalar_lea.vmem %s3127_s15, %s2680_s14  ;;  %s529_s27 = scalar_lea.vmem %s3128_s16, %s2680_s14 }
  0x12   : > { %v535_v1 = vsel %vm534_vm0, %v531_v0, 0.0 }
  0x13   : > { %536 = vadd.xlane.f32.xlu0 %v535_v1 }
  0xa0   : > { %v537_v2 = vpop.xlane.xlu0 %536 }
  0xa1   : > { %v539_v3 = vmul.f32 0.03125, %v537_v2 }
  0xa3   : > { %v540_v4 = vsub.f32 %v531_v0, %v539_v3 }
  0xa5   : > { %v541_v5 = vmul.f32 %v540_v4, %v540_v4 }
  0xa7   : > { %v542_v6 = vsel %vm534_vm0, %v541_v5, 0.0 }
  0xa8   : > { %543 = vadd.xlane.f32.xlu0 %v542_v6 }
 0x135   : > { %v544_v10 = vpop.xlane.xlu0 %543 }
 0x136   : > { %v545_v11 = vmul.f32 0.03125, %v544_v10 }
 0x138   : > { %v546_v12 = vadd.f32 1e-05, %v545_v11 }
 0x13a   : > { %2534 = vrsqrt.f32 %v546_v12 }
 0x144   : > { %v2535_v13 = vpop.eup %2534 }
 0x145   : > { %v548_v15 = vmul.f32 %v2535_v13, %v540_v4 }
 0x147   : > { %v555_v17 = vmul.f32 %v2293_v14, %v548_v15 }
 0x149   : > { %v562_v18 = vadd.f32 %v2294_v16, %v555_v17 }
 0x14b   : > { %v563_v19 = vpack.c.bf16 %v562_v18, %v562_v18 }
 0x14d   : > { %2391 = vmatmul.mubr.msk.bf16.vlgmr.msra.gmra.mrb[0].mxu1 %vm534_vm0, %v563_v19 }
 0x14e   : > { %2396 = vmatprep.mubr.msk.bf16.mxu1 %vm2574_vm1, %v2573_v8 }
 0x220   : > { %v624_v21 = vpop.f32.mrb[0].mxu1 }
 0x221   : > { %v2717_v22 = vadd.f32 %v2295_v20, %v624_v21  ;;  %v2392_v23 = vpop.f32.mrb[1].mxu1 }
 0x222   : > { %v627_v24 = vpop.f32.mrb[2].mxu1 }
 0x223   : > { %800 = vrot.lane.b32.xlu0 %v2717_v22, %s2575_s13  ;;  %796 = vrot.lane.b32.xlu1 %v2717_v22, %s2576_s22  ;;  %v2393_v25 = vpop.f32.mrb[3].mxu1  ;;  %v2722_v26 = vmul.f32 0.35355338, %v2717_v22 }
 0x227   : > { %798 = vrot.lane.b32.xlu1 %v2717_v22, %s2577_s23  ;;  %652 = vrot.lane.b32.xlu0 %v2722_v26, %s2575_s13 }
 0x22b   : > { %802 = vrot.lane.b32.xlu1 %v2717_v22, %s2578_s24 }
 0x295   : > { %v2728_v27 = vpop.permute.xlu1 %796  ;;  %v2736_v29 = vpop.permute.xlu0 %800 }
 0x296   : > { %804 = vrot.lane.b32.xlu1 %v2728_v27, %s2578_s24 }
 0x299   : > { %v2732_v28 = vpop.permute.xlu1 %798  ;;  %v653_v57 = vpop.permute.xlu0 %652 }
 0x29a   : > { %806 = vrot.lane.b32.xlu1 %v2732_v28, %s2578_s24 }
 0x29d   : > { %v803_v30 = vpop.permute.xlu1 %802 }
 0x29e   : > { %808 = vrot.lane.b32.xlu1 %v2736_v29, %s2578_s24 }
 0x2a2   : > { %646 = vrot.lane.b32.xlu1 %v2722_v26, %s2576_s22 }
 0x2a6   : > { %649 = vrot.lane.b32.xlu1 %v2722_v26, %s2577_s23 }
 0x308   : > { %v805_v34 = vpop.permute.xlu1 %804 }
 0x30c   : > { %v807_v39 = vpop.permute.xlu1 %806 }
 0x30d   : > { %v814_v42 = vcombine.low %v803_v30, %v807_v39  ;;  %v815_v43 = vcombine.high %v803_v30, %v807_v39 }
 0x30f   : > { %v822_v48 = vrot.slane %v814_v42, %v2754_v41  ;;  %v829_v49 = vrot.slane %v815_v43, %v2754_v41 }
 0x310   : > { %v809_v44 = vpop.permute.xlu1 %808 }
 0x311   : > { %v830_v45 = vcombine.low %v805_v34, %v809_v44  ;;  %v831_v46 = vcombine.high %v805_v34, %v809_v44 }
 0x313   : > { %v838_v50 = vrot.slane %v830_v45, %v2754_v41  ;;  %v845_v51 = vrot.slane %v831_v46, %v2754_v41 }
 0x314   : > { %v647_v52 = vpop.permute.xlu1 %646 }
 0x315   : > { %v846_v53 = vcombine.low %v822_v48, %v838_v50  ;;  %v847_v54 = vcombine.high %v822_v48, %v838_v50  ;;  %v862_v55 = vcombine.low %v829_v49, %v845_v51  ;;  %v863_v56 = vcombine.high %v829_v49, %v845_v51 }
 0x316   : > { %v671_v62 = vcombine.low %v647_v52, %v653_v57  ;;  %v672_v63 = vcombine.high %v647_v52, %v653_v57 }
 0x317   : > { %v854_v58 = vrot.slane %v846_v53, %v2757_v47  ;;  %v861_v59 = vrot.slane %v847_v54, %v2757_v47  ;;  %v870_v60 = vrot.slane %v862_v55, %v2757_v47  ;;  %v877_v61 = vrot.slane %v863_v56, %v2757_v47 }
 0x318   : > { %v650_v0 = vpop.permute.xlu1 %649  ;;  %v679_v12 = vrot.slane %v671_v62, %v2754_v41  ;;  %v686_v13 = vrot.slane %v672_v63, %v2754_v41 }
 0x319   : > { %v882_v1 = vcombine.low %v854_v58, %v861_v59  ;;  %v2303_v2 = vcombine.high %v854_v58, %v861_v59  ;;  %v898_v3 = vcombine.low %v870_v60, %v877_v61  ;;  %v2304_v4 = vcombine.high %v870_v60, %v877_v61 }
 0x31a   : > { %v655_v5 = vcombine.low %v2722_v26, %v650_v0  ;;  %v656_v6 = vcombine.high %v2722_v26, %v650_v0 }
 0x31b   : > { %v889_v7 = vrot.slane %v882_v1, %v2754_v41  ;;  %v897_v9 = vrot.slane %v2303_v2, %v2754_v41  ;;  %v905_v10 = vrot.slane %v898_v3, %v2754_v41  ;;  %v913_v11 = vrot.slane %v2304_v4, %v2754_v41 }
 0x31c   : > { %v663_v14 = vrot.slane %v655_v5, %v2754_v41  ;;  %v670_v15 = vrot.slane %v656_v6, %v2754_v41 }
 0x31d   : > { %v914_v16 = vcombine.low %v889_v7, %v897_v9  ;;  %v915_v17 = vcombine.high %v889_v7, %v897_v9  ;;  %v930_v18 = vcombine.low %v905_v10, %v913_v11  ;;  %v931_v19 = vcombine.high %v905_v10, %v913_v11 }
 0x31e   : > { %v687_v20 = vcombine.low %v663_v14, %v679_v12  ;;  %v688_v21 = vcombine.high %v663_v14, %v679_v12  ;;  %v703_v23 = vcombine.low %v670_v15, %v686_v13  ;;  %v704_v24 = vcombine.high %v670_v15, %v686_v13 }
 0x31f   : > { %v922_v25 = vrot.slane %v914_v16, %v2757_v47  ;;  %v929_v26 = vrot.slane %v915_v17, %v2757_v47  ;;  %v938_v30 = vrot.slane %v930_v18, %v2757_v47  ;;  %v945_v31 = vrot.slane %v931_v19, %v2757_v47 }
 0x320   : > { %v695_v32 = vrot.slane %v687_v20, %v2757_v47  ;;  %v702_v34 = vrot.slane %v688_v21, %v2757_v47  ;;  %v711_v35 = vrot.slane %v703_v23, %v2757_v47  ;;  %v718_v36 = vrot.slane %v704_v24, %v2757_v47 }
 0x321   : > { %v946_v37 = vcombine.low %v922_v25, %v938_v30  ;;  %v947_v39 = vcombine.high %v922_v25, %v938_v30  ;;  %v948_v40 = vcombine.low %v929_v26, %v945_v31  ;;  %v949_v42 = vcombine.high %v929_v26, %v945_v31 }
 0x322   : > { %v723_v43 = vcombine.low %v695_v32, %v702_v34  ;;  %v2301_v44 = vcombine.high %v695_v32, %v702_v34  ;;  %v739_v45 = vcombine.low %v711_v35, %v718_v36  ;;  %v2302_v46 = vcombine.high %v711_v35, %v718_v36 }
 0x323   : > { %v950_v48 = vpack.c.bf16 %v946_v37, %v946_v37  ;;  %v951_v49 = vpack.c.bf16 %v947_v39, %v947_v39  ;;  %v952_v50 = vpack.c.bf16 %v948_v40, %v948_v40  ;;  %v953_v51 = vpack.c.bf16 %v949_v42, %v949_v42 }
 0x324   : > { %v730_v52 = vrot.slane %v723_v43, %v2754_v41  ;;  %v738_v53 = vrot.slane %v2301_v44, %v2754_v41  ;;  %v746_v54 = vrot.slane %v739_v45, %v2754_v41  ;;  %v754_v55 = vrot.slane %v2302_v46, %v2754_v41 }
 0x325   : > { %955 = vst.msk [vmem:[#allocation2] sm:$0xf] %vm954_vm3, %v950_v48  ;;  %956 = vst.msk [vmem:[#allocation2 + $0x4] sm:$0xf] %vm954_vm3, %v951_v49  ;;  %v2581_v17 = vmov -inf   ;;  %v1132_v18 = vand.u32 127, %v660_v33 }
 0x326   : > { %957 = vst.msk [vmem:[#allocation2 + $0x8] sm:$0xf] %vm954_vm3, %v952_v50  ;;  %958 = vst.msk [vmem:[#allocation2 + $0xc] sm:$0xf] %vm954_vm3, %v953_v51  ;;  %v755_v56 = vcombine.low %v730_v52, %v738_v53  ;;  %v771_v57 = vcombine.low %v746_v54, %v754_v55  ;;  %v756_v58 = vcombine.high %v730_v52, %v738_v53  ;;  %v2582_v50 = vmov 0  }
 0x327   : > { %v772_v59 = vcombine.high %v746_v54, %v754_v55  ;;  %1116 = vst.msk [vmem:[#allocation4] sm:$0xff] %vm1115_vm4, %v2581_v17  ;;  %1117 = vst.msk [vmem:[#allocation4 + $0x8] sm:$0xff] %vm1115_vm4, %v2581_v17  ;;  %vm1327_vm5 = vcmp.le.s32.totalorder %v1132_v18, %v2751_v38  ;;  %2512 = vset.pattern.permute.xlu1 %v2582_v50  ;;  %2513 = vset.pattern.permute.xlu0 %v2582_v50 }
 0x328   : > { %v763_v60 = vrot.slane %v755_v56, %v2757_v47  ;;  %v779_v61 = vrot.slane %v771_v57, %v2757_v47  ;;  %v770_v62 = vrot.slane %v756_v58, %v2757_v47  ;;  %1118 = vst.msk [vmem:[#allocation4 + $0x10] sm:$0xff] %vm1115_vm4, %v2581_v17  ;;  %1119 = vst.msk [vmem:[#allocation4 + $0x18] sm:$0xff] %vm1115_vm4, %v2581_v17 }
 0x329   : > { %v786_v63 = vrot.slane %v772_v59, %v2757_v47 }
 0x32a   : > { %v787_v4 = vcombine.low %v763_v60, %v779_v61  ;;  %v788_v11 = vcombine.high %v763_v60, %v779_v61 }
 0x32b   : > { %v790_v5 = vcombine.high %v770_v62, %v786_v63  ;;  %v789_v15 = vcombine.low %v770_v62, %v786_v63 }
 0x32c   : > { %v1133_v0 = vld [vmem:[#allocation2] sm:$0xf]  ;;  %v1134_v6 = vld [vmem:[#allocation2 + $0x4] sm:$0xf]  ;;  %v791_v7 = vpack.c.bf16 %v787_v4, %v787_v4  ;;  %v792_v13 = vpack.c.bf16 %v788_v11, %v788_v11 }
 0x32d   : > { %v1136_v1 = vld [vmem:[#allocation2 + $0xc] sm:$0xf]  ;;  %v1145_v2 = vsel %vm1124_vm2, %v1133_v0, 0  ;;  %v794_v9 = vpack.c.bf16 %v790_v5, %v790_v5  ;;  %v1191_v10 = vsel %vm1124_vm2, %v1134_v6, 0  ;;  %v1135_v12 = vld [vmem:[#allocation2 + $0x8] sm:$0xf]  ;;  %v793_v16 = vpack.c.bf16 %v789_v15, %v789_v15 }
 0x32e   : > { %v1283_v3 = vsel %vm1124_vm2, %v1136_v1, 0  ;;  %2395 = vmatpush3.bf16.xpose.msra.mxu1 %v1145_v2  ;;  %v1237_v14 = vsel %vm1124_vm2, %v1135_v12, 0  ;;  %v2863_v38 = vld [vmem:[#allocation4] sm:$0xff] }
 0x32f   : > { %2413 = vmatpush3.bf16.xpose.msra.mxu0 %v1283_v3  ;;  %2400 = vmatprep.subr.bf16.mxu1 %v2573_v8  ;;  %v2868_v53 = vld [vmem:[#allocation4 + $0x18] sm:$0xff]  ;;  %v2892_v59 = vld [vmem:[#allocation4 + $0x10] sm:$0xff] }
 0x330   : > { %2424 = vmatprep.subr.bf16.mxu0 %v2573_v8 }
 0x335   : > { %2397 = vmatmul.mubr.msk.bf16.vlgmr.msra.gmra.mrb[4].mxu1 %vm1124_vm2, %v791_v7 }
 0x336   : > { %2415 = vmatmul.mubr.msk.bf16.vlgmr.msra.gmra.mrb[0].mxu0 %vm1124_vm2, %v794_v9  ;;  %2401 = vmatpush3.bf16.xpose.msra.mxu1 %v1191_v10 }
 0x337   : > { %2402 = vmatprep.mubr.msk.bf16.mxu1 %vm2574_vm1, %v2573_v8  ;;  %2406 = vmatprep.subr.bf16.mxu1 %v2573_v8 }
 0x338   : > { %2426 = vmatprep.mubr.msk.bf16.mxu0 %vm2574_vm1, %v2573_v8 }
 0x33d   : > { %2403 = vmatmul.mubr.msk.bf16.vlgmr.msra.gmra.mrb[8].mxu1 %vm1124_vm2, %v792_v13 }
 0x33e   : > { %2407 = vmatpush3.bf16.xpose.msra.mxu1 %v1237_v14  ;;  %2408 = vmatprep.mubr.msk.bf16.mxu1 %vm2574_vm1, %v2573_v8 }
 0x33f   : > { %2418 = vmatprep.subr.bf16.mxu1 %v2573_v8 }
 0x345   : > { %2409 = vmatmul.mubr.msk.bf16.vlgmr.msra.gmra.mrb[12].mxu1 %vm1124_vm2, %v793_v16 }
 0x346   : > { %2420 = vmatprep.mubr.msk.bf16.mxu1 %vm2574_vm1, %v2573_v8 }
 0x408   : > { %v1181_v19 = vpop.f32.mrb[4].mxu1 }
 0x409   : > { %v1319_v20 = vpop.f32.mrb[0].mxu0  ;;  %v2833_v21 = vsel %vm1327_vm5, %v1181_v19, -10000.0  ;;  %v2398_v24 = vpop.f32.mrb[5].mxu1 }
 0x40a   : > { %v2837_v23 = vsel %vm1327_vm5, %v1319_v20, -10000.0  ;;  %v2416_v25 = vpop.f32.mrb[1].mxu0  ;;  %v1184_v26 = vpop.f32.mrb[6].mxu1  ;;  %v1338_v31 = vsel %vm1124_vm2, %v2833_v21, -inf }
 0x40b   : > { %v1322_v30 = vpop.f32.mrb[2].mxu0  ;;  %1339 = vmax.xlane.f32.xlu1 %v1338_v31  ;;  %v2399_v32 = vpop.f32.mrb[7].mxu1  ;;  %v1347_v34 = vsel %vm1124_vm2, %v2837_v23, -inf }
 0x40c   : > { %v2417_v33 = vpop.f32.mrb[3].mxu0 }
 0x40f   : > { %1348 = vmax.xlane.f32.xlu1 %v1347_v34 }
 0x410   : > { %v1227_v35 = vpop.f32.mrb[8].mxu1 }
 0x411   : > { %v2845_v36 = vsel %vm1327_vm5, %v1227_v35, -10000.0  ;;  %v2404_v37 = vpop.f32.mrb[9].mxu1 }
 0x412   : > { %v1230_v39 = vpop.f32.mrb[10].mxu1  ;;  %v1341_v40 = vsel %vm1124_vm2, %v2845_v36, -inf }
 0x413   : > { %1342 = vmax.xlane.f32.xlu0 %v1341_v40  ;;  %v2405_v42 = vpop.f32.mrb[11].mxu1 }
 0x418   : > { %v1273_v43 = vpop.f32.mrb[12].mxu1 }
 0x419   : > { %v2851_v44 = vsel %vm1327_vm5, %v1273_v43, -10000.0  ;;  %v2410_v45 = vpop.f32.mrb[13].mxu1 }
 0x41a   : > { %v1276_v46 = vpop.f32.mrb[14].mxu1  ;;  %v1344_v48 = vsel %vm1124_vm2, %v2851_v44, -inf }
 0x41b   : > { %1345 = vmax.xlane.f32.xlu0 %v1344_v48  ;;  %v2411_v49 = vpop.f32.mrb[15].mxu1 }
 0x420   : > { %961 = vrot.lane.b32.xlu1 %v2728_v27, %s2583_s26 }
 0x424   : > { %963 = vrot.lane.b32.xlu1 %v2732_v28, %s2583_s26 }
 0x431   : > { %959 = vrot.lane.b32.xlu0 %v2717_v22, %s2583_s26 }
 0x435   : > { %965 = vrot.lane.b32.xlu0 %v2736_v29, %s2583_s26  ;;  %v2878_v29 = vld [vmem:[#allocation4 + $0x8] sm:$0xff] }
 0x498   : > { %v1340_v51 = vpop.xlane.xlu1 %1339 }
 0x499   : > { %v2866_v52 = vmax.f32 %v2863_v38, %v1340_v51 }
 0x49b   : > { %v1354_v27 = vsub.f32 %v2863_v38, %v2866_v52  ;;  %1651 = vst.msk [vmem:[#allocation4] sm:$0xff] %vm1115_vm4, %v2866_v52  ;;  %1368 = vperm.xlu1 %2512, %v2866_v52  }
 0x49c   : > { %v1349_v28 = vpop.xlane.xlu1 %1348 }
 0x49d   : > { %v2876_v54 = vmax.f32 %v2868_v53, %v1349_v28 }
 0x49f   : > { %v1357_v55 = vsub.f32 %v2868_v53, %v2876_v54  ;;  %1654 = vst.msk [vmem:[#allocation4 + $0x18] sm:$0xff] %vm1115_vm4, %v2876_v54 }
 0x4a0   : > { %v1343_v56 = vpop.xlane.xlu0 %1342  ;;  %v962_v60 = vpop.permute.xlu1 %961 }
 0x4a1   : > { %v2885_v57 = vmax.f32 %v2878_v29, %v1343_v56  ;;  %v1364_v52 = vmul.f32 1.442695, %v1357_v55 }
 0x4a3   : > { %v1355_v58 = vsub.f32 %v2878_v29, %v2885_v57  ;;  %1652 = vst.msk [vmem:[#allocation4 + $0x8] sm:$0xff] %vm1115_vm4, %v2885_v57  ;;  %1373 = vperm.xlu0 %2513, %v2885_v57   ;;  %v1400_v29 = vld [vmem:[#allocation5 + $0x10] sm:$0xff] }
 0x4a4   : > { %v964_v1 = vpop.permute.xlu1 %963 }
 0x4a5   : > { %v1360_v53 = vmul.f32 1.442695, %v1355_v58 }
 0x4a8   : > { %v1346_v61 = vpop.xlane.xlu0 %1345 }
 0x4a9   : > { %v2895_v62 = vmax.f32 %v2892_v59, %v1346_v61 }
 0x4ab   : > { %v1356_v63 = vsub.f32 %v2892_v59, %v2895_v62  ;;  %1653 = vst.msk [vmem:[#allocation4 + $0x10] sm:$0xff] %vm1115_vm4, %v2895_v62  ;;  %1378 = vperm.xlu1 %2512, %v2895_v62  }
 0x4ac   : > { %v960_v0 = vpop.permute.xlu0 %959 }
 0x4ad   : > { %v971_v2 = vcombine.low %v960_v0, %v964_v1  ;;  %v972_v3 = vcombine.high %v960_v0, %v964_v1 }
 0x4af   : > { %1383 = vperm.xlu1 %2512, %v2876_v54   ;;  %v979_v7 = vrot.slane %v971_v2, %v2754_v41  ;;  %v986_v9 = vrot.slane %v972_v3, %v2754_v41 }
 0x4b0   : > { %v966_v4 = vpop.permute.xlu0 %965 }
 0x4b1   : > { %v987_v5 = vcombine.low %v962_v60, %v966_v4  ;;  %v988_v6 = vcombine.high %v962_v60, %v966_v4 }
 0x4b3   : > { %v995_v10 = vrot.slane %v987_v5, %v2754_v41  ;;  %v1002_v11 = vrot.slane %v988_v6, %v2754_v41 }
 0x4b5   : > { %v1003_v12 = vcombine.low %v979_v7, %v995_v10  ;;  %v1004_v13 = vcombine.high %v979_v7, %v995_v10  ;;  %v1019_v14 = vcombine.low %v986_v9, %v1002_v11  ;;  %v1020_v15 = vcombine.high %v986_v9, %v1002_v11 }
 0x4b7   : > { %v1011_v16 = vrot.slane %v1003_v12, %v2757_v47  ;;  %v1018_v17 = vrot.slane %v1004_v13, %v2757_v47  ;;  %v1027_v18 = vrot.slane %v1019_v14, %v2757_v47  ;;  %v1034_v19 = vrot.slane %v1020_v15, %v2757_v47 }
 0x4b9   : > { %v1039_v20 = vcombine.low %v1011_v16, %v1018_v17  ;;  %v2305_v24 = vcombine.high %v1011_v16, %v1018_v17  ;;  %v1055_v25 = vcombine.low %v1027_v18, %v1034_v19  ;;  %v2306_v26 = vcombine.high %v1027_v18, %v1034_v19 }
 0x4bb   : > { %v1046_v30 = vrot.slane %v1039_v20, %v2754_v41  ;;  %v1054_v31 = vrot.slane %v2305_v24, %v2754_v41  ;;  %v1062_v33 = vrot.slane %v1055_v25, %v2754_v41  ;;  %v1070_v32 = vrot.slane %v2306_v26, %v2754_v41 }
 0x4bc   : > { %v1358_v26 = vmul.f32 1.442695, %v1354_v27 }
 0x4bd   : > { %v1071_v34 = vcombine.low %v1046_v30, %v1054_v31  ;;  %v1072_v35 = vcombine.high %v1046_v30, %v1054_v31  ;;  %v1087_v37 = vcombine.low %v1062_v33, %v1070_v32  ;;  %v1088_v39 = vcombine.high %v1062_v33, %v1070_v32 }
 0x4be   : > { %v1362_v30 = vmul.f32 1.442695, %v1356_v63  ;;  %v1398_v63 = vld [vmem:[#allocation5] sm:$0xff] }
 0x4bf   : > { %v1079_v40 = vrot.slane %v1071_v34, %v2757_v47  ;;  %v1086_v42 = vrot.slane %v1072_v35, %v2757_v47  ;;  %v1095_v43 = vrot.slane %v1087_v37, %v2757_v47  ;;  %v1102_v45 = vrot.slane %v1088_v39, %v2757_v47  ;;  %v1399_v39 = vld [vmem:[#allocation5 + $0x8] sm:$0xff] }
 0x4c1   : > { %v1103_v46 = vcombine.low %v1079_v40, %v1095_v43  ;;  %v1104_v48 = vcombine.high %v1079_v40, %v1095_v43  ;;  %v1105_v49 = vcombine.low %v1086_v42, %v1102_v45  ;;  %v1106_v50 = vcombine.high %v1086_v42, %v1102_v45 }
 0x4c3   : > { %v1107_v51 = vpack.c.bf16 %v1103_v46, %v1103_v46  ;;  %v1108_v28 = vpack.c.bf16 %v1104_v48, %v1104_v48  ;;  %v1109_v56 = vpack.c.bf16 %v1105_v49, %v1105_v49  ;;  %v1110_v60 = vpack.c.bf16 %v1106_v50, %v1106_v50  ;;  %v1401_v46 = vld [vmem:[#allocation5 + $0x18] sm:$0xff] }
 0x4c5   : > { %1111 = vst.msk [vmem:[#allocation3] sm:$0xf] %vm954_vm3, %v1107_v51  ;;  %1112 = vst.msk [vmem:[#allocation3 + $0x4] sm:$0xf] %vm954_vm3, %v1108_v28 }
 0x4c6   : > { %1113 = vst.msk [vmem:[#allocation3 + $0x8] sm:$0xf] %vm954_vm3, %v1109_v56  ;;  %1114 = vst.msk [vmem:[#allocation3 + $0xc] sm:$0xf] %vm954_vm3, %v1110_v60 }
 0x4cc   : > { %v1137_v61 = vld [vmem:[#allocation3] sm:$0xf]  ;;  %v1138_v0 = vld [vmem:[#allocation3 + $0x4] sm:$0xf] }
 0x4cd   : > { %v1463_v1 = vsel %vm1461_vm6, %v1137_v61, 0  ;;  %v1509_v2 = vsel %vm1461_vm6, %v1138_v0, 0  ;;  %v1139_v11 = vld [vmem:[#allocation3 + $0x8] sm:$0xf]  ;;  %v1140_v20 = vld [vmem:[#allocation3 + $0xc] sm:$0xf] }
 0x4ce   : > { %2419 = vmatpush3.bf16.msra.mxu1 %v1463_v1  ;;  %2425 = vmatpush3.bf16.msra.mxu0 %v1509_v2  ;;  %v1601_v25 = vsel %vm1461_vm6, %v1140_v20, 0 }
 0x4cf   : > { %2430 = vmatprep.subr.bf16.mxu1 %v2573_v8  ;;  %2436 = vmatprep.subr.bf16.mxu0 %v2573_v8 }
 0x51a   : > { %v1369_v3 = vpop.permute.xlu1 %1368 }
 0x51b   : > { %v1386_v4 = vsub.f32 %v2833_v21, %v1369_v3  ;;  %v1555_v21 = vsel %vm1461_vm6, %v1139_v11, 0  ;;  %v1426_v3 = vld [vmem:[#allocation6] sm:$0xff] }
 0x51d   : > { %v1390_v5 = vmul.f32 1.442695, %v1386_v4 }
 0x51f   : > { %2536 = vpow2.f32 %v1390_v5 }
 0x522   : > { %v1374_v6 = vpop.permute.xlu0 %1373 }
 0x523   : > { %v1387_v7 = vsub.f32 %v2845_v36, %v1374_v6 }
 0x525   : > { %v1392_v9 = vmul.f32 1.442695, %v1387_v7 }
 0x527   : > { %2538 = vpow2.f32 %v1392_v9 }
 0x529   : > { %v2537_v10 = vpop.eup %2536 }
 0x52a   : > { %v1379_v12 = vpop.permute.xlu1 %1378  ;;  %v1406_v13 = vsel %vm1124_vm2, %v2537_v10, 0.0  ;;  %v1454_v14 = vpack.c.bf16 %v2537_v10, %v2537_v10 }
 0x52b   : > { %v1388_v15 = vsub.f32 %v2851_v44, %v1379_v12  ;;  %1407 = vadd.xlane.f32.xlu0 %v1406_v13  ;;  %v1427_v12 = vld [vmem:[#allocation6 + $0x8] sm:$0xff] }
 0x52c   : > { %2421 = vmatmul.mubr.msk.bf16.vlgmr.msra.gmra.mrb[16].mxu1 %vm1124_vm2, %v1454_v14 }
 0x52d   : > { %v1394_v16 = vmul.f32 1.442695, %v1388_v15  ;;  %2431 = vmatpush3.bf16.msra.mxu1 %v1555_v21  ;;  %2432 = vmatprep.mubr.msk.bf16.mxu1 %vm2574_vm1, %v2573_v8 }
 0x52e   : > { %v1384_v36 = vpop.permute.xlu1 %1383  ;;  %2442 = vmatprep.subr.bf16.mxu1 %v2573_v8 }
 0x52f   : > { %2540 = vpow2.f32 %v1394_v16  ;;  %v1389_v17 = vsub.f32 %v2837_v23, %v1384_v36 }
 0x531   : > { %v2539_v18 = vpop.eup %2538  ;;  %v1396_v19 = vmul.f32 1.442695, %v1389_v17 }
 0x532   : > { %v1409_v44 = vsel %vm1124_vm2, %v2539_v18, 0.0  ;;  %v1455_v24 = vpack.c.bf16 %v2539_v18, %v2539_v18 }
 0x533   : > { %2542 = vpow2.f32 %v1396_v19  ;;  %1410 = vadd.xlane.f32.xlu1 %v1409_v44  ;;  %v1428_v19 = vld [vmem:[#allocation6 + $0x10] sm:$0xff]  ;;  %v1429_v44 = vld [vmem:[#allocation6 + $0x18] sm:$0xff] }
 0x534   : > { %2427 = vmatmul.mubr.msk.bf16.vlgmr.msra.gmra.mrb[4].mxu0 %vm1124_vm2, %v1455_v24  ;;  %2544 = vpow2.f32 %v1358_v26 }
 0x535   : > { %2437 = vmatpush3.bf16.msra.mxu0 %v1601_v25  ;;  %2438 = vmatprep.mubr.msk.bf16.mxu0 %vm2574_vm1, %v2573_v8  ;;  %2546 = vpow2.f32 %v1362_v30 }
 0x536   : > { %2450 = vmatprep.subr.bf16.mxu0 %v2573_v8  ;;  %2548 = vpow2.f32 %v1364_v52 }
 0x537   : > { %2550 = vpow2.f32 %v1360_v53 }
 0x539   : > { %v2541_v23 = vpop.eup %2540 }
 0x53a   : > { %v1412_v31 = vsel %vm1124_vm2, %v2541_v23, 0.0  ;;  %v1456_v33 = vpack.c.bf16 %v2541_v23, %v2541_v23 }
 0x53b   : > { %1413 = vadd.xlane.f32.xlu0 %v1412_v31 }
 0x53c   : > { %2433 = vmatmul.mubr.msk.bf16.vlgmr.msra.gmra.mrb[20].mxu1 %vm1124_vm2, %v1456_v33 }
 0x53d   : > { %v2543_v38 = vpop.eup %2542  ;;  %2446 = vmatprep.mubr.msk.bf16.mxu1 %vm2574_vm1, %v2573_v8 }
 0x53e   : > { %v1415_v27 = vsel %vm1124_vm2, %v2543_v38, 0.0  ;;  %v1457_v32 = vpack.c.bf16 %v2543_v38, %v2543_v38  ;;  %v2545_v59 = vpop.eup %2544 }
 0x53f   : > { %1416 = vadd.xlane.f32.xlu0 %v1415_v27  ;;  %v2547_v54 = vpop.eup %2546  ;;  %v1402_v34 = vmul.f32 %v2545_v59, %v1398_v63 }
 0x540   : > { %2439 = vmatmul.mubr.msk.bf16.vlgmr.msra.gmra.mrb[8].mxu0 %vm1124_vm2, %v1457_v32  ;;  %v2549_v55 = vpop.eup %2548  ;;  %v1404_v57 = vmul.f32 %v2547_v54, %v1400_v29 }
 0x541   : > { %2466 = vmatprep.mubr.msk.bf16.mxu0 %vm2574_vm1, %v2573_v8  ;;  %v2551_v62 = vpop.eup %2550  ;;  %v1405_v50 = vmul.f32 %v2549_v55, %v1401_v46 }
 0x542   : > { %v1403_v40 = vmul.f32 %v2551_v62, %v1399_v39 }
 0x544   : > { %1432 = vperm.xlu1 %2512, %v2545_v59  }
 0x548   : > { %1442 = vperm.xlu1 %2512, %v2547_v54  }
 0x54c   : > { %1447 = vperm.xlu1 %2512, %v2549_v55  }
 0x555   : > { %1437 = vperm.xlu0 %2513, %v2551_v62  }
 0x5b8   : > { %v1408_v35 = vpop.xlane.xlu0 %1407 }
 0x5b9   : > { %v1418_v37 = vadd.f32 %v1408_v35, %v1402_v34 }
 0x5bb   : > { %1422 = vst.msk [vmem:[#allocation5] sm:$0xff] %vm1115_vm4, %v1418_v37 }
 0x5c0   : > { %v1411_v42 = vpop.xlane.xlu1 %1410 }
 0x5c1   : > { %v1419_v43 = vadd.f32 %v1411_v42, %v1403_v40 }
 0x5c2   : > { %v1659_v45 = vld [vmem:[#allocation5] sm:$0xff] }
 0x5c3   : > { %1423 = vst.msk [vmem:[#allocation5 + $0x8] sm:$0xff] %vm1115_vm4, %v1419_v43  ;;  %2552 = vrcp.f32 %v1659_v45 }
 0x5c4   : > { %v1433_v4 = vpop.permute.xlu1 %1432 }
 0x5c5   : > { %v1450_v5 = vmul.f32 %v1433_v4, %v1426_v3 }
 0x5c8   : > { %v1414_v58 = vpop.xlane.xlu0 %1413  ;;  %v1443_v36 = vpop.permute.xlu1 %1442 }
 0x5c9   : > { %v1420_v48 = vadd.f32 %v1414_v58, %v1404_v57  ;;  %v1452_v20 = vmul.f32 %v1443_v36, %v1428_v19 }
 0x5ca   : > { %v1660_v49 = vld [vmem:[#allocation5 + $0x8] sm:$0xff] }
 0x5cb   : > { %1424 = vst.msk [vmem:[#allocation5 + $0x10] sm:$0xff] %vm1115_vm4, %v1420_v48  ;;  %2554 = vrcp.f32 %v1660_v49 }
 0x5cc   : > { %v1417_v51 = vpop.xlane.xlu0 %1416  ;;  %v1448_v24 = vpop.permute.xlu1 %1447 }
 0x5cd   : > { %v2553_v28 = vpop.eup %2552  ;;  %v1421_v56 = vadd.f32 %v1417_v51, %v1405_v50  ;;  %v1453_v31 = vmul.f32 %v1448_v24, %v1429_v44 }
 0x5ce   : > { %1669 = vperm.xlu0 %2513, %v2553_v28  }
 0x5cf   : > { %1425 = vst.msk [vmem:[#allocation5 + $0x18] sm:$0xff] %vm1115_vm4, %v1421_v56 }
 0x5d2   : > { %v1661_v60 = vld [vmem:[#allocation5 + $0x10] sm:$0xff] }
 0x5d3   : > { %2556 = vrcp.f32 %v1661_v60 }
 0x5d4   : > { %v1438_v13 = vpop.permute.xlu0 %1437 }
 0x5d5   : > { %v2555_v61 = vpop.eup %2554  ;;  %v1451_v14 = vmul.f32 %v1438_v13, %v1427_v12 }
 0x5d6   : > { %1674 = vperm.xlu1 %2512, %v2555_v61   ;;  %v1662_v0 = vld [vmem:[#allocation5 + $0x18] sm:$0xff]  ;;  %v2516_v61 = vld [vmem:[%s3117_s5] sm:$0xff]  }
 0x5d7   : > { %2558 = vrcp.f32 %v1662_v0  ;;  %2443 = vmatpush3.bf16.msra.mxu1 %v2516_v61  ;;  %v2524_v61 = vld [vmem:[%s3121_s9 + $0x30] sm:$0xff]  }
 0x5d8   : > { %2444 = vmatprep.subr.bf16.mxu1 %v2573_v8 }
 0x5dd   : > { %v2557_v1 = vpop.eup %2556 }
 0x5de   : > { %1679 = vperm.xlu0 %2513, %v2557_v1  }
 0x5e1   : > { %v2559_v2 = vpop.eup %2558 }
 0x5e2   : > { %1684 = vperm.xlu1 %2512, %v2559_v2  }
 0x5ff   : > { %v1499_v6 = vpop.f32.mrb[16].mxu1 }
 0x600   : > { %v1643_v7 = vadd.f32 %v1499_v6, %v1450_v5  ;;  %v2422_v9 = vpop.f32.mrb[17].mxu1 }
 0x601   : > { %v1502_v10 = vpop.f32.mrb[18].mxu1  ;;  %v2517_v9 = vld [vmem:[%s3117_s5 + $0x8] sm:$0xff]  }
 0x602   : > { %1647 = vst.msk [vmem:[#allocation6] sm:$0xff] %vm1124_vm2, %v1643_v7  ;;  %v2423_v11 = vpop.f32.mrb[19].mxu1  ;;  %2445 = vmatpush3.bf16.msra.mxu1 %v2517_v9 }
 0x603   : > { %2470 = vmatprep.subr.bf16.mxu1 %v2573_v8 }
 0x607   : > { %v1545_v15 = vpop.f32.mrb[4].mxu0 }
 0x608   : > { %v1644_v21 = vadd.f32 %v1545_v15, %v1451_v14  ;;  %v2428_v16 = vpop.f32.mrb[5].mxu0 }
 0x609   : > { %v1548_v17 = vpop.f32.mrb[6].mxu0  ;;  %v1655_v34 = vld [vmem:[#allocation6] sm:$0xff] }
 0x60a   : > { %1648 = vst.msk [vmem:[#allocation6 + $0x8] sm:$0xff] %vm1124_vm2, %v1644_v21  ;;  %v2429_v18 = vpop.f32.mrb[7].mxu0 }
 0x60f   : > { %v1591_v25 = vpop.f32.mrb[20].mxu1 }
 0x610   : > { %v1645_v26 = vadd.f32 %v1591_v25, %v1452_v20  ;;  %v2434_v23 = vpop.f32.mrb[21].mxu1 }
 0x611   : > { %v1594_v30 = vpop.f32.mrb[22].mxu1  ;;  %v1656_v37 = vld [vmem:[#allocation6 + $0x8] sm:$0xff] }
 0x612   : > { %1649 = vst.msk [vmem:[#allocation6 + $0x10] sm:$0xff] %vm1124_vm2, %v1645_v26  ;;  %v2435_v33 = vpop.f32.mrb[23].mxu1 }
 0x613   : > { %v1637_v38 = vpop.f32.mrb[8].mxu0 }
 0x614   : > { %v1646_v52 = vadd.f32 %v1637_v38, %v1453_v31  ;;  %v2440_v27 = vpop.f32.mrb[9].mxu0  ;;  %v2317_v38 = vld [vmem:[%s3118_s6] ss:$0 sm:$0xff] }
 0x615   : > { %v1640_v32 = vpop.f32.mrb[10].mxu0 }
 0x616   : > { %1650 = vst.msk [vmem:[#allocation6 + $0x18] sm:$0xff] %vm1124_vm2, %v1646_v52  ;;  %v2441_v59 = vpop.f32.mrb[11].mxu0 }
 0x617   : > { %v2323_v59 = vld [vmem:[%s3124_s12] ss:$0 sm:$0xff] }
 0x619   : > { %v1657_v62 = vld [vmem:[#allocation6 + $0x10] sm:$0xff] }
 0x61d   : > { %v1658_v39 = vld [vmem:[#allocation6 + $0x18] sm:$0xff] }
 0x64d   : > { %v1670_v53 = vpop.permute.xlu0 %1669 }
 0x64e   : > { %v1687_v35 = vmul.f32 %v1670_v53, %v1655_v34 }
 0x655   : > { %v1675_v54 = vpop.permute.xlu1 %1674 }
 0x656   : > { %v1688_v42 = vmul.f32 %v1675_v54, %v1656_v37  ;;  %v2564_v54 = vld [vmem:[%s2686_s25] sm:$0xff] }
 0x657   : > { %v2518_v37 = vld [vmem:[%s3121_s9] sm:$0xff]  }
 0x65d   : > { %v1680_v55 = vpop.permute.xlu0 %1679 }
 0x65e   : > { %v1689_v63 = vmul.f32 %v1680_v55, %v1657_v62 }
 0x660   : > { %v1691_v43 = vcombine.low %v1687_v35, %v1689_v63  ;;  %v1692_v45 = vcombine.high %v1687_v35, %v1689_v63  ;;  %v2345_v35 = vpack.c.bf16 %v2717_v22, %v2717_v22  ;;  %v2520_v22 = vld [vmem:[%s3121_s9 + $0x10] sm:$0xff]  }
 0x661   : > { %v1685_v40 = vpop.permute.xlu1 %1684 }
 0x662   : > { %v1690_v29 = vmul.f32 %v1685_v40, %v1658_v39  ;;  %v1699_v46 = vrot.slane %v1691_v43, %v2754_v41  ;;  %v1706_v48 = vrot.slane %v1692_v45, %v2754_v41  ;;  %v2018_v39 = vsel %vm534_vm0, %v2518_v37, 0  ;;  %v2519_v40 = vld [vmem:[%s3121_s9 + $0x8] sm:$0xff]   ;;  %v2521_v45 = vld [vmem:[%s3121_s9 + $0x18] sm:$0xff]  }
 0x663   : > { %2451 = vmatpush3.bf16.xpose.msra.mxu0 %v2018_v39  ;;  %v2024_v43 = vsel %vm534_vm0, %v2520_v22, 0 }
 0x664   : > { %v1707_v57 = vcombine.low %v1688_v42, %v1690_v29  ;;  %v1708_v58 = vcombine.high %v1688_v42, %v1690_v29  ;;  %2452 = vmatprep.subr.bf16.mxu0 %v2573_v8  ;;  %v2021_v42 = vsel %vm534_vm0, %v2519_v40, 0  ;;  %v2027_v29 = vsel %vm534_vm0, %v2521_v45, 0 }
 0x666   : > { %v1715_v49 = vrot.slane %v1707_v57, %v2754_v41  ;;  %v1722_v50 = vrot.slane %v1708_v58, %v2754_v41  ;;  %v2522_v57 = vld [vmem:[%s3121_s9 + $0x20] sm:$0xff]  }
 0x667   : > { %v2030_v58 = vsel %vm534_vm0, %v2522_v57, 0 }
 0x668   : > { %v1723_v51 = vcombine.low %v1699_v46, %v1715_v49  ;;  %v1724_v28 = vcombine.high %v1699_v46, %v1715_v49  ;;  %v1739_v56 = vcombine.low %v1706_v48, %v1722_v50  ;;  %v1740_v60 = vcombine.high %v1706_v48, %v1722_v50 }
 0x66a   : > { %v1731_v0 = vrot.slane %v1723_v51, %v2757_v47  ;;  %v1738_v1 = vrot.slane %v1724_v28, %v2757_v47  ;;  %v1747_v2 = vrot.slane %v1739_v56, %v2757_v47  ;;  %v1754_v3 = vrot.slane %v1740_v60, %v2757_v47  ;;  %v2523_v56 = vld [vmem:[%s3121_s9 + $0x28] sm:$0xff]  }
 0x66b   : > { %2453 = vmatpush3.bf16.xpose.msra.mxu0 %v2021_v42  ;;  %v2033_v60 = vsel %vm534_vm0, %v2523_v56, 0 }
 0x66c   : > { %v1759_v4 = vcombine.low %v1731_v0, %v1738_v1  ;;  %v2315_v5 = vcombine.high %v1731_v0, %v1738_v1  ;;  %v1775_v6 = vcombine.low %v1747_v2, %v1754_v3  ;;  %v2316_v7 = vcombine.high %v1747_v2, %v1754_v3  ;;  %2454 = vmatprep.subr.bf16.mxu0 %v2573_v8  ;;  %v2525_v1 = vld [vmem:[%s3121_s9 + $0x38] sm:$0xff]   ;;  %v2526_v3 = vld [vmem:[%s3123_s11] sm:$0xff]  }
 0x66d   : > { %v2036_v0 = vsel %vm534_vm0, %v2524_v61, 0  ;;  %v2039_v2 = vsel %vm534_vm0, %v2525_v1, 0 }
 0x66e   : > { %v1766_v10 = vrot.slane %v1759_v4, %v2754_v41  ;;  %v1774_v11 = vrot.slane %v2315_v5, %v2754_v41  ;;  %v1782_v12 = vrot.slane %v1775_v6, %v2754_v41  ;;  %v1790_v13 = vrot.slane %v2316_v7, %v2754_v41 }
 0x670   : > { %v1792_v14 = vcombine.high %v1766_v10, %v1774_v11  ;;  %v1808_v15 = vcombine.high %v1782_v12, %v1790_v13  ;;  %v1791_v21 = vcombine.low %v1766_v10, %v1774_v11  ;;  %v1807_v16 = vcombine.low %v1782_v12, %v1790_v13  ;;  %v2321_v10 = vld [vmem:[%s3119_s7] ss:$0 sm:$0xff] }
 0x671   : > { %v2322_v12 = vld [vmem:[%s3120_s8] ss:$0 sm:$0xff] }
 0x672   : > { %v1806_v36 = vrot.slane %v1792_v14, %v2757_v47  ;;  %v1822_v17 = vrot.slane %v1808_v15, %v2757_v47  ;;  %v1799_v18 = vrot.slane %v1791_v21, %v2757_v47  ;;  %v1815_v19 = vrot.slane %v1807_v16, %v2757_v47  ;;  %v2527_v21 = vld [vmem:[%s3123_s11 + $0x8] sm:$0xff]   ;;  %v2528_v16 = vld [vmem:[%s3123_s11 + $0x10] sm:$0xff]  }
 0x673   : > { %2455 = vmatpush3.bf16.xpose.msra.mxu0 %v2024_v43 }
 0x674   : > { %v1825_v20 = vcombine.low %v1806_v36, %v1822_v17  ;;  %v1824_v44 = vcombine.high %v1799_v18, %v1815_v19  ;;  %v1823_v24 = vcombine.low %v1799_v18, %v1815_v19  ;;  %v1826_v41 = vcombine.high %v1806_v36, %v1822_v17  ;;  %2456 = vmatprep.subr.bf16.mxu0 %v2573_v8  ;;  %v2529_v36 = vld [vmem:[%s3123_s11 + $0x18] sm:$0xff]   ;;  %v2530_v17 = vld [vmem:[%s3123_s11 + $0x20] sm:$0xff]   ;;  %v2531_v18 = vld [vmem:[%s3123_s11 + $0x28] sm:$0xff]  }
 0x675   : > { %v2532_v19 = vld [vmem:[%s3123_s11 + $0x30] sm:$0xff]  }
 0x676   : > { %1832 = vrot.lane.b32.xlu1 %v1825_v20, %s2584_s0  ;;  %1828 = vrot.lane.b32.xlu0 %v1824_v44, %s2585_s17  ;;  %v2533_v20 = vld [vmem:[%s3123_s11 + $0x38] sm:$0xff]   ;;  %v2324_v44 = vld [vmem:[%s3122_s10] ss:$0 sm:$0xff] }
 0x67a   : > { %1836 = vrot.lane.b32.xlu0 %v1826_v41, %s2586_s18 }
 0x67b   : > { %2457 = vmatpush3.bf16.xpose.msra.mxu0 %v2027_v29 }
 0x67c   : > { %2458 = vmatprep.subr.bf16.mxu0 %v2573_v8 }
 0x683   : > { %2459 = vmatpush3.bf16.xpose.msra.mxu0 %v2030_v58 }
 0x684   : > { %2460 = vmatprep.subr.bf16.mxu0 %v2573_v8 }
 0x68b   : > { %2461 = vmatpush3.bf16.xpose.msra.mxu0 %v2033_v60 }
 0x68c   : > { %2462 = vmatprep.subr.bf16.mxu0 %v2573_v8 }
 0x693   : > { %2463 = vmatpush3.bf16.xpose.msra.mxu0 %v2036_v0 }
 0x694   : > { %2464 = vmatprep.subr.bf16.mxu0 %v2573_v8 }
 0x69b   : > { %2465 = vmatpush3.bf16.xpose.msra.mxu0 %v2039_v2 }
 0x6e8   : > { %v1829_v25 = vpop.permute.xlu0 %1828  ;;  %v1833_v26 = vpop.permute.xlu1 %1832 }
 0x6e9   : > { %v1839_v23 = vsel %vm1124_vm2, %v1823_v24, %v1829_v25 }
 0x6ea   : > { %v1841_v47 = vsel %vm1840_vm7, %v1839_v23, %v1833_v26 }
 0x6ec   : > { %v1837_v30 = vpop.permute.xlu0 %1836 }
 0x6ed   : > { %v1843_v31 = vsel %vm1842_vm8, %v1841_v47, %v1837_v30 }
 0x6ee   : > { %v1844_v33 = vpack.c.bf16 %v1843_v31, %v1843_v31 }
 0x6f0   : > { %2447 = vmatmul.mubr.msk.bf16.vlgmr.msra.gmra.mrb[24].mxu1 %vm534_vm0, %v1844_v33 }
 0x6f1   : > { %2486 = vmatprep.mubr.msk.bf16.mxu1 %vm2574_vm1, %v2573_v8  ;;  %2471 = vmatpush3.bf16.msra.mxu1 %v2526_v3 }
 0x6f2   : > { %2472 = vmatprep.subr.bf16.mxu1 %v2573_v8 }
 0x6f5   : > { %2473 = vmatpush3.bf16.msra.mxu1 %v2527_v21 }
 0x6f6   : > { %2474 = vmatprep.subr.bf16.mxu1 %v2573_v8 }
 0x6f9   : > { %2475 = vmatpush3.bf16.msra.mxu1 %v2528_v16 }
 0x6fa   : > { %2476 = vmatprep.subr.bf16.mxu1 %v2573_v8 }
 0x6fd   : > { %2477 = vmatpush3.bf16.msra.mxu1 %v2529_v36 }
 0x6fe   : > { %2478 = vmatprep.subr.bf16.mxu1 %v2573_v8 }
 0x701   : > { %2479 = vmatpush3.bf16.msra.mxu1 %v2530_v17 }
 0x702   : > { %2480 = vmatprep.subr.bf16.mxu1 %v2573_v8 }
 0x705   : > { %2481 = vmatpush3.bf16.msra.mxu1 %v2531_v18 }
 0x706   : > { %2482 = vmatprep.subr.bf16.mxu1 %v2573_v8 }
 0x709   : > { %2483 = vmatpush3.bf16.msra.mxu1 %v2532_v19 }
 0x70a   : > { %2484 = vmatprep.subr.bf16.mxu1 %v2573_v8 }
 0x70d   : > { %2485 = vmatpush3.bf16.msra.mxu1 %v2533_v20 }
 0x7c3   : > { %v1905_v52 = vpop.f32.mrb[24].mxu1 }
 0x7c4   : > { %v1906_v27 = vadd.f32 %v2317_v38, %v1905_v52  ;;  %v2448_v32 = vpop.f32.mrb[25].mxu1 }
 0x7c5   : > { %v1908_v53 = vpop.f32.mrb[26].mxu1 }
 0x7c6   : > { %v1911_v55 = vadd.f32 %v2564_v54, %v1906_v27  ;;  %v2449_v62 = vpop.f32.mrb[27].mxu1 }
 0x7c8   : > { %v1949_v63 = vadd.f32 %v2323_v59, %v1911_v55  ;;  %v1914_v34 = vsel %vm534_vm0, %v1911_v55, 0.0 }
 0x7c9   : > { %1915 = vadd.xlane.f32.xlu1 %v1914_v34 }
 0x7ca   : > { %1950 = vst.msk [vmem:[%s3010_s28] sm:$0xff] %vm534_vm0, %v1949_v63 }
 0x7d1   : > { %v2106_v53 = vld [vmem:[%s3010_s28] sm:$0xff] }
 0x7da   : > { %639 = vrot.lane.b32.xlu1 %v2345_v35, %s2583_s26 }
 0x856   : > { %v1916_v46 = vpop.xlane.xlu1 %1915 }
 0x857   : > { %v1917_v48 = vmul.f32 0.03125, %v1916_v46 }
 0x859   : > { %v1918_v49 = vsub.f32 %v1911_v55, %v1917_v48 }
 0x85a   : > { %v640_v50 = vpop.permute.xlu1 %639 }
 0x85b   : > { %2300 = vst.msk [vmem:[%s529_s27 + $0x4] sm:$0xf] %vm637_vm9, %v640_v50  ;;  %v1919_v51 = vmul.f32 %v1918_v49, %v1918_v49 }
 0x85d   : > { %v1920_v28 = vsel %vm534_vm0, %v1919_v51, 0.0 }
 0x85e   : > { %1921 = vadd.xlane.f32.xlu0 %v1920_v28 }
 0x874   : > { %634 = vrot.lane.b32.xlu0 %v2345_v35, %s2578_s24 }
 0x8eb   : > { %v1922_v4 = vpop.xlane.xlu0 %1921 }
 0x8ec   : > { %v1923_v5 = vmul.f32 0.03125, %v1922_v4 }
 0x8ee   : > { %v1924_v6 = vadd.f32 1e-05, %v1923_v5 }
 0x8ef   : > { %v635_v7 = vpop.permute.xlu0 %634 }
 0x8f0   : > { %2560 = vrsqrt.f32 %v1924_v6  ;;  %638 = vst.msk [vmem:[%s529_s27] sm:$0xf] %vm637_vm9, %v635_v7 }
 0x8fa   : > { %v2561_v9 = vpop.eup %2560 }
 0x8fb   : > { %v1926_v11 = vmul.f32 %v2561_v9, %v1918_v49 }
 0x8fd   : > { %v1933_v13 = vmul.f32 %v2321_v10, %v1926_v11 }
 0x8ff   : > { %v1940_v14 = vadd.f32 %v2322_v12, %v1933_v13 }
 0x901   : > { %v1941_v15 = vpack.c.bf16 %v1940_v14, %v1940_v14 }
 0x903   : > { %2467 = vmatmul.mubr.msk.bf16.vlgmr.msra.gmra.mrb[12].mxu0 %vm534_vm0, %v1941_v15 }
 0x9d6   : > { %v2075_v24 = vpop.f32.mrb[12].mxu0 }
 0x9d7   : > { %v2076_v41 = vadd.f32 %v2324_v44, %v2075_v24  ;;  %v2468_v25 = vpop.f32.mrb[13].mxu0 }
 0x9d8   : > { %v2078_v26 = vpop.f32.mrb[14].mxu0 }
 0x9d9   : > { %v2082_v23 = vmul.f32 %v2076_v41, %v2076_v41  ;;  %v2469_v30 = vpop.f32.mrb[15].mxu0  ;;  %v2081_v8 = vmul.f32 0.5, %v2076_v41 }
 0x9db   : > { %v2083_v47 = vmul.f32 %v2082_v23, %v2076_v41 }
 0x9dd   : > { %v2084_v31 = vmul.f32 0.044715, %v2083_v47 }
 0x9df   : > { %v2085_v33 = vadd.f32 %v2084_v31, %v2076_v41 }
 0x9e1   : > { %v2086_v38 = vmul.f32 0.7978846, %v2085_v33 }
 0x9e3   : > { %2562 = vtanh.f32 %v2086_v38 }
 0x9ed   : > { %v2563_v52 = vpop.eup %2562 }
 0x9ee   : > { %v2088_v27 = vadd.f32 1.0, %v2563_v52 }
 0x9f0   : > { %v2089_v32 = vmul.f32 %v2088_v27, %v2081_v8 }
 0x9f2   : > { %v2107_v59 = vpack.c.bf16 %v2089_v32, %v2089_v32 }
 0x9f4   : > { %2487 = vmatmul.mubr.bf16.vlgmr.msra.gmra.mrb[28].mxu1 %v2107_v59 }
 0xac7   : > { %v2190_v54 = vpop.f32.mrb[28].mxu1 }
 0xac8   : > { %v2196_v55 = vadd.f32 %v2190_v54, %v2106_v53  ;;  %v2488_v62 = vpop.f32.mrb[29].mxu1 }
 0xac9   : > { %v2193_v63 = vpop.f32.mrb[30].mxu1 }
 0xaca   : > { %2197 = vst.msk [vmem:[%s3010_s28] sm:$0xff] %vm534_vm0, %v2196_v55  ;;  %v2489_v34 = vpop.f32.mrb[31].mxu1 }
 0xacb PF: > { %s27_s21 = sadd.s32 1, %s2571_s21  }
 0xacc   : > { %p24_p4 = scmp.ge.s32.totalorder %s27_s21, 4  }
 0xace   :  { %26 = sbr.rel (!%p24_p4) target bundleno = 2 (0x2), region = 123 }

// kernel: gpt2_role_forward.3
= control target key start
LH: loop header
LB: loop body
LE: loop exit
PB: predicated region body
PF: predicated region fallthrough
CT: control target
= control target key end

     0   :  { %s3355_s0 = inlined_call_operand.vmem [shape: f32[2,8,32], index: 0, kind: input, shape index: {}]   ;;  %s3356_s1 = inlined_call_operand.vmem [shape: f32[1,32], index: 1, kind: input, shape index: {}]   ;;  %s3357_s2 = inlined_call_operand.vmem [shape: f32[1,32], index: 2, kind: input, shape index: {}]   ;;  %s3358_s3 = inlined_call_operand.vmem [shape: bf16[32,96], index: 3, kind: input, shape index: {}]   ;;  %s3359_s4 = inlined_call_operand.vmem [shape: f32[1,96], index: 4, kind: input, shape index: {}]   ;;  %s3360_s5 = inlined_call_operand.vmem [shape: bf16[32,32], index: 5, kind: input, shape index: {}]   ;;  %s3361_s6 = inlined_call_operand.vmem [shape: f32[1,32], index: 6, kind: input, shape index: {}]   ;;  %s3362_s7 = inlined_call_operand.vmem [shape: f32[1,32], index: 7, kind: input, shape index: {}]   ;;  %s3363_s8 = inlined_call_operand.vmem [shape: f32[1,32], index: 8, kind: input, shape index: {}]   ;;  %s3364_s9 = inlined_call_operand.vmem [shape: bf16[128,32], index: 9, kind: input, shape index: {}]   ;;  %s3365_s10 = inlined_call_operand.vmem [shape: f32[1,128], index: 10, kind: input, shape index: {}]   ;;  %s3366_s11 = inlined_call_operand.vmem [shape: bf16[128,32], index: 11, kind: input, shape index: {}]   ;;  %s3367_s12 = inlined_call_operand.vmem [shape: f32[1,32], index: 12, kind: input, shape index: {}]   ;;  %s3368_s13 = inlined_call_operand.vmem [shape: f32[1,32], index: 13, kind: input, shape index: {}]   ;;  %s3369_s14 = inlined_call_operand.vmem [shape: f32[1,32], index: 14, kind: input, shape index: {}]   ;;  %s3370_s15 = inlined_call_operand.hbm [shape: f32[2,8,32], index: 15, kind: output, shape index: {0}]   ;;  %s3371_s16 = inlined_call_operand.vmem [shape: bf16[2,2,8,32], index: 16, kind: output, shape index: {1}]  }
   0x1   :  { %3377 = sst [smem:[#allocation12_spill]] %s3355_s0 }
   0x2   :  { %3378 = sst [smem:[#allocation13_spill]] %s3356_s1 }
   0x3   :  { %3379 = sst [smem:[#allocation14_spill]] %s3357_s2 }
   0x4   :  { %3380 = sst [smem:[#allocation15_spill]] %s3358_s3 }
   0x5   :  { %22 = vsyncpa [#allocation8], 0 }
   0x6   :  { %24 = vsyncpa [#allocation8 + $0x1], 0  ;;  %s2816_s21 = smov 0   ;;  %s2818_s22 = smov 0  }
   0x7   :  { %s2820_s23 = smov 0   ;;  %s2822_s24 = smov 0  }
   0x8 LB: > { %3381 = sst [smem:[#allocation10_spill]] %s2710_s23  ;;  %s2837_s25 = sadd.s32 4294967295, %s2714_s24   ;;  %s2714_s24 = sphi %s2822_s24, %s3397_s24   ;;  %s2710_s23 = sphi %s2820_s23, %s3394_s23   ;;  %s2706_s22 = sphi %s2818_s22, %s3396_s22   ;;  %s2702_s21 = sphi %s2816_s21, %s3395_s21  }
   0x9   : > { %s2335_s26 = sadd.s32 4294967294, %s2714_s24   ;;  %s2841_s27 = sadd.s32 1, %s2714_s24  }
   0xa   : > { %s357_s28 = sadd.s32 1, %s2710_s23  ;;  %s354_s29 = ssub.s32 %s2714_s24, %s2841_s27 }
   0xb   : > { %p367_p0 = scmp.ne.s32.totalorder %s2710_s23, %s2706_s22  ;;  %p355_p1 = scmp.eq.s32.totalorder %s354_s29, 0 }
   0xc   : > { %p368_p2 = scmp.eq.s32.totalorder %s2837_s25, 1  ;;  %p373_p3 = scmp.ne.s32.totalorder %s2706_s22, %s2702_s21 }
   0xd   : > { %p374_p4 = scmp.eq.s32.totalorder %s2335_s26, 1  ;;  %p2338_p7 = scmp.ge.s32.totalorder %s2714_s24, 1 }
   0xe   : > { %s2852_s30 = scalar_select %p355_p1, %s2710_s23, %s357_s28  }
   0xf   : > { %p2854_p5 = por %p368_p2, %p367_p0  ;;  %p2858_p6 = por %p374_p4, %p373_p3 }
  0x10   : > { %3382 = sst [smem:[#allocation11_spill]] %s2852_s30  ;;  %p467_p8 = scmp.lt.s32.totalorder %s2714_s24, 3 }
  0x12   : > { %p468_p9 = pnand %p2338_p7, %p467_p8 }
  0x13   : > { %p521_p10 = scmp.lt.s32.totalorder (!%p468_p9), %s2837_s25, 1  ;;  %vm534_vm0 = vcmask (!%p468_p9), 261120   ;;  %s3385_s28 = sld [smem:[#allocation12_spill]] (!%p468_p9)  ;;  %v2716_v8 = vmov (!%p468_p9), 0.0   ;;  %vm2717_vm1 = vmmov (!%p468_p9), 0   ;;  %vm1124_vm2 = vcmask (!%p468_p9), 64512  }
  0x14   : > { %471 = sbr.rel (%p468_p9) target bundleno = 3111 (0xc27), region = 80  ;;  %s3386_s3 = sld [smem:[#allocation15_spill]] (!%p468_p9)  ;;  %2440 = vmatprep.subr.bf16.mxu1 (!%p468_p9), %v2716_v8  ;;  %2444 = vmatprep.mubr.msk.bf16.mxu1 (!%p468_p9), %vm2717_vm1, %v2716_v8  ;;  %v2345_v20 = vld [vmem:[%s3359_s4] ss:$0 sm:$0xff] (!%p468_p9)  ;;  %1125 = vst.msk [vmem:[#allocation6] sm:$0xff] (!%p468_p9), %vm1124_vm2, %v2716_v8  ;;  %1126 = vst.msk [vmem:[#allocation6 + $0x8] sm:$0xff] (!%p468_p9), %vm1124_vm2, %v2716_v8  ;;  %v660_v33 = vlaneseq (!%p468_p9) }
  0x15   : > { %2466 = vmatprep.subr.bf16.mxu0 (!%p468_p9), %v2716_v8  ;;  %2468 = vmatprep.mubr.msk.bf16.mxu0 (!%p468_p9), %vm2717_vm1, %v2716_v8  ;;  %s3387_s1 = sld [smem:[#allocation13_spill]] (!%p468_p9)  ;;  %s3388_s2 = sld [smem:[#allocation14_spill]] (!%p468_p9)  ;;  %1127 = vst.msk [vmem:[#allocation6 + $0x10] sm:$0xff] (!%p468_p9), %vm1124_vm2, %v2716_v8  ;;  %1128 = vst.msk [vmem:[#allocation6 + $0x18] sm:$0xff] (!%p468_p9), %vm1124_vm2, %v2716_v8  ;;  %v2722_v31 = vmov (!%p468_p9), 1983009808  }
  0x16   : > { %s2718_s23 = smov (!%p468_p9), 104   ;;  %s2719_s30 = smov (!%p468_p9), 120   ;;  %v658_v32 = vunpack.c.l.s4 (!%p468_p9), %v2722_v31  ;;  %v2723_v35 = vmov (!%p468_p9), 1934713408   ;;  %v2939_v38 = vshrl.u32 (!%p468_p9), %v660_v33, 7  ;;  %vm954_vm3 = vcmask (!%p468_p9), 60416  }
  0x17   : > { %v690_v36 = vunpack.c.l.s4 (!%p468_p9), %v2723_v35  ;;  %vm1115_vm4 = vcmask (!%p468_p9), 7168   ;;  %s3374_s20 = smov (!%p468_p9), 64   ;;  %vm1461_vm6 = vcmask (!%p468_p9), 1043456   ;;  %s2727_s26 = smov (!%p468_p9), 16   ;;  %vm1840_vm7 = vcmask (!%p468_p9), 130048  }
  0x18   : > { %v659_v37 = vunpack.c.0.s8 (!%p468_p9), %v658_v32  ;;  %1120 = vst.msk [vmem:[#allocation5] sm:$0xff] (!%p468_p9), %vm1115_vm4, %v2716_v8  ;;  %1121 = vst.msk [vmem:[#allocation5 + $0x8] sm:$0xff] (!%p468_p9), %vm1115_vm4, %v2716_v8  ;;  %vm1842_vm8 = vcmask (!%p468_p9), 195584   ;;  %vm637_vm9 = vcmask (!%p468_p9), 257024  }
  0x19   : > { %v691_v40 = vunpack.c.0.s8 (!%p468_p9), %v690_v36  ;;  %1122 = vst.msk [vmem:[#allocation5 + $0x10] sm:$0xff] (!%p468_p9), %vm1115_vm4, %v2716_v8  ;;  %1123 = vst.msk [vmem:[#allocation5 + $0x18] sm:$0xff] (!%p468_p9), %vm1115_vm4, %v2716_v8 }
  0x1a   : > { %v2599_v7 = vld [vmem:[%s3386_s3] sm:$0xff] (!%p468_p9)   ;;  %v2600_v9 = vld [vmem:[%s3386_s3 + $0x8] sm:$0xff] (!%p468_p9)   ;;  %v2942_v41 = vsub.s32 (!%p468_p9), %v659_v37, %v2939_v38 }
  0x1b   : > { %s2866_s18 = scalar_select %p521_p10, %s2837_s25, 1  ;;  %2441 = vmatpush3.bf16.msra.mxu1 %v2599_v7  ;;  %v2343_v14 = vld [vmem:[%s3387_s1] ss:$0 sm:$0xff]  ;;  %v2945_v47 = vsub.s32 %v691_v40, %v2939_v38 }
  0x1c   : > { %2442 = vmatprep.subr.bf16.mxu1 %v2716_v8  ;;  %v2344_v16 = vld [vmem:[%s3388_s2] ss:$0 sm:$0xff] }
  0x1d   : > { %s3373_s19 = sshll.u32 %s2866_s18, 3 }
  0x1e   : > { %s2874_s29 = scalar_lea.vmem %s3385_s28, %s3373_s19  ;;  %s2720_s28 = smov 112  }
  0x1f   : > { %v531_v0 = vld [vmem:[%s2874_s29] sm:$0xff]  ;;  %2443 = vmatpush3.bf16.msra.mxu1 %v2600_v9  ;;  %s3375_s19 = smov 96  }
  0x20   : > { %v535_v1 = vsel %vm534_vm0, %v531_v0, 0.0  ;;  %2448 = vmatprep.subr.bf16.mxu1 %v2716_v8 }
  0x21   : > { %536 = vadd.xlane.f32.xlu0 %v535_v1 }
  0xae   : > { %v537_v2 = vpop.xlane.xlu0 %536 }
  0xaf   : > { %v539_v3 = vmul.f32 0.03125, %v537_v2 }
  0xb1   : > { %v540_v4 = vsub.f32 %v531_v0, %v539_v3 }
  0xb3   : > { %v541_v5 = vmul.f32 %v540_v4, %v540_v4 }
  0xb5   : > { %v542_v6 = vsel %vm534_vm0, %v541_v5, 0.0 }
  0xb6   : > { %543 = vadd.xlane.f32.xlu0 %v542_v6 }
 0x143   : > { %v544_v10 = vpop.xlane.xlu0 %543 }
 0x144   : > { %v545_v11 = vmul.f32 0.03125, %v544_v10 }
 0x146   : > { %v546_v12 = vadd.f32 1e-05, %v545_v11 }
 0x148   : > { %2619 = vrsqrt.f32 %v546_v12 }
 0x152   : > { %v2620_v13 = vpop.eup %2619 }
 0x153   : > { %v548_v15 = vmul.f32 %v2620_v13, %v540_v4 }
 0x155   : > { %v555_v17 = vmul.f32 %v2343_v14, %v548_v15 }
 0x157   : > { %v562_v18 = vadd.f32 %v2344_v16, %v555_v17 }
 0x159   : > { %v563_v19 = vpack.c.bf16 %v562_v18, %v562_v18 }
 0x15b   : > { %2445 = vmatmul.mubr.msk.bf16.vlgmr.msra.gmra.mrb[0].mxu1 %vm534_vm0, %v563_v19 }
 0x15c   : > { %2450 = vmatprep.mubr.msk.bf16.mxu1 %vm2717_vm1, %v2716_v8 }
 0x22e   : > { %v624_v21 = vpop.f32.mrb[0].mxu1 }
 0x22f   : > { %v2905_v22 = vadd.f32 %v2345_v20, %v624_v21  ;;  %v2446_v23 = vpop.f32.mrb[1].mxu1 }
 0x230   : > { %v627_v24 = vpop.f32.mrb[2].mxu1 }
 0x231   : > { %800 = vrot.lane.b32.xlu0 %v2905_v22, %s2718_s23  ;;  %796 = vrot.lane.b32.xlu1 %v2905_v22, %s2719_s30  ;;  %v2447_v25 = vpop.f32.mrb[3].mxu1  ;;  %v2910_v26 = vmul.f32 0.35355338, %v2905_v22 }
 0x235   : > { %798 = vrot.lane.b32.xlu1 %v2905_v22, %s2720_s28  ;;  %652 = vrot.lane.b32.xlu0 %v2910_v26, %s2718_s23  ;;  %s2728_s23 = smov 8  }
 0x239   : > { %802 = vrot.lane.b32.xlu1 %v2905_v22, %s3375_s19 }
 0x2a3   : > { %v2916_v27 = vpop.permute.xlu1 %796  ;;  %v2924_v29 = vpop.permute.xlu0 %800 }
 0x2a4   : > { %804 = vrot.lane.b32.xlu1 %v2916_v27, %s3375_s19 }
 0x2a7   : > { %v2920_v28 = vpop.permute.xlu1 %798  ;;  %v653_v57 = vpop.permute.xlu0 %652 }
 0x2a8   : > { %806 = vrot.lane.b32.xlu1 %v2920_v28, %s3375_s19 }
 0x2ab   : > { %v803_v30 = vpop.permute.xlu1 %802 }
 0x2ac   : > { %808 = vrot.lane.b32.xlu1 %v2924_v29, %s3375_s19 }
 0x2b0   : > { %646 = vrot.lane.b32.xlu1 %v2910_v26, %s2719_s30  ;;  %s2729_s30 = smov 24  }
 0x2b4   : > { %649 = vrot.lane.b32.xlu1 %v2910_v26, %s2720_s28 }
 0x316   : > { %v805_v34 = vpop.permute.xlu1 %804 }
 0x31a   : > { %v807_v39 = vpop.permute.xlu1 %806 }
 0x31b   : > { %v814_v42 = vcombine.low %v803_v30, %v807_v39  ;;  %v815_v43 = vcombine.high %v803_v30, %v807_v39 }
 0x31d   : > { %v822_v48 = vrot.slane %v814_v42, %v2942_v41  ;;  %v829_v49 = vrot.slane %v815_v43, %v2942_v41 }
 0x31e   : > { %v809_v44 = vpop.permute.xlu1 %808 }
 0x31f   : > { %v830_v45 = vcombine.low %v805_v34, %v809_v44  ;;  %v831_v46 = vcombine.high %v805_v34, %v809_v44 }
 0x321   : > { %v838_v50 = vrot.slane %v830_v45, %v2942_v41  ;;  %v845_v51 = vrot.slane %v831_v46, %v2942_v41 }
 0x322   : > { %v647_v52 = vpop.permute.xlu1 %646 }
 0x323   : > { %v846_v53 = vcombine.low %v822_v48, %v838_v50  ;;  %v847_v54 = vcombine.high %v822_v48, %v838_v50  ;;  %v862_v55 = vcombine.low %v829_v49, %v845_v51  ;;  %v863_v56 = vcombine.high %v829_v49, %v845_v51 }
 0x324   : > { %v671_v62 = vcombine.low %v647_v52, %v653_v57  ;;  %v672_v63 = vcombine.high %v647_v52, %v653_v57 }
 0x325   : > { %v854_v58 = vrot.slane %v846_v53, %v2945_v47  ;;  %v861_v59 = vrot.slane %v847_v54, %v2945_v47  ;;  %v870_v60 = vrot.slane %v862_v55, %v2945_v47  ;;  %v877_v61 = vrot.slane %v863_v56, %v2945_v47 }
 0x326   : > { %v650_v0 = vpop.permute.xlu1 %649  ;;  %v679_v12 = vrot.slane %v671_v62, %v2942_v41  ;;  %v686_v13 = vrot.slane %v672_v63, %v2942_v41 }
 0x327   : > { %v882_v1 = vcombine.low %v854_v58, %v861_v59  ;;  %v2353_v2 = vcombine.high %v854_v58, %v861_v59  ;;  %v898_v3 = vcombine.low %v870_v60, %v877_v61  ;;  %v2354_v4 = vcombine.high %v870_v60, %v877_v61 }
 0x328   : > { %v655_v5 = vcombine.low %v2910_v26, %v650_v0  ;;  %v656_v6 = vcombine.high %v2910_v26, %v650_v0 }
 0x329   : > { %v889_v7 = vrot.slane %v882_v1, %v2942_v41  ;;  %v897_v9 = vrot.slane %v2353_v2, %v2942_v41  ;;  %v905_v10 = vrot.slane %v898_v3, %v2942_v41  ;;  %v913_v11 = vrot.slane %v2354_v4, %v2942_v41 }
 0x32a   : > { %v663_v14 = vrot.slane %v655_v5, %v2942_v41  ;;  %v670_v15 = vrot.slane %v656_v6, %v2942_v41 }
 0x32b   : > { %v914_v16 = vcombine.low %v889_v7, %v897_v9  ;;  %v915_v17 = vcombine.high %v889_v7, %v897_v9  ;;  %v930_v18 = vcombine.low %v905_v10, %v913_v11  ;;  %v931_v19 = vcombine.high %v905_v10, %v913_v11 }
 0x32c   : > { %v687_v20 = vcombine.low %v663_v14, %v679_v12  ;;  %v688_v21 = vcombine.high %v663_v14, %v679_v12  ;;  %v703_v23 = vcombine.low %v670_v15, %v686_v13  ;;  %v704_v24 = vcombine.high %v670_v15, %v686_v13 }
 0x32d   : > { %v922_v25 = vrot.slane %v914_v16, %v2945_v47  ;;  %v929_v26 = vrot.slane %v915_v17, %v2945_v47  ;;  %v938_v30 = vrot.slane %v930_v18, %v2945_v47  ;;  %v945_v31 = vrot.slane %v931_v19, %v2945_v47 }
 0x32e   : > { %v695_v32 = vrot.slane %v687_v20, %v2945_v47  ;;  %v702_v34 = vrot.slane %v688_v21, %v2945_v47  ;;  %v711_v35 = vrot.slane %v703_v23, %v2945_v47  ;;  %v718_v36 = vrot.slane %v704_v24, %v2945_v47 }
 0x32f   : > { %v946_v37 = vcombine.low %v922_v25, %v938_v30  ;;  %v947_v39 = vcombine.high %v922_v25, %v938_v30  ;;  %v948_v40 = vcombine.low %v929_v26, %v945_v31  ;;  %v949_v42 = vcombine.high %v929_v26, %v945_v31 }
 0x330   : > { %v723_v43 = vcombine.low %v695_v32, %v702_v34  ;;  %v2351_v44 = vcombine.high %v695_v32, %v702_v34  ;;  %v739_v45 = vcombine.low %v711_v35, %v718_v36  ;;  %v2352_v46 = vcombine.high %v711_v35, %v718_v36 }
 0x331   : > { %v950_v48 = vpack.c.bf16 %v946_v37, %v946_v37  ;;  %v951_v49 = vpack.c.bf16 %v947_v39, %v947_v39  ;;  %v952_v50 = vpack.c.bf16 %v948_v40, %v948_v40  ;;  %v953_v51 = vpack.c.bf16 %v949_v42, %v949_v42 }
 0x332   : > { %v730_v52 = vrot.slane %v723_v43, %v2942_v41  ;;  %v738_v53 = vrot.slane %v2351_v44, %v2942_v41  ;;  %v746_v54 = vrot.slane %v739_v45, %v2942_v41  ;;  %v754_v55 = vrot.slane %v2352_v46, %v2942_v41 }
 0x333   : > { %955 = vst.msk [vmem:[#allocation2] sm:$0xf] %vm954_vm3, %v950_v48  ;;  %956 = vst.msk [vmem:[#allocation2 + $0x4] sm:$0xf] %vm954_vm3, %v951_v49  ;;  %v2724_v17 = vmov -inf   ;;  %v1132_v18 = vand.u32 127, %v660_v33 }
 0x334   : > { %957 = vst.msk [vmem:[#allocation2 + $0x8] sm:$0xf] %vm954_vm3, %v952_v50  ;;  %958 = vst.msk [vmem:[#allocation2 + $0xc] sm:$0xf] %vm954_vm3, %v953_v51  ;;  %v755_v56 = vcombine.low %v730_v52, %v738_v53  ;;  %v771_v57 = vcombine.low %v746_v54, %v754_v55  ;;  %v756_v58 = vcombine.high %v730_v52, %v738_v53  ;;  %v2725_v50 = vmov 0  }
 0x335   : > { %v772_v59 = vcombine.high %v746_v54, %v754_v55  ;;  %1116 = vst.msk [vmem:[#allocation4] sm:$0xff] %vm1115_vm4, %v2724_v17  ;;  %1117 = vst.msk [vmem:[#allocation4 + $0x8] sm:$0xff] %vm1115_vm4, %v2724_v17  ;;  %vm1327_vm5 = vcmp.le.s32.totalorder %v1132_v18, %v2939_v38  ;;  %2597 = vset.pattern.permute.xlu1 %v2725_v50  ;;  %2598 = vset.pattern.permute.xlu0 %v2725_v50 }
 0x336   : > { %v763_v60 = vrot.slane %v755_v56, %v2945_v47  ;;  %v779_v61 = vrot.slane %v771_v57, %v2945_v47  ;;  %v770_v62 = vrot.slane %v756_v58, %v2945_v47  ;;  %1118 = vst.msk [vmem:[#allocation4 + $0x10] sm:$0xff] %vm1115_vm4, %v2724_v17  ;;  %1119 = vst.msk [vmem:[#allocation4 + $0x18] sm:$0xff] %vm1115_vm4, %v2724_v17 }
 0x337   : > { %v786_v63 = vrot.slane %v772_v59, %v2945_v47 }
 0x338   : > { %v787_v4 = vcombine.low %v763_v60, %v779_v61  ;;  %v788_v11 = vcombine.high %v763_v60, %v779_v61 }
 0x339   : > { %v790_v5 = vcombine.high %v770_v62, %v786_v63  ;;  %v789_v15 = vcombine.low %v770_v62, %v786_v63 }
 0x33a   : > { %v1133_v0 = vld [vmem:[#allocation2] sm:$0xf]  ;;  %v1134_v6 = vld [vmem:[#allocation2 + $0x4] sm:$0xf]  ;;  %v791_v7 = vpack.c.bf16 %v787_v4, %v787_v4  ;;  %v792_v13 = vpack.c.bf16 %v788_v11, %v788_v11 }
 0x33b   : > { %v1136_v1 = vld [vmem:[#allocation2 + $0xc] sm:$0xf]  ;;  %v1145_v2 = vsel %vm1124_vm2, %v1133_v0, 0  ;;  %v794_v9 = vpack.c.bf16 %v790_v5, %v790_v5  ;;  %v1191_v10 = vsel %vm1124_vm2, %v1134_v6, 0  ;;  %v1135_v12 = vld [vmem:[#allocation2 + $0x8] sm:$0xf]  ;;  %v793_v16 = vpack.c.bf16 %v789_v15, %v789_v15 }
 0x33c   : > { %v1283_v3 = vsel %vm1124_vm2, %v1136_v1, 0  ;;  %2449 = vmatpush3.bf16.xpose.msra.mxu1 %v1145_v2  ;;  %v1237_v14 = vsel %vm1124_vm2, %v1135_v12, 0  ;;  %v3051_v38 = vld [vmem:[#allocation4] sm:$0xff] }
 0x33d   : > { %2467 = vmatpush3.bf16.xpose.msra.mxu0 %v1283_v3  ;;  %2454 = vmatprep.subr.bf16.mxu1 %v2716_v8  ;;  %v3056_v53 = vld [vmem:[#allocation4 + $0x18] sm:$0xff]  ;;  %v3080_v59 = vld [vmem:[#allocation4 + $0x10] sm:$0xff] }
 0x33e   : > { %2478 = vmatprep.subr.bf16.mxu0 %v2716_v8 }
 0x343   : > { %2451 = vmatmul.mubr.msk.bf16.vlgmr.msra.gmra.mrb[4].mxu1 %vm1124_vm2, %v791_v7 }
 0x344   : > { %2469 = vmatmul.mubr.msk.bf16.vlgmr.msra.gmra.mrb[0].mxu0 %vm1124_vm2, %v794_v9  ;;  %2455 = vmatpush3.bf16.xpose.msra.mxu1 %v1191_v10 }
 0x345   : > { %2456 = vmatprep.mubr.msk.bf16.mxu1 %vm2717_vm1, %v2716_v8  ;;  %2460 = vmatprep.subr.bf16.mxu1 %v2716_v8 }
 0x346   : > { %2480 = vmatprep.mubr.msk.bf16.mxu0 %vm2717_vm1, %v2716_v8 }
 0x34b   : > { %2457 = vmatmul.mubr.msk.bf16.vlgmr.msra.gmra.mrb[8].mxu1 %vm1124_vm2, %v792_v13 }
 0x34c   : > { %2461 = vmatpush3.bf16.xpose.msra.mxu1 %v1237_v14  ;;  %2462 = vmatprep.mubr.msk.bf16.mxu1 %vm2717_vm1, %v2716_v8 }
 0x34d   : > { %2472 = vmatprep.subr.bf16.mxu1 %v2716_v8 }
 0x353   : > { %2463 = vmatmul.mubr.msk.bf16.vlgmr.msra.gmra.mrb[12].mxu1 %vm1124_vm2, %v793_v16 }
 0x354   : > { %2474 = vmatprep.mubr.msk.bf16.mxu1 %vm2717_vm1, %v2716_v8 }
 0x416   : > { %v1181_v19 = vpop.f32.mrb[4].mxu1 }
 0x417   : > { %v1319_v20 = vpop.f32.mrb[0].mxu0  ;;  %v3021_v21 = vsel %vm1327_vm5, %v1181_v19, -10000.0  ;;  %v2452_v24 = vpop.f32.mrb[5].mxu1 }
 0x418   : > { %v3025_v23 = vsel %vm1327_vm5, %v1319_v20, -10000.0  ;;  %v2470_v25 = vpop.f32.mrb[1].mxu0  ;;  %v1184_v26 = vpop.f32.mrb[6].mxu1  ;;  %v1338_v31 = vsel %vm1124_vm2, %v3021_v21, -inf }
 0x419   : > { %v1322_v30 = vpop.f32.mrb[2].mxu0  ;;  %1339 = vmax.xlane.f32.xlu1 %v1338_v31  ;;  %v2453_v32 = vpop.f32.mrb[7].mxu1  ;;  %v1347_v34 = vsel %vm1124_vm2, %v3025_v23, -inf }
 0x41a   : > { %v2471_v33 = vpop.f32.mrb[3].mxu0 }
 0x41d   : > { %1348 = vmax.xlane.f32.xlu1 %v1347_v34 }
 0x41e   : > { %v1227_v35 = vpop.f32.mrb[8].mxu1 }
 0x41f   : > { %v3033_v36 = vsel %vm1327_vm5, %v1227_v35, -10000.0  ;;  %v2458_v37 = vpop.f32.mrb[9].mxu1 }
 0x420   : > { %v1230_v39 = vpop.f32.mrb[10].mxu1  ;;  %v1341_v40 = vsel %vm1124_vm2, %v3033_v36, -inf }
 0x421   : > { %1342 = vmax.xlane.f32.xlu0 %v1341_v40  ;;  %v2459_v42 = vpop.f32.mrb[11].mxu1 }
 0x426   : > { %v1273_v43 = vpop.f32.mrb[12].mxu1 }
 0x427   : > { %v3039_v44 = vsel %vm1327_vm5, %v1273_v43, -10000.0  ;;  %v2464_v45 = vpop.f32.mrb[13].mxu1 }
 0x428   : > { %v1276_v46 = vpop.f32.mrb[14].mxu1  ;;  %v1344_v48 = vsel %vm1124_vm2, %v3039_v44, -inf }
 0x429   : > { %1345 = vmax.xlane.f32.xlu0 %v1344_v48  ;;  %v2465_v49 = vpop.f32.mrb[15].mxu1 }
 0x42e   : > { %961 = vrot.lane.b32.xlu1 %v2916_v27, %s3374_s20 }
 0x432   : > { %963 = vrot.lane.b32.xlu1 %v2920_v28, %s3374_s20 }
 0x43f   : > { %959 = vrot.lane.b32.xlu0 %v2905_v22, %s3374_s20 }
 0x443   : > { %965 = vrot.lane.b32.xlu0 %v2924_v29, %s3374_s20  ;;  %v3066_v29 = vld [vmem:[#allocation4 + $0x8] sm:$0xff]  ;;  %s3389_s20 = smov 96  }
 0x4a6   : > { %v1340_v51 = vpop.xlane.xlu1 %1339 }
 0x4a7   : > { %v3054_v52 = vmax.f32 %v3051_v38, %v1340_v51 }
 0x4a9   : > { %v1354_v27 = vsub.f32 %v3051_v38, %v3054_v52  ;;  %1651 = vst.msk [vmem:[#allocation4] sm:$0xff] %vm1115_vm4, %v3054_v52  ;;  %1368 = vperm.xlu1 %2597, %v3054_v52  }
 0x4aa   : > { %v1349_v28 = vpop.xlane.xlu1 %1348 }
 0x4ab   : > { %v3064_v54 = vmax.f32 %v3056_v53, %v1349_v28 }
 0x4ad   : > { %v1357_v55 = vsub.f32 %v3056_v53, %v3064_v54  ;;  %1654 = vst.msk [vmem:[#allocation4 + $0x18] sm:$0xff] %vm1115_vm4, %v3064_v54 }
 0x4ae   : > { %v1343_v56 = vpop.xlane.xlu0 %1342  ;;  %v962_v60 = vpop.permute.xlu1 %961 }
 0x4af   : > { %v3073_v57 = vmax.f32 %v3066_v29, %v1343_v56  ;;  %v1364_v52 = vmul.f32 1.442695, %v1357_v55 }
 0x4b1   : > { %v1355_v58 = vsub.f32 %v3066_v29, %v3073_v57  ;;  %1652 = vst.msk [vmem:[#allocation4 + $0x8] sm:$0xff] %vm1115_vm4, %v3073_v57  ;;  %1373 = vperm.xlu0 %2598, %v3073_v57   ;;  %v1400_v29 = vld [vmem:[#allocation5 + $0x10] sm:$0xff] }
 0x4b2   : > { %v964_v1 = vpop.permute.xlu1 %963 }
 0x4b3   : > { %v1360_v53 = vmul.f32 1.442695, %v1355_v58 }
 0x4b6   : > { %v1346_v61 = vpop.xlane.xlu0 %1345 }
 0x4b7   : > { %v3083_v62 = vmax.f32 %v3080_v59, %v1346_v61 }
 0x4b9   : > { %v1356_v63 = vsub.f32 %v3080_v59, %v3083_v62  ;;  %1653 = vst.msk [vmem:[#allocation4 + $0x10] sm:$0xff] %vm1115_vm4, %v3083_v62  ;;  %1378 = vperm.xlu1 %2597, %v3083_v62  }
 0x4ba   : > { %v960_v0 = vpop.permute.xlu0 %959 }
 0x4bb   : > { %v971_v2 = vcombine.low %v960_v0, %v964_v1  ;;  %v972_v3 = vcombine.high %v960_v0, %v964_v1 }
 0x4bd   : > { %1383 = vperm.xlu1 %2597, %v3064_v54   ;;  %v979_v7 = vrot.slane %v971_v2, %v2942_v41  ;;  %v986_v9 = vrot.slane %v972_v3, %v2942_v41 }
 0x4be   : > { %v966_v4 = vpop.permute.xlu0 %965 }
 0x4bf   : > { %v987_v5 = vcombine.low %v962_v60, %v966_v4  ;;  %v988_v6 = vcombine.high %v962_v60, %v966_v4 }
 0x4c1   : > { %v995_v10 = vrot.slane %v987_v5, %v2942_v41  ;;  %v1002_v11 = vrot.slane %v988_v6, %v2942_v41 }
 0x4c3   : > { %v1003_v12 = vcombine.low %v979_v7, %v995_v10  ;;  %v1004_v13 = vcombine.high %v979_v7, %v995_v10  ;;  %v1019_v14 = vcombine.low %v986_v9, %v1002_v11  ;;  %v1020_v15 = vcombine.high %v986_v9, %v1002_v11 }
 0x4c5   : > { %v1011_v16 = vrot.slane %v1003_v12, %v2945_v47  ;;  %v1018_v17 = vrot.slane %v1004_v13, %v2945_v47  ;;  %v1027_v18 = vrot.slane %v1019_v14, %v2945_v47  ;;  %v1034_v19 = vrot.slane %v1020_v15, %v2945_v47 }
 0x4c7   : > { %v1039_v20 = vcombine.low %v1011_v16, %v1018_v17  ;;  %v2355_v24 = vcombine.high %v1011_v16, %v1018_v17  ;;  %v1055_v25 = vcombine.low %v1027_v18, %v1034_v19  ;;  %v2356_v26 = vcombine.high %v1027_v18, %v1034_v19 }
 0x4c9   : > { %v1046_v30 = vrot.slane %v1039_v20, %v2942_v41  ;;  %v1054_v31 = vrot.slane %v2355_v24, %v2942_v41  ;;  %v1062_v33 = vrot.slane %v1055_v25, %v2942_v41  ;;  %v1070_v32 = vrot.slane %v2356_v26, %v2942_v41 }
 0x4ca   : > { %v1358_v26 = vmul.f32 1.442695, %v1354_v27 }
 0x4cb   : > { %v1071_v34 = vcombine.low %v1046_v30, %v1054_v31  ;;  %v1072_v35 = vcombine.high %v1046_v30, %v1054_v31  ;;  %v1087_v37 = vcombine.low %v1062_v33, %v1070_v32  ;;  %v1088_v39 = vcombine.high %v1062_v33, %v1070_v32 }
 0x4cc   : > { %v1362_v30 = vmul.f32 1.442695, %v1356_v63  ;;  %v1398_v63 = vld [vmem:[#allocation5] sm:$0xff] }
 0x4cd   : > { %v1079_v40 = vrot.slane %v1071_v34, %v2945_v47  ;;  %v1086_v42 = vrot.slane %v1072_v35, %v2945_v47  ;;  %v1095_v43 = vrot.slane %v1087_v37, %v2945_v47  ;;  %v1102_v45 = vrot.slane %v1088_v39, %v2945_v47  ;;  %v1399_v39 = vld [vmem:[#allocation5 + $0x8] sm:$0xff] }
 0x4cf   : > { %v1103_v46 = vcombine.low %v1079_v40, %v1095_v43  ;;  %v1104_v48 = vcombine.high %v1079_v40, %v1095_v43  ;;  %v1105_v49 = vcombine.low %v1086_v42, %v1102_v45  ;;  %v1106_v50 = vcombine.high %v1086_v42, %v1102_v45 }
 0x4d1   : > { %v1107_v51 = vpack.c.bf16 %v1103_v46, %v1103_v46  ;;  %v1108_v28 = vpack.c.bf16 %v1104_v48, %v1104_v48  ;;  %v1109_v56 = vpack.c.bf16 %v1105_v49, %v1105_v49  ;;  %v1110_v60 = vpack.c.bf16 %v1106_v50, %v1106_v50  ;;  %v1401_v46 = vld [vmem:[#allocation5 + $0x18] sm:$0xff] }
 0x4d3   : > { %1111 = vst.msk [vmem:[#allocation3] sm:$0xf] %vm954_vm3, %v1107_v51  ;;  %1112 = vst.msk [vmem:[#allocation3 + $0x4] sm:$0xf] %vm954_vm3, %v1108_v28 }
 0x4d4   : > { %1113 = vst.msk [vmem:[#allocation3 + $0x8] sm:$0xf] %vm954_vm3, %v1109_v56  ;;  %1114 = vst.msk [vmem:[#allocation3 + $0xc] sm:$0xf] %vm954_vm3, %v1110_v60 }
 0x4da   : > { %v1137_v61 = vld [vmem:[#allocation3] sm:$0xf]  ;;  %v1138_v0 = vld [vmem:[#allocation3 + $0x4] sm:$0xf] }
 0x4db   : > { %v1463_v1 = vsel %vm1461_vm6, %v1137_v61, 0  ;;  %v1509_v2 = vsel %vm1461_vm6, %v1138_v0, 0  ;;  %v1139_v11 = vld [vmem:[#allocation3 + $0x8] sm:$0xf]  ;;  %v1140_v20 = vld [vmem:[#allocation3 + $0xc] sm:$0xf] }
 0x4dc   : > { %2473 = vmatpush3.bf16.msra.mxu1 %v1463_v1  ;;  %2479 = vmatpush3.bf16.msra.mxu0 %v1509_v2  ;;  %v1601_v25 = vsel %vm1461_vm6, %v1140_v20, 0 }
 0x4dd   : > { %2484 = vmatprep.subr.bf16.mxu1 %v2716_v8  ;;  %2490 = vmatprep.subr.bf16.mxu0 %v2716_v8 }
 0x528   : > { %v1369_v3 = vpop.permute.xlu1 %1368 }
 0x529   : > { %v1386_v4 = vsub.f32 %v3021_v21, %v1369_v3  ;;  %v1555_v21 = vsel %vm1461_vm6, %v1139_v11, 0  ;;  %v1426_v3 = vld [vmem:[#allocation6] sm:$0xff] }
 0x52b   : > { %v1390_v5 = vmul.f32 1.442695, %v1386_v4 }
 0x52d   : > { %2621 = vpow2.f32 %v1390_v5 }
 0x530   : > { %v1374_v6 = vpop.permute.xlu0 %1373 }
 0x531   : > { %v1387_v7 = vsub.f32 %v3033_v36, %v1374_v6 }
 0x533   : > { %v1392_v9 = vmul.f32 1.442695, %v1387_v7 }
 0x535   : > { %2623 = vpow2.f32 %v1392_v9 }
 0x537   : > { %v2622_v10 = vpop.eup %2621 }
 0x538   : > { %v1379_v12 = vpop.permute.xlu1 %1378  ;;  %v1406_v13 = vsel %vm1124_vm2, %v2622_v10, 0.0  ;;  %v1454_v14 = vpack.c.bf16 %v2622_v10, %v2622_v10 }
 0x539   : > { %v1388_v15 = vsub.f32 %v3039_v44, %v1379_v12  ;;  %1407 = vadd.xlane.f32.xlu0 %v1406_v13  ;;  %v1427_v12 = vld [vmem:[#allocation6 + $0x8] sm:$0xff] }
 0x53a   : > { %2475 = vmatmul.mubr.msk.bf16.vlgmr.msra.gmra.mrb[16].mxu1 %vm1124_vm2, %v1454_v14 }
 0x53b   : > { %v1394_v16 = vmul.f32 1.442695, %v1388_v15  ;;  %2485 = vmatpush3.bf16.msra.mxu1 %v1555_v21  ;;  %2486 = vmatprep.mubr.msk.bf16.mxu1 %vm2717_vm1, %v2716_v8 }
 0x53c   : > { %v1384_v36 = vpop.permute.xlu1 %1383  ;;  %2496 = vmatprep.subr.bf16.mxu1 %v2716_v8 }
 0x53d   : > { %2625 = vpow2.f32 %v1394_v16  ;;  %v1389_v17 = vsub.f32 %v3025_v23, %v1384_v36 }
 0x53f   : > { %v2624_v18 = vpop.eup %2623  ;;  %v1396_v19 = vmul.f32 1.442695, %v1389_v17 }
 0x540   : > { %v1409_v44 = vsel %vm1124_vm2, %v2624_v18, 0.0  ;;  %v1455_v24 = vpack.c.bf16 %v2624_v18, %v2624_v18 }
 0x541   : > { %2627 = vpow2.f32 %v1396_v19  ;;  %1410 = vadd.xlane.f32.xlu1 %v1409_v44  ;;  %v1428_v19 = vld [vmem:[#allocation6 + $0x10] sm:$0xff]  ;;  %v1429_v44 = vld [vmem:[#allocation6 + $0x18] sm:$0xff] }
 0x542   : > { %2481 = vmatmul.mubr.msk.bf16.vlgmr.msra.gmra.mrb[4].mxu0 %vm1124_vm2, %v1455_v24  ;;  %2629 = vpow2.f32 %v1358_v26 }
 0x543   : > { %2491 = vmatpush3.bf16.msra.mxu0 %v1601_v25  ;;  %2492 = vmatprep.mubr.msk.bf16.mxu0 %vm2717_vm1, %v2716_v8  ;;  %2631 = vpow2.f32 %v1362_v30 }
 0x544   : > { %2504 = vmatprep.subr.bf16.mxu0 %v2716_v8  ;;  %2633 = vpow2.f32 %v1364_v52 }
 0x545   : > { %2635 = vpow2.f32 %v1360_v53 }
 0x547   : > { %v2626_v23 = vpop.eup %2625 }
 0x548   : > { %v1412_v31 = vsel %vm1124_vm2, %v2626_v23, 0.0  ;;  %v1456_v33 = vpack.c.bf16 %v2626_v23, %v2626_v23 }
 0x549   : > { %1413 = vadd.xlane.f32.xlu0 %v1412_v31 }
 0x54a   : > { %2487 = vmatmul.mubr.msk.bf16.vlgmr.msra.gmra.mrb[20].mxu1 %vm1124_vm2, %v1456_v33 }
 0x54b   : > { %v2628_v38 = vpop.eup %2627  ;;  %2500 = vmatprep.mubr.msk.bf16.mxu1 %vm2717_vm1, %v2716_v8 }
 0x54c   : > { %v1415_v27 = vsel %vm1124_vm2, %v2628_v38, 0.0  ;;  %v1457_v32 = vpack.c.bf16 %v2628_v38, %v2628_v38  ;;  %v2630_v59 = vpop.eup %2629 }
 0x54d   : > { %1416 = vadd.xlane.f32.xlu0 %v1415_v27  ;;  %v2632_v54 = vpop.eup %2631  ;;  %v1402_v34 = vmul.f32 %v2630_v59, %v1398_v63 }
 0x54e   : > { %2493 = vmatmul.mubr.msk.bf16.vlgmr.msra.gmra.mrb[8].mxu0 %vm1124_vm2, %v1457_v32  ;;  %v2634_v55 = vpop.eup %2633  ;;  %v1404_v57 = vmul.f32 %v2632_v54, %v1400_v29 }
 0x54f   : > { %2520 = vmatprep.mubr.msk.bf16.mxu0 %vm2717_vm1, %v2716_v8  ;;  %v2636_v62 = vpop.eup %2635  ;;  %v1405_v50 = vmul.f32 %v2634_v55, %v1401_v46 }
 0x550   : > { %v1403_v40 = vmul.f32 %v2636_v62, %v1399_v39 }
 0x552   : > { %1432 = vperm.xlu1 %2597, %v2630_v59  }
 0x556   : > { %1442 = vperm.xlu1 %2597, %v2632_v54  }
 0x55a   : > { %1447 = vperm.xlu1 %2597, %v2634_v55  }
 0x563   : > { %1437 = vperm.xlu0 %2598, %v2636_v62  }
 0x5c6   : > { %v1408_v35 = vpop.xlane.xlu0 %1407 }
 0x5c7   : > { %v1418_v37 = vadd.f32 %v1408_v35, %v1402_v34 }
 0x5c9   : > { %1422 = vst.msk [vmem:[#allocation5] sm:$0xff] %vm1115_vm4, %v1418_v37 }
 0x5ce   : > { %v1411_v42 = vpop.xlane.xlu1 %1410 }
 0x5cf   : > { %v1419_v43 = vadd.f32 %v1411_v42, %v1403_v40 }
 0x5d0   : > { %v1659_v45 = vld [vmem:[#allocation5] sm:$0xff] }
 0x5d1   : > { %1423 = vst.msk [vmem:[#allocation5 + $0x8] sm:$0xff] %vm1115_vm4, %v1419_v43  ;;  %2637 = vrcp.f32 %v1659_v45 }
 0x5d2   : > { %v1433_v4 = vpop.permute.xlu1 %1432 }
 0x5d3   : > { %v1450_v5 = vmul.f32 %v1433_v4, %v1426_v3 }
 0x5d6   : > { %v1414_v58 = vpop.xlane.xlu0 %1413  ;;  %v1443_v36 = vpop.permute.xlu1 %1442 }
 0x5d7   : > { %v1420_v48 = vadd.f32 %v1414_v58, %v1404_v57  ;;  %v1452_v20 = vmul.f32 %v1443_v36, %v1428_v19 }
 0x5d8   : > { %v1660_v49 = vld [vmem:[#allocation5 + $0x8] sm:$0xff] }
 0x5d9   : > { %1424 = vst.msk [vmem:[#allocation5 + $0x10] sm:$0xff] %vm1115_vm4, %v1420_v48  ;;  %2639 = vrcp.f32 %v1660_v49 }
 0x5da   : > { %v1417_v51 = vpop.xlane.xlu0 %1416  ;;  %v1448_v24 = vpop.permute.xlu1 %1447 }
 0x5db   : > { %v2638_v28 = vpop.eup %2637  ;;  %v1421_v56 = vadd.f32 %v1417_v51, %v1405_v50  ;;  %v1453_v31 = vmul.f32 %v1448_v24, %v1429_v44 }
 0x5dc   : > { %1669 = vperm.xlu0 %2598, %v2638_v28  }
 0x5dd   : > { %1425 = vst.msk [vmem:[#allocation5 + $0x18] sm:$0xff] %vm1115_vm4, %v1421_v56 }
 0x5e0   : > { %v1661_v60 = vld [vmem:[#allocation5 + $0x10] sm:$0xff] }
 0x5e1   : > { %2641 = vrcp.f32 %v1661_v60 }
 0x5e2   : > { %v1438_v13 = vpop.permute.xlu0 %1437 }
 0x5e3   : > { %v2640_v61 = vpop.eup %2639  ;;  %v1451_v14 = vmul.f32 %v1438_v13, %v1427_v12 }
 0x5e4   : > { %1674 = vperm.xlu1 %2597, %v2640_v61   ;;  %v1662_v0 = vld [vmem:[#allocation5 + $0x18] sm:$0xff]  ;;  %v2601_v61 = vld [vmem:[%s3360_s5] sm:$0xff]  }
 0x5e5   : > { %2643 = vrcp.f32 %v1662_v0  ;;  %2497 = vmatpush3.bf16.msra.mxu1 %v2601_v61 }
 0x5e6   : > { %2498 = vmatprep.subr.bf16.mxu1 %v2716_v8 }
 0x5eb   : > { %v2642_v1 = vpop.eup %2641 }
 0x5ec   : > { %1679 = vperm.xlu0 %2598, %v2642_v1  }
 0x5ef   : > { %v2644_v2 = vpop.eup %2643 }
 0x5f0   : > { %1684 = vperm.xlu1 %2597, %v2644_v2  }
 0x60d   : > { %v1499_v6 = vpop.f32.mrb[16].mxu1 }
 0x60e   : > { %v1643_v7 = vadd.f32 %v1499_v6, %v1450_v5  ;;  %v2476_v9 = vpop.f32.mrb[17].mxu1 }
 0x60f   : > { %v1502_v10 = vpop.f32.mrb[18].mxu1  ;;  %v2602_v9 = vld [vmem:[%s3360_s5 + $0x8] sm:$0xff]  }
 0x610   : > { %1647 = vst.msk [vmem:[#allocation6] sm:$0xff] %vm1124_vm2, %v1643_v7  ;;  %v2477_v11 = vpop.f32.mrb[19].mxu1  ;;  %2499 = vmatpush3.bf16.msra.mxu1 %v2602_v9 }
 0x611   : > { %2524 = vmatprep.subr.bf16.mxu1 %v2716_v8 }
 0x615   : > { %v1545_v15 = vpop.f32.mrb[4].mxu0 }
 0x616   : > { %v1644_v21 = vadd.f32 %v1545_v15, %v1451_v14  ;;  %v2482_v16 = vpop.f32.mrb[5].mxu0 }
 0x617   : > { %v1548_v17 = vpop.f32.mrb[6].mxu0  ;;  %v1655_v34 = vld [vmem:[#allocation6] sm:$0xff] }
 0x618   : > { %1648 = vst.msk [vmem:[#allocation6 + $0x8] sm:$0xff] %vm1124_vm2, %v1644_v21  ;;  %v2483_v18 = vpop.f32.mrb[7].mxu0 }
 0x61d   : > { %v1591_v25 = vpop.f32.mrb[20].mxu1 }
 0x61e   : > { %v1645_v26 = vadd.f32 %v1591_v25, %v1452_v20  ;;  %v2488_v23 = vpop.f32.mrb[21].mxu1 }
 0x61f   : > { %v1594_v30 = vpop.f32.mrb[22].mxu1  ;;  %v1656_v37 = vld [vmem:[#allocation6 + $0x8] sm:$0xff] }
 0x620   : > { %1649 = vst.msk [vmem:[#allocation6 + $0x10] sm:$0xff] %vm1124_vm2, %v1645_v26  ;;  %v2489_v33 = vpop.f32.mrb[23].mxu1 }
 0x621   : > { %v1637_v38 = vpop.f32.mrb[8].mxu0 }
 0x622   : > { %v1646_v52 = vadd.f32 %v1637_v38, %v1453_v31  ;;  %v2494_v27 = vpop.f32.mrb[9].mxu0  ;;  %v2367_v38 = vld [vmem:[%s3361_s6] ss:$0 sm:$0xff] }
 0x623   : > { %v1640_v32 = vpop.f32.mrb[10].mxu0 }
 0x624   : > { %1650 = vst.msk [vmem:[#allocation6 + $0x18] sm:$0xff] %vm1124_vm2, %v1646_v52  ;;  %v2495_v59 = vpop.f32.mrb[11].mxu0 }
 0x625   : > { %v2373_v59 = vld [vmem:[%s3367_s12] ss:$0 sm:$0xff] }
 0x627   : > { %v1657_v62 = vld [vmem:[#allocation6 + $0x10] sm:$0xff] }
 0x62b   : > { %v1658_v39 = vld [vmem:[#allocation6 + $0x18] sm:$0xff] }
 0x65b   : > { %v1670_v53 = vpop.permute.xlu0 %1669 }
 0x65c   : > { %v1687_v35 = vmul.f32 %v1670_v53, %v1655_v34 }
 0x663   : > { %v1675_v54 = vpop.permute.xlu1 %1674 }
 0x664   : > { %v1688_v42 = vmul.f32 %v1675_v54, %v1656_v37  ;;  %v2651_v54 = vld [vmem:[%s2874_s29] sm:$0xff]  ;;  %s3391_s29 = smov 64  }
 0x66b   : > { %v1680_v55 = vpop.permute.xlu0 %1679 }
 0x66c   : > { %v1689_v63 = vmul.f32 %v1680_v55, %v1657_v62 }
 0x66e   : > { %v1691_v43 = vcombine.low %v1687_v35, %v1689_v63  ;;  %v1692_v45 = vcombine.high %v1687_v35, %v1689_v63  ;;  %v2603_v35 = vld [vmem:[%s3364_s9] sm:$0xff]  }
 0x66f   : > { %v1685_v40 = vpop.permute.xlu1 %1684  ;;  %v2018_v37 = vsel %vm534_vm0, %v2603_v35, 0  ;;  %v2399_v35 = vpack.c.bf16 %v2905_v22, %v2905_v22 }
 0x670   : > { %v1690_v29 = vmul.f32 %v1685_v40, %v1658_v39  ;;  %v1699_v46 = vrot.slane %v1691_v43, %v2942_v41  ;;  %v1706_v48 = vrot.slane %v1692_v45, %v2942_v41  ;;  %2505 = vmatpush3.bf16.xpose.msra.mxu0 %v2018_v37  ;;  %v2604_v39 = vld [vmem:[%s3364_s9 + $0x8] sm:$0xff]   ;;  %v2606_v45 = vld [vmem:[%s3364_s9 + $0x18] sm:$0xff]  }
 0x671   : > { %2506 = vmatprep.subr.bf16.mxu0 %v2716_v8  ;;  %v2021_v40 = vsel %vm534_vm0, %v2604_v39, 0 }
 0x672   : > { %v1707_v57 = vcombine.low %v1688_v42, %v1690_v29  ;;  %v1708_v58 = vcombine.high %v1688_v42, %v1690_v29  ;;  %v2605_v42 = vld [vmem:[%s3364_s9 + $0x10] sm:$0xff]   ;;  %v2027_v29 = vsel %vm534_vm0, %v2606_v45, 0 }
 0x673   : > { %v2024_v43 = vsel %vm534_vm0, %v2605_v42, 0 }
 0x674   : > { %v1715_v49 = vrot.slane %v1707_v57, %v2942_v41  ;;  %v1722_v50 = vrot.slane %v1708_v58, %v2942_v41  ;;  %v2607_v57 = vld [vmem:[%s3364_s9 + $0x20] sm:$0xff]  }
 0x675   : > { %v2030_v58 = vsel %vm534_vm0, %v2607_v57, 0 }
 0x676   : > { %v1723_v51 = vcombine.low %v1699_v46, %v1715_v49  ;;  %v1724_v28 = vcombine.high %v1699_v46, %v1715_v49  ;;  %v1739_v56 = vcombine.low %v1706_v48, %v1722_v50  ;;  %v1740_v60 = vcombine.high %v1706_v48, %v1722_v50 }
 0x678   : > { %v1731_v0 = vrot.slane %v1723_v51, %v2945_v47  ;;  %v1738_v1 = vrot.slane %v1724_v28, %v2945_v47  ;;  %v1747_v2 = vrot.slane %v1739_v56, %v2945_v47  ;;  %v1754_v3 = vrot.slane %v1740_v60, %v2945_v47  ;;  %2507 = vmatpush3.bf16.xpose.msra.mxu0 %v2021_v40  ;;  %v2608_v28 = vld [vmem:[%s3364_s9 + $0x28] sm:$0xff]   ;;  %v2609_v60 = vld [vmem:[%s3364_s9 + $0x30] sm:$0xff]  }
 0x679   : > { %2508 = vmatprep.subr.bf16.mxu0 %v2716_v8  ;;  %v2033_v56 = vsel %vm534_vm0, %v2608_v28, 0  ;;  %v2036_v61 = vsel %vm534_vm0, %v2609_v60, 0 }
 0x67a   : > { %v1759_v4 = vcombine.low %v1731_v0, %v1738_v1  ;;  %v2365_v5 = vcombine.high %v1731_v0, %v1738_v1  ;;  %v1775_v6 = vcombine.low %v1747_v2, %v1754_v3  ;;  %v2366_v7 = vcombine.high %v1747_v2, %v1754_v3  ;;  %v2610_v0 = vld [vmem:[%s3364_s9 + $0x38] sm:$0xff]   ;;  %v2611_v2 = vld [vmem:[%s3366_s11] sm:$0xff]  }
 0x67b   : > { %v2039_v1 = vsel %vm534_vm0, %v2610_v0, 0 }
 0x67c   : > { %v1766_v10 = vrot.slane %v1759_v4, %v2942_v41  ;;  %v1774_v11 = vrot.slane %v2365_v5, %v2942_v41  ;;  %v1782_v12 = vrot.slane %v1775_v6, %v2942_v41  ;;  %v1790_v13 = vrot.slane %v2366_v7, %v2942_v41  ;;  %v2371_v7 = vld [vmem:[%s3362_s7] ss:$0 sm:$0xff] }
 0x67e   : > { %v1792_v14 = vcombine.high %v1766_v10, %v1774_v11  ;;  %v1808_v15 = vcombine.high %v1782_v12, %v1790_v13  ;;  %v1791_v21 = vcombine.low %v1766_v10, %v1774_v11  ;;  %v1807_v16 = vcombine.low %v1782_v12, %v1790_v13  ;;  %v2372_v10 = vld [vmem:[%s3363_s8] ss:$0 sm:$0xff] }
 0x680   : > { %v1806_v36 = vrot.slane %v1792_v14, %v2945_v47  ;;  %v1822_v17 = vrot.slane %v1808_v15, %v2945_v47  ;;  %v1799_v18 = vrot.slane %v1791_v21, %v2945_v47  ;;  %v1815_v19 = vrot.slane %v1807_v16, %v2945_v47  ;;  %2509 = vmatpush3.bf16.xpose.msra.mxu0 %v2024_v43  ;;  %v2612_v14 = vld [vmem:[%s3366_s11 + $0x8] sm:$0xff]   ;;  %v2613_v15 = vld [vmem:[%s3366_s11 + $0x10] sm:$0xff]   ;;  %v2614_v21 = vld [vmem:[%s3366_s11 + $0x18] sm:$0xff]  }
 0x681   : > { %2510 = vmatprep.subr.bf16.mxu0 %v2716_v8  ;;  %v2615_v16 = vld [vmem:[%s3366_s11 + $0x20] sm:$0xff]  }
 0x682   : > { %v1825_v20 = vcombine.low %v1806_v36, %v1822_v17  ;;  %v1824_v44 = vcombine.high %v1799_v18, %v1815_v19  ;;  %v1823_v24 = vcombine.low %v1799_v18, %v1815_v19  ;;  %v1826_v41 = vcombine.high %v1806_v36, %v1822_v17  ;;  %v2616_v36 = vld [vmem:[%s3366_s11 + $0x28] sm:$0xff]   ;;  %v2617_v17 = vld [vmem:[%s3366_s11 + $0x30] sm:$0xff]   ;;  %v2618_v18 = vld [vmem:[%s3366_s11 + $0x38] sm:$0xff]  }
 0x683   : > { %v2374_v19 = vld [vmem:[%s3365_s10] ss:$0 sm:$0xff] }
 0x684   : > { %1832 = vrot.lane.b32.xlu1 %v1825_v20, %s2727_s26  ;;  %1828 = vrot.lane.b32.xlu0 %v1824_v44, %s2728_s23  ;;  %s3376_s23 = sand.u32 1, %s2706_s22  }
 0x688   : > { %1836 = vrot.lane.b32.xlu0 %v1826_v41, %s2729_s30  ;;  %s2339_s30 = sshll.u32 %s3376_s23, 3  ;;  %2511 = vmatpush3.bf16.xpose.msra.mxu0 %v2027_v29 }
 0x689   : > { %s3198_s28 = scalar_lea.vmem [#allocation7], %s2339_s30  ;;  %2512 = vmatprep.subr.bf16.mxu0 %v2716_v8  ;;  %s3390_s30 = sshll.u32 %s2866_s18, 3 }
 0x68a   : > { %s529_s26 = scalar_lea.vmem %s3371_s16, %s3390_s30  ;;  %s2395_s30 = sshll.u32 %s2837_s25, 7 }
 0x68b   : > { %s2248_s23 = sshll.u32 %s3198_s28, 4  ;;  %s3309_s3 = scalar_lea.hbm %s3370_s15, %s2395_s30  ;;  %s3311_s23 = int_to_ptr.vmem [resolvable:$true] %s2248_s23 }
 0x68c   : > { %s2652_s19 = scalar_lea.vmem %s3311_s23, 128  ;;  %s2730_s25 = smov [#allocation7]  }
 0x68d   : > { %p2653_p11 = scmp.ne.s32.totalorder %s3311_s23, %s2652_s19  ;;  %s2656_s2 = sshll.u32 %s2730_s25, 4  ;;  %s2657_s2 = int_to_ptr.vmem [resolvable:$false] %s2656_s2 }
 0x68e   : > { %p2659_p0 = scmp.lt.s32.totalorder %s3311_s23, %s2657_s2 }
 0x68f   : > { %p2654_p12 = pnand %p2653_p11, %p2854_p5 }
 0x690   : > { %2513 = vmatpush3.bf16.xpose.msra.mxu0 %v2030_v58 }
 0x691   : > { %2514 = vmatprep.subr.bf16.mxu0 %v2716_v8  ;;  %p2655_p13 = pneg %p2654_p12 }
 0x698   : > { %2515 = vmatpush3.bf16.xpose.msra.mxu0 %v2033_v56 }
 0x699   : > { %2516 = vmatprep.subr.bf16.mxu0 %v2716_v8 }
 0x6a0   : > { %2517 = vmatpush3.bf16.xpose.msra.mxu0 %v2036_v61 }
 0x6a1   : > { %2518 = vmatprep.subr.bf16.mxu0 %v2716_v8 }
 0x6a8   : > { %2519 = vmatpush3.bf16.xpose.msra.mxu0 %v2039_v1 }
 0x6f6   : > { %v1829_v25 = vpop.permute.xlu0 %1828  ;;  %v1833_v26 = vpop.permute.xlu1 %1832 }
 0x6f7   : > { %v1839_v23 = vsel %vm1124_vm2, %v1823_v24, %v1829_v25 }
 0x6f8   : > { %v1841_v30 = vsel %vm1840_vm7, %v1839_v23, %v1833_v26 }
 0x6fa   : > { %v1837_v47 = vpop.permute.xlu0 %1836 }
 0x6fb   : > { %v1843_v31 = vsel %vm1842_vm8, %v1841_v30, %v1837_v47 }
 0x6fc   : > { %v1844_v33 = vpack.c.bf16 %v1843_v31, %v1843_v31 }
 0x6fe   : > { %2501 = vmatmul.mubr.msk.bf16.vlgmr.msra.gmra.mrb[24].mxu1 %vm534_vm0, %v1844_v33 }
 0x6ff   : > { %2540 = vmatprep.mubr.msk.bf16.mxu1 %vm2717_vm1, %v2716_v8  ;;  %2525 = vmatpush3.bf16.msra.mxu1 %v2611_v2 }
 0x700   : > { %2526 = vmatprep.subr.bf16.mxu1 %v2716_v8 }
 0x703   : > { %2527 = vmatpush3.bf16.msra.mxu1 %v2612_v14 }
 0x704   : > { %2528 = vmatprep.subr.bf16.mxu1 %v2716_v8 }
 0x707   : > { %2529 = vmatpush3.bf16.msra.mxu1 %v2613_v15 }
 0x708   : > { %2530 = vmatprep.subr.bf16.mxu1 %v2716_v8 }
 0x70b   : > { %2531 = vmatpush3.bf16.msra.mxu1 %v2614_v21 }
 0x70c   : > { %2532 = vmatprep.subr.bf16.mxu1 %v2716_v8 }
 0x70f   : > { %2533 = vmatpush3.bf16.msra.mxu1 %v2615_v16 }
 0x710   : > { %2534 = vmatprep.subr.bf16.mxu1 %v2716_v8 }
 0x713   : > { %2535 = vmatpush3.bf16.msra.mxu1 %v2616_v36 }
 0x714   : > { %2536 = vmatprep.subr.bf16.mxu1 %v2716_v8 }
 0x717   : > { %2537 = vmatpush3.bf16.msra.mxu1 %v2617_v17 }
 0x718   : > { %2538 = vmatprep.subr.bf16.mxu1 %v2716_v8 }
 0x71b   : > { %2539 = vmatpush3.bf16.msra.mxu1 %v2618_v18 }
 0x7d1   : > { %v1905_v52 = vpop.f32.mrb[24].mxu1 }
 0x7d2   : > { %v1906_v27 = vadd.f32 %v2367_v38, %v1905_v52  ;;  %v2502_v32 = vpop.f32.mrb[25].mxu1 }
 0x7d3   : > { %v1908_v53 = vpop.f32.mrb[26].mxu1 }
 0x7d4   : > { %v1911_v55 = vadd.f32 %v2651_v54, %v1906_v27  ;;  %v2503_v62 = vpop.f32.mrb[27].mxu1 }
 0x7d6   : > { %v1949_v63 = vadd.f32 %v2373_v59, %v1911_v55  ;;  %v1914_v34 = vsel %vm534_vm0, %v1911_v55, 0.0 }
 0x7d7   : > { %1915 = vadd.xlane.f32.xlu1 %v1914_v34 }
 0x7d8   : > { %1950 = vst.msk [vmem:[%s3198_s28] sm:$0xff] %vm534_vm0, %v1949_v63 }
 0x7df   : > { %v2106_v32 = vld [vmem:[%s3198_s28] sm:$0xff] }
 0x864   : > { %v1916_v46 = vpop.xlane.xlu1 %1915 }
 0x865   : > { %v1917_v48 = vmul.f32 0.03125, %v1916_v46 }
 0x867   : > { %v1918_v49 = vsub.f32 %v1911_v55, %v1917_v48  ;;  %v2392_v48 = vld [vmem:[%s3368_s13] ss:$0 sm:$0xff] }
 0x869   : > { %v1919_v50 = vmul.f32 %v1918_v49, %v1918_v49 }
 0x86b   : > { %v1920_v51 = vsel %vm534_vm0, %v1919_v50, 0.0  ;;  %v2393_v50 = vld [vmem:[%s3369_s14] ss:$0 sm:$0xff] }
 0x86c   : > { %1921 = vadd.xlane.f32.xlu0 %v1920_v51 }
 0x8f9   : > { %v1922_v3 = vpop.xlane.xlu0 %1921 }
 0x8fa   : > { %v1923_v4 = vmul.f32 0.03125, %v1922_v3 }
 0x8fc   : > { %v1924_v5 = vadd.f32 1e-05, %v1923_v4 }
 0x8fe   : > { %2645 = vrsqrt.f32 %v1924_v5 }
 0x908   : > { %v2646_v6 = vpop.eup %2645 }
 0x909   : > { %v1926_v9 = vmul.f32 %v2646_v6, %v1918_v49 }
 0x90b   : > { %v1933_v11 = vmul.f32 %v2371_v7, %v1926_v9 }
 0x90d   : > { %v1940_v12 = vadd.f32 %v2372_v10, %v1933_v11 }
 0x90f   : > { %v1941_v13 = vpack.c.bf16 %v1940_v12, %v1940_v12 }
 0x911   : > { %2521 = vmatmul.mubr.msk.bf16.vlgmr.msra.gmra.mrb[12].mxu0 %vm534_vm0, %v1941_v13 }
 0x9e4   : > { %v2075_v20 = vpop.f32.mrb[12].mxu0 }
 0x9e5   : > { %v2076_v44 = vadd.f32 %v2374_v19, %v2075_v20  ;;  %v2522_v24 = vpop.f32.mrb[13].mxu0 }
 0x9e6   : > { %v2078_v41 = vpop.f32.mrb[14].mxu0 }
 0x9e7   : > { %v2082_v25 = vmul.f32 %v2076_v44, %v2076_v44  ;;  %v2523_v26 = vpop.f32.mrb[15].mxu0  ;;  %v2081_v33 = vmul.f32 0.5, %v2076_v44 }
 0x9e9   : > { %v2083_v23 = vmul.f32 %v2082_v25, %v2076_v44 }
 0x9eb   : > { %v2084_v47 = vmul.f32 0.044715, %v2083_v23 }
 0x9ed   : > { %v2085_v30 = vadd.f32 %v2084_v47, %v2076_v44 }
 0x9ef   : > { %v2086_v31 = vmul.f32 0.7978846, %v2085_v30 }
 0x9f1   : > { %2647 = vtanh.f32 %v2086_v31 }
 0x9fb   : > { %v2648_v8 = vpop.eup %2647 }
 0x9fc   : > { %v2088_v38 = vadd.f32 1.0, %v2648_v8 }
 0x9fe   : > { %v2089_v52 = vmul.f32 %v2088_v38, %v2081_v33 }
 0xa00   : > { %v2107_v27 = vpack.c.bf16 %v2089_v52, %v2089_v52 }
 0xa02   : > { %2541 = vmatmul.mubr.bf16.vlgmr.msra.gmra.mrb[28].mxu1 %v2107_v27 }
 0xad5   : > { %v2190_v59 = vpop.f32.mrb[28].mxu1 }
 0xad6   : > { %v2196_v53 = vadd.f32 %v2190_v59, %v2106_v32  ;;  %v2542_v54 = vpop.f32.mrb[29].mxu1 }
 0xad7   : > { %v2193_v55 = vpop.f32.mrb[30].mxu1 }
 0xad8   : > { %2197 = vst.msk [vmem:[%s3198_s28] sm:$0xff] %vm534_vm0, %v2196_v53  ;;  %v2543_v62 = vpop.f32.mrb[31].mxu1 }
 0xadf   : > { %v2198_v63 = vld [vmem:[%s3198_s28] sm:$0xff] }
 0xae0   : > { %v2201_v34 = vsel %vm534_vm0, %v2198_v63, 0.0 }
 0xae1   : > { %2202 = vadd.xlane.f32.xlu0 %v2201_v34 }
 0xaf7   : > { %634 = vrot.lane.b32.xlu0 %v2399_v35, %s3389_s20  ;;  %s2658_s20 = scalar_lea.vmem %s2657_s2, 256 }
 0xaf8   : > { %p2660_p1 = scmp.lt.s32.totalorder %s2658_s20, %s2652_s19 }
 0xafa   : > { %p2661_p2 = por %p2660_p1, %p2659_p0 }
 0xafc   : > { %p2662_p3 = pnand %p2661_p2, %p2655_p13 }
 0xb6e   : > { %v2203_v37 = vpop.xlane.xlu0 %2202 }
 0xb6f   : > { %v2204_v39 = vmul.f32 0.03125, %v2203_v37 }
 0xb71   : > { %v2205_v40 = vsub.f32 %v2198_v63, %v2204_v39 }
 0xb72   : > { %v635_v42 = vpop.permute.xlu0 %634 }
 0xb73   : > { %638 = vst.msk [vmem:[%s529_s26] sm:$0xf] %vm637_vm9, %v635_v42  ;;  %v2206_v43 = vmul.f32 %v2205_v40, %v2205_v40 }
 0xb75   : > { %v2207_v45 = vsel %vm534_vm0, %v2206_v43, 0.0 }
 0xb76   : > { %2208 = vadd.xlane.f32.xlu1 %v2207_v45 }
 0xb87   : > { %639 = vrot.lane.b32.xlu1 %v2399_v35, %s3391_s29 }
 0xc03   : > { %v2209_v22 = vpop.xlane.xlu1 %2208 }
 0xc04   : > { %v2210_v29 = vmul.f32 0.03125, %v2209_v22 }
 0xc06   : > { %v2211_v57 = vadd.f32 1e-05, %v2210_v29 }
 0xc07   : > { %v640_v58 = vpop.permute.xlu1 %639 }
 0xc08   : > { %2649 = vrsqrt.f32 %v2211_v57  ;;  %2350 = vst.msk [vmem:[%s529_s26 + $0x4] sm:$0xf] %vm637_vm9, %v640_v58  ;;  %s3392_s26 = sand.u32 1, %s2706_s22  }
 0xc09   : > { %s2230_s18 = scalar_lea.sflag [#allocation8], %s3392_s26 }
 0xc12   : > { %v2650_v46 = vpop.eup %2649 }
 0xc13   : > { %v2213_v49 = vmul.f32 %v2650_v46, %v2205_v40 }
 0xc15   : > { %v2220_v51 = vmul.f32 %v2392_v48, %v2213_v49 }
 0xc17   : > { %v2227_v28 = vadd.f32 %v2393_v50, %v2220_v51 }
 0xc19   : > { %2228 = vst.msk [vmem:[%s3198_s28] sm:$0xff] %vm534_vm0, %v2227_v28 }
 0xc1a   : > { %2665 = shalt.err (!%p2662_p3)
}
 0xc1b   : > { %s2666_s28 = scalar_lea.hbm %s3309_s3, 128  ;;  %s2670_s29 = scalar_lea.hbm %s3370_s15, 256 }
 0xc1c   : > { %p2667_p4 = scmp.ne.s32.totalorder %s3309_s3, %s2666_s28  ;;  %p2671_p9 = scmp.lt.u32.totalorder %s3309_s3, %s3370_s15 }
 0xc1d   : > { %p2672_p10 = scmp.lt.u32.totalorder %s2670_s29, %s2666_s28  ;;  %p2674_p12 = scmp.lt.u32.totalorder %s2666_s28, %s3309_s3 }
 0xc1e   : > { %p2668_p7 = pnand %p2667_p4, %p2854_p5 }
 0xc1f   : > { %p2673_p11 = por %p2672_p10, %p2671_p9 }
 0xc20   : > { %p2669_p8 = pneg %p2668_p7 }
 0xc21   : > { %p2675_p13 = por %p2674_p12, %p2673_p11 }
 0xc23   : > { %p2676_p0 = pnand %p2675_p13, %p2669_p8 }
 0xc25   : > { %2679 = shalt.err (!%p2676_p0)
}
 0xc26   : > { %2544 = dma.vmem_to_hbm [thread:$0]  (%p2854_p5), %s3311_s23, 128, %s3309_s3, %s2230_s18  }
 0xc27 PF: > { %p2550_p1 = scmp.ge.s32.totalorder %s2714_s24, 2  ;;  %s2263_s19 = sand.u32 1, %s2702_s21  }
 0xc28   : > { %s2264_s2 = scalar_lea.sflag [#allocation8], %s2263_s19 }
 0xc29   : > { %p2547_p2 = pnand %p2550_p1, %p2858_p6 }
 0xc2b   : > { %2697 = dma.done.wait (!%p2547_p2), %s2264_s2, 128  }
 0xc2c   : > { %2699 = vsyncadd (!%p2547_p2), %s2264_s2, 4294967168  ;;  %s3393_s20 = sld [smem:[#allocation10_spill]]  ;;  %s3394_s23 = sld [smem:[#allocation11_spill]] }
 0xc2d   : > { %p27_p3 = scmp.ge.s32.totalorder %s2841_s27, 4   ;;  %s3395_s21 = smov %s2706_s22 }
 0xc2e   : > { %s3397_s24 = smov %s2841_s27 }
 0xc2f   :  { %29 = sbr.rel (!%p27_p3) target bundleno = 8 (0x8), region = 128 }
 0xc32   : > { %s3396_s22 = smov %s3393_s20 }
 0xc36   :  { %2277 = vsyncpa [#allocation8], 1 }
 0xc37   :  { %2279 = vsyncpa [#allocation8 + $0x1], 1 }

// kernel: gpt2_role_forward.2
= control target key start
LH: loop header
LB: loop body
LE: loop exit
PB: predicated region body
PF: predicated region fallthrough
CT: control target
= control target key end

     0   :  { %s2672_s21 = smov 0   ;;  %s3112_s0 = inlined_call_operand.vmem [shape: f32[2,8,32], index: 0, kind: input, shape index: {}]   ;;  %s3113_s1 = inlined_call_operand.vmem [shape: f32[1,32], index: 1, kind: input, shape index: {}]   ;;  %s3114_s2 = inlined_call_operand.vmem [shape: f32[1,32], index: 2, kind: input, shape index: {}]   ;;  %s3115_s3 = inlined_call_operand.vmem [shape: bf16[32,96], index: 3, kind: input, shape index: {}]   ;;  %s3116_s4 = inlined_call_operand.vmem [shape: f32[1,96], index: 4, kind: input, shape index: {}]   ;;  %s3117_s5 = inlined_call_operand.vmem [shape: bf16[32,32], index: 5, kind: input, shape index: {}]   ;;  %s3118_s6 = inlined_call_operand.vmem [shape: f32[1,32], index: 6, kind: input, shape index: {}]   ;;  %s3119_s7 = inlined_call_operand.vmem [shape: f32[1,32], index: 7, kind: input, shape index: {}]   ;;  %s3120_s8 = inlined_call_operand.vmem [shape: f32[1,32], index: 8, kind: input, shape index: {}]   ;;  %s3121_s9 = inlined_call_operand.vmem [shape: bf16[128,32], index: 9, kind: input, shape index: {}]   ;;  %s3122_s10 = inlined_call_operand.vmem [shape: f32[1,128], index: 10, kind: input, shape index: {}]   ;;  %s3123_s11 = inlined_call_operand.vmem [shape: bf16[128,32], index: 11, kind: input, shape index: {}]   ;;  %s3124_s12 = inlined_call_operand.vmem [shape: f32[1,32], index: 12, kind: input, shape index: {}]   ;;  %s3125_s13 = inlined_call_operand.vmem [shape: f32[1,32], index: 13, kind: input, shape index: {}]   ;;  %s3126_s14 = inlined_call_operand.vmem [shape: f32[1,32], index: 14, kind: input, shape index: {}]   ;;  %s3127_s15 = inlined_call_operand.vmem [shape: f32[2,8,32], index: 15, kind: output, shape index: {0}]   ;;  %s3128_s16 = inlined_call_operand.vmem [shape: bf16[2,2,8,32], index: 16, kind: output, shape index: {1}]  }
   0x1   :  { %3129 = sst [smem:[#allocation7_spill]] %s3112_s0 }
   0x2 LB: > { %s2284_s13 = sadd.s32 4294967295, %s2571_s21   ;;  %p2288_p0 = scmp.ge.s32.totalorder %s2571_s21, 1  ;;  %s2571_s21 = sphi %s2672_s21, %s27_s21  }
   0x3   : > { %p464_p1 = scmp.lt.s32.totalorder %s2571_s21, 3 }
   0x5   : > { %p465_p2 = pnand %p2288_p0, %p464_p1 }
   0x6   : > { %p517_p3 = scmp.lt.s32.totalorder (!%p465_p2), %s2284_s13, 1  ;;  %vm534_vm0 = vcmask (!%p465_p2), 261120   ;;  %s3130_s24 = sld [smem:[#allocation7_spill]] (!%p465_p2)  ;;  %v2514_v7 = vld [vmem:[%s3115_s3] sm:$0xff] (!%p465_p2)   ;;  %v2573_v8 = vmov (!%p465_p2), 0.0   ;;  %vm2574_vm1 = vmmov (!%p465_p2), 0   ;;  %v660_v33 = vlaneseq (!%p465_p2) }
   0x7   : > { %468 = sbr.rel (%p465_p2) target bundleno = 2763 (0xacb), region = 80  ;;  %2386 = vmatprep.subr.bf16.mxu1 (!%p465_p2), %v2573_v8  ;;  %2390 = vmatprep.mubr.msk.bf16.mxu1 (!%p465_p2), %vm2574_vm1, %v2573_v8  ;;  %v2515_v9 = vld [vmem:[%s3115_s3 + $0x8] sm:$0xff] (!%p465_p2)   ;;  %v2293_v14 = vld [vmem:[%s3113_s1] ss:$0 sm:$0xff] (!%p465_p2)  ;;  %s2576_s22 = smov (!%p465_p2), 120   ;;  %vm1124_vm2 = vcmask (!%p465_p2), 64512  }
   0x8   : > { %2387 = vmatpush3.bf16.msra.mxu1 (!%p465_p2), %v2514_v7  ;;  %2412 = vmatprep.subr.bf16.mxu0 (!%p465_p2), %v2573_v8  ;;  %v2294_v16 = vld [vmem:[%s3114_s2] ss:$0 sm:$0xff] (!%p465_p2)  ;;  %s2577_s23 = smov (!%p465_p2), 112   ;;  %1125 = vst.msk [vmem:[#allocation6] sm:$0xff] (!%p465_p2), %vm1124_vm2, %v2573_v8  ;;  %1126 = vst.msk [vmem:[#allocation6 + $0x8] sm:$0xff] (!%p465_p2), %vm1124_vm2, %v2573_v8  ;;  %v2751_v38 = vshrl.u32 (!%p465_p2), %v660_v33, 7 }
   0x9   : > { %2388 = vmatprep.subr.bf16.mxu1 (!%p465_p2), %v2573_v8  ;;  %2414 = vmatprep.mubr.msk.bf16.mxu0 (!%p465_p2), %vm2574_vm1, %v2573_v8  ;;  %v2295_v20 = vld [vmem:[%s3116_s4] ss:$0 sm:$0xff] (!%p465_p2)  ;;  %1127 = vst.msk [vmem:[#allocation6 + $0x10] sm:$0xff] (!%p465_p2), %vm1124_vm2, %v2573_v8  ;;  %1128 = vst.msk [vmem:[#allocation6 + $0x18] sm:$0xff] (!%p465_p2), %vm1124_vm2, %v2573_v8  ;;  %v2579_v31 = vmov (!%p465_p2), 1983009808  }
   0xa   : > { %v658_v32 = vunpack.c.l.s4 (!%p465_p2), %v2579_v31  ;;  %v2580_v35 = vmov (!%p465_p2), 1934713408   ;;  %vm954_vm3 = vcmask (!%p465_p2), 60416   ;;  %vm1115_vm4 = vcmask (!%p465_p2), 7168   ;;  %s2583_s26 = smov (!%p465_p2), 64   ;;  %s2584_s0 = smov (!%p465_p2), 16  }
   0xb   : > { %v690_v36 = vunpack.c.l.s4 (!%p465_p2), %v2580_v35  ;;  %1120 = vst.msk [vmem:[#allocation5] sm:$0xff] (!%p465_p2), %vm1115_vm4, %v2573_v8  ;;  %1121 = vst.msk [vmem:[#allocation5 + $0x8] sm:$0xff] (!%p465_p2), %vm1115_vm4, %v2573_v8  ;;  %vm1461_vm6 = vcmask (!%p465_p2), 1043456   ;;  %s2585_s17 = smov (!%p465_p2), 8   ;;  %s2586_s18 = smov (!%p465_p2), 24   ;;  %vm1840_vm7 = vcmask (!%p465_p2), 130048  }
   0xc   : > { %2389 = vmatpush3.bf16.msra.mxu1 (!%p465_p2), %v2515_v9  ;;  %v659_v37 = vunpack.c.0.s8 (!%p465_p2), %v658_v32  ;;  %1122 = vst.msk [vmem:[#allocation5 + $0x10] sm:$0xff] (!%p465_p2), %vm1115_vm4, %v2573_v8  ;;  %1123 = vst.msk [vmem:[#allocation5 + $0x18] sm:$0xff] (!%p465_p2), %vm1115_vm4, %v2573_v8  ;;  %vm1842_vm8 = vcmask (!%p465_p2), 195584   ;;  %vm637_vm9 = vcmask (!%p465_p2), 257024  }
   0xd   : > { %2394 = vmatprep.subr.bf16.mxu1 (!%p465_p2), %v2573_v8  ;;  %v691_v40 = vunpack.c.0.s8 (!%p465_p2), %v690_v36 }
   0xe   : > { %s3132_s13 = smov (!%p517_p3, %s2284_s13), 1  ;;  %v2754_v41 = vsub.s32 %v659_v37, %v2751_v38 }
   0xf   : > { %s2680_s14 = sshll.u32 %s3132_s13, 3  ;;  %s2575_s13 = smov 104   ;;  %v2757_v47 = vsub.s32 %v691_v40, %v2751_v38 }
  0x10   : > { %s2686_s25 = scalar_lea.vmem %s3130_s24, %s2680_s14  ;;  %s2578_s24 = smov 96  }
  0x11   : > { %v531_v0 = vld [vmem:[%s2686_s25] sm:$0xff]  ;;  %s3010_s28 = scalar_lea.vmem %s3127_s15, %s2680_s14  ;;  %s529_s27 = scalar_lea.vmem %s3128_s16, %s2680_s14 }
  0x12   : > { %v535_v1 = vsel %vm534_vm0, %v531_v0, 0.0 }
  0x13   : > { %536 = vadd.xlane.f32.xlu0 %v535_v1 }
  0xa0   : > { %v537_v2 = vpop.xlane.xlu0 %536 }
  0xa1   : > { %v539_v3 = vmul.f32 0.03125, %v537_v2 }
  0xa3   : > { %v540_v4 = vsub.f32 %v531_v0, %v539_v3 }
  0xa5   : > { %v541_v5 = vmul.f32 %v540_v4, %v540_v4 }
  0xa7   : > { %v542_v6 = vsel %vm534_vm0, %v541_v5, 0.0 }
  0xa8   : > { %543 = vadd.xlane.f32.xlu0 %v542_v6 }
 0x135   : > { %v544_v10 = vpop.xlane.xlu0 %543 }
 0x136   : > { %v545_v11 = vmul.f32 0.03125, %v544_v10 }
 0x138   : > { %v546_v12 = vadd.f32 1e-05, %v545_v11 }
 0x13a   : > { %2534 = vrsqrt.f32 %v546_v12 }
 0x144   : > { %v2535_v13 = vpop.eup %2534 }
 0x145   : > { %v548_v15 = vmul.f32 %v2535_v13, %v540_v4 }
 0x147   : > { %v555_v17 = vmul.f32 %v2293_v14, %v548_v15 }
 0x149   : > { %v562_v18 = vadd.f32 %v2294_v16, %v555_v17 }
 0x14b   : > { %v563_v19 = vpack.c.bf16 %v562_v18, %v562_v18 }
 0x14d   : > { %2391 = vmatmul.mubr.msk.bf16.vlgmr.msra.gmra.mrb[0].mxu1 %vm534_vm0, %v563_v19 }
 0x14e   : > { %2396 = vmatprep.mubr.msk.bf16.mxu1 %vm2574_vm1, %v2573_v8 }
 0x220   : > { %v624_v21 = vpop.f32.mrb[0].mxu1 }
 0x221   : > { %v2717_v22 = vadd.f32 %v2295_v20, %v624_v21  ;;  %v2392_v23 = vpop.f32.mrb[1].mxu1 }
 0x222   : > { %v627_v24 = vpop.f32.mrb[2].mxu1 }
 0x223   : > { %800 = vrot.lane.b32.xlu0 %v2717_v22, %s2575_s13  ;;  %796 = vrot.lane.b32.xlu1 %v2717_v22, %s2576_s22  ;;  %v2393_v25 = vpop.f32.mrb[3].mxu1  ;;  %v2722_v26 = vmul.f32 0.35355338, %v2717_v22 }
 0x227   : > { %798 = vrot.lane.b32.xlu1 %v2717_v22, %s2577_s23  ;;  %652 = vrot.lane.b32.xlu0 %v2722_v26, %s2575_s13 }
 0x22b   : > { %802 = vrot.lane.b32.xlu1 %v2717_v22, %s2578_s24 }
 0x295   : > { %v2728_v27 = vpop.permute.xlu1 %796  ;;  %v2736_v29 = vpop.permute.xlu0 %800 }
 0x296   : > { %804 = vrot.lane.b32.xlu1 %v2728_v27, %s2578_s24 }
 0x299   : > { %v2732_v28 = vpop.permute.xlu1 %798  ;;  %v653_v57 = vpop.permute.xlu0 %652 }
 0x29a   : > { %806 = vrot.lane.b32.xlu1 %v2732_v28, %s2578_s24 }
 0x29d   : > { %v803_v30 = vpop.permute.xlu1 %802 }
 0x29e   : > { %808 = vrot.lane.b32.xlu1 %v2736_v29, %s2578_s24 }
 0x2a2   : > { %646 = vrot.lane.b32.xlu1 %v2722_v26, %s2576_s22 }
 0x2a6   : > { %649 = vrot.lane.b32.xlu1 %v2722_v26, %s2577_s23 }
 0x308   : > { %v805_v34 = vpop.permute.xlu1 %804 }
 0x30c   : > { %v807_v39 = vpop.permute.xlu1 %806 }
 0x30d   : > { %v814_v42 = vcombine.low %v803_v30, %v807_v39  ;;  %v815_v43 = vcombine.high %v803_v30, %v807_v39 }
 0x30f   : > { %v822_v48 = vrot.slane %v814_v42, %v2754_v41  ;;  %v829_v49 = vrot.slane %v815_v43, %v2754_v41 }
 0x310   : > { %v809_v44 = vpop.permute.xlu1 %808 }
 0x311   : > { %v830_v45 = vcombine.low %v805_v34, %v809_v44  ;;  %v831_v46 = vcombine.high %v805_v34, %v809_v44 }
 0x313   : > { %v838_v50 = vrot.slane %v830_v45, %v2754_v41  ;;  %v845_v51 = vrot.slane %v831_v46, %v2754_v41 }
 0x314   : > { %v647_v52 = vpop.permute.xlu1 %646 }
 0x315   : > { %v846_v53 = vcombine.low %v822_v48, %v838_v50  ;;  %v847_v54 = vcombine.high %v822_v48, %v838_v50  ;;  %v862_v55 = vcombine.low %v829_v49, %v845_v51  ;;  %v863_v56 = vcombine.high %v829_v49, %v845_v51 }
 0x316   : > { %v671_v62 = vcombine.low %v647_v52, %v653_v57  ;;  %v672_v63 = vcombine.high %v647_v52, %v653_v57 }
 0x317   : > { %v854_v58 = vrot.slane %v846_v53, %v2757_v47  ;;  %v861_v59 = vrot.slane %v847_v54, %v2757_v47  ;;  %v870_v60 = vrot.slane %v862_v55, %v2757_v47  ;;  %v877_v61 = vrot.slane %v863_v56, %v2757_v47 }
 0x318   : > { %v650_v0 = vpop.permute.xlu1 %649  ;;  %v679_v12 = vrot.slane %v671_v62, %v2754_v41  ;;  %v686_v13 = vrot.slane %v672_v63, %v2754_v41 }
 0x319   : > { %v882_v1 = vcombine.low %v854_v58, %v861_v59  ;;  %v2303_v2 = vcombine.high %v854_v58, %v861_v59  ;;  %v898_v3 = vcombine.low %v870_v60, %v877_v61  ;;  %v2304_v4 = vcombine.high %v870_v60, %v877_v61 }
 0x31a   : > { %v655_v5 = vcombine.low %v2722_v26, %v650_v0  ;;  %v656_v6 = vcombine.high %v2722_v26, %v650_v0 }
 0x31b   : > { %v889_v7 = vrot.slane %v882_v1, %v2754_v41  ;;  %v897_v9 = vrot.slane %v2303_v2, %v2754_v41  ;;  %v905_v10 = vrot.slane %v898_v3, %v2754_v41  ;;  %v913_v11 = vrot.slane %v2304_v4, %v2754_v41 }
 0x31c   : > { %v663_v14 = vrot.slane %v655_v5, %v2754_v41  ;;  %v670_v15 = vrot.slane %v656_v6, %v2754_v41 }
 0x31d   : > { %v914_v16 = vcombine.low %v889_v7, %v897_v9  ;;  %v915_v17 = vcombine.high %v889_v7, %v897_v9  ;;  %v930_v18 = vcombine.low %v905_v10, %v913_v11  ;;  %v931_v19 = vcombine.high %v905_v10, %v913_v11 }
 0x31e   : > { %v687_v20 = vcombine.low %v663_v14, %v679_v12  ;;  %v688_v21 = vcombine.high %v663_v14, %v679_v12  ;;  %v703_v23 = vcombine.low %v670_v15, %v686_v13  ;;  %v704_v24 = vcombine.high %v670_v15, %v686_v13 }
 0x31f   : > { %v922_v25 = vrot.slane %v914_v16, %v2757_v47  ;;  %v929_v26 = vrot.slane %v915_v17, %v2757_v47  ;;  %v938_v30 = vrot.slane %v930_v18, %v2757_v47  ;;  %v945_v31 = vrot.slane %v931_v19, %v2757_v47 }
 0x320   : > { %v695_v32 = vrot.slane %v687_v20, %v2757_v47  ;;  %v702_v34 = vrot.slane %v688_v21, %v2757_v47  ;;  %v711_v35 = vrot.slane %v703_v23, %v2757_v47  ;;  %v718_v36 = vrot.slane %v704_v24, %v2757_v47 }
 0x321   : > { %v946_v37 = vcombine.low %v922_v25, %v938_v30  ;;  %v947_v39 = vcombine.high %v922_v25, %v938_v30  ;;  %v948_v40 = vcombine.low %v929_v26, %v945_v31  ;;  %v949_v42 = vcombine.high %v929_v26, %v945_v31 }
 0x322   : > { %v723_v43 = vcombine.low %v695_v32, %v702_v34  ;;  %v2301_v44 = vcombine.high %v695_v32, %v702_v34  ;;  %v739_v45 = vcombine.low %v711_v35, %v718_v36  ;;  %v2302_v46 = vcombine.high %v711_v35, %v718_v36 }
 0x323   : > { %v950_v48 = vpack.c.bf16 %v946_v37, %v946_v37  ;;  %v951_v49 = vpack.c.bf16 %v947_v39, %v947_v39  ;;  %v952_v50 = vpack.c.bf16 %v948_v40, %v948_v40  ;;  %v953_v51 = vpack.c.bf16 %v949_v42, %v949_v42 }
 0x324   : > { %v730_v52 = vrot.slane %v723_v43, %v2754_v41  ;;  %v738_v53 = vrot.slane %v2301_v44, %v2754_v41  ;;  %v746_v54 = vrot.slane %v739_v45, %v2754_v41  ;;  %v754_v55 = vrot.slane %v2302_v46, %v2754_v41 }
 0x325   : > { %955 = vst.msk [vmem:[#allocation2] sm:$0xf] %vm954_vm3, %v950_v48  ;;  %956 = vst.msk [vmem:[#allocation2 + $0x4] sm:$0xf] %vm954_vm3, %v951_v49  ;;  %v2581_v17 = vmov -inf   ;;  %v1132_v18 = vand.u32 127, %v660_v33 }
 0x326   : > { %957 = vst.msk [vmem:[#allocation2 + $0x8] sm:$0xf] %vm954_vm3, %v952_v50  ;;  %958 = vst.msk [vmem:[#allocation2 + $0xc] sm:$0xf] %vm954_vm3, %v953_v51  ;;  %v755_v56 = vcombine.low %v730_v52, %v738_v53  ;;  %v771_v57 = vcombine.low %v746_v54, %v754_v55  ;;  %v756_v58 = vcombine.high %v730_v52, %v738_v53  ;;  %v2582_v50 = vmov 0  }
 0x327   : > { %v772_v59 = vcombine.high %v746_v54, %v754_v55  ;;  %1116 = vst.msk [vmem:[#allocation4] sm:$0xff] %vm1115_vm4, %v2581_v17  ;;  %1117 = vst.msk [vmem:[#allocation4 + $0x8] sm:$0xff] %vm1115_vm4, %v2581_v17  ;;  %vm1327_vm5 = vcmp.le.s32.totalorder %v1132_v18, %v2751_v38  ;;  %2512 = vset.pattern.permute.xlu1 %v2582_v50  ;;  %2513 = vset.pattern.permute.xlu0 %v2582_v50 }
 0x328   : > { %v763_v60 = vrot.slane %v755_v56, %v2757_v47  ;;  %v779_v61 = vrot.slane %v771_v57, %v2757_v47  ;;  %v770_v62 = vrot.slane %v756_v58, %v2757_v47  ;;  %1118 = vst.msk [vmem:[#allocation4 + $0x10] sm:$0xff] %vm1115_vm4, %v2581_v17  ;;  %1119 = vst.msk [vmem:[#allocation4 + $0x18] sm:$0xff] %vm1115_vm4, %v2581_v17 }
 0x329   : > { %v786_v63 = vrot.slane %v772_v59, %v2757_v47 }
 0x32a   : > { %v787_v4 = vcombine.low %v763_v60, %v779_v61  ;;  %v788_v11 = vcombine.high %v763_v60, %v779_v61 }
 0x32b   : > { %v790_v5 = vcombine.high %v770_v62, %v786_v63  ;;  %v789_v15 = vcombine.low %v770_v62, %v786_v63 }
 0x32c   : > { %v1133_v0 = vld [vmem:[#allocation2] sm:$0xf]  ;;  %v1134_v6 = vld [vmem:[#allocation2 + $0x4] sm:$0xf]  ;;  %v791_v7 = vpack.c.bf16 %v787_v4, %v787_v4  ;;  %v792_v13 = vpack.c.bf16 %v788_v11, %v788_v11 }
 0x32d   : > { %v1136_v1 = vld [vmem:[#allocation2 + $0xc] sm:$0xf]  ;;  %v1145_v2 = vsel %vm1124_vm2, %v1133_v0, 0  ;;  %v794_v9 = vpack.c.bf16 %v790_v5, %v790_v5  ;;  %v1191_v10 = vsel %vm1124_vm2, %v1134_v6, 0  ;;  %v1135_v12 = vld [vmem:[#allocation2 + $0x8] sm:$0xf]  ;;  %v793_v16 = vpack.c.bf16 %v789_v15, %v789_v15 }
 0x32e   : > { %v1283_v3 = vsel %vm1124_vm2, %v1136_v1, 0  ;;  %2395 = vmatpush3.bf16.xpose.msra.mxu1 %v1145_v2  ;;  %v1237_v14 = vsel %vm1124_vm2, %v1135_v12, 0  ;;  %v2863_v38 = vld [vmem:[#allocation4] sm:$0xff] }
 0x32f   : > { %2413 = vmatpush3.bf16.xpose.msra.mxu0 %v1283_v3  ;;  %2400 = vmatprep.subr.bf16.mxu1 %v2573_v8  ;;  %v2868_v53 = vld [vmem:[#allocation4 + $0x18] sm:$0xff]  ;;  %v2892_v59 = vld [vmem:[#allocation4 + $0x10] sm:$0xff] }
 0x330   : > { %2424 = vmatprep.subr.bf16.mxu0 %v2573_v8 }
 0x335   : > { %2397 = vmatmul.mubr.msk.bf16.vlgmr.msra.gmra.mrb[4].mxu1 %vm1124_vm2, %v791_v7 }
 0x336   : > { %2415 = vmatmul.mubr.msk.bf16.vlgmr.msra.gmra.mrb[0].mxu0 %vm1124_vm2, %v794_v9  ;;  %2401 = vmatpush3.bf16.xpose.msra.mxu1 %v1191_v10 }
 0x337   : > { %2402 = vmatprep.mubr.msk.bf16.mxu1 %vm2574_vm1, %v2573_v8  ;;  %2406 = vmatprep.subr.bf16.mxu1 %v2573_v8 }
 0x338   : > { %2426 = vmatprep.mubr.msk.bf16.mxu0 %vm2574_vm1, %v2573_v8 }
 0x33d   : > { %2403 = vmatmul.mubr.msk.bf16.vlgmr.msra.gmra.mrb[8].mxu1 %vm1124_vm2, %v792_v13 }
 0x33e   : > { %2407 = vmatpush3.bf16.xpose.msra.mxu1 %v1237_v14  ;;  %2408 = vmatprep.mubr.msk.bf16.mxu1 %vm2574_vm1, %v2573_v8 }
 0x33f   : > { %2418 = vmatprep.subr.bf16.mxu1 %v2573_v8 }
 0x345   : > { %2409 = vmatmul.mubr.msk.bf16.vlgmr.msra.gmra.mrb[12].mxu1 %vm1124_vm2, %v793_v16 }
 0x346   : > { %2420 = vmatprep.mubr.msk.bf16.mxu1 %vm2574_vm1, %v2573_v8 }
 0x408   : > { %v1181_v19 = vpop.f32.mrb[4].mxu1 }
 0x409   : > { %v1319_v20 = vpop.f32.mrb[0].mxu0  ;;  %v2833_v21 = vsel %vm1327_vm5, %v1181_v19, -10000.0  ;;  %v2398_v24 = vpop.f32.mrb[5].mxu1 }
 0x40a   : > { %v2837_v23 = vsel %vm1327_vm5, %v1319_v20, -10000.0  ;;  %v2416_v25 = vpop.f32.mrb[1].mxu0  ;;  %v1184_v26 = vpop.f32.mrb[6].mxu1  ;;  %v1338_v31 = vsel %vm1124_vm2, %v2833_v21, -inf }
 0x40b   : > { %v1322_v30 = vpop.f32.mrb[2].mxu0  ;;  %1339 = vmax.xlane.f32.xlu1 %v1338_v31  ;;  %v2399_v32 = vpop.f32.mrb[7].mxu1  ;;  %v1347_v34 = vsel %vm1124_vm2, %v2837_v23, -inf }
 0x40c   : > { %v2417_v33 = vpop.f32.mrb[3].mxu0 }
 0x40f   : > { %1348 = vmax.xlane.f32.xlu1 %v1347_v34 }
 0x410   : > { %v1227_v35 = vpop.f32.mrb[8].mxu1 }
 0x411   : > { %v2845_v36 = vsel %vm1327_vm5, %v1227_v35, -10000.0  ;;  %v2404_v37 = vpop.f32.mrb[9].mxu1 }
 0x412   : > { %v1230_v39 = vpop.f32.mrb[10].mxu1  ;;  %v1341_v40 = vsel %vm1124_vm2, %v2845_v36, -inf }
 0x413   : > { %1342 = vmax.xlane.f32.xlu0 %v1341_v40  ;;  %v2405_v42 = vpop.f32.mrb[11].mxu1 }
 0x418   : > { %v1273_v43 = vpop.f32.mrb[12].mxu1 }
 0x419   : > { %v2851_v44 = vsel %vm1327_vm5, %v1273_v43, -10000.0  ;;  %v2410_v45 = vpop.f32.mrb[13].mxu1 }
 0x41a   : > { %v1276_v46 = vpop.f32.mrb[14].mxu1  ;;  %v1344_v48 = vsel %vm1124_vm2, %v2851_v44, -inf }
 0x41b   : > { %1345 = vmax.xlane.f32.xlu0 %v1344_v48  ;;  %v2411_v49 = vpop.f32.mrb[15].mxu1 }
 0x420   : > { %961 = vrot.lane.b32.xlu1 %v2728_v27, %s2583_s26 }
 0x424   : > { %963 = vrot.lane.b32.xlu1 %v2732_v28, %s2583_s26 }
 0x431   : > { %959 = vrot.lane.b32.xlu0 %v2717_v22, %s2583_s26 }
 0x435   : > { %965 = vrot.lane.b32.xlu0 %v2736_v29, %s2583_s26  ;;  %v2878_v29 = vld [vmem:[#allocation4 + $0x8] sm:$0xff] }
 0x498   : > { %v1340_v51 = vpop.xlane.xlu1 %1339 }
 0x499   : > { %v2866_v52 = vmax.f32 %v2863_v38, %v1340_v51 }
 0x49b   : > { %v1354_v27 = vsub.f32 %v2863_v38, %v2866_v52  ;;  %1651 = vst.msk [vmem:[#allocation4] sm:$0xff] %vm1115_vm4, %v2866_v52  ;;  %1368 = vperm.xlu1 %2512, %v2866_v52  }
 0x49c   : > { %v1349_v28 = vpop.xlane.xlu1 %1348 }
 0x49d   : > { %v2876_v54 = vmax.f32 %v2868_v53, %v1349_v28 }
 0x49f   : > { %v1357_v55 = vsub.f32 %v2868_v53, %v2876_v54  ;;  %1654 = vst.msk [vmem:[#allocation4 + $0x18] sm:$0xff] %vm1115_vm4, %v2876_v54 }
 0x4a0   : > { %v1343_v56 = vpop.xlane.xlu0 %1342  ;;  %v962_v60 = vpop.permute.xlu1 %961 }
 0x4a1   : > { %v2885_v57 = vmax.f32 %v2878_v29, %v1343_v56  ;;  %v1364_v52 = vmul.f32 1.442695, %v1357_v55 }
 0x4a3   : > { %v1355_v58 = vsub.f32 %v2878_v29, %v2885_v57  ;;  %1652 = vst.msk [vmem:[#allocation4 + $0x8] sm:$0xff] %vm1115_vm4, %v2885_v57  ;;  %1373 = vperm.xlu0 %2513, %v2885_v57   ;;  %v1400_v29 = vld [vmem:[#allocation5 + $0x10] sm:$0xff] }
 0x4a4   : > { %v964_v1 = vpop.permute.xlu1 %963 }
 0x4a5   : > { %v1360_v53 = vmul.f32 1.442695, %v1355_v58 }
 0x4a8   : > { %v1346_v61 = vpop.xlane.xlu0 %1345 }
 0x4a9   : > { %v2895_v62 = vmax.f32 %v2892_v59, %v1346_v61 }
 0x4ab   : > { %v1356_v63 = vsub.f32 %v2892_v59, %v2895_v62  ;;  %1653 = vst.msk [vmem:[#allocation4 + $0x10] sm:$0xff] %vm1115_vm4, %v2895_v62  ;;  %1378 = vperm.xlu1 %2512, %v2895_v62  }
 0x4ac   : > { %v960_v0 = vpop.permute.xlu0 %959 }
 0x4ad   : > { %v971_v2 = vcombine.low %v960_v0, %v964_v1  ;;  %v972_v3 = vcombine.high %v960_v0, %v964_v1 }
 0x4af   : > { %1383 = vperm.xlu1 %2512, %v2876_v54   ;;  %v979_v7 = vrot.slane %v971_v2, %v2754_v41  ;;  %v986_v9 = vrot.slane %v972_v3, %v2754_v41 }
 0x4b0   : > { %v966_v4 = vpop.permute.xlu0 %965 }
 0x4b1   : > { %v987_v5 = vcombine.low %v962_v60, %v966_v4  ;;  %v988_v6 = vcombine.high %v962_v60, %v966_v4 }
 0x4b3   : > { %v995_v10 = vrot.slane %v987_v5, %v2754_v41  ;;  %v1002_v11 = vrot.slane %v988_v6, %v2754_v41 }
 0x4b5   : > { %v1003_v12 = vcombine.low %v979_v7, %v995_v10  ;;  %v1004_v13 = vcombine.high %v979_v7, %v995_v10  ;;  %v1019_v14 = vcombine.low %v986_v9, %v1002_v11  ;;  %v1020_v15 = vcombine.high %v986_v9, %v1002_v11 }
 0x4b7   : > { %v1011_v16 = vrot.slane %v1003_v12, %v2757_v47  ;;  %v1018_v17 = vrot.slane %v1004_v13, %v2757_v47  ;;  %v1027_v18 = vrot.slane %v1019_v14, %v2757_v47  ;;  %v1034_v19 = vrot.slane %v1020_v15, %v2757_v47 }
 0x4b9   : > { %v1039_v20 = vcombine.low %v1011_v16, %v1018_v17  ;;  %v2305_v24 = vcombine.high %v1011_v16, %v1018_v17  ;;  %v1055_v25 = vcombine.low %v1027_v18, %v1034_v19  ;;  %v2306_v26 = vcombine.high %v1027_v18, %v1034_v19 }
 0x4bb   : > { %v1046_v30 = vrot.slane %v1039_v20, %v2754_v41  ;;  %v1054_v31 = vrot.slane %v2305_v24, %v2754_v41  ;;  %v1062_v33 = vrot.slane %v1055_v25, %v2754_v41  ;;  %v1070_v32 = vrot.slane %v2306_v26, %v2754_v41 }
 0x4bc   : > { %v1358_v26 = vmul.f32 1.442695, %v1354_v27 }
 0x4bd   : > { %v1071_v34 = vcombine.low %v1046_v30, %v1054_v31  ;;  %v1072_v35 = vcombine.high %v1046_v30, %v1054_v31  ;;  %v1087_v37 = vcombine.low %v1062_v33, %v1070_v32  ;;  %v1088_v39 = vcombine.high %v1062_v33, %v1070_v32 }
 0x4be   : > { %v1362_v30 = vmul.f32 1.442695, %v1356_v63  ;;  %v1398_v63 = vld [vmem:[#allocation5] sm:$0xff] }
 0x4bf   : > { %v1079_v40 = vrot.slane %v1071_v34, %v2757_v47  ;;  %v1086_v42 = vrot.slane %v1072_v35, %v2757_v47  ;;  %v1095_v43 = vrot.slane %v1087_v37, %v2757_v47  ;;  %v1102_v45 = vrot.slane %v1088_v39, %v2757_v47  ;;  %v1399_v39 = vld [vmem:[#allocation5 + $0x8] sm:$0xff] }
 0x4c1   : > { %v1103_v46 = vcombine.low %v1079_v40, %v1095_v43  ;;  %v1104_v48 = vcombine.high %v1079_v40, %v1095_v43  ;;  %v1105_v49 = vcombine.low %v1086_v42, %v1102_v45  ;;  %v1106_v50 = vcombine.high %v1086_v42, %v1102_v45 }
 0x4c3   : > { %v1107_v51 = vpack.c.bf16 %v1103_v46, %v1103_v46  ;;  %v1108_v28 = vpack.c.bf16 %v1104_v48, %v1104_v48  ;;  %v1109_v56 = vpack.c.bf16 %v1105_v49, %v1105_v49  ;;  %v1110_v60 = vpack.c.bf16 %v1106_v50, %v1106_v50  ;;  %v1401_v46 = vld [vmem:[#allocation5 + $0x18] sm:$0xff] }
 0x4c5   : > { %1111 = vst.msk [vmem:[#allocation3] sm:$0xf] %vm954_vm3, %v1107_v51  ;;  %1112 = vst.msk [vmem:[#allocation3 + $0x4] sm:$0xf] %vm954_vm3, %v1108_v28 }
 0x4c6   : > { %1113 = vst.msk [vmem:[#allocation3 + $0x8] sm:$0xf] %vm954_vm3, %v1109_v56  ;;  %1114 = vst.msk [vmem:[#allocation3 + $0xc] sm:$0xf] %vm954_vm3, %v1110_v60 }
 0x4cc   : > { %v1137_v61 = vld [vmem:[#allocation3] sm:$0xf]  ;;  %v1138_v0 = vld [vmem:[#allocation3 + $0x4] sm:$0xf] }
 0x4cd   : > { %v1463_v1 = vsel %vm1461_vm6, %v1137_v61, 0  ;;  %v1509_v2 = vsel %vm1461_vm6, %v1138_v0, 0  ;;  %v1139_v11 = vld [vmem:[#allocation3 + $0x8] sm:$0xf]  ;;  %v1140_v20 = vld [vmem:[#allocation3 + $0xc] sm:$0xf] }
 0x4ce   : > { %2419 = vmatpush3.bf16.msra.mxu1 %v1463_v1  ;;  %2425 = vmatpush3.bf16.msra.mxu0 %v1509_v2  ;;  %v1601_v25 = vsel %vm1461_vm6, %v1140_v20, 0 }
 0x4cf   : > { %2430 = vmatprep.subr.bf16.mxu1 %v2573_v8  ;;  %2436 = vmatprep.subr.bf16.mxu0 %v2573_v8 }
 0x51a   : > { %v1369_v3 = vpop.permute.xlu1 %1368 }
 0x51b   : > { %v1386_v4 = vsub.f32 %v2833_v21, %v1369_v3  ;;  %v1555_v21 = vsel %vm1461_vm6, %v1139_v11, 0  ;;  %v1426_v3 = vld [vmem:[#allocation6] sm:$0xff] }
 0x51d   : > { %v1390_v5 = vmul.f32 1.442695, %v1386_v4 }
 0x51f   : > { %2536 = vpow2.f32 %v1390_v5 }
 0x522   : > { %v1374_v6 = vpop.permute.xlu0 %1373 }
 0x523   : > { %v1387_v7 = vsub.f32 %v2845_v36, %v1374_v6 }
 0x525   : > { %v1392_v9 = vmul.f32 1.442695, %v1387_v7 }
 0x527   : > { %2538 = vpow2.f32 %v1392_v9 }
 0x529   : > { %v2537_v10 = vpop.eup %2536 }
 0x52a   : > { %v1379_v12 = vpop.permute.xlu1 %1378  ;;  %v1406_v13 = vsel %vm1124_vm2, %v2537_v10, 0.0  ;;  %v1454_v14 = vpack.c.bf16 %v2537_v10, %v2537_v10 }
 0x52b   : > { %v1388_v15 = vsub.f32 %v2851_v44, %v1379_v12  ;;  %1407 = vadd.xlane.f32.xlu0 %v1406_v13  ;;  %v1427_v12 = vld [vmem:[#allocation6 + $0x8] sm:$0xff] }
 0x52c   : > { %2421 = vmatmul.mubr.msk.bf16.vlgmr.msra.gmra.mrb[16].mxu1 %vm1124_vm2, %v1454_v14 }
 0x52d   : > { %v1394_v16 = vmul.f32 1.442695, %v1388_v15  ;;  %2431 = vmatpush3.bf16.msra.mxu1 %v1555_v21  ;;  %2432 = vmatprep.mubr.msk.bf16.mxu1 %vm2574_vm1, %v2573_v8 }
 0x52e   : > { %v1384_v36 = vpop.permute.xlu1 %1383  ;;  %2442 = vmatprep.subr.bf16.mxu1 %v2573_v8 }
 0x52f   : > { %2540 = vpow2.f32 %v1394_v16  ;;  %v1389_v17 = vsub.f32 %v2837_v23, %v1384_v36 }
 0x531   : > { %v2539_v18 = vpop.eup %2538  ;;  %v1396_v19 = vmul.f32 1.442695, %v1389_v17 }
 0x532   : > { %v1409_v44 = vsel %vm1124_vm2, %v2539_v18, 0.0  ;;  %v1455_v24 = vpack.c.bf16 %v2539_v18, %v2539_v18 }
 0x533   : > { %2542 = vpow2.f32 %v1396_v19  ;;  %1410 = vadd.xlane.f32.xlu1 %v1409_v44  ;;  %v1428_v19 = vld [vmem:[#allocation6 + $0x10] sm:$0xff]  ;;  %v1429_v44 = vld [vmem:[#allocation6 + $0x18] sm:$0xff] }
 0x534   : > { %2427 = vmatmul.mubr.msk.bf16.vlgmr.msra.gmra.mrb[4].mxu0 %vm1124_vm2, %v1455_v24  ;;  %2544 = vpow2.f32 %v1358_v26 }
 0x535   : > { %2437 = vmatpush3.bf16.msra.mxu0 %v1601_v25  ;;  %2438 = vmatprep.mubr.msk.bf16.mxu0 %vm2574_vm1, %v2573_v8  ;;  %2546 = vpow2.f32 %v1362_v30 }
 0x536   : > { %2450 = vmatprep.subr.bf16.mxu0 %v2573_v8  ;;  %2548 = vpow2.f32 %v1364_v52 }
 0x537   : > { %2550 = vpow2.f32 %v1360_v53 }
 0x539   : > { %v2541_v23 = vpop.eup %2540 }
 0x53a   : > { %v1412_v31 = vsel %vm1124_vm2, %v2541_v23, 0.0  ;;  %v1456_v33 = vpack.c.bf16 %v2541_v23, %v2541_v23 }
 0x53b   : > { %1413 = vadd.xlane.f32.xlu0 %v1412_v31 }
 0x53c   : > { %2433 = vmatmul.mubr.msk.bf16.vlgmr.msra.gmra.mrb[20].mxu1 %vm1124_vm2, %v1456_v33 }
 0x53d   : > { %v2543_v38 = vpop.eup %2542  ;;  %2446 = vmatprep.mubr.msk.bf16.mxu1 %vm2574_vm1, %v2573_v8 }
 0x53e   : > { %v1415_v27 = vsel %vm1124_vm2, %v2543_v38, 0.0  ;;  %v1457_v32 = vpack.c.bf16 %v2543_v38, %v2543_v38  ;;  %v2545_v59 = vpop.eup %2544 }
 0x53f   : > { %1416 = vadd.xlane.f32.xlu0 %v1415_v27  ;;  %v2547_v54 = vpop.eup %2546  ;;  %v1402_v34 = vmul.f32 %v2545_v59, %v1398_v63 }
 0x540   : > { %2439 = vmatmul.mubr.msk.bf16.vlgmr.msra.gmra.mrb[8].mxu0 %vm1124_vm2, %v1457_v32  ;;  %v2549_v55 = vpop.eup %2548  ;;  %v1404_v57 = vmul.f32 %v2547_v54, %v1400_v29 }
 0x541   : > { %2466 = vmatprep.mubr.msk.bf16.mxu0 %vm2574_vm1, %v2573_v8  ;;  %v2551_v62 = vpop.eup %2550  ;;  %v1405_v50 = vmul.f32 %v2549_v55, %v1401_v46 }
 0x542   : > { %v1403_v40 = vmul.f32 %v2551_v62, %v1399_v39 }
 0x544   : > { %1432 = vperm.xlu1 %2512, %v2545_v59  }
 0x548   : > { %1442 = vperm.xlu1 %2512, %v2547_v54  }
 0x54c   : > { %1447 = vperm.xlu1 %2512, %v2549_v55  }
 0x555   : > { %1437 = vperm.xlu0 %2513, %v2551_v62  }
 0x5b8   : > { %v1408_v35 = vpop.xlane.xlu0 %1407 }
 0x5b9   : > { %v1418_v37 = vadd.f32 %v1408_v35, %v1402_v34 }
 0x5bb   : > { %1422 = vst.msk [vmem:[#allocation5] sm:$0xff] %vm1115_vm4, %v1418_v37 }
 0x5c0   : > { %v1411_v42 = vpop.xlane.xlu1 %1410 }
 0x5c1   : > { %v1419_v43 = vadd.f32 %v1411_v42, %v1403_v40 }
 0x5c2   : > { %v1659_v45 = vld [vmem:[#allocation5] sm:$0xff] }
 0x5c3   : > { %1423 = vst.msk [vmem:[#allocation5 + $0x8] sm:$0xff] %vm1115_vm4, %v1419_v43  ;;  %2552 = vrcp.f32 %v1659_v45 }
 0x5c4   : > { %v1433_v4 = vpop.permute.xlu1 %1432 }
 0x5c5   : > { %v1450_v5 = vmul.f32 %v1433_v4, %v1426_v3 }
 0x5c8   : > { %v1414_v58 = vpop.xlane.xlu0 %1413  ;;  %v1443_v36 = vpop.permute.xlu1 %1442 }
 0x5c9   : > { %v1420_v48 = vadd.f32 %v1414_v58, %v1404_v57  ;;  %v1452_v20 = vmul.f32 %v1443_v36, %v1428_v19 }
 0x5ca   : > { %v1660_v49 = vld [vmem:[#allocation5 + $0x8] sm:$0xff] }
 0x5cb   : > { %1424 = vst.msk [vmem:[#allocation5 + $0x10] sm:$0xff] %vm1115_vm4, %v1420_v48  ;;  %2554 = vrcp.f32 %v1660_v49 }
 0x5cc   : > { %v1417_v51 = vpop.xlane.xlu0 %1416  ;;  %v1448_v24 = vpop.permute.xlu1 %1447 }
 0x5cd   : > { %v2553_v28 = vpop.eup %2552  ;;  %v1421_v56 = vadd.f32 %v1417_v51, %v1405_v50  ;;  %v1453_v31 = vmul.f32 %v1448_v24, %v1429_v44 }
 0x5ce   : > { %1669 = vperm.xlu0 %2513, %v2553_v28  }
 0x5cf   : > { %1425 = vst.msk [vmem:[#allocation5 + $0x18] sm:$0xff] %vm1115_vm4, %v1421_v56 }
 0x5d2   : > { %v1661_v60 = vld [vmem:[#allocation5 + $0x10] sm:$0xff] }
 0x5d3   : > { %2556 = vrcp.f32 %v1661_v60 }
 0x5d4   : > { %v1438_v13 = vpop.permute.xlu0 %1437 }
 0x5d5   : > { %v2555_v61 = vpop.eup %2554  ;;  %v1451_v14 = vmul.f32 %v1438_v13, %v1427_v12 }
 0x5d6   : > { %1674 = vperm.xlu1 %2512, %v2555_v61   ;;  %v1662_v0 = vld [vmem:[#allocation5 + $0x18] sm:$0xff]  ;;  %v2516_v61 = vld [vmem:[%s3117_s5] sm:$0xff]  }
 0x5d7   : > { %2558 = vrcp.f32 %v1662_v0  ;;  %2443 = vmatpush3.bf16.msra.mxu1 %v2516_v61  ;;  %v2524_v61 = vld [vmem:[%s3121_s9 + $0x30] sm:$0xff]  }
 0x5d8   : > { %2444 = vmatprep.subr.bf16.mxu1 %v2573_v8 }
 0x5dd   : > { %v2557_v1 = vpop.eup %2556 }
 0x5de   : > { %1679 = vperm.xlu0 %2513, %v2557_v1  }
 0x5e1   : > { %v2559_v2 = vpop.eup %2558 }
 0x5e2   : > { %1684 = vperm.xlu1 %2512, %v2559_v2  }
 0x5ff   : > { %v1499_v6 = vpop.f32.mrb[16].mxu1 }
 0x600   : > { %v1643_v7 = vadd.f32 %v1499_v6, %v1450_v5  ;;  %v2422_v9 = vpop.f32.mrb[17].mxu1 }
 0x601   : > { %v1502_v10 = vpop.f32.mrb[18].mxu1  ;;  %v2517_v9 = vld [vmem:[%s3117_s5 + $0x8] sm:$0xff]  }
 0x602   : > { %1647 = vst.msk [vmem:[#allocation6] sm:$0xff] %vm1124_vm2, %v1643_v7  ;;  %v2423_v11 = vpop.f32.mrb[19].mxu1  ;;  %2445 = vmatpush3.bf16.msra.mxu1 %v2517_v9 }
 0x603   : > { %2470 = vmatprep.subr.bf16.mxu1 %v2573_v8 }
 0x607   : > { %v1545_v15 = vpop.f32.mrb[4].mxu0 }
 0x608   : > { %v1644_v21 = vadd.f32 %v1545_v15, %v1451_v14  ;;  %v2428_v16 = vpop.f32.mrb[5].mxu0 }
 0x609   : > { %v1548_v17 = vpop.f32.mrb[6].mxu0  ;;  %v1655_v34 = vld [vmem:[#allocation6] sm:$0xff] }
 0x60a   : > { %1648 = vst.msk [vmem:[#allocation6 + $0x8] sm:$0xff] %vm1124_vm2, %v1644_v21  ;;  %v2429_v18 = vpop.f32.mrb[7].mxu0 }
 0x60f   : > { %v1591_v25 = vpop.f32.mrb[20].mxu1 }
 0x610   : > { %v1645_v26 = vadd.f32 %v1591_v25, %v1452_v20  ;;  %v2434_v23 = vpop.f32.mrb[21].mxu1 }
 0x611   : > { %v1594_v30 = vpop.f32.mrb[22].mxu1  ;;  %v1656_v37 = vld [vmem:[#allocation6 + $0x8] sm:$0xff] }
 0x612   : > { %1649 = vst.msk [vmem:[#allocation6 + $0x10] sm:$0xff] %vm1124_vm2, %v1645_v26  ;;  %v2435_v33 = vpop.f32.mrb[23].mxu1 }
 0x613   : > { %v1637_v38 = vpop.f32.mrb[8].mxu0 }
 0x614   : > { %v1646_v52 = vadd.f32 %v1637_v38, %v1453_v31  ;;  %v2440_v27 = vpop.f32.mrb[9].mxu0  ;;  %v2317_v38 = vld [vmem:[%s3118_s6] ss:$0 sm:$0xff] }
 0x615   : > { %v1640_v32 = vpop.f32.mrb[10].mxu0 }
 0x616   : > { %1650 = vst.msk [vmem:[#allocation6 + $0x18] sm:$0xff] %vm1124_vm2, %v1646_v52  ;;  %v2441_v59 = vpop.f32.mrb[11].mxu0 }
 0x617   : > { %v2323_v59 = vld [vmem:[%s3124_s12] ss:$0 sm:$0xff] }
 0x619   : > { %v1657_v62 = vld [vmem:[#allocation6 + $0x10] sm:$0xff] }
 0x61d   : > { %v1658_v39 = vld [vmem:[#allocation6 + $0x18] sm:$0xff] }
 0x64d   : > { %v1670_v53 = vpop.permute.xlu0 %1669 }
 0x64e   : > { %v1687_v35 = vmul.f32 %v1670_v53, %v1655_v34 }
 0x655   : > { %v1675_v54 = vpop.permute.xlu1 %1674 }
 0x656   : > { %v1688_v42 = vmul.f32 %v1675_v54, %v1656_v37  ;;  %v2564_v54 = vld [vmem:[%s2686_s25] sm:$0xff] }
 0x657   : > { %v2518_v37 = vld [vmem:[%s3121_s9] sm:$0xff]  }
 0x65d   : > { %v1680_v55 = vpop.permute.xlu0 %1679 }
 0x65e   : > { %v1689_v63 = vmul.f32 %v1680_v55, %v1657_v62 }
 0x660   : > { %v1691_v43 = vcombine.low %v1687_v35, %v1689_v63  ;;  %v1692_v45 = vcombine.high %v1687_v35, %v1689_v63  ;;  %v2345_v35 = vpack.c.bf16 %v2717_v22, %v2717_v22  ;;  %v2520_v22 = vld [vmem:[%s3121_s9 + $0x10] sm:$0xff]  }
 0x661   : > { %v1685_v40 = vpop.permute.xlu1 %1684 }
 0x662   : > { %v1690_v29 = vmul.f32 %v1685_v40, %v1658_v39  ;;  %v1699_v46 = vrot.slane %v1691_v43, %v2754_v41  ;;  %v1706_v48 = vrot.slane %v1692_v45, %v2754_v41  ;;  %v2018_v39 = vsel %vm534_vm0, %v2518_v37, 0  ;;  %v2519_v40 = vld [vmem:[%s3121_s9 + $0x8] sm:$0xff]   ;;  %v2521_v45 = vld [vmem:[%s3121_s9 + $0x18] sm:$0xff]  }
 0x663   : > { %2451 = vmatpush3.bf16.xpose.msra.mxu0 %v2018_v39  ;;  %v2024_v43 = vsel %vm534_vm0, %v2520_v22, 0 }
 0x664   : > { %v1707_v57 = vcombine.low %v1688_v42, %v1690_v29  ;;  %v1708_v58 = vcombine.high %v1688_v42, %v1690_v29  ;;  %2452 = vmatprep.subr.bf16.mxu0 %v2573_v8  ;;  %v2021_v42 = vsel %vm534_vm0, %v2519_v40, 0  ;;  %v2027_v29 = vsel %vm534_vm0, %v2521_v45, 0 }
 0x666   : > { %v1715_v49 = vrot.slane %v1707_v57, %v2754_v41  ;;  %v1722_v50 = vrot.slane %v1708_v58, %v2754_v41  ;;  %v2522_v57 = vld [vmem:[%s3121_s9 + $0x20] sm:$0xff]  }
 0x667   : > { %v2030_v58 = vsel %vm534_vm0, %v2522_v57, 0 }
 0x668   : > { %v1723_v51 = vcombine.low %v1699_v46, %v1715_v49  ;;  %v1724_v28 = vcombine.high %v1699_v46, %v1715_v49  ;;  %v1739_v56 = vcombine.low %v1706_v48, %v1722_v50  ;;  %v1740_v60 = vcombine.high %v1706_v48, %v1722_v50 }
 0x66a   : > { %v1731_v0 = vrot.slane %v1723_v51, %v2757_v47  ;;  %v1738_v1 = vrot.slane %v1724_v28, %v2757_v47  ;;  %v1747_v2 = vrot.slane %v1739_v56, %v2757_v47  ;;  %v1754_v3 = vrot.slane %v1740_v60, %v2757_v47  ;;  %v2523_v56 = vld [vmem:[%s3121_s9 + $0x28] sm:$0xff]  }
 0x66b   : > { %2453 = vmatpush3.bf16.xpose.msra.mxu0 %v2021_v42  ;;  %v2033_v60 = vsel %vm534_vm0, %v2523_v56, 0 }
 0x66c   : > { %v1759_v4 = vcombine.low %v1731_v0, %v1738_v1  ;;  %v2315_v5 = vcombine.high %v1731_v0, %v1738_v1  ;;  %v1775_v6 = vcombine.low %v1747_v2, %v1754_v3  ;;  %v2316_v7 = vcombine.high %v1747_v2, %v1754_v3  ;;  %2454 = vmatprep.subr.bf16.mxu0 %v2573_v8  ;;  %v2525_v1 = vld [vmem:[%s3121_s9 + $0x38] sm:$0xff]   ;;  %v2526_v3 = vld [vmem:[%s3123_s11] sm:$0xff]  }
 0x66d   : > { %v2036_v0 = vsel %vm534_vm0, %v2524_v61, 0  ;;  %v2039_v2 = vsel %vm534_vm0, %v2525_v1, 0 }
 0x66e   : > { %v1766_v10 = vrot.slane %v1759_v4, %v2754_v41  ;;  %v1774_v11 = vrot.slane %v2315_v5, %v2754_v41  ;;  %v1782_v12 = vrot.slane %v1775_v6, %v2754_v41  ;;  %v1790_v13 = vrot.slane %v2316_v7, %v2754_v41 }
 0x670   : > { %v1792_v14 = vcombine.high %v1766_v10, %v1774_v11  ;;  %v1808_v15 = vcombine.high %v1782_v12, %v1790_v13  ;;  %v1791_v21 = vcombine.low %v1766_v10, %v1774_v11  ;;  %v1807_v16 = vcombine.low %v1782_v12, %v1790_v13  ;;  %v2321_v10 = vld [vmem:[%s3119_s7] ss:$0 sm:$0xff] }
 0x671   : > { %v2322_v12 = vld [vmem:[%s3120_s8] ss:$0 sm:$0xff] }
 0x672   : > { %v1806_v36 = vrot.slane %v1792_v14, %v2757_v47  ;;  %v1822_v17 = vrot.slane %v1808_v15, %v2757_v47  ;;  %v1799_v18 = vrot.slane %v1791_v21, %v2757_v47  ;;  %v1815_v19 = vrot.slane %v1807_v16, %v2757_v47  ;;  %v2527_v21 = vld [vmem:[%s3123_s11 + $0x8] sm:$0xff]   ;;  %v2528_v16 = vld [vmem:[%s3123_s11 + $0x10] sm:$0xff]  }
 0x673   : > { %2455 = vmatpush3.bf16.xpose.msra.mxu0 %v2024_v43 }
 0x674   : > { %v1825_v20 = vcombine.low %v1806_v36, %v1822_v17  ;;  %v1824_v44 = vcombine.high %v1799_v18, %v1815_v19  ;;  %v1823_v24 = vcombine.low %v1799_v18, %v1815_v19  ;;  %v1826_v41 = vcombine.high %v1806_v36, %v1822_v17  ;;  %2456 = vmatprep.subr.bf16.mxu0 %v2573_v8  ;;  %v2529_v36 = vld [vmem:[%s3123_s11 + $0x18] sm:$0xff]   ;;  %v2530_v17 = vld [vmem:[%s3123_s11 + $0x20] sm:$0xff]   ;;  %v2531_v18 = vld [vmem:[%s3123_s11 + $0x28] sm:$0xff]  }
 0x675   : > { %v2532_v19 = vld [vmem:[%s3123_s11 + $0x30] sm:$0xff]  }
 0x676   : > { %1832 = vrot.lane.b32.xlu1 %v1825_v20, %s2584_s0  ;;  %1828 = vrot.lane.b32.xlu0 %v1824_v44, %s2585_s17  ;;  %v2533_v20 = vld [vmem:[%s3123_s11 + $0x38] sm:$0xff]   ;;  %v2324_v44 = vld [vmem:[%s3122_s10] ss:$0 sm:$0xff] }
 0x67a   : > { %1836 = vrot.lane.b32.xlu0 %v1826_v41, %s2586_s18 }
 0x67b   : > { %2457 = vmatpush3.bf16.xpose.msra.mxu0 %v2027_v29 }
 0x67c   : > { %2458 = vmatprep.subr.bf16.mxu0 %v2573_v8 }
 0x683   : > { %2459 = vmatpush3.bf16.xpose.msra.mxu0 %v2030_v58 }
 0x684   : > { %2460 = vmatprep.subr.bf16.mxu0 %v2573_v8 }
 0x68b   : > { %2461 = vmatpush3.bf16.xpose.msra.mxu0 %v2033_v60 }
 0x68c   : > { %2462 = vmatprep.subr.bf16.mxu0 %v2573_v8 }
 0x693   : > { %2463 = vmatpush3.bf16.xpose.msra.mxu0 %v2036_v0 }
 0x694   : > { %2464 = vmatprep.subr.bf16.mxu0 %v2573_v8 }
 0x69b   : > { %2465 = vmatpush3.bf16.xpose.msra.mxu0 %v2039_v2 }
 0x6e8   : > { %v1829_v25 = vpop.permute.xlu0 %1828  ;;  %v1833_v26 = vpop.permute.xlu1 %1832 }
 0x6e9   : > { %v1839_v23 = vsel %vm1124_vm2, %v1823_v24, %v1829_v25 }
 0x6ea   : > { %v1841_v47 = vsel %vm1840_vm7, %v1839_v23, %v1833_v26 }
 0x6ec   : > { %v1837_v30 = vpop.permute.xlu0 %1836 }
 0x6ed   : > { %v1843_v31 = vsel %vm1842_vm8, %v1841_v47, %v1837_v30 }
 0x6ee   : > { %v1844_v33 = vpack.c.bf16 %v1843_v31, %v1843_v31 }
 0x6f0   : > { %2447 = vmatmul.mubr.msk.bf16.vlgmr.msra.gmra.mrb[24].mxu1 %vm534_vm0, %v1844_v33 }
 0x6f1   : > { %2486 = vmatprep.mubr.msk.bf16.mxu1 %vm2574_vm1, %v2573_v8  ;;  %2471 = vmatpush3.bf16.msra.mxu1 %v2526_v3 }
 0x6f2   : > { %2472 = vmatprep.subr.bf16.mxu1 %v2573_v8 }
 0x6f5   : > { %2473 = vmatpush3.bf16.msra.mxu1 %v2527_v21 }
 0x6f6   : > { %2474 = vmatprep.subr.bf16.mxu1 %v2573_v8 }
 0x6f9   : > { %2475 = vmatpush3.bf16.msra.mxu1 %v2528_v16 }
 0x6fa   : > { %2476 = vmatprep.subr.bf16.mxu1 %v2573_v8 }
 0x6fd   : > { %2477 = vmatpush3.bf16.msra.mxu1 %v2529_v36 }
 0x6fe   : > { %2478 = vmatprep.subr.bf16.mxu1 %v2573_v8 }
 0x701   : > { %2479 = vmatpush3.bf16.msra.mxu1 %v2530_v17 }
 0x702   : > { %2480 = vmatprep.subr.bf16.mxu1 %v2573_v8 }
 0x705   : > { %2481 = vmatpush3.bf16.msra.mxu1 %v2531_v18 }
 0x706   : > { %2482 = vmatprep.subr.bf16.mxu1 %v2573_v8 }
 0x709   : > { %2483 = vmatpush3.bf16.msra.mxu1 %v2532_v19 }
 0x70a   : > { %2484 = vmatprep.subr.bf16.mxu1 %v2573_v8 }
 0x70d   : > { %2485 = vmatpush3.bf16.msra.mxu1 %v2533_v20 }
 0x7c3   : > { %v1905_v52 = vpop.f32.mrb[24].mxu1 }
 0x7c4   : > { %v1906_v27 = vadd.f32 %v2317_v38, %v1905_v52  ;;  %v2448_v32 = vpop.f32.mrb[25].mxu1 }
 0x7c5   : > { %v1908_v53 = vpop.f32.mrb[26].mxu1 }
 0x7c6   : > { %v1911_v55 = vadd.f32 %v2564_v54, %v1906_v27  ;;  %v2449_v62 = vpop.f32.mrb[27].mxu1 }
 0x7c8   : > { %v1949_v63 = vadd.f32 %v2323_v59, %v1911_v55  ;;  %v1914_v34 = vsel %vm534_vm0, %v1911_v55, 0.0 }
 0x7c9   : > { %1915 = vadd.xlane.f32.xlu1 %v1914_v34 }
 0x7ca   : > { %1950 = vst.msk [vmem:[%s3010_s28] sm:$0xff] %vm534_vm0, %v1949_v63 }
 0x7d1   : > { %v2106_v53 = vld [vmem:[%s3010_s28] sm:$0xff] }
 0x7da   : > { %639 = vrot.lane.b32.xlu1 %v2345_v35, %s2583_s26 }
 0x856   : > { %v1916_v46 = vpop.xlane.xlu1 %1915 }
 0x857   : > { %v1917_v48 = vmul.f32 0.03125, %v1916_v46 }
 0x859   : > { %v1918_v49 = vsub.f32 %v1911_v55, %v1917_v48 }
 0x85a   : > { %v640_v50 = vpop.permute.xlu1 %639 }
 0x85b   : > { %2300 = vst.msk [vmem:[%s529_s27 + $0x4] sm:$0xf] %vm637_vm9, %v640_v50  ;;  %v1919_v51 = vmul.f32 %v1918_v49, %v1918_v49 }
 0x85d   : > { %v1920_v28 = vsel %vm534_vm0, %v1919_v51, 0.0 }
 0x85e   : > { %1921 = vadd.xlane.f32.xlu0 %v1920_v28 }
 0x874   : > { %634 = vrot.lane.b32.xlu0 %v2345_v35, %s2578_s24 }
 0x8eb   : > { %v1922_v4 = vpop.xlane.xlu0 %1921 }
 0x8ec   : > { %v1923_v5 = vmul.f32 0.03125, %v1922_v4 }
 0x8ee   : > { %v1924_v6 = vadd.f32 1e-05, %v1923_v5 }
 0x8ef   : > { %v635_v7 = vpop.permute.xlu0 %634 }
 0x8f0   : > { %2560 = vrsqrt.f32 %v1924_v6  ;;  %638 = vst.msk [vmem:[%s529_s27] sm:$0xf] %vm637_vm9, %v635_v7 }
 0x8fa   : > { %v2561_v9 = vpop.eup %2560 }
 0x8fb   : > { %v1926_v11 = vmul.f32 %v2561_v9, %v1918_v49 }
 0x8fd   : > { %v1933_v13 = vmul.f32 %v2321_v10, %v1926_v11 }
 0x8ff   : > { %v1940_v14 = vadd.f32 %v2322_v12, %v1933_v13 }
 0x901   : > { %v1941_v15 = vpack.c.bf16 %v1940_v14, %v1940_v14 }
 0x903   : > { %2467 = vmatmul.mubr.msk.bf16.vlgmr.msra.gmra.mrb[12].mxu0 %vm534_vm0, %v1941_v15 }
 0x9d6   : > { %v2075_v24 = vpop.f32.mrb[12].mxu0 }
 0x9d7   : > { %v2076_v41 = vadd.f32 %v2324_v44, %v2075_v24  ;;  %v2468_v25 = vpop.f32.mrb[13].mxu0 }
 0x9d8   : > { %v2078_v26 = vpop.f32.mrb[14].mxu0 }
 0x9d9   : > { %v2082_v23 = vmul.f32 %v2076_v41, %v2076_v41  ;;  %v2469_v30 = vpop.f32.mrb[15].mxu0  ;;  %v2081_v8 = vmul.f32 0.5, %v2076_v41 }
 0x9db   : > { %v2083_v47 = vmul.f32 %v2082_v23, %v2076_v41 }
 0x9dd   : > { %v2084_v31 = vmul.f32 0.044715, %v2083_v47 }
 0x9df   : > { %v2085_v33 = vadd.f32 %v2084_v31, %v2076_v41 }
 0x9e1   : > { %v2086_v38 = vmul.f32 0.7978846, %v2085_v33 }
 0x9e3   : > { %2562 = vtanh.f32 %v2086_v38 }
 0x9ed   : > { %v2563_v52 = vpop.eup %2562 }
 0x9ee   : > { %v2088_v27 = vadd.f32 1.0, %v2563_v52 }
 0x9f0   : > { %v2089_v32 = vmul.f32 %v2088_v27, %v2081_v8 }
 0x9f2   : > { %v2107_v59 = vpack.c.bf16 %v2089_v32, %v2089_v32 }
 0x9f4   : > { %2487 = vmatmul.mubr.bf16.vlgmr.msra.gmra.mrb[28].mxu1 %v2107_v59 }
 0xac7   : > { %v2190_v54 = vpop.f32.mrb[28].mxu1 }
 0xac8   : > { %v2196_v55 = vadd.f32 %v2190_v54, %v2106_v53  ;;  %v2488_v62 = vpop.f32.mrb[29].mxu1 }
 0xac9   : > { %v2193_v63 = vpop.f32.mrb[30].mxu1 }
 0xaca   : > { %2197 = vst.msk [vmem:[%s3010_s28] sm:$0xff] %vm534_vm0, %v2196_v55  ;;  %v2489_v34 = vpop.f32.mrb[31].mxu1 }
 0xacb PF: > { %s27_s21 = sadd.s32 1, %s2571_s21  }
 0xacc   : > { %p24_p4 = scmp.ge.s32.totalorder %s27_s21, 4  }
 0xace   :  { %26 = sbr.rel (!%p24_p4) target bundleno = 2 (0x2), region = 123 }

</bundles_post_ra>
